<compile_context>
chip_gen: v5e
topology: v5e:2x2
jax: 0.10.0
libtpu: 0.0.40
codegen_flags: <defaults>
</compile_context>

<pallas_src>
import jax
import jax.numpy as jnp
from jax.experimental import pallas as pl
from jax.experimental.pallas import tpu as pltpu

D = 8            # number of pts_linears
W = 256          # hidden width
INPUT_CH = 3
INPUT_CH_VIEWS = 3
OUTPUT_CH = 4
SKIP = 4         # skips = [4]

IN_PAD = 8       # padded input-feature width (>= input_ch + input_ch_views)
OUT_PAD = 128    # padded (lane-dense) output width
TM_MAX = 1024    # max rows per grid step
TM_MIN = 256     # fills the 256-row MXU on v6e/v7x


def _round_up(x, m):
    return ((x + m - 1) // m) * m


def _pick_tm(n):
    """Largest tile that still leaves >=2 grid steps (v7x has 2 TCs)."""
    tm = min(TM_MAX, _round_up(pl.cdiv(n, 2), TM_MIN))
    return max(tm, TM_MIN)


def _epilogue_dtype():
    """bf16 bias+ReLU epilogue only where the VPU has native bf16 (v6e/v7x)."""
    try:
        kind = jax.devices()[0].device_kind.lower()
    except Exception:
        return jnp.float32
    for tag in ("v2", "v3", "v4", "v5"):
        if tag in kind:
            return jnp.float32
    return jnp.bfloat16


def make_nerf_kernel(ep_dtype):
    def nerf_kernel(x_ref, w0_ref, b0_ref, w5a_ref, wh_ref, bh_ref,
                    wout_ref, bout_ref, o_ref):
        # x_ref: (TM, IN_PAD) -- cols 0..2 are input_pts, cols 3..5 input_views
        # (views unused when use_viewdirs=False; corresponding weight rows are 0).
        x = x_ref[...].astype(jnp.bfloat16)

        # layer 0: Linear(input_ch, W) + ReLU
        z = jnp.dot(x, w0_ref[...], preferred_element_type=jnp.float32)
        h = jnp.maximum(z.astype(ep_dtype) + b0_ref[...].astype(ep_dtype), 0.0)
        h = h.astype(jnp.bfloat16)

        # layers 1..7: Linear(W, W) (+ ReLU); layer SKIP+1 additionally takes
        # the skip input cat([input_pts, h]) -> decomposed as h@W5[3:] + pts@W5[:3]
        for layer in range(1, D):
            z = jnp.dot(h, wh_ref[layer - 1], preferred_element_type=jnp.float32)
            if layer == SKIP + 1:
                # Recompute the pts projection here (cheap K=8 matmul) instead
                # of carrying a (TM, W) f32 value live across layers 1..4.
                z = z + jnp.dot(x, w5a_ref[...],
                                preferred_element_type=jnp.float32)
            z = z.astype(ep_dtype) + bh_ref[layer - 1].astype(ep_dtype)
            h = jnp.maximum(z, 0.0).astype(jnp.bfloat16)

        # output_linear: Linear(W, output_ch), no activation (padded to OUT_PAD)
        out = jnp.dot(h, wout_ref[...],
                      preferred_element_type=jnp.float32) + bout_ref[...]
        o_ref[...] = out.astype(o_ref.dtype)

    return nerf_kernel


def nerf_forward_pallas(x, params, return_padded=False):
    """x: (N, input_ch + input_ch_views) float32.

    Returns (N, output_ch) f32, or the padded (cdiv(N,TM)*TM, OUT_PAD) slab if
    return_padded=True (avoids a second HBM pass for the un-pad slice).
    NOTE: padded tail rows (>= N) of the slab are NOT zero (biases propagate
    through the ReLU chain); consumers of the padded slab must mask them.
    """
    assert x.shape[1] == INPUT_CH + INPUT_CH_VIEWS, \
        "kernel hard-codes use_viewdirs=False with input_ch=3, input_ch_views=3"

    N = x.shape[0]
    tm = _pick_tm(N)
    n_tiles = pl.cdiv(N, tm)
    n_pad = n_tiles * tm

    # pad rows to a TM multiple and features 6 -> IN_PAD with zeros (glue)
    x_pad = jnp.zeros((n_pad, IN_PAD), jnp.float32).at[:N, : x.shape[1]].set(x)

    (w0, b0, w5a, wh, bh, wout, bout) = params

    flops = 2 * n_pad * (2 * IN_PAD * W + (D - 1) * W * W + W * OUT_PAD)
    bytes_accessed = (
        x_pad.size * 4 + n_pad * OUT_PAD * 4
        + (w0.size + w5a.size + wh.size + wout.size) * 2      # bf16 weights
        + (b0.size + bh.size + bout.size) * 4)                # f32 biases

    out_pad = pl.pallas_call(
        make_nerf_kernel(_epilogue_dtype()),
        out_shape=jax.ShapeDtypeStruct((n_pad, OUT_PAD), jnp.float32),
        grid_spec=pltpu.PrefetchScalarGridSpec(
            num_scalar_prefetch=0,
            grid=(n_tiles,),
            in_specs=[
                pl.BlockSpec((tm, IN_PAD), lambda i: (i, 0)),          # x
                pl.BlockSpec((IN_PAD, W), lambda i: (0, 0)),           # w0
                pl.BlockSpec((1, W), lambda i: (0, 0)),                # b0
                pl.BlockSpec((IN_PAD, W), lambda i: (0, 0)),           # w5a
                pl.BlockSpec((D - 1, W, W), lambda i: (0, 0, 0)),      # wh
                pl.BlockSpec((D - 1, 1, W), lambda i: (0, 0, 0)),      # bh
                pl.BlockSpec((W, OUT_PAD), lambda i: (0, 0)),          # wout
                pl.BlockSpec((1, OUT_PAD), lambda i: (0, 0)),          # bout
            ],
            out_specs=pl.BlockSpec((tm, OUT_PAD), lambda i: (i, 0)),
        ),
        compiler_params=pltpu.CompilerParams(
            dimension_semantics=("parallel",),
            vmem_limit_bytes=32 * 1024 * 1024),
        cost_estimate=pl.CostEstimate(
            flops=flops, transcendentals=0, bytes_accessed=bytes_accessed),
    )(x_pad, w0, b0, w5a, wh, bh, wout, bout)

    if return_padded:
        return out_pad
    return out_pad[:N, :OUTPUT_CH]


def init_params(key):
    """Deterministic init mirroring nn.Linear shapes (stored as (in, out)).

    Weights are stored in bf16 (MXU operands); biases stay f32.
    """
    def linear(key, fan_in, fan_out):
        kw, kb = jax.random.split(key)
        bound = 1.0 / jnp.sqrt(fan_in)
        w = jax.random.uniform(kw, (fan_in, fan_out), jnp.float32, -bound, bound)
        b = jax.random.uniform(kb, (fan_out,), jnp.float32, -bound, bound)
        return w, b

    keys = jax.random.split(key, D + 1)

    # layer 0: Linear(input_ch, W), rows padded 3 -> IN_PAD with zeros
    w0_raw, b0_raw = linear(keys[0], INPUT_CH, W)
    w0 = jnp.zeros((IN_PAD, W), jnp.float32).at[:INPUT_CH].set(w0_raw)
    b0 = b0_raw[None, :]

    # layers 1..7 (layer SKIP+1 is Linear(W + input_ch, W); concat order in
    # the forward is [input_pts, h], so its first INPUT_CH rows multiply pts)
    wh_list, bh_list = [], []
    w5a = jnp.zeros((IN_PAD, W), jnp.float32)
    for layer in range(1, D):
        fan_in = W + INPUT_CH if layer == SKIP + 1 else W
        w_full, b_raw = linear(keys[layer], fan_in, W)
        if layer == SKIP + 1:
            w5a = w5a.at[:INPUT_CH].set(w_full[:INPUT_CH])
            w_h = w_full[INPUT_CH:]
        else:
            w_h = w_full
        wh_list.append(w_h)
        bh_list.append(b_raw[None, :])
    wh = jnp.stack(wh_list, axis=0)                 # (D-1, W, W)
    bh = jnp.stack(bh_list, axis=0)                 # (D-1, 1, W)

    # output_linear: Linear(W, output_ch), zero-pad out cols to OUT_PAD
    wout_raw, bout_raw = linear(keys[D], W, OUTPUT_CH)
    wout = jnp.zeros((W, OUT_PAD), jnp.float32).at[:, :OUTPUT_CH].set(wout_raw)
    bout = jnp.zeros((1, OUT_PAD), jnp.float32).at[0, :OUTPUT_CH].set(bout_raw)

    return (w0.astype(jnp.bfloat16), b0,
            w5a.astype(jnp.bfloat16),
            wh.astype(jnp.bfloat16), bh,
            wout.astype(jnp.bfloat16), bout)


def nerf_forward_ref(x, params):
    """Pure-JAX f32 reference with the exact PyTorch forward semantics
    (uses the same bf16-rounded weights, cast back to f32)."""
    (w0, b0, w5a, wh, bh, wout, bout) = params
    w0_f = w0.astype(jnp.float32)[:INPUT_CH]
    w5a_f = w5a.astype(jnp.float32)[:INPUT_CH]
    wh_f = wh.astype(jnp.float32)
    wout_f = wout.astype(jnp.float32)[:, :OUTPUT_CH]

    pts = x[:, :INPUT_CH]
    h = jnp.maximum(pts @ w0_f + b0[0], 0.0)
    for layer in range(1, D):
        if layer == SKIP + 1:
            # PyTorch: after relu of layer SKIP, h = cat([pts, h])
            h_cat = jnp.concatenate([pts, h], axis=-1)
            w_full = jnp.concatenate([w5a_f, wh_f[layer - 1]], axis=0)
            h = jnp.maximum(h_cat @ w_full + bh[layer - 1, 0], 0.0)
        else:
            h = jnp.maximum(h @ wh_f[layer - 1] + bh[layer - 1, 0], 0.0)
    return h @ wout_f + bout[0, :OUTPUT_CH]


if __name__ == "__main__":
    key = jax.random.PRNGKey(0)
    k_param, k_x = jax.random.split(key)

    params = init_params(k_param)

    # deliberately NOT a multiple of the tile size: exercises the cdiv grid +
    # padded last tile, and yields grid=2 (both v7x TensorCores used).
    N = 500
    x = jax.random.normal(k_x, (N, INPUT_CH + INPUT_CH_VIEWS), jnp.float32)

    out = nerf_forward_pallas(x, params)
    out = jax.block_until_ready(out)

    ref = nerf_forward_ref(x, params)
    assert out.shape == (N, OUTPUT_CH)
    # bf16 MXU operands (+ bf16 epilogue on v6e/v7x) with f32 accumulation.
    assert jnp.allclose(out, ref, atol=2e-2, rtol=2e-2), \
        float(jnp.max(jnp.abs(out - ref)))

    print("KERNEL_OK")
</pallas_src>

<mosaic_0001>
module attributes {stable_mosaic.version = 11 : i64} {
  func.func @nerf_kernel(%arg0: i32, %arg1: memref<256x8xf32, #tpu.memory_space<vmem>>, %arg2: memref<8x256xbf16, #tpu.memory_space<vmem>>, %arg3: memref<1x256xf32, #tpu.memory_space<vmem>>, %arg4: memref<8x256xbf16, #tpu.memory_space<vmem>>, %arg5: memref<7x256x256xbf16, #tpu.memory_space<vmem>>, %arg6: memref<7x1x256xf32, #tpu.memory_space<vmem>>, %arg7: memref<256x128xbf16, #tpu.memory_space<vmem>>, %arg8: memref<1x128xf32, #tpu.memory_space<vmem>>, %arg9: memref<256x128xf32, #tpu.memory_space<vmem>>) attributes {dimension_semantics = [#tpu.dimension_semantics<parallel>], iteration_bounds = array<i64: 2>, scalar_prefetch = 0 : i64, scratch_operands = 0 : i64, tpu.core_type = #tpu.core_type<tc>, window_params = [{transform_indices = @transform_0, window_bounds = array<i64: 256, 8>}, {pipeline_mode = #tpu.pipeline_mode<synchronous>, transform_indices = @transform_1, window_bounds = array<i64: 8, 256>}, {pipeline_mode = #tpu.pipeline_mode<synchronous>, transform_indices = @transform_2, window_bounds = array<i64: 1, 256>}, {pipeline_mode = #tpu.pipeline_mode<synchronous>, transform_indices = @transform_3, window_bounds = array<i64: 8, 256>}, {pipeline_mode = #tpu.pipeline_mode<synchronous>, transform_indices = @transform_4, window_bounds = array<i64: 7, 256, 256>}, {pipeline_mode = #tpu.pipeline_mode<synchronous>, transform_indices = @transform_5, window_bounds = array<i64: 7, 1, 256>}, {pipeline_mode = #tpu.pipeline_mode<synchronous>, transform_indices = @transform_6, window_bounds = array<i64: 256, 128>}, {pipeline_mode = #tpu.pipeline_mode<synchronous>, transform_indices = @transform_7, window_bounds = array<i64: 1, 128>}, {transform_indices = @transform_8, window_bounds = array<i64: 256, 128>}]} {
    %c0 = arith.constant 0 : index
    %c0_0 = arith.constant 0 : index
    %0 = vector.load %arg1[%c0, %c0_0] : memref<256x8xf32, #tpu.memory_space<vmem>>, vector<256x8xf32>
    %1 = arith.truncf %0 : vector<256x8xf32> to vector<256x8xbf16>
    %c0_1 = arith.constant 0 : index
    %c0_2 = arith.constant 0 : index
    %2 = vector.load %arg2[%c0_1, %c0_2] : memref<8x256xbf16, #tpu.memory_space<vmem>>, vector<8x256xbf16>
    %cst = arith.constant dense<0.000000e+00> : vector<256x256xf32>
    %3 = tpu.matmul %1, %2, %cst {dimension_numbers = #tpu.dot_dimension_numbers<[1], [0], [0], [1], [0, 0, 1, 1], [], []>} : vector<256x8xbf16>, vector<8x256xbf16>, vector<256x256xf32> -> vector<256x256xf32>
    %4 = arith.truncf %3 : vector<256x256xf32> to vector<256x256xbf16>
    %c0_3 = arith.constant 0 : index
    %c0_4 = arith.constant 0 : index
    %5 = vector.load %arg3[%c0_3, %c0_4] : memref<1x256xf32, #tpu.memory_space<vmem>>, vector<1x256xf32>
    %6 = arith.truncf %5 : vector<1x256xf32> to vector<1x256xbf16>
    %7 = vector.broadcast %6 : vector<1x256xbf16> to vector<256x256xbf16>
    %8 = arith.addf %4, %7 : vector<256x256xbf16>
    %cst_5 = arith.constant 0.000000e+00 : bf16
    %9 = vector.broadcast %cst_5 : bf16 to vector<256x256xbf16>
    %10 = arith.maximumf %8, %9 : vector<256x256xbf16>
    %c0_6 = arith.constant 0 : index
    %c0_7 = arith.constant 0 : index
    %c0_8 = arith.constant 0 : index
    %11 = vector.load %arg5[%c0_6, %c0_7, %c0_8] : memref<7x256x256xbf16, #tpu.memory_space<vmem>>, vector<1x256x256xbf16>
    %12 = vector.shape_cast %11 : vector<1x256x256xbf16> to vector<256x256xbf16>
    %cst_9 = arith.constant dense<0.000000e+00> : vector<256x256xf32>
    %13 = tpu.matmul %10, %12, %cst_9 {dimension_numbers = #tpu.dot_dimension_numbers<[1], [0], [0], [1], [0, 0, 1, 1], [], []>} : vector<256x256xbf16>, vector<256x256xbf16>, vector<256x256xf32> -> vector<256x256xf32>
    %14 = arith.truncf %13 : vector<256x256xf32> to vector<256x256xbf16>
    %c0_10 = arith.constant 0 : index
    %c0_11 = arith.constant 0 : index
    %c0_12 = arith.constant 0 : index
    %15 = vector.load %arg6[%c0_10, %c0_11, %c0_12] : memref<7x1x256xf32, #tpu.memory_space<vmem>>, vector<1x1x256xf32>
    %16 = vector.shape_cast %15 : vector<1x1x256xf32> to vector<1x256xf32>
    %17 = arith.truncf %16 : vector<1x256xf32> to vector<1x256xbf16>
    %18 = vector.broadcast %17 : vector<1x256xbf16> to vector<256x256xbf16>
    %19 = arith.addf %14, %18 : vector<256x256xbf16>
    %cst_13 = arith.constant 0.000000e+00 : bf16
    %20 = vector.broadcast %cst_13 : bf16 to vector<256x256xbf16>
    %21 = arith.maximumf %19, %20 : vector<256x256xbf16>
    %c1 = arith.constant 1 : index
    %c0_14 = arith.constant 0 : index
    %c0_15 = arith.constant 0 : index
    %22 = vector.load %arg5[%c1, %c0_14, %c0_15] : memref<7x256x256xbf16, #tpu.memory_space<vmem>>, vector<1x256x256xbf16>
    %23 = vector.shape_cast %22 : vector<1x256x256xbf16> to vector<256x256xbf16>
    %cst_16 = arith.constant dense<0.000000e+00> : vector<256x256xf32>
    %24 = tpu.matmul %21, %23, %cst_16 {dimension_numbers = #tpu.dot_dimension_numbers<[1], [0], [0], [1], [0, 0, 1, 1], [], []>} : vector<256x256xbf16>, vector<256x256xbf16>, vector<256x256xf32> -> vector<256x256xf32>
    %25 = arith.truncf %24 : vector<256x256xf32> to vector<256x256xbf16>
    %c1_17 = arith.constant 1 : index
    %c0_18 = arith.constant 0 : index
    %c0_19 = arith.constant 0 : index
    %26 = vector.load %arg6[%c1_17, %c0_18, %c0_19] : memref<7x1x256xf32, #tpu.memory_space<vmem>>, vector<1x1x256xf32>
    %27 = vector.shape_cast %26 : vector<1x1x256xf32> to vector<1x256xf32>
    %28 = arith.truncf %27 : vector<1x256xf32> to vector<1x256xbf16>
    %29 = vector.broadcast %28 : vector<1x256xbf16> to vector<256x256xbf16>
    %30 = arith.addf %25, %29 : vector<256x256xbf16>
    %cst_20 = arith.constant 0.000000e+00 : bf16
    %31 = vector.broadcast %cst_20 : bf16 to vector<256x256xbf16>
    %32 = arith.maximumf %30, %31 : vector<256x256xbf16>
    %c2 = arith.constant 2 : index
    %c0_21 = arith.constant 0 : index
    %c0_22 = arith.constant 0 : index
    %33 = vector.load %arg5[%c2, %c0_21, %c0_22] : memref<7x256x256xbf16, #tpu.memory_space<vmem>>, vector<1x256x256xbf16>
    %34 = vector.shape_cast %33 : vector<1x256x256xbf16> to vector<256x256xbf16>
    %cst_23 = arith.constant dense<0.000000e+00> : vector<256x256xf32>
    %35 = tpu.matmul %32, %34, %cst_23 {dimension_numbers = #tpu.dot_dimension_numbers<[1], [0], [0], [1], [0, 0, 1, 1], [], []>} : vector<256x256xbf16>, vector<256x256xbf16>, vector<256x256xf32> -> vector<256x256xf32>
    %36 = arith.truncf %35 : vector<256x256xf32> to vector<256x256xbf16>
    %c2_24 = arith.constant 2 : index
    %c0_25 = arith.constant 0 : index
    %c0_26 = arith.constant 0 : index
    %37 = vector.load %arg6[%c2_24, %c0_25, %c0_26] : memref<7x1x256xf32, #tpu.memory_space<vmem>>, vector<1x1x256xf32>
    %38 = vector.shape_cast %37 : vector<1x1x256xf32> to vector<1x256xf32>
    %39 = arith.truncf %38 : vector<1x256xf32> to vector<1x256xbf16>
    %40 = vector.broadcast %39 : vector<1x256xbf16> to vector<256x256xbf16>
    %41 = arith.addf %36, %40 : vector<256x256xbf16>
    %cst_27 = arith.constant 0.000000e+00 : bf16
    %42 = vector.broadcast %cst_27 : bf16 to vector<256x256xbf16>
    %43 = arith.maximumf %41, %42 : vector<256x256xbf16>
    %c3 = arith.constant 3 : index
    %c0_28 = arith.constant 0 : index
    %c0_29 = arith.constant 0 : index
    %44 = vector.load %arg5[%c3, %c0_28, %c0_29] : memref<7x256x256xbf16, #tpu.memory_space<vmem>>, vector<1x256x256xbf16>
    %45 = vector.shape_cast %44 : vector<1x256x256xbf16> to vector<256x256xbf16>
    %cst_30 = arith.constant dense<0.000000e+00> : vector<256x256xf32>
    %46 = tpu.matmul %43, %45, %cst_30 {dimension_numbers = #tpu.dot_dimension_numbers<[1], [0], [0], [1], [0, 0, 1, 1], [], []>} : vector<256x256xbf16>, vector<256x256xbf16>, vector<256x256xf32> -> vector<256x256xf32>
    %47 = arith.truncf %46 : vector<256x256xf32> to vector<256x256xbf16>
    %c3_31 = arith.constant 3 : index
    %c0_32 = arith.constant 0 : index
    %c0_33 = arith.constant 0 : index
    %48 = vector.load %arg6[%c3_31, %c0_32, %c0_33] : memref<7x1x256xf32, #tpu.memory_space<vmem>>, vector<1x1x256xf32>
    %49 = vector.shape_cast %48 : vector<1x1x256xf32> to vector<1x256xf32>
    %50 = arith.truncf %49 : vector<1x256xf32> to vector<1x256xbf16>
    %51 = vector.broadcast %50 : vector<1x256xbf16> to vector<256x256xbf16>
    %52 = arith.addf %47, %51 : vector<256x256xbf16>
    %cst_34 = arith.constant 0.000000e+00 : bf16
    %53 = vector.broadcast %cst_34 : bf16 to vector<256x256xbf16>
    %54 = arith.maximumf %52, %53 : vector<256x256xbf16>
    %c4 = arith.constant 4 : index
    %c0_35 = arith.constant 0 : index
    %c0_36 = arith.constant 0 : index
    %55 = vector.load %arg5[%c4, %c0_35, %c0_36] : memref<7x256x256xbf16, #tpu.memory_space<vmem>>, vector<1x256x256xbf16>
    %56 = vector.shape_cast %55 : vector<1x256x256xbf16> to vector<256x256xbf16>
    %cst_37 = arith.constant dense<0.000000e+00> : vector<256x256xf32>
    %57 = tpu.matmul %54, %56, %cst_37 {dimension_numbers = #tpu.dot_dimension_numbers<[1], [0], [0], [1], [0, 0, 1, 1], [], []>} : vector<256x256xbf16>, vector<256x256xbf16>, vector<256x256xf32> -> vector<256x256xf32>
    %c0_38 = arith.constant 0 : index
    %c0_39 = arith.constant 0 : index
    %58 = vector.load %arg4[%c0_38, %c0_39] : memref<8x256xbf16, #tpu.memory_space<vmem>>, vector<8x256xbf16>
    %cst_40 = arith.constant dense<0.000000e+00> : vector<256x256xf32>
    %59 = tpu.matmul %1, %58, %cst_40 {dimension_numbers = #tpu.dot_dimension_numbers<[1], [0], [0], [1], [0, 0, 1, 1], [], []>} : vector<256x8xbf16>, vector<8x256xbf16>, vector<256x256xf32> -> vector<256x256xf32>
    %60 = arith.addf %57, %59 : vector<256x256xf32>
    %61 = arith.truncf %60 : vector<256x256xf32> to vector<256x256xbf16>
    %c4_41 = arith.constant 4 : index
    %c0_42 = arith.constant 0 : index
    %c0_43 = arith.constant 0 : index
    %62 = vector.load %arg6[%c4_41, %c0_42, %c0_43] : memref<7x1x256xf32, #tpu.memory_space<vmem>>, vector<1x1x256xf32>
    %63 = vector.shape_cast %62 : vector<1x1x256xf32> to vector<1x256xf32>
    %64 = arith.truncf %63 : vector<1x256xf32> to vector<1x256xbf16>
    %65 = vector.broadcast %64 : vector<1x256xbf16> to vector<256x256xbf16>
    %66 = arith.addf %61, %65 : vector<256x256xbf16>
    %cst_44 = arith.constant 0.000000e+00 : bf16
    %67 = vector.broadcast %cst_44 : bf16 to vector<256x256xbf16>
    %68 = arith.maximumf %66, %67 : vector<256x256xbf16>
    %c5 = arith.constant 5 : index
    %c0_45 = arith.constant 0 : index
    %c0_46 = arith.constant 0 : index
    %69 = vector.load %arg5[%c5, %c0_45, %c0_46] : memref<7x256x256xbf16, #tpu.memory_space<vmem>>, vector<1x256x256xbf16>
    %70 = vector.shape_cast %69 : vector<1x256x256xbf16> to vector<256x256xbf16>
    %cst_47 = arith.constant dense<0.000000e+00> : vector<256x256xf32>
    %71 = tpu.matmul %68, %70, %cst_47 {dimension_numbers = #tpu.dot_dimension_numbers<[1], [0], [0], [1], [0, 0, 1, 1], [], []>} : vector<256x256xbf16>, vector<256x256xbf16>, vector<256x256xf32> -> vector<256x256xf32>
    %72 = arith.truncf %71 : vector<256x256xf32> to vector<256x256xbf16>
    %c5_48 = arith.constant 5 : index
    %c0_49 = arith.constant 0 : index
    %c0_50 = arith.constant 0 : index
    %73 = vector.load %arg6[%c5_48, %c0_49, %c0_50] : memref<7x1x256xf32, #tpu.memory_space<vmem>>, vector<1x1x256xf32>
    %74 = vector.shape_cast %73 : vector<1x1x256xf32> to vector<1x256xf32>
    %75 = arith.truncf %74 : vector<1x256xf32> to vector<1x256xbf16>
    %76 = vector.broadcast %75 : vector<1x256xbf16> to vector<256x256xbf16>
    %77 = arith.addf %72, %76 : vector<256x256xbf16>
    %cst_51 = arith.constant 0.000000e+00 : bf16
    %78 = vector.broadcast %cst_51 : bf16 to vector<256x256xbf16>
    %79 = arith.maximumf %77, %78 : vector<256x256xbf16>
    %c6 = arith.constant 6 : index
    %c0_52 = arith.constant 0 : index
    %c0_53 = arith.constant 0 : index
    %80 = vector.load %arg5[%c6, %c0_52, %c0_53] : memref<7x256x256xbf16, #tpu.memory_space<vmem>>, vector<1x256x256xbf16>
    %81 = vector.shape_cast %80 : vector<1x256x256xbf16> to vector<256x256xbf16>
    %cst_54 = arith.constant dense<0.000000e+00> : vector<256x256xf32>
    %82 = tpu.matmul %79, %81, %cst_54 {dimension_numbers = #tpu.dot_dimension_numbers<[1], [0], [0], [1], [0, 0, 1, 1], [], []>} : vector<256x256xbf16>, vector<256x256xbf16>, vector<256x256xf32> -> vector<256x256xf32>
    %83 = arith.truncf %82 : vector<256x256xf32> to vector<256x256xbf16>
    %c6_55 = arith.constant 6 : index
    %c0_56 = arith.constant 0 : index
    %c0_57 = arith.constant 0 : index
    %84 = vector.load %arg6[%c6_55, %c0_56, %c0_57] : memref<7x1x256xf32, #tpu.memory_space<vmem>>, vector<1x1x256xf32>
    %85 = vector.shape_cast %84 : vector<1x1x256xf32> to vector<1x256xf32>
    %86 = arith.truncf %85 : vector<1x256xf32> to vector<1x256xbf16>
    %87 = vector.broadcast %86 : vector<1x256xbf16> to vector<256x256xbf16>
    %88 = arith.addf %83, %87 : vector<256x256xbf16>
    %cst_58 = arith.constant 0.000000e+00 : bf16
    %89 = vector.broadcast %cst_58 : bf16 to vector<256x256xbf16>
    %90 = arith.maximumf %88, %89 : vector<256x256xbf16>
    %c0_59 = arith.constant 0 : index
    %c0_60 = arith.constant 0 : index
    %91 = vector.load %arg7[%c0_59, %c0_60] : memref<256x128xbf16, #tpu.memory_space<vmem>>, vector<256x128xbf16>
    %cst_61 = arith.constant dense<0.000000e+00> : vector<256x128xf32>
    %92 = tpu.matmul %90, %91, %cst_61 {dimension_numbers = #tpu.dot_dimension_numbers<[1], [0], [0], [1], [0, 0, 1, 1], [], []>} : vector<256x256xbf16>, vector<256x128xbf16>, vector<256x128xf32> -> vector<256x128xf32>
    %c0_62 = arith.constant 0 : index
    %c0_63 = arith.constant 0 : index
    %93 = vector.load %arg8[%c0_62, %c0_63] : memref<1x128xf32, #tpu.memory_space<vmem>>, vector<1x128xf32>
    %94 = vector.broadcast %93 : vector<1x128xf32> to vector<256x128xf32>
    %95 = arith.addf %92, %94 : vector<256x128xf32>
    %c0_64 = arith.constant 0 : index
    %c0_65 = arith.constant 0 : index
    %96 = vector.load %arg9[%c0_64, %c0_65] : memref<256x128xf32, #tpu.memory_space<vmem>>, vector<256x128xf32>
    tpu.vector_store %arg9[%c0_64, %c0_65], %95 {strides = array<i32>} : memref<256x128xf32, #tpu.memory_space<vmem>>, vector<256x128xf32>,
    return
  }
  func.func @transform_0(%arg0: i32) -> (i32, i32) {
    %c0_i32 = arith.constant 0 : i32
    %c0_i32_0 = arith.constant 0 : i32
    return %arg0, %c0_i32 : i32, i32
  }
  func.func @transform_1(%arg0: i32) -> (i32, i32) {
    %c0_i32 = arith.constant 0 : i32
    %c0_i32_0 = arith.constant 0 : i32
    %c0_i32_1 = arith.constant 0 : i32
    return %c0_i32, %c0_i32_0 : i32, i32
  }
  func.func @transform_2(%arg0: i32) -> (i32, i32) {
    %c0_i32 = arith.constant 0 : i32
    %c0_i32_0 = arith.constant 0 : i32
    %c0_i32_1 = arith.constant 0 : i32
    return %c0_i32, %c0_i32_0 : i32, i32
  }
  func.func @transform_3(%arg0: i32) -> (i32, i32) {
    %c0_i32 = arith.constant 0 : i32
    %c0_i32_0 = arith.constant 0 : i32
    %c0_i32_1 = arith.constant 0 : i32
    return %c0_i32, %c0_i32_0 : i32, i32
  }
  func.func @transform_4(%arg0: i32) -> (i32, i32, i32) {
    %c0_i32 = arith.constant 0 : i32
    %c0_i32_0 = arith.constant 0 : i32
    %c0_i32_1 = arith.constant 0 : i32
    %c0_i32_2 = arith.constant 0 : i32
    return %c0_i32, %c0_i32_0, %c0_i32_1 : i32, i32, i32
  }
  func.func @transform_5(%arg0: i32) -> (i32, i32, i32) {
    %c0_i32 = arith.constant 0 : i32
    %c0_i32_0 = arith.constant 0 : i32
    %c0_i32_1 = arith.constant 0 : i32
    %c0_i32_2 = arith.constant 0 : i32
    return %c0_i32, %c0_i32_0, %c0_i32_1 : i32, i32, i32
  }
  func.func @transform_6(%arg0: i32) -> (i32, i32) {
    %c0_i32 = arith.constant 0 : i32
    %c0_i32_0 = arith.constant 0 : i32
    %c0_i32_1 = arith.constant 0 : i32
    return %c0_i32, %c0_i32_0 : i32, i32
  }
  func.func @transform_7(%arg0: i32) -> (i32, i32) {
    %c0_i32 = arith.constant 0 : i32
    %c0_i32_0 = arith.constant 0 : i32
    %c0_i32_1 = arith.constant 0 : i32
    return %c0_i32, %c0_i32_0 : i32, i32
  }
  func.func @transform_8(%arg0: i32) -> (i32, i32) {
    %c0_i32 = arith.constant 0 : i32
    %c0_i32_0 = arith.constant 0 : i32
    return %arg0, %c0_i32 : i32, i32
  }
}

</mosaic_0001>

<bundles_post_ra>
// kernel: tpu_custom_call.1
= control target key start
LH: loop header
LB: loop body
LE: loop exit
PB: predicated region body
PF: predicated region fallthrough
CT: control target
= control target key end

     0   :  { %13 = vsyncpa [#allocation3], 0  ;;  %s11889_s0 = inlined_call_operand.vmem [shape: f32[512,8], index: 0, kind: input, shape index: {}]   ;;  %s11890_s1 = inlined_call_operand.vmem [shape: bf16[8,256], index: 1, kind: input, shape index: {}]   ;;  %s11891_s2 = inlined_call_operand.vmem [shape: f32[1,256], index: 2, kind: input, shape index: {}]   ;;  %s11892_s3 = inlined_call_operand.vmem [shape: bf16[8,256], index: 3, kind: input, shape index: {}]   ;;  %s11893_s4 = inlined_call_operand.hbm [shape: bf16[7,256,256], index: 4, kind: input, shape index: {}]   ;;  %s11894_s5 = inlined_call_operand.vmem [shape: f32[7,1,256], index: 5, kind: input, shape index: {}]   ;;  %s11895_s6 = inlined_call_operand.vmem [shape: bf16[256,128], index: 6, kind: input, shape index: {}]   ;;  %s11896_s7 = inlined_call_operand.vmem [shape: f32[1,128], index: 7, kind: input, shape index: {}]   ;;  %s11897_s8 = inlined_call_operand.hbm [shape: f32[512,128], index: 8, kind: output, shape index: {}]  }
   0x1   :  { %14 = vsyncpa [#allocation4], 0 }
   0x2   :  { %16 = vsyncpa [#allocation4 + $0x1], 0  ;;  %s9574_s27 = smov 0   ;;  %s9576_s28 = smov 0  }
   0x3   :  { %s9578_s29 = smov 0   ;;  %s9580_s30 = smov 0  }
   0x4 LB: > { %s9595_s9 = sadd.s32 4294967295, %s9522_s30   ;;  %s8075_s10 = sadd.s32 4294967294, %s9522_s30   ;;  %s9522_s30 = sphi %s9580_s30, %s12041_s30   ;;  %s9518_s29 = sphi %s9578_s29, %s12040_s29   ;;  %s9514_s28 = sphi %s9576_s28, %s12039_s28   ;;  %s9510_s27 = sphi %s9574_s27, %s12038_s27  }
   0x5   : > { %s9599_s11 = sadd.s32 1, %s9522_s30   ;;  %s202_s12 = sadd.s32 1, %s9518_s29 }
   0x6   : > { %s199_s13 = ssub.s32 %s9522_s30, %s9599_s11  ;;  %p212_p0 = scmp.ne.s32.totalorder %s9518_s29, %s9514_s28 }
   0x7   : > { %p200_p1 = scmp.eq.s32.totalorder %s199_s13, 0  ;;  %p213_p2 = scmp.eq.s32.totalorder %s9595_s9, 1 }
   0x8   : > { %p218_p3 = scmp.ne.s32.totalorder %s9514_s28, %s9510_s27  ;;  %p219_p4 = scmp.eq.s32.totalorder %s8075_s10, 1 }
   0x9   : > { %s9610_s14 = scalar_select %p200_p1, %s9518_s29, %s202_s12  }
   0xa   : > { %p9612_p5 = por %p213_p2, %p212_p0  ;;  %p9616_p6 = por %p219_p4, %p218_p3 }
   0xb   : > { %p8076_p7 = scmp.ge.s32.totalorder %s9522_s30, 1  ;;  %p226_p8 = scmp.lt.s32.totalorder %s9522_s30, 3 }
   0xc   : > { %p9384_p9 = scmp.eq.s32.totalorder %s9595_s9, 0  ;;  %s246_s19 = sshll.u32 %s11893_s4, 4  ;;  %s247_s19 = int_to_ptr.hbm [resolvable:$true] %s246_s19 }
   0xd   : > { %p227_p10 = pnand %p8076_p7, %p226_p8  ;;  %s9524_s20 = smov [#allocation2]  }
   0xe   : > { %s248_s21 = sshll.u32 %s9524_s20, 4  ;;  %s9525_s22 = smov 128   ;;  %s249_s21 = int_to_ptr.vmem [resolvable:$true] %s248_s21 }
   0xf   : > { %p9376_p11 = pneg %p227_p10  ;;  %s9526_s23 = smov 8  }
  0x10   : > { %282 = sbr.rel (%p227_p10) target bundleno = 2519 (0x9d7), region = 52 }
  0x11   : > { %p9377_p12 = pnand %p9384_p9, %p9376_p11 }
  0x13   : > { %9379 = dma.hbm_to_vmem [thread:$0]  (!%p9377_p12), %s247_s19, 28672, %s249_s21, [#allocation3], %s9525_s22, %s9525_s22, %s9526_s23  }
  0x15   : > { %9501 = dma.done.wait (%p9384_p9), [#allocation3], 28672  }
  0x16   : > { %9503 = vsyncadd (%p9384_p9), [#allocation3], 4294938624  ;;  %s8082_s24 = sshll.u32 %s9595_s9, 5  ;;  %v373_v0 = vld [vmem:[%s11890_s1] sm:$0xff]  ;;  %vm428_vm0 = vcmask 1043456   ;;  %vm379_vm1 = vcmask 64512  }
  0x17   : > { %p318_p13 = scmp.lt.s32.totalorder %s8082_s24, 63  ;;  %v375_v1 = vunpack.c.l.b16 %v373_v0  ;;  %v376_v2 = vunpack.c.h.b16 %v373_v0  ;;  %v8174_v16 = vld [vmem:[#allocation2 + $0x70] sm:$0xf]  ;;  %v9134_v17 = vld [vmem:[#allocation2 + $0x74] sm:$0xf0]  ;;  %s314_s18 = sand.u32 1, %s9514_s28  }
  0x18   : > { %v8238_v18 = vld [vmem:[#allocation2 + $0xf0] sm:$0xf]  ;;  %v8175_v19 = vor.u32 %v9134_v17, %v8174_v16  ;;  %v9150_v20 = vld [vmem:[#allocation2 + $0xf4] sm:$0xf0]  ;;  %v8166_v22 = vld [vmem:[#allocation2 + $0x60] sm:$0xf] }
  0x19   : > { %s12043_s24 = smov (!%p318_p13, %s8082_s24), 63  ;;  %v377_v7 = vpack.c.b16 %v375_v1, %v375_v1  ;;  %v378_v8 = vpack.c.b16 %v376_v2, %v376_v2  ;;  %v8239_v21 = vor.u32 %v9150_v20, %v8238_v18  ;;  %v9132_v23 = vld [vmem:[#allocation2 + $0x64] sm:$0xf0]  ;;  %v8230_v31 = vld [vmem:[#allocation2 + $0xe0] sm:$0xf]  ;;  %s8081_s21 = sshll.u32 %s314_s18, 8 }
  0x1a   : > { %s8083_s25 = sshll.u32 %s12043_s24, 3  ;;  %v8167_v24 = vor.u32 %v9132_v23, %v8166_v22  ;;  %v9148_v32 = vld [vmem:[#allocation2 + $0xe4] sm:$0xf0]  ;;  %v8158_v34 = vld [vmem:[#allocation2 + $0x50] sm:$0xf]  ;;  %s11749_s22 = scalar_lea.vmem [#allocation5], %s8081_s21 }
  0x1b   : > { %s9636_s12 = scalar_lea.vmem %s11889_s0, %s8083_s25  ;;  %v430_v11 = vsel %vm428_vm0, %v377_v7, 0  ;;  %v433_v12 = vsel %vm428_vm0, %v378_v8, 0  ;;  %v8231_v33 = vor.u32 %v9148_v32, %v8230_v31  ;;  %v9130_v35 = vld [vmem:[#allocation2 + $0x54] sm:$0xf0]  ;;  %v8222_v43 = vld [vmem:[#allocation2 + $0xd0] sm:$0xf] }
  0x1c   : > { %v325_v3 = vld [vmem:[%s9636_s12] sm:$0xff]  ;;  %v326_v4 = vld [vmem:[%s9636_s12 + $0x8] sm:$0xff]  ;;  %v343_v9 = vld [vmem:[%s9636_s12 + $0x90] sm:$0xff]  ;;  %442 = vmatpush.bf16.msra.mxu0 %v430_v11  ;;  %531 = vmatpush.bf16.msra.mxu1 %v433_v12  ;;  %v8159_v36 = vor.u32 %v9130_v35, %v8158_v34  ;;  %s9359_s23 = sshll.u32 %s9595_s9, 8  ;;  %s7998_s10 = sshll.u32 %s11749_s22, 4  ;;  %s7999_s10 = int_to_ptr.vmem [resolvable:$true] %s7998_s10 }
  0x1d   : > { %v341_v5 = vld [vmem:[%s9636_s12 + $0x80] sm:$0xff]  ;;  %v342_v6 = vld [vmem:[%s9636_s12 + $0x88] sm:$0xff]  ;;  %v344_v10 = vld [vmem:[%s9636_s12 + $0x98] sm:$0xff]  ;;  %v9649_v13 = vpack.c.bf16 %v326_v4, %v325_v3  ;;  %9361 = vmatpush.bf16.msra.mxu3 %v433_v12  ;;  %9360 = vmatpush.bf16.msra.mxu2 %v430_v11  ;;  %s7997_s26 = scalar_lea.hbm %s11897_s8, %s9359_s23  ;;  %s7986_s13 = scalar_lea.sflag [#allocation4], %s314_s18 }
  0x1e   : > { %v9651_v14 = vpack.c.bf16 %v342_v6, %v341_v5  ;;  %v9653_v15 = vpack.c.bf16 %v344_v10, %v343_v9  ;;  %v327_v25 = vld [vmem:[%s9636_s12 + $0x10] sm:$0xff]  ;;  %v328_v26 = vld [vmem:[%s9636_s12 + $0x18] sm:$0xff]  ;;  %v345_v27 = vld [vmem:[%s9636_s12 + $0xa0] sm:$0xff]  ;;  %s9476_s21 = scalar_lea.hbm %s11897_s8, 512 }
  0x1f   : > { %8084 = vmatmul.msk.bf16.vlgmr.msra.gmra.mxu0 %vm379_vm1, %v9649_v13  ;;  %8100 = vmatmul.msk.bf16.vlgmr.msra.gmra.mxu1 %vm379_vm1, %v9649_v13  ;;  %v346_v28 = vld [vmem:[%s9636_s12 + $0xa8] sm:$0xff]  ;;  %v9667_v29 = vpack.c.bf16 %v328_v26, %v327_v25  ;;  %v329_v37 = vld [vmem:[%s9636_s12 + $0x20] sm:$0xff]  ;;  %v347_v39 = vld [vmem:[%s9636_s12 + $0xb0] sm:$0xff] }
  0x20   : > { %8108 = vmatmul.msk.bf16.vlgmr.msra.gmra.mxu3 %vm379_vm1, %v9651_v14  ;;  %8093 = vmatmul.msk.bf16.vlgmr.msra.gmra.mxu2 %vm379_vm1, %v9653_v15  ;;  %v9669_v30 = vpack.c.bf16 %v346_v28, %v345_v27  ;;  %v330_v38 = vld [vmem:[%s9636_s12 + $0x28] sm:$0xff]  ;;  %v348_v40 = vld [vmem:[%s9636_s12 + $0xb8] sm:$0xff]  ;;  %v8150_v46 = vld [vmem:[#allocation2 + $0x40] sm:$0xf] }
  0x21   : > { %1179 = vmatpush.bf16.msrb.mxu2 %v8175_v19  ;;  %1268 = vmatpush.bf16.msrb.mxu3 %v8239_v21  ;;  %v9683_v41 = vpack.c.bf16 %v330_v38, %v329_v37  ;;  %v9685_v42 = vpack.c.bf16 %v348_v40, %v347_v39  ;;  %v9146_v44 = vld [vmem:[#allocation2 + $0xd4] sm:$0xf0]  ;;  %v9128_v47 = vld [vmem:[#allocation2 + $0x44] sm:$0xf0]  ;;  %v331_v49 = vld [vmem:[%s9636_s12 + $0x30] sm:$0xff] }
  0x22   : > { %v8223_v45 = vor.u32 %v9146_v44, %v8222_v43  ;;  %v8151_v48 = vor.u32 %v9128_v47, %v8150_v46  ;;  %v332_v50 = vld [vmem:[%s9636_s12 + $0x38] sm:$0xff]  ;;  %v349_v51 = vld [vmem:[%s9636_s12 + $0xc0] sm:$0xff]  ;;  %v350_v52 = vld [vmem:[%s9636_s12 + $0xc8] sm:$0xff] }
  0x23   : > { %v9699_v53 = vpack.c.bf16 %v332_v50, %v331_v49  ;;  %v9701_v54 = vpack.c.bf16 %v350_v52, %v349_v51  ;;  %v8214_v55 = vld [vmem:[#allocation2 + $0xc0] sm:$0xf]  ;;  %v9144_v56 = vld [vmem:[#allocation2 + $0xc4] sm:$0xf0]  ;;  %v8142_v58 = vld [vmem:[#allocation2 + $0x30] sm:$0xf] }
  0x24   : > { %v8215_v57 = vor.u32 %v9144_v56, %v8214_v55  ;;  %v9126_v59 = vld [vmem:[#allocation2 + $0x34] sm:$0xf0]  ;;  %v333_v61 = vld [vmem:[%s9636_s12 + $0x40] sm:$0xff]  ;;  %v334_v62 = vld [vmem:[%s9636_s12 + $0x48] sm:$0xff] }
  0x25   : > { %1180 = vmatpush.bf16.msrb.mxu2 %v8167_v24  ;;  %1269 = vmatpush.bf16.msrb.mxu3 %v8231_v33  ;;  %v8143_v60 = vor.u32 %v9126_v59, %v8142_v58  ;;  %v351_v63 = vld [vmem:[%s9636_s12 + $0xd0] sm:$0xff]  ;;  %v352_v0 = vld [vmem:[%s9636_s12 + $0xd8] sm:$0xff]  ;;  %v9715_v1 = vpack.c.bf16 %v334_v62, %v333_v61  ;;  %v8134_v5 = vld [vmem:[#allocation2 + $0x20] sm:$0xf] }
  0x26   : > { %v9717_v2 = vpack.c.bf16 %v352_v0, %v351_v63  ;;  %v8206_v3 = vld [vmem:[#allocation2 + $0xb0] sm:$0xf]  ;;  %v9142_v4 = vld [vmem:[#allocation2 + $0xb4] sm:$0xf0]  ;;  %v9124_v7 = vld [vmem:[#allocation2 + $0x24] sm:$0xf0] }
  0x27   : > { %v8207_v6 = vor.u32 %v9142_v4, %v8206_v3  ;;  %v8135_v8 = vor.u32 %v9124_v7, %v8134_v5  ;;  %v9133_v9 = vld [vmem:[#allocation2 + $0x74] sm:$0xf]  ;;  %v8176_v10 = vld [vmem:[#allocation2 + $0x78] sm:$0xf0]  ;;  %v353_v17 = vld [vmem:[%s9636_s12 + $0xe0] sm:$0xff] }
  0x28   : > { %v8179_v11 = vor.u32 %v9133_v9, %v8176_v10  ;;  %v335_v12 = vld [vmem:[%s9636_s12 + $0x50] sm:$0xff]  ;;  %v336_v16 = vld [vmem:[%s9636_s12 + $0x58] sm:$0xff]  ;;  %v354_v18 = vld [vmem:[%s9636_s12 + $0xe8] sm:$0xff] }
  0x29   : > { %1181 = vmatpush.bf16.msrb.mxu2 %v8159_v36  ;;  %1270 = vmatpush.bf16.msrb.mxu3 %v8223_v45  ;;  %v9731_v19 = vpack.c.bf16 %v336_v16, %v335_v12  ;;  %v9733_v20 = vpack.c.bf16 %v354_v18, %v353_v17  ;;  %v9149_v21 = vld [vmem:[#allocation2 + $0xf4] sm:$0xf]  ;;  %v8240_v22 = vld [vmem:[#allocation2 + $0xf8] sm:$0xf0]  ;;  %v8198_v24 = vld [vmem:[#allocation2 + $0xa0] sm:$0xf] }
  0x2a   : > { %1357 = vmatpush.bf16.msrb.mxu0 %v8179_v11  ;;  %v8243_v23 = vor.u32 %v9149_v21, %v8240_v22  ;;  %v9140_v25 = vld [vmem:[#allocation2 + $0xa4] sm:$0xf0]  ;;  %v8126_v26 = vld [vmem:[#allocation2 + $0x10] sm:$0xf]  ;;  %v9122_v28 = vld [vmem:[#allocation2 + $0x14] sm:$0xf0] }
  0x2b   : > { %v8199_v27 = vor.u32 %v9140_v25, %v8198_v24  ;;  %v9131_v31 = vld [vmem:[#allocation2 + $0x64] sm:$0xf]  ;;  %v8168_v32 = vld [vmem:[#allocation2 + $0x68] sm:$0xf0]  ;;  %v8127_v33 = vor.u32 %v9122_v28, %v8126_v26  ;;  %v9129_v38 = vld [vmem:[#allocation2 + $0x54] sm:$0xf] }
  0x2c   : > { %1446 = vmatpush.bf16.msrb.mxu1 %v8243_v23  ;;  %v8171_v34 = vor.u32 %v9131_v31, %v8168_v32  ;;  %v9147_v35 = vld [vmem:[#allocation2 + $0xe4] sm:$0xf]  ;;  %v8232_v36 = vld [vmem:[#allocation2 + $0xe8] sm:$0xf0]  ;;  %v8160_v39 = vld [vmem:[#allocation2 + $0x58] sm:$0xf0] }
  0x2d   : > { %1182 = vmatpush.bf16.msrb.mxu2 %v8151_v48  ;;  %1271 = vmatpush.bf16.msrb.mxu3 %v8215_v57  ;;  %v8235_v37 = vor.u32 %v9147_v35, %v8232_v36  ;;  %v8163_v40 = vor.u32 %v9129_v38, %v8160_v39  ;;  %v9145_v43 = vld [vmem:[#allocation2 + $0xd4] sm:$0xf]  ;;  %v8224_v44 = vld [vmem:[#allocation2 + $0xd8] sm:$0xf0]  ;;  %v337_v46 = vld [vmem:[%s9636_s12 + $0x60] sm:$0xff] }
  0x2e   : > { %1358 = vmatpush.bf16.msrb.mxu0 %v8171_v34  ;;  %v8227_v45 = vor.u32 %v9145_v43, %v8224_v44  ;;  %v338_v47 = vld [vmem:[%s9636_s12 + $0x68] sm:$0xff]  ;;  %v355_v48 = vld [vmem:[%s9636_s12 + $0xf0] sm:$0xff]  ;;  %v356_v49 = vld [vmem:[%s9636_s12 + $0xf8] sm:$0xff] }
  0x2f   : > { %8085 = vmatmul.msk.bf16.gmra.mxu0 %vm379_vm1, %v9667_v29  ;;  %8101 = vmatmul.msk.bf16.gmra.mxu1 %vm379_vm1, %v9667_v29  ;;  %v9127_v50 = vld [vmem:[#allocation2 + $0x44] sm:$0xf]  ;;  %v8152_v51 = vld [vmem:[#allocation2 + $0x48] sm:$0xf0]  ;;  %v9747_v57 = vpack.c.bf16 %v338_v47, %v337_v46  ;;  %v9749_v59 = vpack.c.bf16 %v356_v49, %v355_v48  ;;  %v8144_v61 = vld [vmem:[#allocation2 + $0x38] sm:$0xf0] }
  0x30   : > { %8109 = vmatmul.msk.bf16.gmra.mxu3 %vm379_vm1, %v9653_v15  ;;  %8094 = vmatmul.msk.bf16.gmra.mxu2 %vm379_vm1, %v9669_v30  ;;  %v9143_v52 = vld [vmem:[#allocation2 + $0xc4] sm:$0xf]  ;;  %v8155_v55 = vor.u32 %v9127_v50, %v8152_v51  ;;  %v8216_v56 = vld [vmem:[#allocation2 + $0xc8] sm:$0xf0]  ;;  %v9141_v62 = vld [vmem:[#allocation2 + $0xb4] sm:$0xf] }
  0x31   : > { %1183 = vmatpush.bf16.msrb.mxu2 %v8143_v60  ;;  %1272 = vmatpush.bf16.msrb.mxu3 %v8207_v6  ;;  %v8219_v58 = vor.u32 %v9143_v52, %v8216_v56  ;;  %11910 = vst [vmem:[#allocation8_spill] sm:$0xff] %v9749_v59  ;;  %v9125_v60 = vld [vmem:[#allocation2 + $0x34] sm:$0xf]  ;;  %v8208_v0 = vld [vmem:[#allocation2 + $0xb8] sm:$0xf0] }
  0x32   : > { %1447 = vmatpush.bf16.msrb.mxu1 %v8235_v37  ;;  %1359 = vmatpush.bf16.msrb.mxu0 %v8163_v40  ;;  %v8147_v63 = vor.u32 %v9125_v60, %v8144_v61  ;;  %v8211_v3 = vor.u32 %v9141_v62, %v8208_v0  ;;  %v9123_v4 = vld [vmem:[#allocation2 + $0x24] sm:$0xf]  ;;  %v8136_v5 = vld [vmem:[#allocation2 + $0x28] sm:$0xf0]  ;;  %v8118_v9 = vld [vmem:[#allocation2] sm:$0xf] }
  0x33   : > { %v9139_v6 = vld [vmem:[#allocation2 + $0xa4] sm:$0xf]  ;;  %v8139_v7 = vor.u32 %v9123_v4, %v8136_v5  ;;  %v9120_v10 = vld [vmem:[#allocation2 + $0x4] sm:$0xf0]  ;;  %v8190_v11 = vld [vmem:[#allocation2 + $0x90] sm:$0xf] }
  0x34   : > { %v8119_v16 = vor.u32 %v9120_v10, %v8118_v9  ;;  %v9138_v17 = vld [vmem:[#allocation2 + $0x94] sm:$0xf0]  ;;  %v9121_v21 = vld [vmem:[#allocation2 + $0x14] sm:$0xf]  ;;  %v8128_v22 = vld [vmem:[#allocation2 + $0x18] sm:$0xf0] }
  0x35   : > { %1184 = vmatpush.bf16.msrb.mxu2 %v8135_v8  ;;  %1273 = vmatpush.bf16.msrb.mxu3 %v8199_v27  ;;  %v8200_v8 = vld [vmem:[#allocation2 + $0xa8] sm:$0xf0]  ;;  %v8191_v18 = vor.u32 %v9138_v17, %v8190_v11  ;;  %v9137_v23 = vld [vmem:[#allocation2 + $0x94] sm:$0xf]  ;;  %v8131_v24 = vor.u32 %v9121_v21, %v8128_v22  ;;  %v8192_v25 = vld [vmem:[#allocation2 + $0x98] sm:$0xf0] }
  0x36   : > { %1448 = vmatpush.bf16.msrb.mxu1 %v8227_v45  ;;  %1360 = vmatpush.bf16.msrb.mxu0 %v8155_v55  ;;  %v8203_v12 = vor.u32 %v9139_v6, %v8200_v8  ;;  %v339_v26 = vld [vmem:[%s9636_s12 + $0x70] sm:$0xff]  ;;  %v340_v27 = vld [vmem:[%s9636_s12 + $0x78] sm:$0xff]  ;;  %v8195_v28 = vor.u32 %v9137_v23, %v8192_v25  ;;  %v645_v31 = vld [vmem:[%s11891_s2] sm:$0x3]  ;;  %s8000_s12 = sshll.u32 %s7997_s26, 4  ;;  %s8001_s12 = int_to_ptr.hbm [resolvable:$true] %s8000_s12 }
  0x37   : > { %v8182_v32 = vld [vmem:[#allocation2 + $0x80] sm:$0xf]  ;;  %v9119_v34 = vld [vmem:[#allocation2 + $0x4] sm:$0xf]  ;;  %v9764_v35 = vpack.c.bf16 %v340_v27, %v339_v26  ;;  %v8120_v37 = vld [vmem:[#allocation2 + $0x8] sm:$0xf0] }
  0x38   : > { %v9135_v38 = vld [vmem:[#allocation2 + $0x84] sm:$0xf]  ;;  %v8184_v39 = vld [vmem:[#allocation2 + $0x88] sm:$0xf0]  ;;  %v647_v40 = vperm.slane %v645_v31, 0  ;;  %v648_v43 = vperm.slane %v645_v31, 1  ;;  %v8123_v44 = vor.u32 %v9119_v34, %v8120_v37 }
  0x39   : > { %1185 = vmatpush.bf16.msrb.mxu2 %v8127_v33  ;;  %1274 = vmatpush.bf16.msrb.mxu3 %v8191_v18  ;;  %v9136_v33 = vld [vmem:[#allocation2 + $0x84] sm:$0xf0]  ;;  %v8187_v45 = vor.u32 %v9135_v38, %v8184_v39  ;;  %v8302_v47 = vld [vmem:[#allocation2 + $0x170] sm:$0xf]  ;;  %v9166_v48 = vld [vmem:[#allocation2 + $0x174] sm:$0xf0] }
  0x3a   : > { %1449 = vmatpush.bf16.msrb.mxu1 %v8219_v58  ;;  %1361 = vmatpush.bf16.msrb.mxu0 %v8147_v63  ;;  %v8183_v36 = vor.u32 %v9136_v33, %v8182_v32  ;;  %v651_v46 = vpack.c.bf16 %v648_v43, %v647_v40  ;;  %v8303_v49 = vor.u32 %v9166_v48, %v8302_v47  ;;  %v9182_v4 = vld [vmem:[#allocation2 + $0x1f4] sm:$0xf0]  ;;  %v8294_v40 = vld [vmem:[#allocation2 + $0x160] sm:$0xf]  ;;  %v9164_v43 = vld [vmem:[#allocation2 + $0x164] sm:$0xf0] }
  0x3b   : > { %s9470_s9 = sshra.s32 %s8001_s12, 4  ;;  %s9471_s9 = int_to_ptr.hbm [resolvable:$true] %s9470_s9 }
  0x3c   : > { %v653_v50 = vunpack.c.l.b16 %v651_v46  ;;  %v654_v51 = vunpack.c.h.b16 %v651_v46  ;;  %s9472_s17 = scalar_lea.hbm %s9471_s9, 256  ;;  %p9477_p3 = scmp.lt.s32.totalorder %s9471_s9, %s11897_s8 }
  0x3d   : > { %1186 = vmatpush.bf16.msrb.mxu2 %v8119_v16  ;;  %1275 = vmatpush.bf16.msrb.mxu3 %v8183_v36  ;;  %p9473_p0 = scmp.ne.s32.totalorder %s9471_s9, %s9472_s17  ;;  %p9478_p4 = scmp.lt.s32.totalorder %s9476_s21, %s9472_s17 }
  0x3e   : > { %1450 = vmatpush.bf16.msrb.mxu1 %v8211_v3  ;;  %1362 = vmatpush.bf16.msrb.mxu0 %v8139_v7  ;;  %v655_v52 = vpack.c.b16 %v653_v50, %v653_v50  ;;  %v656_v55 = vpack.c.b16 %v654_v51, %v654_v51  ;;  %v8366_v3 = vld [vmem:[#allocation2 + $0x1f0] sm:$0xf] }
  0x3f   : > { %8086 = vmatmul.msk.bf16.gmra.mxu0 %vm379_vm1, %v9683_v41  ;;  %8102 = vmatmul.msk.bf16.gmra.mxu1 %vm379_vm1, %v9683_v41  ;;  %v8367_v5 = vor.u32 %v9182_v4, %v8366_v3  ;;  %p9474_p1 = pnand %p9473_p0, %p9612_p5  ;;  %p9479_p7 = por %p9478_p4, %p9477_p3 }
  0x40   : > { %8110 = vmatmul.msk.bf16.gmra.mxu3 %vm379_vm1, %v9669_v30  ;;  %8095 = vmatmul.msk.bf16.gmra.mxu2 %vm379_vm1, %v9685_v42  ;;  %v658_v56 = vpack.i.b16 %v655_v52, %v655_v52  ;;  %v662_v58 = vpack.i.b16 %v656_v55, %v656_v55 }
  0x41   : > { %2102 = vmatpush.bf16.msra.mxu2 %v8303_v49  ;;  %2191 = vmatpush.bf16.msra.mxu3 %v8367_v5  ;;  %p9475_p2 = pneg %p9474_p1 }
  0x42   : > { %1451 = vmatpush.bf16.msrb.mxu1 %v8203_v12  ;;  %1363 = vmatpush.bf16.msrb.mxu0 %v8131_v24  ;;  %v660_v63 = vperm.slane %v658_v56, 0  ;;  %v664_v0 = vperm.slane %v662_v58, 0 }
  0x43   : > { %p9480_p8 = pnand %p9479_p7, %p9475_p2 }
  0x44   : > { %v9774_v8 = vunpack.c.l.bf16 %v660_v63  ;;  %v9776_v9 = vunpack.c.l.bf16 %v664_v0 }
  0x46   : > { %1452 = vmatpush.bf16.msrb.mxu1 %v8195_v28  ;;  %1364 = vmatpush.bf16.msrb.mxu0 %v8123_v44  ;;  %v8295_v44 = vor.u32 %v9164_v43, %v8294_v40 }
  0x48   : > { %2103 = vmatpush.bf16.msra.mxu2 %v8295_v44 }
  0x4a   : > { %1453 = vmatpush.bf16.msrb.mxu1 %v8187_v45 }
  0x4f   : > { %8087 = vmatmul.msk.bf16.gmra.mxu0 %vm379_vm1, %v9699_v53  ;;  %8103 = vmatmul.msk.bf16.gmra.mxu1 %vm379_vm1, %v9699_v53 }
  0x50   : > { %8111 = vmatmul.msk.bf16.gmra.mxu3 %vm379_vm1, %v9685_v42  ;;  %8096 = vmatmul.msk.bf16.gmra.mxu2 %vm379_vm1, %v9701_v54 }
  0x5f   : > { %8088 = vmatmul.msk.bf16.gmra.mxu0 %vm379_vm1, %v9715_v1  ;;  %8104 = vmatmul.msk.bf16.gmra.mxu1 %vm379_vm1, %v9715_v1 }
  0x60   : > { %8112 = vmatmul.msk.bf16.gmra.mxu3 %vm379_vm1, %v9701_v54  ;;  %8097 = vmatmul.msk.bf16.gmra.mxu2 %vm379_vm1, %v9717_v2 }
  0x6f   : > { %8089 = vmatmul.msk.bf16.gmra.mxu0 %vm379_vm1, %v9731_v19  ;;  %8105 = vmatmul.msk.bf16.gmra.mxu1 %vm379_vm1, %v9731_v19 }
  0x70   : > { %8113 = vmatmul.msk.bf16.gmra.mxu3 %vm379_vm1, %v9717_v2  ;;  %8098 = vmatmul.msk.bf16.gmra.mxu2 %vm379_vm1, %v9733_v20 }
  0x7f   : > { %8090 = vmatmul.msk.bf16.gmra.mxu0 %vm379_vm1, %v9747_v57  ;;  %8106 = vmatmul.msk.bf16.gmra.mxu1 %vm379_vm1, %v9747_v57 }
  0x80   : > { %8114 = vmatmul.msk.bf16.gmra.mxu3 %vm379_vm1, %v9733_v20  ;;  %8099 = vmatmul.msk.bf16.gmra.mxu2 %vm379_vm1, %v9749_v59 }
  0x8f   : > { %8091 = vmatmul.msk.bf16.gmra.mxu0 %vm379_vm1, %v9764_v35  ;;  %8107 = vmatmul.msk.bf16.gmra.mxu1 %vm379_vm1, %v9764_v35 }
  0x90   : > { %8115 = vmatmul.msk.bf16.gmra.mxu3 %vm379_vm1, %v9749_v59 }
  0x9c   : > { %v444_v60 = vpop.f32.mrf.mxu0  ;;  %v533_v61 = vpop.f32.mrf.mxu1 }
  0x9d   : > { %v613_v62 = vpack.c.bf16 %v533_v61, %v444_v60 }
  0x9f   : > { %8092 = vmatmul.msk.bf16.gmra.mxu0 %vm379_vm1, %v9651_v14  ;;  %v665_v6 = vunpack.c.l.bf16 %v613_v62  ;;  %v666_v7 = vunpack.c.h.bf16 %v613_v62 }
  0xa1   : > { %v731_v18 = vadd.f32 %v9774_v8, %v665_v6  ;;  %v732_v21 = vadd.f32 %v9776_v9, %v666_v7 }
  0xa3   : > { %v9778_v10 = vpop.f32.mrf.mxu3  ;;  %v489_v11 = vpop.f32.mrf.mxu2  ;;  %v891_v26 = vmax.f32 %v731_v18, 0.0  ;;  %v892_v27 = vmax.f32 %v732_v21, 0.0 }
  0xa4   : > { %v446_v12 = vpop.f32.mrf.mxu0  ;;  %v535_v16 = vpop.f32.mrf.mxu1 }
  0xa5   : > { %v614_v17 = vpack.c.bf16 %v535_v16, %v446_v12 }
  0xa7   : > { %v667_v22 = vunpack.c.l.bf16 %v614_v17  ;;  %v668_v23 = vunpack.c.h.bf16 %v614_v17 }
  0xa9   : > { %v733_v24 = vadd.f32 %v9774_v8, %v667_v22  ;;  %v734_v25 = vadd.f32 %v9776_v9, %v668_v23 }
  0xab   : > { %v893_v28 = vmax.f32 %v733_v24, 0.0  ;;  %v894_v31 = vmax.f32 %v734_v25, 0.0  ;;  %v9784_v32 = vpop.f32.mrf.mxu3  ;;  %v9786_v33 = vpop.f32.mrf.mxu2  ;;  %v8358_v24 = vld [vmem:[#allocation2 + $0x1e0] sm:$0xf]  ;;  %v9180_v25 = vld [vmem:[#allocation2 + $0x1e4] sm:$0xf0] }
  0xac   : > { %v449_v34 = vpop.f32.mrf.mxu0  ;;  %v538_v36 = vpop.f32.mrf.mxu1 }
  0xad   : > { %v955_v37 = vpack.c.bf16 %v893_v28, %v891_v26  ;;  %v956_v38 = vpack.c.bf16 %v894_v31, %v892_v27  ;;  %v615_v39 = vpack.c.bf16 %v538_v36, %v449_v34  ;;  %v8359_v31 = vor.u32 %v9180_v25, %v8358_v24 }
  0xaf   : > { %1187 = vmatmul.bf16.vlgmr.msrb.gmra.mxu2 %v955_v37  ;;  %1276 = vmatmul.bf16.vlgmr.msrb.gmra.mxu3 %v956_v38  ;;  %v669_v45 = vunpack.c.l.bf16 %v615_v39  ;;  %v670_v46 = vunpack.c.h.bf16 %v615_v39 }
  0xb0   : > { %1365 = vmatmul.bf16.vlgmr.msrb.gmra.mxu0 %v955_v37  ;;  %1454 = vmatmul.bf16.vlgmr.msrb.gmra.mxu1 %v956_v38 }
  0xb1   : > { %v735_v58 = vadd.f32 %v9774_v8, %v669_v45  ;;  %v736_v60 = vadd.f32 %v9776_v9, %v670_v46  ;;  %2192 = vmatpush.bf16.msra.mxu3 %v8359_v31 }
  0xb3   : > { %v578_v47 = vpop.f32.mrf.mxu3  ;;  %v494_v48 = vpop.f32.mrf.mxu2  ;;  %v895_v63 = vmax.f32 %v735_v58, 0.0  ;;  %v896_v3 = vmax.f32 %v736_v60, 0.0 }
  0xb4   : > { %v451_v49 = vpop.f32.mrf.mxu0  ;;  %v540_v50 = vpop.f32.mrf.mxu1  ;;  %v9788_v51 = vpack.c.bf16 %v578_v47, %v489_v11 }
  0xb5   : > { %v616_v52 = vpack.c.bf16 %v540_v50, %v451_v49 }
  0xb7   : > { %v671_v55 = vunpack.c.l.bf16 %v616_v52  ;;  %v672_v56 = vunpack.c.h.bf16 %v616_v52 }
  0xb9   : > { %v737_v61 = vadd.f32 %v9774_v8, %v671_v55  ;;  %v738_v62 = vadd.f32 %v9776_v9, %v672_v56 }
  0xbb   : > { %v897_v0 = vmax.f32 %v737_v61, 0.0  ;;  %v898_v4 = vmax.f32 %v738_v62, 0.0  ;;  %v9794_v5 = vpop.f32.mrf.mxu3  ;;  %v9796_v6 = vpop.f32.mrf.mxu2 }
  0xbc   : > { %v454_v7 = vpop.f32.mrf.mxu0  ;;  %v543_v11 = vpop.f32.mrf.mxu1 }
  0xbd   : > { %v957_v12 = vpack.c.bf16 %v897_v0, %v895_v63  ;;  %v958_v16 = vpack.c.bf16 %v898_v4, %v896_v3  ;;  %v617_v17 = vpack.c.bf16 %v543_v11, %v454_v7  ;;  %v8286_v63 = vld [vmem:[#allocation2 + $0x150] sm:$0xf]  ;;  %v9162_v0 = vld [vmem:[#allocation2 + $0x154] sm:$0xf0] }
  0xbe   : > { %v8287_v11 = vor.u32 %v9162_v0, %v8286_v63 }
  0xbf   : > { %1192 = vmatmul.bf16.gmra.mxu2 %v957_v12  ;;  %1281 = vmatmul.bf16.gmra.mxu3 %v958_v16  ;;  %v673_v18 = vunpack.c.l.bf16 %v617_v17  ;;  %v674_v21 = vunpack.c.h.bf16 %v617_v17 }
  0xc0   : > { %1370 = vmatmul.bf16.gmra.mxu0 %v957_v12  ;;  %1459 = vmatmul.bf16.gmra.mxu1 %v958_v16 }
  0xc1   : > { %v739_v38 = vadd.f32 %v9774_v8, %v673_v18  ;;  %v740_v39 = vadd.f32 %v9776_v9, %v674_v21  ;;  %2104 = vmatpush.bf16.msra.mxu2 %v8287_v11 }
  0xc3   : > { %v583_v22 = vpop.f32.mrf.mxu3  ;;  %v499_v23 = vpop.f32.mrf.mxu2  ;;  %v899_v44 = vmax.f32 %v739_v38, 0.0  ;;  %v900_v46 = vmax.f32 %v740_v39, 0.0 }
  0xc4   : > { %v456_v26 = vpop.f32.mrf.mxu0  ;;  %v545_v27 = vpop.f32.mrf.mxu1  ;;  %v9798_v28 = vpack.c.bf16 %v583_v22, %v494_v48 }
  0xc5   : > { %v618_v34 = vpack.c.bf16 %v545_v27, %v456_v26 }
  0xc7   : > { %v675_v36 = vunpack.c.l.bf16 %v618_v34  ;;  %v676_v37 = vunpack.c.h.bf16 %v618_v34 }
  0xc9   : > { %v741_v40 = vadd.f32 %v9774_v8, %v675_v36  ;;  %v742_v43 = vadd.f32 %v9776_v9, %v676_v37 }
  0xcb   : > { %v901_v45 = vmax.f32 %v741_v40, 0.0  ;;  %v902_v47 = vmax.f32 %v742_v43, 0.0  ;;  %v9804_v49 = vpop.f32.mrf.mxu3  ;;  %v9806_v56 = vpop.f32.mrf.mxu2 }
  0xcc   : > { %v459_v48 = vpop.f32.mrf.mxu0  ;;  %v548_v50 = vpop.f32.mrf.mxu1 }
  0xcd   : > { %v959_v52 = vpack.c.bf16 %v901_v45, %v899_v44  ;;  %v960_v55 = vpack.c.bf16 %v902_v47, %v900_v46  ;;  %v619_v58 = vpack.c.bf16 %v548_v50, %v459_v48  ;;  %v8350_v47 = vld [vmem:[#allocation2 + $0x1d0] sm:$0xf]  ;;  %v9178_v48 = vld [vmem:[#allocation2 + $0x1d4] sm:$0xf0] }
  0xcf   : > { %1197 = vmatmul.bf16.gmra.mxu2 %v959_v52  ;;  %1286 = vmatmul.bf16.gmra.mxu3 %v960_v55  ;;  %v677_v60 = vunpack.c.l.bf16 %v619_v58  ;;  %v678_v61 = vunpack.c.h.bf16 %v619_v58  ;;  %v8351_v58 = vor.u32 %v9178_v48, %v8350_v47 }
  0xd0   : > { %1375 = vmatmul.bf16.gmra.mxu0 %v959_v52  ;;  %1464 = vmatmul.bf16.gmra.mxu1 %v960_v55 }
  0xd1   : > { %v743_v18 = vadd.f32 %v9774_v8, %v677_v60  ;;  %v744_v21 = vadd.f32 %v9776_v9, %v678_v61  ;;  %2193 = vmatpush.bf16.msra.mxu3 %v8351_v58 }
  0xd3   : > { %v588_v62 = vpop.f32.mrf.mxu3  ;;  %v504_v22 = vpop.f32.mrf.mxu2  ;;  %v903_v26 = vmax.f32 %v743_v18, 0.0  ;;  %v904_v31 = vmax.f32 %v744_v21, 0.0 }
  0xd4   : > { %v461_v3 = vpop.f32.mrf.mxu0  ;;  %v550_v4 = vpop.f32.mrf.mxu1  ;;  %v9808_v7 = vpack.c.bf16 %v588_v62, %v499_v23 }
  0xd5   : > { %v620_v12 = vpack.c.bf16 %v550_v4, %v461_v3 }
  0xd7   : > { %v679_v16 = vunpack.c.l.bf16 %v620_v12  ;;  %v680_v17 = vunpack.c.h.bf16 %v620_v12 }
  0xd9   : > { %v745_v24 = vadd.f32 %v9774_v8, %v679_v16  ;;  %v746_v25 = vadd.f32 %v9776_v9, %v680_v17 }
  0xdb   : > { %v905_v27 = vmax.f32 %v745_v24, 0.0  ;;  %v906_v34 = vmax.f32 %v746_v25, 0.0  ;;  %v9814_v23 = vpop.f32.mrf.mxu3  ;;  %v9816_v43 = vpop.f32.mrf.mxu2 }
  0xdc   : > { %v464_v36 = vpop.f32.mrf.mxu0  ;;  %v553_v37 = vpop.f32.mrf.mxu1 }
  0xdd   : > { %v961_v38 = vpack.c.bf16 %v905_v27, %v903_v26  ;;  %v962_v39 = vpack.c.bf16 %v906_v34, %v904_v31  ;;  %v621_v40 = vpack.c.bf16 %v553_v37, %v464_v36  ;;  %v8278_v37 = vld [vmem:[#allocation2 + $0x140] sm:$0xf] }
  0xdf   : > { %1202 = vmatmul.bf16.gmra.mxu2 %v961_v38  ;;  %1291 = vmatmul.bf16.gmra.mxu3 %v962_v39  ;;  %v681_v44 = vunpack.c.l.bf16 %v621_v40  ;;  %v682_v45 = vunpack.c.h.bf16 %v621_v40 }
  0xe0   : > { %1380 = vmatmul.bf16.gmra.mxu0 %v961_v38  ;;  %1469 = vmatmul.bf16.gmra.mxu1 %v962_v39  ;;  %v9160_v38 = vld [vmem:[#allocation2 + $0x144] sm:$0xf0] }
  0xe1   : > { %v748_v61 = vadd.f32 %v9776_v9, %v682_v45  ;;  %v747_v0 = vadd.f32 %v9774_v8, %v681_v44  ;;  %v8279_v45 = vor.u32 %v9160_v38, %v8278_v37 }
  0xe3   : > { %v593_v46 = vpop.f32.mrf.mxu3  ;;  %v908_v11 = vmax.f32 %v748_v61, 0.0  ;;  %v907_v12 = vmax.f32 %v747_v0, 0.0  ;;  %v509_v21 = vpop.f32.mrf.mxu2  ;;  %2105 = vmatpush.bf16.msra.mxu2 %v8279_v45  ;;  %v8342_v45 = vld [vmem:[#allocation2 + $0x1c0] sm:$0xf] }
  0xe4   : > { %v466_v50 = vpop.f32.mrf.mxu0  ;;  %v555_v52 = vpop.f32.mrf.mxu1  ;;  %v9818_v55 = vpack.c.bf16 %v593_v46, %v504_v22 }
  0xe5   : > { %v622_v60 = vpack.c.bf16 %v555_v52, %v466_v50 }
  0xe7   : > { %v683_v62 = vunpack.c.l.bf16 %v622_v60  ;;  %v684_v63 = vunpack.c.h.bf16 %v622_v60 }
  0xe9   : > { %v750_v3 = vadd.f32 %v9776_v9, %v684_v63  ;;  %v749_v4 = vadd.f32 %v9774_v8, %v683_v62 }
  0xeb   : > { %v909_v16 = vmax.f32 %v749_v4, 0.0  ;;  %v910_v17 = vmax.f32 %v750_v3, 0.0  ;;  %v9824_v18 = vpop.f32.mrf.mxu3  ;;  %v9828_v47 = vpop.f32.mrf.mxu2 }
  0xec   : > { %v469_v22 = vpop.f32.mrf.mxu0  ;;  %v558_v24 = vpop.f32.mrf.mxu1 }
  0xed   : > { %v963_v25 = vpack.c.bf16 %v909_v16, %v907_v12  ;;  %v964_v26 = vpack.c.bf16 %v910_v17, %v908_v11  ;;  %v623_v27 = vpack.c.bf16 %v558_v24, %v469_v22 }
  0xef   : > { %1207 = vmatmul.bf16.gmra.mxu2 %v963_v25  ;;  %1296 = vmatmul.bf16.gmra.mxu3 %v964_v26  ;;  %v685_v31 = vunpack.c.l.bf16 %v623_v27  ;;  %v686_v34 = vunpack.c.h.bf16 %v623_v27  ;;  %v9165_v27 = vld [vmem:[#allocation2 + $0x174] sm:$0xf] }
  0xf0   : > { %1385 = vmatmul.bf16.gmra.mxu0 %v963_v25  ;;  %1474 = vmatmul.bf16.gmra.mxu1 %v964_v26 }
  0xf1   : > { %v751_v48 = vadd.f32 %v9774_v8, %v685_v31  ;;  %v752_v50 = vadd.f32 %v9776_v9, %v686_v34  ;;  %v8304_v31 = vld [vmem:[#allocation2 + $0x178] sm:$0xf0] }
  0xf2   : > { %v8307_v38 = vor.u32 %v9165_v27, %v8304_v31  ;;  %v8270_v31 = vld [vmem:[#allocation2 + $0x130] sm:$0xf] }
  0xf3   : > { %v598_v36 = vpop.f32.mrf.mxu3  ;;  %v911_v62 = vmax.f32 %v751_v48, 0.0  ;;  %v912_v63 = vmax.f32 %v752_v50, 0.0  ;;  %v514_v22 = vpop.f32.mrf.mxu2  ;;  %v9176_v50 = vld [vmem:[#allocation2 + $0x1c4] sm:$0xf0] }
  0xf4   : > { %v471_v39 = vpop.f32.mrf.mxu0  ;;  %v560_v40 = vpop.f32.mrf.mxu1  ;;  %v9826_v44 = vpack.c.bf16 %v598_v36, %v509_v21  ;;  %2280 = vmatpush.bf16.msra.mxu0 %v8307_v38 }
  0xf5   : > { %v624_v46 = vpack.c.bf16 %v560_v40, %v471_v39  ;;  %v9181_v39 = vld [vmem:[#allocation2 + $0x1f4] sm:$0xf]  ;;  %v8368_v40 = vld [vmem:[#allocation2 + $0x1f8] sm:$0xf0] }
  0xf6   : > { %v8371_v48 = vor.u32 %v9181_v39, %v8368_v40 }
  0xf7   : > { %v687_v52 = vunpack.c.l.bf16 %v624_v46  ;;  %v688_v58 = vunpack.c.h.bf16 %v624_v46 }
  0xf8   : > { %2369 = vmatpush.bf16.msra.mxu1 %v8371_v48 }
  0xf9   : > { %v753_v60 = vadd.f32 %v9774_v8, %v687_v52  ;;  %v754_v61 = vadd.f32 %v9776_v9, %v688_v58  ;;  %v8343_v52 = vor.u32 %v9176_v50, %v8342_v45 }
  0xfb   : > { %v913_v0 = vmax.f32 %v753_v60, 0.0  ;;  %v914_v3 = vmax.f32 %v754_v61, 0.0  ;;  %v9834_v4 = vpop.f32.mrf.mxu3  ;;  %2194 = vmatpush.bf16.msra.mxu3 %v8343_v52 }
  0xfc   : > { %v474_v11 = vpop.f32.mrf.mxu0  ;;  %v563_v12 = vpop.f32.mrf.mxu1 }
  0xfd   : > { %v965_v16 = vpack.c.bf16 %v913_v0, %v911_v62  ;;  %v966_v17 = vpack.c.bf16 %v914_v3, %v912_v63  ;;  %v625_v21 = vpack.c.bf16 %v563_v12, %v474_v11  ;;  %v9842_v3 = vpop.f32.mrf.mxu2 }
  0xff   : > { %1212 = vmatmul.bf16.gmra.mxu2 %v965_v16  ;;  %1301 = vmatmul.bf16.gmra.mxu3 %v966_v17  ;;  %v689_v24 = vunpack.c.l.bf16 %v625_v21  ;;  %v690_v25 = vunpack.c.h.bf16 %v625_v21 }
 0x100   : > { %1390 = vmatmul.bf16.gmra.mxu0 %v965_v16  ;;  %1479 = vmatmul.bf16.gmra.mxu1 %v966_v17 }
 0x101   : > { %v755_v58 = vadd.f32 %v9774_v8, %v689_v24  ;;  %v756_v60 = vadd.f32 %v9776_v9, %v690_v25 }
 0x103   : > { %v603_v26 = vpop.f32.mrf.mxu3  ;;  %v915_v11 = vmax.f32 %v755_v58, 0.0  ;;  %v916_v12 = vmax.f32 %v756_v60, 0.0 }
 0x104   : > { %v476_v34 = vpop.f32.mrf.mxu0  ;;  %v565_v36 = vpop.f32.mrf.mxu1  ;;  %v9836_v37 = vpack.c.bf16 %v603_v26, %v514_v22 }
 0x105   : > { %v626_v46 = vpack.c.bf16 %v565_v36, %v476_v34  ;;  %v9158_v34 = vld [vmem:[#allocation2 + $0x134] sm:$0xf0]  ;;  %v519_v40 = vpop.f32.mrf.mxu2 }
 0x106   : > { %v8271_v36 = vor.u32 %v9158_v34, %v8270_v31 }
 0x107   : > { %v691_v61 = vunpack.c.l.bf16 %v626_v46  ;;  %v692_v62 = vunpack.c.h.bf16 %v626_v46 }
 0x108   : > { %2106 = vmatpush.bf16.msra.mxu2 %v8271_v36 }
 0x109   : > { %v757_v63 = vadd.f32 %v9774_v8, %v691_v61  ;;  %v758_v0 = vadd.f32 %v9776_v9, %v692_v62 }
 0x10b   : > { %v917_v16 = vmax.f32 %v757_v63, 0.0  ;;  %v918_v17 = vmax.f32 %v758_v0, 0.0  ;;  %v9844_v21 = vpop.f32.mrf.mxu3 }
 0x10c   : > { %v479_v22 = vpop.f32.mrf.mxu0  ;;  %v568_v24 = vpop.f32.mrf.mxu1 }
 0x10d   : > { %v967_v26 = vpack.c.bf16 %v917_v16, %v915_v11  ;;  %v968_v25 = vpack.c.bf16 %v918_v17, %v916_v12  ;;  %v627_v27 = vpack.c.bf16 %v568_v24, %v479_v22 }
 0x10f   : > { %1217 = vmatmul.bf16.gmra.mxu2 %v967_v26  ;;  %1306 = vmatmul.bf16.gmra.mxu3 %v968_v25  ;;  %v693_v38 = vunpack.c.l.bf16 %v627_v27  ;;  %v694_v39 = vunpack.c.h.bf16 %v627_v27  ;;  %v1567_v27 = vld [vmem:[%s11894_s5] sm:$0x3] }
 0x110   : > { %1395 = vmatmul.bf16.gmra.mxu0 %v967_v26  ;;  %1484 = vmatmul.bf16.gmra.mxu1 %v968_v25  ;;  %v1569_v36 = vperm.slane %v1567_v27, 0 }
 0x111   : > { %v759_v58 = vadd.f32 %v9774_v8, %v693_v38  ;;  %v760_v60 = vadd.f32 %v9776_v9, %v694_v39  ;;  %v1570_v38 = vperm.slane %v1567_v27, 1 }
 0x113   : > { %v608_v45 = vpop.f32.mrf.mxu3  ;;  %v919_v11 = vmax.f32 %v759_v58, 0.0  ;;  %v920_v12 = vmax.f32 %v760_v60, 0.0  ;;  %v1573_v58 = vpack.c.bf16 %v1570_v38, %v1569_v36  ;;  %v632_v38 = vpack.c.bf16 %v9794_v5, %v9786_v33 }
 0x114   : > { %v481_v46 = vpop.f32.mrf.mxu0  ;;  %v570_v48 = vpop.f32.mrf.mxu1  ;;  %v9846_v50 = vpack.c.bf16 %v608_v45, %v519_v40  ;;  %v9163_v45 = vld [vmem:[#allocation2 + $0x164] sm:$0xf] }
 0x115   : > { %v628_v52 = vpack.c.bf16 %v570_v48, %v481_v46  ;;  %v8296_v46 = vld [vmem:[#allocation2 + $0x168] sm:$0xf0]  ;;  %v9179_v48 = vld [vmem:[#allocation2 + $0x1e4] sm:$0xf] }
 0x116   : > { %v8299_v60 = vor.u32 %v9163_v45, %v8296_v46 }
 0x117   : > { %v695_v61 = vunpack.c.l.bf16 %v628_v52  ;;  %v696_v62 = vunpack.c.h.bf16 %v628_v52 }
 0x118   : > { %2281 = vmatpush.bf16.msra.mxu0 %v8299_v60 }
 0x119   : > { %v761_v63 = vadd.f32 %v9774_v8, %v695_v61  ;;  %v762_v0 = vadd.f32 %v9776_v9, %v696_v62  ;;  %v8360_v61 = vld [vmem:[#allocation2 + $0x1e8] sm:$0xf0]  ;;  %v8334_v62 = vld [vmem:[#allocation2 + $0x1b0] sm:$0xf] }
 0x11b   : > { %v921_v16 = vmax.f32 %v761_v63, 0.0  ;;  %v922_v17 = vmax.f32 %v762_v0, 0.0  ;;  %v9174_v63 = vld [vmem:[#allocation2 + $0x1b4] sm:$0xf0] }
 0x11c   : > { %v484_v22 = vpop.f32.mrf.mxu0 }
 0x11d   : > { %v969_v24 = vpack.c.bf16 %v921_v16, %v919_v11  ;;  %v970_v26 = vpack.c.bf16 %v922_v17, %v920_v12  ;;  %v629_v25 = vpack.c.bf16 %v9778_v10, %v484_v22  ;;  %v8363_v12 = vor.u32 %v9179_v48, %v8360_v61  ;;  %v9861_v22 = vpop.f32.mrf.mxu2 }
 0x11e   : > { %v8335_v16 = vor.u32 %v9174_v63, %v8334_v62  ;;  %v701_v61 = vunpack.c.l.bf16 %v9788_v51  ;;  %v703_v62 = vunpack.c.l.bf16 %v632_v38  ;;  %v704_v63 = vunpack.c.h.bf16 %v632_v38 }
 0x11f   : > { %1222 = vmatmul.bf16.gmra.mxu2 %v969_v24  ;;  %1311 = vmatmul.bf16.gmra.mxu3 %v970_v26  ;;  %v697_v31 = vunpack.c.l.bf16 %v629_v25  ;;  %v698_v34 = vunpack.c.h.bf16 %v629_v25  ;;  %v1576_v25 = vunpack.c.h.b16 %v1573_v58 }
 0x120   : > { %1400 = vmatmul.bf16.gmra.mxu0 %v969_v24  ;;  %1489 = vmatmul.bf16.gmra.mxu1 %v970_v26  ;;  %v9863_v24 = vpop.f32.mrf.mxu3  ;;  %v1575_v26 = vunpack.c.l.b16 %v1573_v58  ;;  %v8262_v58 = vld [vmem:[#allocation2 + $0x120] sm:$0xf] }
 0x121   : > { %v763_v10 = vadd.f32 %v9774_v8, %v697_v31  ;;  %v764_v52 = vadd.f32 %v9776_v9, %v698_v34  ;;  %2370 = vmatpush.bf16.msra.mxu1 %v8363_v12  ;;  %2195 = vmatpush.bf16.msra.mxu3 %v8335_v16  ;;  %v1578_v60 = vpack.c.b16 %v1576_v25, %v1576_v25 }
 0x122   : > { %v1577_v48 = vpack.c.b16 %v1575_v26, %v1575_v26  ;;  %v769_v25 = vadd.f32 %v9774_v8, %v703_v62 }
 0x123   : > { %v923_v27 = vmax.f32 %v763_v10, 0.0  ;;  %v924_v31 = vmax.f32 %v764_v52, 0.0  ;;  %v9156_v10 = vld [vmem:[#allocation2 + $0x124] sm:$0xf0]  ;;  %v702_v52 = vunpack.c.h.bf16 %v9788_v51  ;;  %v1584_v16 = vpack.i.b16 %v1578_v60, %v1578_v60 }
 0x124   : > { %v486_v39 = vpop.f32.mrf.mxu0 }
 0x125   : > { %v630_v40 = vpack.c.bf16 %v9784_v32, %v486_v39  ;;  %v768_v26 = vadd.f32 %v9776_v9, %v702_v52  ;;  %v1586_v38 = vperm.slane %v1584_v16, 0 }
 0x127   : > { %v699_v0 = vunpack.c.l.bf16 %v630_v40  ;;  %v700_v11 = vunpack.c.h.bf16 %v630_v40  ;;  %v9875_v52 = vunpack.c.l.bf16 %v1586_v38 }
 0x129   : > { %v765_v17 = vadd.f32 %v9774_v8, %v699_v0  ;;  %v766_v32 = vadd.f32 %v9776_v9, %v700_v11  ;;  %v8263_v0 = vor.u32 %v9156_v10, %v8262_v58  ;;  %v1580_v11 = vpack.i.b16 %v1577_v48, %v1577_v48 }
 0x12a   : > { %v929_v48 = vmax.f32 %v769_v25, 0.0 }
 0x12b   : > { %v925_v34 = vmax.f32 %v765_v17, 0.0  ;;  %v926_v36 = vmax.f32 %v766_v32, 0.0  ;;  %2107 = vmatpush.bf16.msra.mxu2 %v8263_v0  ;;  %v767_v32 = vadd.f32 %v9774_v8, %v701_v61 }
 0x12d   : > { %v1366_v39 = vpop.f32.mrf.mxu0  ;;  %v1455_v40 = vpop.f32.mrf.mxu1  ;;  %v971_v45 = vpack.c.bf16 %v925_v34, %v923_v27  ;;  %v972_v46 = vpack.c.bf16 %v926_v36, %v924_v31  ;;  %v770_v27 = vadd.f32 %v9776_v9, %v704_v63  ;;  %v1582_v36 = vperm.slane %v1580_v11, 0 }
 0x12e   : > { %v1456_v17 = vadd.f32 %v1455_v40, %v1366_v39  ;;  %v634_v63 = vpack.c.bf16 %v9804_v49, %v9796_v6  ;;  %v706_v6 = vunpack.c.h.bf16 %v9798_v28 }
 0x12f   : > { %1227 = vmatmul.bf16.gmra.mxu2 %v971_v45  ;;  %1316 = vmatmul.bf16.gmra.mxu3 %v972_v46  ;;  %v930_v58 = vmax.f32 %v770_v27, 0.0  ;;  %v9873_v10 = vunpack.c.l.bf16 %v1582_v36 }
 0x130   : > { %1405 = vmatmul.bf16.gmra.mxu0 %v971_v45  ;;  %1494 = vmatmul.bf16.gmra.mxu1 %v972_v46  ;;  %v927_v45 = vmax.f32 %v767_v32, 0.0  ;;  %v928_v46 = vmax.f32 %v768_v26, 0.0  ;;  %v705_v32 = vunpack.c.l.bf16 %v9798_v28  ;;  %v707_v49 = vunpack.c.l.bf16 %v634_v63 }
 0x131   : > { %v708_v36 = vunpack.c.h.bf16 %v634_v63 }
 0x132   : > { %v1188_v33 = vpop.f32.mrf.mxu2  ;;  %v1277_v5 = vpop.f32.mrf.mxu3  ;;  %v974_v16 = vpack.c.bf16 %v930_v58, %v928_v46  ;;  %v8326_v46 = vld [vmem:[#allocation2 + $0x1a0] sm:$0xf] }
 0x133   : > { %v1278_v12 = vadd.f32 %v1277_v5, %v1188_v33 }
 0x135   : > { %v1368_v31 = vpop.f32.mrf.mxu0  ;;  %v1457_v51 = vpop.f32.mrf.mxu1  ;;  %v1535_v34 = vpack.c.bf16 %v1456_v17, %v1278_v12  ;;  %v973_v12 = vpack.c.bf16 %v929_v48, %v927_v45  ;;  %v8352_v45 = vld [vmem:[#allocation2 + $0x1d8] sm:$0xf0]  ;;  %v9172_v48 = vld [vmem:[#allocation2 + $0x1a4] sm:$0xf0] }
 0x136   : > { %v1458_v62 = vadd.f32 %v1457_v51, %v1368_v31  ;;  %v9161_v31 = vld [vmem:[#allocation2 + $0x154] sm:$0xf]  ;;  %v8288_v51 = vld [vmem:[#allocation2 + $0x158] sm:$0xf0] }
 0x137   : > { %v1587_v60 = vunpack.c.l.bf16 %v1535_v34  ;;  %v1588_v61 = vunpack.c.h.bf16 %v1535_v34  ;;  %v9177_v34 = vld [vmem:[#allocation2 + $0x1d4] sm:$0xf]  ;;  %v8291_v38 = vor.u32 %v9161_v31, %v8288_v51 }
 0x139   : > { %v1653_v17 = vadd.f32 %v9873_v10, %v1587_v60  ;;  %v1654_v26 = vadd.f32 %v9875_v52, %v1588_v61  ;;  %2282 = vmatpush.bf16.msra.mxu0 %v8291_v38 }
 0x13a   : > { %v1190_v39 = vpop.f32.mrf.mxu2  ;;  %v1279_v40 = vpop.f32.mrf.mxu3 }
 0x13b   : > { %v1280_v0 = vadd.f32 %v1279_v40, %v1190_v39  ;;  %v8355_v39 = vor.u32 %v9177_v34, %v8352_v45  ;;  %v8327_v40 = vor.u32 %v9172_v48, %v8326_v46  ;;  %v1813_v61 = vmax.f32 %v1653_v17, 0.0 }
 0x13d   : > { %v1536_v33 = vpack.c.bf16 %v1458_v62, %v1280_v0  ;;  %v1371_v5 = vpop.f32.mrf.mxu0  ;;  %v1460_v11 = vpop.f32.mrf.mxu1  ;;  %2371 = vmatpush.bf16.msra.mxu1 %v8355_v39  ;;  %2196 = vmatpush.bf16.msra.mxu3 %v8327_v40 }
 0x13e   : > { %v1461_v31 = vadd.f32 %v1460_v11, %v1371_v5 }
 0x13f   : > { %v1589_v25 = vunpack.c.l.bf16 %v1536_v33  ;;  %v1590_v27 = vunpack.c.h.bf16 %v1536_v33  ;;  %1232 = vmatmul.bf16.gmra.mxu2 %v973_v12  ;;  %1321 = vmatmul.bf16.gmra.mxu3 %v974_v16  ;;  %v1814_v33 = vmax.f32 %v1654_v26, 0.0 }
 0x140   : > { %1410 = vmatmul.bf16.gmra.mxu0 %v973_v12  ;;  %1499 = vmatmul.bf16.gmra.mxu1 %v974_v16  ;;  %v771_v12 = vadd.f32 %v9774_v8, %v705_v32  ;;  %v772_v16 = vadd.f32 %v9776_v9, %v706_v6 }
 0x141   : > { %v1655_v58 = vadd.f32 %v9873_v10, %v1589_v25  ;;  %v1656_v60 = vadd.f32 %v9875_v52, %v1590_v27  ;;  %v773_v25 = vadd.f32 %v9774_v8, %v707_v49  ;;  %v774_v27 = vadd.f32 %v9776_v9, %v708_v36 }
 0x142   : > { %v1193_v62 = vpop.f32.mrf.mxu2  ;;  %v1282_v0 = vpop.f32.mrf.mxu3  ;;  %v931_v45 = vmax.f32 %v771_v12, 0.0  ;;  %v932_v46 = vmax.f32 %v772_v16, 0.0  ;;  %v636_v49 = vpack.c.bf16 %v9814_v23, %v9806_v56  ;;  %v709_v12 = vunpack.c.l.bf16 %v9808_v7  ;;  %v8254_v56 = vld [vmem:[#allocation2 + $0x110] sm:$0xf]  ;;  %v9154_v23 = vld [vmem:[#allocation2 + $0x114] sm:$0xf0] }
 0x143   : > { %v1815_v28 = vmax.f32 %v1655_v58, 0.0  ;;  %v1816_v59 = vmax.f32 %v1656_v60, 0.0  ;;  %v1283_v63 = vadd.f32 %v1282_v0, %v1193_v62  ;;  %v933_v48 = vmax.f32 %v773_v25, 0.0 }
 0x144   : > { %v934_v58 = vmax.f32 %v774_v27, 0.0  ;;  %v710_v16 = vunpack.c.h.bf16 %v9808_v7  ;;  %v712_v25 = vunpack.c.h.bf16 %v636_v49  ;;  %v8255_v27 = vor.u32 %v9154_v23, %v8254_v56 }
 0x145   : > { %v9889_v51 = vpack.c.bf16 %v1815_v28, %v1813_v61  ;;  %v9891_v17 = vpack.c.bf16 %v1816_v59, %v1814_v33  ;;  %v1373_v34 = vpop.f32.mrf.mxu0  ;;  %v1462_v26 = vpop.f32.mrf.mxu1  ;;  %v1537_v38 = vpack.c.bf16 %v1461_v31, %v1283_v63  ;;  %v975_v61 = vpack.c.bf16 %v933_v48, %v931_v45 }
 0x146   : > { %v1463_v5 = vadd.f32 %v1462_v26, %v1373_v34  ;;  %v976_v62 = vpack.c.bf16 %v934_v58, %v932_v46  ;;  %v711_v31 = vunpack.c.l.bf16 %v636_v49  ;;  %2108 = vmatpush.bf16.msra.mxu2 %v8255_v27  ;;  %v775_v7 = vadd.f32 %v9774_v8, %v709_v12 }
 0x147   : > { %v1591_v60 = vunpack.c.l.bf16 %v1537_v38  ;;  %v1592_v6 = vunpack.c.h.bf16 %v1537_v38 }
 0x149   : > { %v1657_v0 = vadd.f32 %v9873_v10, %v1591_v60  ;;  %v1658_v63 = vadd.f32 %v9875_v52, %v1592_v6 }
 0x14a   : > { %v1195_v32 = vpop.f32.mrf.mxu2  ;;  %v1284_v39 = vpop.f32.mrf.mxu3 }
 0x14b   : > { %v1285_v11 = vadd.f32 %v1284_v39, %v1195_v32  ;;  %v1817_v46 = vmax.f32 %v1657_v0, 0.0  ;;  %v1818_v60 = vmax.f32 %v1658_v63, 0.0  ;;  %v776_v39 = vadd.f32 %v9776_v9, %v710_v16 }
 0x14d   : > { %v1538_v36 = vpack.c.bf16 %v1463_v5, %v1285_v11  ;;  %v1376_v40 = vpop.f32.mrf.mxu0  ;;  %v1465_v59 = vpop.f32.mrf.mxu1  ;;  %v777_v5 = vadd.f32 %v9774_v8, %v711_v31  ;;  %v778_v11 = vadd.f32 %v9776_v9, %v712_v25  ;;  %v638_v31 = vpack.c.bf16 %v9824_v18, %v9816_v43 }
 0x14e   : > { %v1466_v6 = vadd.f32 %v1465_v59, %v1376_v40  ;;  %v714_v43 = vunpack.c.h.bf16 %v9818_v55 }
 0x14f   : > { %v1593_v33 = vunpack.c.l.bf16 %v1538_v36  ;;  %v1594_v28 = vunpack.c.h.bf16 %v1538_v36  ;;  %1237 = vmatmul.bf16.gmra.mxu2 %v975_v61  ;;  %1326 = vmatmul.bf16.gmra.mxu3 %v976_v62  ;;  %v937_v63 = vmax.f32 %v777_v5, 0.0  ;;  %v938_v56 = vmax.f32 %v778_v11, 0.0 }
 0x150   : > { %1415 = vmatmul.bf16.gmra.mxu0 %v975_v61  ;;  %1504 = vmatmul.bf16.gmra.mxu1 %v976_v62  ;;  %v715_v18 = vunpack.c.l.bf16 %v638_v31  ;;  %v716_v5 = vunpack.c.h.bf16 %v638_v31 }
 0x151   : > { %v1659_v34 = vadd.f32 %v9873_v10, %v1593_v33  ;;  %v1660_v26 = vadd.f32 %v9875_v52, %v1594_v28  ;;  %v935_v33 = vmax.f32 %v775_v7, 0.0  ;;  %v936_v28 = vmax.f32 %v776_v39, 0.0  ;;  %v8280_v7 = vld [vmem:[#allocation2 + $0x148] sm:$0xf0]  ;;  %v9175_v39 = vld [vmem:[#allocation2 + $0x1c4] sm:$0xf] }
 0x152   : > { %v1198_v38 = vpop.f32.mrf.mxu2  ;;  %v1287_v45 = vpop.f32.mrf.mxu3 }
 0x153   : > { %v1288_v48 = vadd.f32 %v1287_v45, %v1198_v38  ;;  %v1819_v58 = vmax.f32 %v1659_v34, 0.0  ;;  %v1820_v32 = vmax.f32 %v1660_v26, 0.0  ;;  %v977_v38 = vpack.c.bf16 %v937_v63, %v935_v33 }
 0x154   : > { %v978_v45 = vpack.c.bf16 %v938_v56, %v936_v28 }
 0x155   : > { %v1378_v49 = vpop.f32.mrf.mxu0  ;;  %v1467_v36 = vpop.f32.mrf.mxu1  ;;  %v9905_v61 = vpack.c.bf16 %v1819_v58, %v1817_v46  ;;  %v9907_v62 = vpack.c.bf16 %v1820_v32, %v1818_v60  ;;  %v1539_v0 = vpack.c.bf16 %v1466_v6, %v1288_v48  ;;  %v713_v48 = vunpack.c.l.bf16 %v9818_v55  ;;  %v9159_v32 = vld [vmem:[#allocation2 + $0x144] sm:$0xf] }
 0x156   : > { %v1468_v40 = vadd.f32 %v1467_v36, %v1378_v49  ;;  %v8283_v11 = vor.u32 %v9159_v32, %v8280_v7  ;;  %v8344_v49 = vld [vmem:[#allocation2 + $0x1c8] sm:$0xf0]  ;;  %v8318_v36 = vld [vmem:[#allocation2 + $0x190] sm:$0xf] }
 0x157   : > { %v1595_v23 = vunpack.c.l.bf16 %v1539_v0  ;;  %v1596_v16 = vunpack.c.h.bf16 %v1539_v0  ;;  %v9170_v0 = vld [vmem:[#allocation2 + $0x194] sm:$0xf0]  ;;  %v8347_v33 = vor.u32 %v9175_v39, %v8344_v49  ;;  %v779_v31 = vadd.f32 %v9774_v8, %v713_v48 }
 0x158   : > { %v8319_v28 = vor.u32 %v9170_v0, %v8318_v36  ;;  %2283 = vmatpush.bf16.msra.mxu0 %v8283_v11 }
 0x159   : > { %v1661_v46 = vadd.f32 %v9873_v10, %v1595_v23  ;;  %v1662_v6 = vadd.f32 %v9875_v52, %v1596_v16  ;;  %2372 = vmatpush.bf16.msra.mxu1 %v8347_v33  ;;  %v939_v11 = vmax.f32 %v779_v31, 0.0 }
 0x15a   : > { %v1200_v12 = vpop.f32.mrf.mxu2  ;;  %v1289_v27 = vpop.f32.mrf.mxu3  ;;  %2197 = vmatpush.bf16.msra.mxu3 %v8319_v28 }
 0x15b   : > { %v1290_v59 = vadd.f32 %v1289_v27, %v1200_v12  ;;  %v1821_v27 = vmax.f32 %v1661_v46, 0.0 }
 0x15d   : > { %v1540_v25 = vpack.c.bf16 %v1468_v40, %v1290_v59  ;;  %v1381_v34 = vpop.f32.mrf.mxu0  ;;  %v1470_v26 = vpop.f32.mrf.mxu1  ;;  %v1822_v40 = vmax.f32 %v1662_v6, 0.0 }
 0x15f   : > { %v1597_v58 = vunpack.c.l.bf16 %v1540_v25  ;;  %v1598_v60 = vunpack.c.h.bf16 %v1540_v25  ;;  %1242 = vmatmul.bf16.gmra.mxu2 %v977_v38  ;;  %1331 = vmatmul.bf16.gmra.mxu3 %v978_v45  ;;  %v780_v25 = vadd.f32 %v9776_v9, %v714_v43 }
 0x160   : > { %1420 = vmatmul.bf16.gmra.mxu0 %v977_v38  ;;  %1509 = vmatmul.bf16.gmra.mxu1 %v978_v45  ;;  %v1471_v38 = vadd.f32 %v1470_v26, %v1381_v34  ;;  %v781_v45 = vadd.f32 %v9774_v8, %v715_v18  ;;  %v640_v18 = vpack.c.bf16 %v9834_v4, %v9828_v47  ;;  %v8246_v47 = vld [vmem:[#allocation2 + $0x100] sm:$0xf]  ;;  %v9152_v4 = vld [vmem:[#allocation2 + $0x104] sm:$0xf0] }
 0x161   : > { %v1663_v63 = vadd.f32 %v9873_v10, %v1597_v58  ;;  %v1664_v56 = vadd.f32 %v9875_v52, %v1598_v60  ;;  %v782_v58 = vadd.f32 %v9776_v9, %v716_v5  ;;  %v940_v49 = vmax.f32 %v780_v25, 0.0 }
 0x162   : > { %v1203_v23 = vpop.f32.mrf.mxu2  ;;  %v1292_v12 = vpop.f32.mrf.mxu3  ;;  %v941_v6 = vmax.f32 %v781_v45, 0.0  ;;  %v719_v31 = vunpack.c.l.bf16 %v640_v18  ;;  %v720_v25 = vunpack.c.h.bf16 %v640_v18 }
 0x163   : > { %v1293_v16 = vadd.f32 %v1292_v12, %v1203_v23  ;;  %v1823_v55 = vmax.f32 %v1663_v63, 0.0  ;;  %v1824_v59 = vmax.f32 %v1664_v56, 0.0  ;;  %v942_v36 = vmax.f32 %v782_v58, 0.0 }
 0x164   : > { %v979_v56 = vpack.c.bf16 %v941_v6, %v939_v11 }
 0x165   : > { %v1383_v60 = vpop.f32.mrf.mxu0  ;;  %v1472_v32 = vpop.f32.mrf.mxu1  ;;  %v9921_v7 = vpack.c.bf16 %v1823_v55, %v1821_v27  ;;  %v9923_v46 = vpack.c.bf16 %v1824_v59, %v1822_v40  ;;  %v1541_v39 = vpack.c.bf16 %v1471_v38, %v1293_v16  ;;  %v980_v23 = vpack.c.bf16 %v942_v36, %v940_v49 }
 0x166   : > { %v1473_v34 = vadd.f32 %v1472_v32, %v1383_v60  ;;  %v717_v40 = vunpack.c.l.bf16 %v9826_v44  ;;  %v718_v59 = vunpack.c.h.bf16 %v9826_v44  ;;  %v8247_v38 = vor.u32 %v9152_v4, %v8246_v47 }
 0x167   : > { %v1599_v0 = vunpack.c.l.bf16 %v1541_v39  ;;  %v1600_v48 = vunpack.c.h.bf16 %v1541_v39 }
 0x168   : > { %2109 = vmatpush.bf16.msra.mxu2 %v8247_v38 }
 0x169   : > { %v1665_v12 = vadd.f32 %v9873_v10, %v1599_v0  ;;  %v1666_v27 = vadd.f32 %v9875_v52, %v1600_v48  ;;  %v783_v0 = vadd.f32 %v9774_v8, %v717_v40  ;;  %v784_v48 = vadd.f32 %v9776_v9, %v718_v59 }
 0x16a   : > { %v1205_v33 = vpop.f32.mrf.mxu2  ;;  %v1294_v43 = vpop.f32.mrf.mxu3 }
 0x16b   : > { %v1295_v26 = vadd.f32 %v1294_v43, %v1205_v33  ;;  %v1825_v39 = vmax.f32 %v1665_v12, 0.0  ;;  %v1826_v11 = vmax.f32 %v1666_v27, 0.0  ;;  %v785_v33 = vadd.f32 %v9774_v8, %v719_v31 }
 0x16c   : > { %v786_v43 = vadd.f32 %v9776_v9, %v720_v25  ;;  %v642_v31 = vpack.c.bf16 %v9844_v21, %v9842_v3  ;;  %v8336_v21 = vld [vmem:[#allocation2 + $0x1b8] sm:$0xf0] }
 0x16d   : > { %v1542_v5 = vpack.c.bf16 %v1473_v34, %v1295_v26  ;;  %v1386_v28 = vpop.f32.mrf.mxu0  ;;  %v1475_v63 = vpop.f32.mrf.mxu1  ;;  %v945_v27 = vmax.f32 %v785_v33, 0.0 }
 0x16e   : > { %v1476_v49 = vadd.f32 %v1475_v63, %v1386_v28  ;;  %v943_v28 = vmax.f32 %v783_v0, 0.0  ;;  %v724_v33 = vunpack.c.h.bf16 %v642_v31 }
 0x16f   : > { %v1601_v16 = vunpack.c.l.bf16 %v1542_v5  ;;  %v1602_v55 = vunpack.c.h.bf16 %v1542_v5  ;;  %1247 = vmatmul.bf16.gmra.mxu2 %v979_v56  ;;  %1336 = vmatmul.bf16.gmra.mxu3 %v980_v23 }
 0x170   : > { %1425 = vmatmul.bf16.gmra.mxu0 %v979_v56  ;;  %1514 = vmatmul.bf16.gmra.mxu1 %v980_v23  ;;  %v944_v23 = vmax.f32 %v784_v48, 0.0  ;;  %v723_v48 = vunpack.c.l.bf16 %v642_v31  ;;  %v8328_v31 = vld [vmem:[#allocation2 + $0x1a8] sm:$0xf0] }
 0x171   : > { %v1667_v45 = vadd.f32 %v9873_v10, %v1601_v16  ;;  %v1668_v58 = vadd.f32 %v9875_v52, %v1602_v55  ;;  %v946_v16 = vmax.f32 %v786_v43, 0.0 }
 0x172   : > { %v1208_v60 = vpop.f32.mrf.mxu2  ;;  %v1297_v32 = vpop.f32.mrf.mxu3 }
 0x173   : > { %v1298_v6 = vadd.f32 %v1297_v32, %v1208_v60  ;;  %v1827_v36 = vmax.f32 %v1667_v45, 0.0  ;;  %v1828_v44 = vmax.f32 %v1668_v58, 0.0  ;;  %v981_v58 = vpack.c.bf16 %v945_v27, %v943_v28 }
 0x174   : > { %v982_v60 = vpack.c.bf16 %v946_v16, %v944_v23  ;;  %v9155_v16 = vld [vmem:[#allocation2 + $0x124] sm:$0xf] }
 0x175   : > { %v1543_v34 = vpack.c.bf16 %v1476_v49, %v1298_v6  ;;  %v1388_v26 = vpop.f32.mrf.mxu0  ;;  %v1477_v18 = vpop.f32.mrf.mxu1  ;;  %v9937_v5 = vpack.c.bf16 %v1827_v36, %v1825_v39  ;;  %v9939_v56 = vpack.c.bf16 %v1828_v44, %v1826_v11  ;;  %v721_v39 = vunpack.c.l.bf16 %v9836_v37  ;;  %v9157_v11 = vld [vmem:[#allocation2 + $0x134] sm:$0xf]  ;;  %v8272_v49 = vld [vmem:[#allocation2 + $0x138] sm:$0xf0] }
 0x176   : > { %v1478_v59 = vadd.f32 %v1477_v18, %v1388_v26  ;;  %v9173_v6 = vld [vmem:[#allocation2 + $0x1b4] sm:$0xf]  ;;  %v722_v36 = vunpack.c.h.bf16 %v9836_v37  ;;  %v8275_v3 = vor.u32 %v9157_v11, %v8272_v49  ;;  %v9168_v26 = vld [vmem:[#allocation2 + $0x184] sm:$0xf0] }
 0x177   : > { %v1603_v63 = vunpack.c.l.bf16 %v1543_v34  ;;  %v1604_v12 = vunpack.c.h.bf16 %v1543_v34  ;;  %v8339_v43 = vor.u32 %v9173_v6, %v8336_v21  ;;  %v8310_v34 = vld [vmem:[#allocation2 + $0x180] sm:$0xf]  ;;  %v790_v6 = vadd.f32 %v9776_v9, %v724_v33 }
 0x178   : > { %2284 = vmatpush.bf16.msra.mxu0 %v8275_v3  ;;  %v8311_v28 = vor.u32 %v9168_v26, %v8310_v34  ;;  %v9153_v34 = vld [vmem:[#allocation2 + $0x114] sm:$0xf]  ;;  %v8256_v26 = vld [vmem:[#allocation2 + $0x118] sm:$0xf0] }
 0x179   : > { %v1669_v4 = vadd.f32 %v9873_v10, %v1603_v63  ;;  %v1670_v32 = vadd.f32 %v9875_v52, %v1604_v12  ;;  %2373 = vmatpush.bf16.msra.mxu1 %v8339_v43 }
 0x17a   : > { %v1210_v55 = vpop.f32.mrf.mxu2  ;;  %v1299_v40 = vpop.f32.mrf.mxu3  ;;  %2198 = vmatpush.bf16.msra.mxu3 %v8311_v28  ;;  %v8259_v28 = vor.u32 %v9153_v34, %v8256_v26 }
 0x17b   : > { %v1300_v47 = vadd.f32 %v1299_v40, %v1210_v55  ;;  %v1829_v18 = vmax.f32 %v1669_v4, 0.0  ;;  %v1830_v23 = vmax.f32 %v1670_v32, 0.0  ;;  %v8264_v55 = vld [vmem:[#allocation2 + $0x128] sm:$0xf0]  ;;  %v9171_v40 = vld [vmem:[#allocation2 + $0x1a4] sm:$0xf]  ;;  %v787_v4 = vadd.f32 %v9774_v8, %v721_v39 }
 0x17c   : > { %v8331_v49 = vor.u32 %v9171_v40, %v8328_v31  ;;  %v789_v32 = vadd.f32 %v9774_v8, %v723_v48  ;;  %v9169_v39 = vld [vmem:[#allocation2 + $0x194] sm:$0xf]  ;;  %v8312_v31 = vld [vmem:[#allocation2 + $0x188] sm:$0xf0] }
 0x17d   : > { %v1544_v25 = vpack.c.bf16 %v1478_v59, %v1300_v47  ;;  %v1391_v38 = vpop.f32.mrf.mxu0  ;;  %v1480_v45 = vpop.f32.mrf.mxu1  ;;  %v8267_v47 = vor.u32 %v9155_v16, %v8264_v55  ;;  %v9167_v16 = vld [vmem:[#allocation2 + $0x184] sm:$0xf] }
 0x17e   : > { %v1481_v11 = vadd.f32 %v1480_v45, %v1391_v38  ;;  %2374 = vmatpush.bf16.msra.mxu1 %v8331_v49  ;;  %v947_v45 = vmax.f32 %v787_v4, 0.0  ;;  %v949_v48 = vmax.f32 %v789_v32, 0.0 }
 0x17f   : > { %v1605_v44 = vunpack.c.l.bf16 %v1544_v25  ;;  %v1606_v0 = vunpack.c.h.bf16 %v1544_v25  ;;  %1252 = vmatmul.bf16.gmra.mxu2 %v981_v58  ;;  %1341 = vmatmul.bf16.gmra.mxu3 %v982_v60 }
 0x180   : > { %1430 = vmatmul.bf16.gmra.mxu0 %v981_v58  ;;  %1519 = vmatmul.bf16.gmra.mxu1 %v982_v60  ;;  %v788_v60 = vadd.f32 %v9776_v9, %v722_v36  ;;  %v8320_v36 = vld [vmem:[#allocation2 + $0x198] sm:$0xf0]  ;;  %v983_v49 = vpack.c.bf16 %v949_v48, %v947_v45 }
 0x181   : > { %v1671_v63 = vadd.f32 %v9873_v10, %v1605_v44  ;;  %v1672_v37 = vadd.f32 %v9875_v52, %v1606_v0  ;;  %2285 = vmatpush.bf16.msra.mxu0 %v8267_v47  ;;  %v8323_v38 = vor.u32 %v9169_v39, %v8320_v36  ;;  %v9198_v39 = vld [vmem:[#allocation2 + $0x274] sm:$0xf0] }
 0x182   : > { %v1213_v12 = vpop.f32.mrf.mxu2  ;;  %v1302_v27 = vpop.f32.mrf.mxu3 }
 0x183   : > { %v1303_v59 = vadd.f32 %v1302_v27, %v1213_v12  ;;  %v1831_v25 = vmax.f32 %v1671_v63, 0.0  ;;  %v1832_v58 = vmax.f32 %v1672_v37, 0.0  ;;  %v948_v63 = vmax.f32 %v788_v60, 0.0  ;;  %2375 = vmatpush.bf16.msra.mxu1 %v8323_v38 }
 0x184   : > { %v950_v37 = vmax.f32 %v790_v6, 0.0 }
 0x185   : > { %v1393_v44 = vpop.f32.mrf.mxu0  ;;  %v1482_v0 = vpop.f32.mrf.mxu1  ;;  %v9953_v3 = vpack.c.bf16 %v1831_v25, %v1829_v18  ;;  %v9955_v21 = vpack.c.bf16 %v1832_v58, %v1830_v23  ;;  %v1545_v43 = vpack.c.bf16 %v1481_v11, %v1303_v59  ;;  %2286 = vmatpush.bf16.msra.mxu0 %v8259_v28  ;;  %v9151_v18 = vld [vmem:[#allocation2 + $0x104] sm:$0xf]  ;;  %v8248_v23 = vld [vmem:[#allocation2 + $0x108] sm:$0xf0]  ;;  %v644_v25 = vpack.c.bf16 %v9863_v24, %v9861_v22 }
 0x186   : > { %v1483_v40 = vadd.f32 %v1482_v0, %v1393_v44  ;;  %v8251_v47 = vor.u32 %v9151_v18, %v8248_v23  ;;  %v8315_v58 = vor.u32 %v9167_v16, %v8312_v31  ;;  %v984_v32 = vpack.c.bf16 %v950_v37, %v948_v63 }
 0x187   : > { %v1607_v33 = vunpack.c.l.bf16 %v1545_v43  ;;  %v1608_v55 = vunpack.c.h.bf16 %v1545_v43  ;;  %v725_v0 = vunpack.c.l.bf16 %v9846_v50  ;;  %v726_v22 = vunpack.c.h.bf16 %v9846_v50  ;;  %v8431_v43 = vld [vmem:[#allocation2 + $0x270] sm:$0xf] }
 0x188   : > { %2376 = vmatpush.bf16.msra.mxu1 %v8315_v58  ;;  %v727_v24 = vunpack.c.l.bf16 %v644_v25  ;;  %v728_v28 = vunpack.c.h.bf16 %v644_v25  ;;  %v8432_v36 = vor.u32 %v9198_v39, %v8431_v43 }
 0x189   : > { %2287 = vmatpush.bf16.msra.mxu0 %v8251_v47  ;;  %v1673_v6 = vadd.f32 %v9873_v10, %v1607_v33  ;;  %v1674_v44 = vadd.f32 %v9875_v52, %v1608_v55  ;;  %v791_v50 = vadd.f32 %v9774_v8, %v725_v0  ;;  %v792_v23 = vadd.f32 %v9776_v9, %v726_v22 }
 0x18a   : > { %v1215_v12 = vpop.f32.mrf.mxu2  ;;  %v1304_v27 = vpop.f32.mrf.mxu3  ;;  %3026 = vmatpush.bf16.msrb.mxu2 %v8432_v36  ;;  %v793_v55 = vadd.f32 %v9774_v8, %v727_v24 }
 0x18b   : > { %v1305_v59 = vadd.f32 %v1304_v27, %v1215_v12  ;;  %v1833_v37 = vmax.f32 %v1673_v6, 0.0  ;;  %v1834_v27 = vmax.f32 %v1674_v44, 0.0 }
 0x18d   : > { %v1546_v4 = vpack.c.bf16 %v1483_v40, %v1305_v59  ;;  %v1396_v60 = vpop.f32.mrf.mxu0  ;;  %v1485_v11 = vpop.f32.mrf.mxu1  ;;  %v794_v40 = vadd.f32 %v9776_v9, %v728_v28 }
 0x18e   : > { %v1486_v16 = vadd.f32 %v1485_v11, %v1396_v60 }
 0x18f   : > { %v1609_v34 = vunpack.c.l.bf16 %v1546_v4  ;;  %v1610_v26 = vunpack.c.h.bf16 %v1546_v4  ;;  %1257 = vmatmul.bf16.gmra.mxu2 %v983_v49  ;;  %1346 = vmatmul.bf16.gmra.mxu3 %v984_v32  ;;  %v951_v4 = vmax.f32 %v791_v50, 0.0  ;;  %v954_v6 = vmax.f32 %v794_v40, 0.0 }
 0x190   : > { %1435 = vmatmul.bf16.gmra.mxu0 %v983_v49  ;;  %1524 = vmatmul.bf16.gmra.mxu1 %v984_v32  ;;  %v952_v49 = vmax.f32 %v792_v23, 0.0  ;;  %v953_v32 = vmax.f32 %v793_v55, 0.0 }
 0x191   : > { %v1675_v38 = vadd.f32 %v9873_v10, %v1609_v34  ;;  %v1676_v45 = vadd.f32 %v9875_v52, %v1610_v26 }
 0x192   : > { %v1218_v63 = vpop.f32.mrf.mxu2  ;;  %v1307_v48 = vpop.f32.mrf.mxu3  ;;  %v985_v24 = vpack.c.bf16 %v953_v32, %v951_v4  ;;  %v986_v43 = vpack.c.bf16 %v954_v6, %v952_v49 }
 0x193   : > { %v1308_v33 = vadd.f32 %v1307_v48, %v1218_v63  ;;  %v1835_v12 = vmax.f32 %v1675_v38, 0.0  ;;  %v1836_v18 = vmax.f32 %v1676_v45, 0.0  ;;  %v8495_v45 = vld [vmem:[#allocation2 + $0x2f0] sm:$0xf]  ;;  %v9214_v63 = vld [vmem:[#allocation2 + $0x2f4] sm:$0xf0] }
 0x194   : > { %v8496_v48 = vor.u32 %v9214_v63, %v8495_v45 }
 0x195   : > { %v1398_v59 = vpop.f32.mrf.mxu0  ;;  %v1487_v47 = vpop.f32.mrf.mxu1  ;;  %v9969_v31 = vpack.c.bf16 %v1835_v12, %v1833_v37  ;;  %v9971_v25 = vpack.c.bf16 %v1836_v18, %v1834_v27  ;;  %v1547_v58 = vpack.c.bf16 %v1486_v16, %v1308_v33 }
 0x196   : > { %v1488_v60 = vadd.f32 %v1487_v47, %v1398_v59  ;;  %3115 = vmatpush.bf16.msrb.mxu3 %v8496_v48 }
 0x197   : > { %v1611_v34 = vunpack.c.l.bf16 %v1547_v58  ;;  %v1612_v0 = vunpack.c.h.bf16 %v1547_v58 }
 0x199   : > { %v1677_v39 = vadd.f32 %v9873_v10, %v1611_v34  ;;  %v1678_v38 = vadd.f32 %v9875_v52, %v1612_v0 }
 0x19a   : > { %v1220_v26 = vpop.f32.mrf.mxu2  ;;  %v1309_v44 = vpop.f32.mrf.mxu3 }
 0x19b   : > { %v1310_v11 = vadd.f32 %v1309_v44, %v1220_v26  ;;  %v1837_v18 = vmax.f32 %v1677_v39, 0.0  ;;  %v1838_v16 = vmax.f32 %v1678_v38, 0.0  ;;  %v8423_v39 = vld [vmem:[#allocation2 + $0x260] sm:$0xf] }
 0x19d   : > { %v1548_v8 = vpack.c.bf16 %v1488_v60, %v1310_v11  ;;  %v1401_v22 = vpop.f32.mrf.mxu0  ;;  %v1490_v9 = vpop.f32.mrf.mxu1 }
 0x19e   : > { %v1491_v40 = vadd.f32 %v1490_v9, %v1401_v22 }
 0x19f   : > { %v1613_v28 = vunpack.c.l.bf16 %v1548_v8  ;;  %v1614_v36 = vunpack.c.h.bf16 %v1548_v8  ;;  %1262 = vmatmul.bf16.gmra.mxu2 %v985_v24  ;;  %1351 = vmatmul.bf16.gmra.mxu3 %v986_v43 }
 0x1a0   : > { %1440 = vmatmul.bf16.gmra.mxu0 %v985_v24  ;;  %1529 = vmatmul.bf16.gmra.mxu1 %v986_v43 }
 0x1a1   : > { %v1679_v37 = vadd.f32 %v9873_v10, %v1613_v28  ;;  %v1680_v33 = vadd.f32 %v9875_v52, %v1614_v36  ;;  %v9196_v28 = vld [vmem:[#allocation2 + $0x264] sm:$0xf0] }
 0x1a2   : > { %v1223_v12 = vpop.f32.mrf.mxu2  ;;  %v1312_v27 = vpop.f32.mrf.mxu3  ;;  %v8424_v36 = vor.u32 %v9196_v28, %v8423_v39 }
 0x1a3   : > { %v1313_v50 = vadd.f32 %v1312_v27, %v1223_v12  ;;  %v1839_v23 = vmax.f32 %v1679_v37, 0.0  ;;  %v1840_v55 = vmax.f32 %v1680_v33, 0.0 }
 0x1a4   : > { %3027 = vmatpush.bf16.msrb.mxu2 %v8424_v36 }
 0x1a5   : > { %v1403_v59 = vpop.f32.mrf.mxu0  ;;  %v1492_v47 = vpop.f32.mrf.mxu1  ;;  %v9977_v58 = vpack.c.bf16 %v1839_v23, %v1837_v18  ;;  %v9979_v4 = vpack.c.bf16 %v1840_v55, %v1838_v16  ;;  %v1549_v49 = vpack.c.bf16 %v1491_v40, %v1313_v50 }
 0x1a6   : > { %v1493_v44 = vadd.f32 %v1492_v47, %v1403_v59 }
 0x1a7   : > { %v1615_v32 = vunpack.c.l.bf16 %v1549_v49  ;;  %v1616_v26 = vunpack.c.h.bf16 %v1549_v49 }
 0x1a9   : > { %v1681_v24 = vadd.f32 %v9873_v10, %v1615_v32  ;;  %v1682_v9 = vadd.f32 %v9875_v52, %v1616_v26 }
 0x1aa   : > { %v1225_v6 = vpop.f32.mrf.mxu2  ;;  %v1314_v34 = vpop.f32.mrf.mxu3 }
 0x1ab   : > { %v1315_v0 = vadd.f32 %v1314_v34, %v1225_v6  ;;  %v1841_v37 = vmax.f32 %v1681_v24, 0.0  ;;  %v1842_v27 = vmax.f32 %v1682_v9, 0.0  ;;  %v8487_v24 = vld [vmem:[#allocation2 + $0x2e0] sm:$0xf] }
 0x1ad   : > { %v1550_v60 = vpack.c.bf16 %v1493_v44, %v1315_v0  ;;  %v1406_v11 = vpop.f32.mrf.mxu0  ;;  %v1495_v8 = vpop.f32.mrf.mxu1 }
 0x1ae   : > { %v1496_v50 = vadd.f32 %v1495_v8, %v1406_v11 }
 0x1af   : > { %v1617_v43 = vunpack.c.l.bf16 %v1550_v60  ;;  %v1618_v22 = vunpack.c.h.bf16 %v1550_v60  ;;  %2110 = vmatmul.bf16.vlgmr.msra.gmra.mxu2 %v9889_v51  ;;  %2199 = vmatmul.bf16.vlgmr.msra.gmra.mxu3 %v9891_v17 }
 0x1b0   : > { %2288 = vmatmul.bf16.vlgmr.msra.gmra.mxu0 %v9889_v51  ;;  %2377 = vmatmul.bf16.vlgmr.msra.gmra.mxu1 %v9891_v17 }
 0x1b1   : > { %v1683_v38 = vadd.f32 %v9873_v10, %v1617_v43  ;;  %v1684_v45 = vadd.f32 %v9875_v52, %v1618_v22  ;;  %v9212_v43 = vld [vmem:[#allocation2 + $0x2e4] sm:$0xf0] }
 0x1b2   : > { %v1228_v63 = vpop.f32.mrf.mxu2  ;;  %v1317_v48 = vpop.f32.mrf.mxu3  ;;  %v8488_v22 = vor.u32 %v9212_v43, %v8487_v24 }
 0x1b3   : > { %v1318_v33 = vadd.f32 %v1317_v48, %v1228_v63  ;;  %v1843_v12 = vmax.f32 %v1683_v38, 0.0  ;;  %v1844_v18 = vmax.f32 %v1684_v45, 0.0 }
 0x1b4   : > { %3116 = vmatpush.bf16.msrb.mxu3 %v8488_v22 }
 0x1b5   : > { %v1408_v23 = vpop.f32.mrf.mxu0  ;;  %v1497_v51 = vpop.f32.mrf.mxu1  ;;  %v9989_v16 = vpack.c.bf16 %v1843_v12, %v1841_v37  ;;  %v9991_v17 = vpack.c.bf16 %v1844_v18, %v1842_v27  ;;  %v1551_v55 = vpack.c.bf16 %v1496_v50, %v1318_v33 }
 0x1b6   : > { %v1498_v32 = vadd.f32 %v1497_v51, %v1408_v23 }
 0x1b7   : > { %v1619_v40 = vunpack.c.l.bf16 %v1551_v55  ;;  %v1620_v49 = vunpack.c.h.bf16 %v1551_v55 }
 0x1b9   : > { %v1685_v0 = vadd.f32 %v9873_v10, %v1619_v40  ;;  %v1686_v8 = vadd.f32 %v9875_v52, %v1620_v49 }
 0x1ba   : > { %v1230_v59 = vpop.f32.mrf.mxu2  ;;  %v1319_v47 = vpop.f32.mrf.mxu3 }
 0x1bb   : > { %v1320_v6 = vadd.f32 %v1319_v47, %v1230_v59  ;;  %v1845_v38 = vmax.f32 %v1685_v0, 0.0  ;;  %v1846_v48 = vmax.f32 %v1686_v8, 0.0  ;;  %v8415_v0 = vld [vmem:[#allocation2 + $0x250] sm:$0xf] }
 0x1bd   : > { %v1552_v34 = vpack.c.bf16 %v1498_v32, %v1320_v6  ;;  %v1411_v26 = vpop.f32.mrf.mxu0  ;;  %v1500_v44 = vpop.f32.mrf.mxu1 }
 0x1be   : > { %v1501_v33 = vadd.f32 %v1500_v44, %v1411_v26 }
 0x1bf   : > { %v1621_v60 = vunpack.c.l.bf16 %v1552_v34  ;;  %v1622_v11 = vunpack.c.h.bf16 %v1552_v34  ;;  %2115 = vmatmul.bf16.gmra.mxu2 %v9905_v61  ;;  %2204 = vmatmul.bf16.gmra.mxu3 %v9907_v62 }
 0x1c0   : > { %2293 = vmatmul.bf16.gmra.mxu0 %v9905_v61  ;;  %2382 = vmatmul.bf16.gmra.mxu1 %v9907_v62 }
 0x1c1   : > { %v1687_v9 = vadd.f32 %v9873_v10, %v1621_v60  ;;  %v1688_v39 = vadd.f32 %v9875_v52, %v1622_v11  ;;  %v9194_v60 = vld [vmem:[#allocation2 + $0x254] sm:$0xf0] }
 0x1c2   : > { %v1233_v28 = vpop.f32.mrf.mxu2  ;;  %v1322_v36 = vpop.f32.mrf.mxu3  ;;  %v8416_v11 = vor.u32 %v9194_v60, %v8415_v0 }
 0x1c3   : > { %v1323_v45 = vadd.f32 %v1322_v36, %v1233_v28  ;;  %v1847_v63 = vmax.f32 %v1687_v9, 0.0  ;;  %v1848_v37 = vmax.f32 %v1688_v39, 0.0 }
 0x1c4   : > { %3028 = vmatpush.bf16.msrb.mxu2 %v8416_v11 }
 0x1c5   : > { %v1413_v12 = vpop.f32.mrf.mxu0  ;;  %v1502_v61 = vpop.f32.mrf.mxu1  ;;  %v10001_v27 = vpack.c.bf16 %v1847_v63, %v1845_v38  ;;  %v10003_v62 = vpack.c.bf16 %v1848_v37, %v1846_v48  ;;  %v1553_v18 = vpack.c.bf16 %v1501_v33, %v1323_v45 }
 0x1c6   : > { %v1503_v40 = vadd.f32 %v1502_v61, %v1413_v12 }
 0x1c7   : > { %v1623_v50 = vunpack.c.l.bf16 %v1553_v18  ;;  %v1624_v55 = vunpack.c.h.bf16 %v1553_v18 }
 0x1c9   : > { %v1689_v6 = vadd.f32 %v9873_v10, %v1623_v50  ;;  %v1690_v44 = vadd.f32 %v9875_v52, %v1624_v55 }
 0x1ca   : > { %v1235_v23 = vpop.f32.mrf.mxu2  ;;  %v1324_v51 = vpop.f32.mrf.mxu3 }
 0x1cb   : > { %v1325_v59 = vadd.f32 %v1324_v51, %v1235_v23  ;;  %v1849_v9 = vmax.f32 %v1689_v6, 0.0  ;;  %v1850_v36 = vmax.f32 %v1690_v44, 0.0  ;;  %v8479_v6 = vld [vmem:[#allocation2 + $0x2d0] sm:$0xf] }
 0x1cd   : > { %v1554_v47 = vpack.c.bf16 %v1503_v40, %v1325_v59  ;;  %v1416_v49 = vpop.f32.mrf.mxu0  ;;  %v1505_v32 = vpop.f32.mrf.mxu1 }
 0x1ce   : > { %v1506_v45 = vadd.f32 %v1505_v32, %v1416_v49 }
 0x1cf   : > { %v1625_v34 = vunpack.c.l.bf16 %v1554_v47  ;;  %v1626_v26 = vunpack.c.h.bf16 %v1554_v47  ;;  %2120 = vmatmul.bf16.gmra.mxu2 %v9921_v7  ;;  %2209 = vmatmul.bf16.gmra.mxu3 %v9923_v46 }
 0x1d0   : > { %2298 = vmatmul.bf16.gmra.mxu0 %v9921_v7  ;;  %2387 = vmatmul.bf16.gmra.mxu1 %v9923_v46 }
 0x1d1   : > { %v1691_v8 = vadd.f32 %v9873_v10, %v1625_v34  ;;  %v1692_v24 = vadd.f32 %v9875_v52, %v1626_v26  ;;  %v9210_v34 = vld [vmem:[#allocation2 + $0x2d4] sm:$0xf0] }
 0x1d2   : > { %v1238_v43 = vpop.f32.mrf.mxu2  ;;  %v1327_v22 = vpop.f32.mrf.mxu3  ;;  %v8480_v26 = vor.u32 %v9210_v34, %v8479_v6 }
 0x1d3   : > { %v1328_v39 = vadd.f32 %v1327_v22, %v1238_v43  ;;  %v1851_v28 = vmax.f32 %v1691_v8, 0.0  ;;  %v1852_v38 = vmax.f32 %v1692_v24, 0.0 }
 0x1d4   : > { %3117 = vmatpush.bf16.msrb.mxu3 %v8480_v26 }
 0x1d5   : > { %v1418_v63 = vpop.f32.mrf.mxu0  ;;  %v1507_v7 = vpop.f32.mrf.mxu1  ;;  %v10013_v48 = vpack.c.bf16 %v1851_v28, %v1849_v9  ;;  %v10015_v46 = vpack.c.bf16 %v1852_v38, %v1850_v36  ;;  %v1555_v37 = vpack.c.bf16 %v1506_v45, %v1328_v39 }
 0x1d6   : > { %v1508_v50 = vadd.f32 %v1507_v7, %v1418_v63 }
 0x1d7   : > { %v1627_v33 = vunpack.c.l.bf16 %v1555_v37  ;;  %v1628_v18 = vunpack.c.h.bf16 %v1555_v37 }
 0x1d9   : > { %v1693_v59 = vadd.f32 %v9873_v10, %v1627_v33  ;;  %v1694_v32 = vadd.f32 %v9875_v52, %v1628_v18 }
 0x1da   : > { %v1240_v12 = vpop.f32.mrf.mxu2  ;;  %v1329_v61 = vpop.f32.mrf.mxu3 }
 0x1db   : > { %v1330_v23 = vadd.f32 %v1329_v61, %v1240_v12  ;;  %v1853_v8 = vmax.f32 %v1693_v59, 0.0  ;;  %v1854_v22 = vmax.f32 %v1694_v32, 0.0  ;;  %v8407_v59 = vld [vmem:[#allocation2 + $0x240] sm:$0xf] }
 0x1dd   : > { %v1556_v51 = vpack.c.bf16 %v1508_v50, %v1330_v23  ;;  %v1421_v55 = vpop.f32.mrf.mxu0  ;;  %v1510_v40 = vpop.f32.mrf.mxu1 }
 0x1de   : > { %v1511_v39 = vadd.f32 %v1510_v40, %v1421_v55 }
 0x1df   : > { %v1629_v47 = vunpack.c.l.bf16 %v1556_v51  ;;  %v1630_v49 = vunpack.c.h.bf16 %v1556_v51  ;;  %2125 = vmatmul.bf16.gmra.mxu2 %v9937_v5  ;;  %2214 = vmatmul.bf16.gmra.mxu3 %v9939_v56 }
 0x1e0   : > { %2303 = vmatmul.bf16.gmra.mxu0 %v9937_v5  ;;  %2392 = vmatmul.bf16.gmra.mxu1 %v9939_v56 }
 0x1e1   : > { %v1695_v44 = vadd.f32 %v9873_v10, %v1629_v47  ;;  %v1696_v0 = vadd.f32 %v9875_v52, %v1630_v49  ;;  %v9192_v47 = vld [vmem:[#allocation2 + $0x244] sm:$0xf0] }
 0x1e2   : > { %v1243_v60 = vpop.f32.mrf.mxu2  ;;  %v1332_v11 = vpop.f32.mrf.mxu3  ;;  %v8408_v49 = vor.u32 %v9192_v47, %v8407_v59  ;;  %v8497_v59 = vld [vmem:[#allocation2 + $0x2f8] sm:$0xf0]  ;;  %v8471_v47 = vld [vmem:[#allocation2 + $0x2c0] sm:$0xf] }
 0x1e3   : > { %v1333_v24 = vadd.f32 %v1332_v11, %v1243_v60  ;;  %v1855_v43 = vmax.f32 %v1695_v44, 0.0  ;;  %v1856_v9 = vmax.f32 %v1696_v0, 0.0 }
 0x1e4   : > { %3029 = vmatpush.bf16.msrb.mxu2 %v8408_v49  ;;  %v9208_v49 = vld [vmem:[#allocation2 + $0x2c4] sm:$0xf0] }
 0x1e5   : > { %v1423_v28 = vpop.f32.mrf.mxu0  ;;  %v1512_v5 = vpop.f32.mrf.mxu1  ;;  %v10025_v36 = vpack.c.bf16 %v1855_v43, %v1853_v8  ;;  %v10027_v56 = vpack.c.bf16 %v1856_v9, %v1854_v22  ;;  %v1557_v38 = vpack.c.bf16 %v1511_v39, %v1333_v24 }
 0x1e6   : > { %v1513_v33 = vadd.f32 %v1512_v5, %v1423_v28 }
 0x1e7   : > { %v1631_v45 = vunpack.c.l.bf16 %v1557_v38  ;;  %v1632_v37 = vunpack.c.h.bf16 %v1557_v38 }
 0x1e9   : > { %v1697_v23 = vadd.f32 %v9873_v10, %v1631_v45  ;;  %v1698_v40 = vadd.f32 %v9875_v52, %v1632_v37 }
 0x1ea   : > { %v1245_v63 = vpop.f32.mrf.mxu2  ;;  %v1334_v7 = vpop.f32.mrf.mxu3 }
 0x1eb   : > { %v1335_v12 = vadd.f32 %v1334_v7, %v1245_v63  ;;  %v1857_v44 = vmax.f32 %v1697_v23, 0.0  ;;  %v1858_v11 = vmax.f32 %v1698_v40, 0.0  ;;  %v8433_v23 = vld [vmem:[#allocation2 + $0x278] sm:$0xf0] }
 0x1ed   : > { %v1558_v61 = vpack.c.bf16 %v1513_v33, %v1335_v12  ;;  %v1426_v18 = vpop.f32.mrf.mxu0  ;;  %v1515_v50 = vpop.f32.mrf.mxu1 }
 0x1ee   : > { %v1516_v24 = vadd.f32 %v1515_v50, %v1426_v18  ;;  %v9197_v50 = vld [vmem:[#allocation2 + $0x274] sm:$0xf] }
 0x1ef   : > { %v1633_v51 = vunpack.c.l.bf16 %v1558_v61  ;;  %v1634_v55 = vunpack.c.h.bf16 %v1558_v61  ;;  %2130 = vmatmul.bf16.gmra.mxu2 %v9953_v3  ;;  %2219 = vmatmul.bf16.gmra.mxu3 %v9955_v21  ;;  %v8436_v40 = vor.u32 %v9197_v50, %v8433_v23 }
 0x1f0   : > { %2308 = vmatmul.bf16.gmra.mxu0 %v9953_v3  ;;  %2397 = vmatmul.bf16.gmra.mxu1 %v9955_v21 }
 0x1f1   : > { %v1699_v32 = vadd.f32 %v9873_v10, %v1633_v51  ;;  %v1700_v6 = vadd.f32 %v9875_v52, %v1634_v55  ;;  %v9213_v51 = vld [vmem:[#allocation2 + $0x2f4] sm:$0xf]  ;;  %3204 = vmatpush.bf16.msrb.mxu0 %v8436_v40  ;;  %v9190_v40 = vld [vmem:[#allocation2 + $0x234] sm:$0xf0] }
 0x1f2   : > { %v1248_v34 = vpop.f32.mrf.mxu2  ;;  %v1337_v26 = vpop.f32.mrf.mxu3 }
 0x1f3   : > { %v1338_v0 = vadd.f32 %v1337_v26, %v1248_v34  ;;  %v1859_v60 = vmax.f32 %v1699_v32, 0.0  ;;  %v1860_v8 = vmax.f32 %v1700_v6, 0.0  ;;  %v8500_v32 = vor.u32 %v9213_v51, %v8497_v59 }
 0x1f4   : > { %v8472_v6 = vor.u32 %v9208_v49, %v8471_v47 }
 0x1f5   : > { %v1428_v43 = vpop.f32.mrf.mxu0  ;;  %v1517_v3 = vpop.f32.mrf.mxu1  ;;  %v10037_v22 = vpack.c.bf16 %v1859_v60, %v1857_v44  ;;  %v10039_v21 = vpack.c.bf16 %v1860_v8, %v1858_v11  ;;  %v1559_v9 = vpack.c.bf16 %v1516_v24, %v1338_v0  ;;  %3293 = vmatpush.bf16.msrb.mxu1 %v8500_v32 }
 0x1f6   : > { %v1518_v45 = vadd.f32 %v1517_v3, %v1428_v43  ;;  %3118 = vmatpush.bf16.msrb.mxu3 %v8472_v6 }
 0x1f7   : > { %v1635_v39 = vunpack.c.l.bf16 %v1559_v9  ;;  %v1636_v38 = vunpack.c.h.bf16 %v1559_v9 }
 0x1f9   : > { %v1701_v12 = vadd.f32 %v9873_v10, %v1635_v39  ;;  %v1702_v55 = vadd.f32 %v9875_v52, %v1636_v38 }
 0x1fa   : > { %v1250_v28 = vpop.f32.mrf.mxu2  ;;  %v1339_v5 = vpop.f32.mrf.mxu3 }
 0x1fb   : > { %v1340_v63 = vadd.f32 %v1339_v5, %v1250_v28  ;;  %v1861_v60 = vmax.f32 %v1701_v12, 0.0  ;;  %v1862_v8 = vmax.f32 %v1702_v55, 0.0  ;;  %v8399_v55 = vld [vmem:[#allocation2 + $0x230] sm:$0xf] }
 0x1fc   : > { %v8400_v59 = vor.u32 %v9190_v40, %v8399_v55 }
 0x1fd   : > { %v1560_v7 = vpack.c.bf16 %v1518_v45, %v1340_v63  ;;  %v1431_v37 = vpop.f32.mrf.mxu0  ;;  %v1520_v33 = vpop.f32.mrf.mxu1 }
 0x1fe   : > { %v1521_v24 = vadd.f32 %v1520_v33, %v1431_v37  ;;  %3030 = vmatpush.bf16.msrb.mxu2 %v8400_v59 }
 0x1ff   : > { %v1637_v61 = vunpack.c.l.bf16 %v1560_v7  ;;  %v1638_v18 = vunpack.c.h.bf16 %v1560_v7  ;;  %2135 = vmatmul.bf16.gmra.mxu2 %v9969_v31  ;;  %2224 = vmatmul.bf16.gmra.mxu3 %v9971_v25 }
 0x200   : > { %2313 = vmatmul.bf16.gmra.mxu0 %v9969_v31  ;;  %2402 = vmatmul.bf16.gmra.mxu1 %v9971_v25 }
 0x201   : > { %v1703_v34 = vadd.f32 %v9873_v10, %v1637_v61  ;;  %v1704_v26 = vadd.f32 %v9875_v52, %v1638_v18 }
 0x202   : > { %v1253_v44 = vpop.f32.mrf.mxu2  ;;  %v1342_v0 = vpop.f32.mrf.mxu3 }
 0x203   : > { %v1343_v11 = vadd.f32 %v1342_v0, %v1253_v44  ;;  %v1863_v31 = vmax.f32 %v1703_v34, 0.0  ;;  %v1864_v25 = vmax.f32 %v1704_v26, 0.0 }
 0x205   : > { %v1433_v43 = vpop.f32.mrf.mxu0  ;;  %v1522_v3 = vpop.f32.mrf.mxu1  ;;  %v10049_v9 = vpack.c.bf16 %v1863_v31, %v1861_v60  ;;  %v10051_v39 = vpack.c.bf16 %v1864_v25, %v1862_v8  ;;  %v1561_v28 = vpack.c.bf16 %v1521_v24, %v1343_v11 }
 0x206   : > { %v1523_v7 = vadd.f32 %v1522_v3, %v1433_v43 }
 0x207   : > { %v1639_v5 = vunpack.c.l.bf16 %v1561_v28  ;;  %v1640_v63 = vunpack.c.h.bf16 %v1561_v28 }
 0x209   : > { %v1705_v23 = vadd.f32 %v9873_v10, %v1639_v5  ;;  %v1706_v33 = vadd.f32 %v9875_v52, %v1640_v63 }
 0x20a   : > { %v1255_v38 = vpop.f32.mrf.mxu2  ;;  %v1344_v45 = vpop.f32.mrf.mxu3 }
 0x20b   : > { %v1345_v12 = vadd.f32 %v1344_v45, %v1255_v38  ;;  %v1865_v34 = vmax.f32 %v1705_v23, 0.0  ;;  %v1866_v0 = vmax.f32 %v1706_v33, 0.0 }
 0x20d   : > { %v1562_v61 = vpack.c.bf16 %v1523_v7, %v1345_v12  ;;  %v1436_v18 = vpop.f32.mrf.mxu0  ;;  %v1525_v50 = vpop.f32.mrf.mxu1 }
 0x20e   : > { %v1526_v11 = vadd.f32 %v1525_v50, %v1436_v18  ;;  %v8372_v50 = vld [vmem:[%s11894_s5 + $0x2] sm:$0x3] }
 0x20f   : > { %v1641_v51 = vunpack.c.l.bf16 %v1562_v61  ;;  %v1642_v37 = vunpack.c.h.bf16 %v1562_v61  ;;  %2140 = vmatmul.bf16.gmra.mxu2 %v9977_v58  ;;  %2229 = vmatmul.bf16.gmra.mxu3 %v9979_v4  ;;  %v2493_v40 = vperm.slane %v8372_v50, 0  ;;  %v2494_v59 = vperm.slane %v8372_v50, 1 }
 0x210   : > { %2318 = vmatmul.bf16.gmra.mxu0 %v9977_v58  ;;  %2407 = vmatmul.bf16.gmra.mxu1 %v9979_v4 }
 0x211   : > { %v1707_v47 = vadd.f32 %v9873_v10, %v1641_v51  ;;  %v1708_v49 = vadd.f32 %v9875_v52, %v1642_v37 }
 0x212   : > { %v1258_v32 = vpop.f32.mrf.mxu2  ;;  %v1347_v6 = vpop.f32.mrf.mxu3 }
 0x213   : > { %v1348_v26 = vadd.f32 %v1347_v6, %v1258_v32  ;;  %v1867_v44 = vmax.f32 %v1707_v47, 0.0  ;;  %v1868_v60 = vmax.f32 %v1708_v49, 0.0 }
 0x215   : > { %v1438_v31 = vpop.f32.mrf.mxu0  ;;  %v1527_v58 = vpop.f32.mrf.mxu1  ;;  %v10061_v8 = vpack.c.bf16 %v1867_v44, %v1865_v34  ;;  %v10063_v4 = vpack.c.bf16 %v1868_v60, %v1866_v0  ;;  %v1563_v25 = vpack.c.bf16 %v1526_v11, %v1348_v26  ;;  %v9195_v60 = vld [vmem:[#allocation2 + $0x264] sm:$0xf] }
 0x216   : > { %v1528_v5 = vadd.f32 %v1527_v58, %v1438_v31  ;;  %v9211_v11 = vld [vmem:[#allocation2 + $0x2e4] sm:$0xf] }
 0x217   : > { %v1643_v24 = vunpack.c.l.bf16 %v1563_v25  ;;  %v1644_v28 = vunpack.c.h.bf16 %v1563_v25  ;;  %v2497_v25 = vpack.c.bf16 %v2494_v59, %v2493_v40 }
 0x219   : > { %v1709_v12 = vadd.f32 %v9873_v10, %v1643_v24  ;;  %v1710_v23 = vadd.f32 %v9875_v52, %v1644_v28  ;;  %v9206_v28 = vld [vmem:[#allocation2 + $0x2b4] sm:$0xf0] }
 0x21a   : > { %v1260_v43 = vpop.f32.mrf.mxu2  ;;  %v1349_v3 = vpop.f32.mrf.mxu3 }
 0x21b   : > { %v1350_v38 = vadd.f32 %v1349_v3, %v1260_v43  ;;  %v1869_v47 = vmax.f32 %v1709_v12, 0.0  ;;  %v1870_v6 = vmax.f32 %v1710_v23, 0.0  ;;  %v8489_v43 = vld [vmem:[#allocation2 + $0x2e8] sm:$0xf0]  ;;  %v8463_v3 = vld [vmem:[#allocation2 + $0x2b0] sm:$0xf]  ;;  %v2499_v12 = vunpack.c.l.b16 %v2497_v25 }
 0x21d   : > { %v1564_v45 = vpack.c.bf16 %v1528_v5, %v1350_v38  ;;  %v1441_v63 = vpop.f32.mrf.mxu0  ;;  %v1530_v7 = vpop.f32.mrf.mxu1  ;;  %v8492_v5 = vor.u32 %v9211_v11, %v8489_v43  ;;  %v8464_v38 = vor.u32 %v9206_v28, %v8463_v3 }
 0x21e   : > { %v1531_v26 = vadd.f32 %v1530_v7, %v1441_v63 }
 0x21f   : > { %v1645_v61 = vunpack.c.l.bf16 %v1564_v45  ;;  %v1646_v18 = vunpack.c.h.bf16 %v1564_v45  ;;  %2145 = vmatmul.bf16.gmra.mxu2 %v9989_v16  ;;  %2234 = vmatmul.bf16.gmra.mxu3 %v9991_v17 }
 0x220   : > { %2323 = vmatmul.bf16.gmra.mxu0 %v9989_v16  ;;  %2412 = vmatmul.bf16.gmra.mxu1 %v9991_v17  ;;  %v8425_v16 = vld [vmem:[#allocation2 + $0x268] sm:$0xf0] }
 0x221   : > { %v1711_v51 = vadd.f32 %v9873_v10, %v1645_v61  ;;  %v1712_v37 = vadd.f32 %v9875_v52, %v1646_v18  ;;  %v8428_v24 = vor.u32 %v9195_v60, %v8425_v16  ;;  %3294 = vmatpush.bf16.msrb.mxu1 %v8492_v5  ;;  %3119 = vmatpush.bf16.msrb.mxu3 %v8464_v38  ;;  %v2500_v61 = vunpack.c.h.b16 %v2497_v25 }
 0x222   : > { %v1263_v33 = vpop.f32.mrf.mxu2  ;;  %v1352_v55 = vpop.f32.mrf.mxu3 }
 0x223   : > { %v1353_v49 = vadd.f32 %v1352_v55, %v1263_v33  ;;  %v1871_v32 = vmax.f32 %v1711_v51, 0.0  ;;  %v1872_v34 = vmax.f32 %v1712_v37, 0.0  ;;  %3205 = vmatpush.bf16.msrb.mxu0 %v8428_v24  ;;  %v2501_v55 = vpack.c.b16 %v2499_v12, %v2499_v12 }
 0x224   : > { %v2502_v40 = vpack.c.b16 %v2500_v61, %v2500_v61 }
 0x225   : > { %v1443_v44 = vpop.f32.mrf.mxu0  ;;  %v1532_v0 = vpop.f32.mrf.mxu1  ;;  %v10076_v17 = vpack.c.bf16 %v1871_v32, %v1869_v47  ;;  %v10078_v31 = vpack.c.bf16 %v1872_v34, %v1870_v6  ;;  %v1565_v58 = vpack.c.bf16 %v1531_v26, %v1353_v49  ;;  %v8391_v6 = vld [vmem:[#allocation2 + $0x220] sm:$0xf]  ;;  %v9188_v34 = vld [vmem:[#allocation2 + $0x224] sm:$0xf0]  ;;  %v2504_v11 = vpack.i.b16 %v2501_v55, %v2501_v55 }
 0x226   : > { %v1533_v50 = vadd.f32 %v1532_v0, %v1443_v44  ;;  %v8392_v26 = vor.u32 %v9188_v34, %v8391_v6  ;;  %v9193_v6 = vld [vmem:[#allocation2 + $0x254] sm:$0xf]  ;;  %v8417_v34 = vld [vmem:[#allocation2 + $0x258] sm:$0xf0] }
 0x227   : > { %v1647_v45 = vunpack.c.l.bf16 %v1565_v58  ;;  %v1648_v18 = vunpack.c.h.bf16 %v1565_v58  ;;  %v2508_v58 = vpack.i.b16 %v2502_v40, %v2502_v40 }
 0x228   : > { %3031 = vmatpush.bf16.msrb.mxu2 %v8392_v26  ;;  %v9209_v26 = vld [vmem:[#allocation2 + $0x2d4] sm:$0xf] }
 0x229   : > { %v1713_v59 = vadd.f32 %v9873_v10, %v1647_v45  ;;  %v1714_v32 = vadd.f32 %v9875_v52, %v1648_v18 }
 0x22a   : > { %v1265_v63 = vpop.f32.mrf.mxu2  ;;  %v1354_v7 = vpop.f32.mrf.mxu3 }
 0x22b   : > { %v1355_v23 = vadd.f32 %v1354_v7, %v1265_v63  ;;  %v1873_v25 = vmax.f32 %v1713_v59, 0.0  ;;  %v1874_v3 = vmax.f32 %v1714_v32, 0.0  ;;  %v2506_v63 = vperm.slane %v2504_v11, 0 }
 0x22d   : > { %v1566_v51 = vpack.c.bf16 %v1533_v50, %v1355_v23  ;;  %v2289_v37 = vpop.f32.mrf.mxu0  ;;  %v2378_v33 = vpop.f32.mrf.mxu1  ;;  %v10092_v12 = vunpack.c.l.bf16 %v2506_v63 }
 0x22f   : > { %v1649_v47 = vunpack.c.l.bf16 %v1566_v51  ;;  %v1650_v49 = vunpack.c.h.bf16 %v1566_v51  ;;  %2150 = vmatmul.bf16.gmra.mxu2 %v10001_v27  ;;  %2239 = vmatmul.bf16.gmra.mxu3 %v10003_v62 }
 0x230   : > { %2328 = vmatmul.bf16.gmra.mxu0 %v10001_v27  ;;  %2417 = vmatmul.bf16.gmra.mxu1 %v10003_v62  ;;  %v2379_v27 = vadd.f32 %v2378_v33, %v2289_v37 }
 0x231   : > { %v1715_v44 = vadd.f32 %v9873_v10, %v1649_v47  ;;  %v1716_v0 = vadd.f32 %v9875_v52, %v1650_v49  ;;  %v2510_v52 = vperm.slane %v2508_v58, 0 }
 0x232   : > { %v2111_v60 = vpop.f32.mrf.mxu2  ;;  %v2200_v16 = vpop.f32.mrf.mxu3 }
 0x233   : > { %v2201_v24 = vadd.f32 %v2200_v16, %v2111_v60  ;;  %v1875_v43 = vmax.f32 %v1715_v44, 0.0  ;;  %v1876_v28 = vmax.f32 %v1716_v0, 0.0  ;;  %v10094_v23 = vunpack.c.l.bf16 %v2510_v52  ;;  %v8481_v0 = vld [vmem:[#allocation2 + $0x2d8] sm:$0xf0]  ;;  %v8455_v60 = vld [vmem:[#allocation2 + $0x2a0] sm:$0xf] }
 0x234   : > { %v8420_v44 = vor.u32 %v9193_v6, %v8417_v34  ;;  %v9204_v16 = vld [vmem:[#allocation2 + $0x2a4] sm:$0xf0] }
 0x235   : > { %v2291_v5 = vpop.f32.mrf.mxu0  ;;  %v2380_v62 = vpop.f32.mrf.mxu1  ;;  %v10088_v38 = vpack.c.bf16 %v1875_v43, %v1873_v25  ;;  %v10090_v45 = vpack.c.bf16 %v1876_v28, %v1874_v3  ;;  %v2458_v10 = vpack.c.bf16 %v2379_v27, %v2201_v24  ;;  %v8484_v25 = vor.u32 %v9209_v26, %v8481_v0  ;;  %v8383_v26 = vld [vmem:[#allocation2 + $0x210] sm:$0xf] }
 0x236   : > { %v2381_v51 = vadd.f32 %v2380_v62, %v2291_v5  ;;  %v8456_v24 = vor.u32 %v9204_v16, %v8455_v60  ;;  %3206 = vmatpush.bf16.msrb.mxu0 %v8420_v44  ;;  %v9186_v44 = vld [vmem:[#allocation2 + $0x214] sm:$0xf0] }
 0x237   : > { %v2511_v7 = vunpack.c.l.bf16 %v2458_v10  ;;  %v2512_v50 = vunpack.c.h.bf16 %v2458_v10  ;;  %3295 = vmatpush.bf16.msrb.mxu1 %v8484_v25  ;;  %v8384_v0 = vor.u32 %v9186_v44, %v8383_v26  ;;  %v8473_v26 = vld [vmem:[#allocation2 + $0x2c8] sm:$0xf0]  ;;  %v8447_v44 = vld [vmem:[#allocation2 + $0x290] sm:$0xf] }
 0x238   : > { %3120 = vmatpush.bf16.msrb.mxu3 %v8456_v24 }
 0x239   : > { %v2577_v59 = vadd.f32 %v10092_v12, %v2511_v7  ;;  %v2578_v47 = vadd.f32 %v10094_v23, %v2512_v50  ;;  %3032 = vmatpush.bf16.msrb.mxu2 %v8384_v0  ;;  %v9202_v0 = vld [vmem:[#allocation2 + $0x294] sm:$0xf0] }
 0x23a   : > { %v2113_v61 = vpop.f32.mrf.mxu2  ;;  %v2202_v18 = vpop.f32.mrf.mxu3 }
 0x23b   : > { %v2203_v55 = vadd.f32 %v2202_v18, %v2113_v61  ;;  %v2737_v43 = vmax.f32 %v2577_v59, 0.0  ;;  %v2738_v27 = vmax.f32 %v2578_v47, 0.0 }
 0x23d   : > { %v2459_v37 = vpack.c.bf16 %v2381_v51, %v2203_v55  ;;  %v2294_v33 = vpop.f32.mrf.mxu0  ;;  %v2383_v40 = vpop.f32.mrf.mxu1 }
 0x23f   : > { %v2513_v49 = vunpack.c.l.bf16 %v2459_v37  ;;  %v2514_v32 = vunpack.c.h.bf16 %v2459_v37  ;;  %2155 = vmatmul.bf16.gmra.mxu2 %v10013_v48  ;;  %2244 = vmatmul.bf16.gmra.mxu3 %v10015_v46 }
 0x240   : > { %2333 = vmatmul.bf16.gmra.mxu0 %v10013_v48  ;;  %2422 = vmatmul.bf16.gmra.mxu1 %v10015_v46  ;;  %v2384_v46 = vadd.f32 %v2383_v40, %v2294_v33 }
 0x241   : > { %v2579_v11 = vadd.f32 %v10092_v12, %v2513_v49  ;;  %v2580_v58 = vadd.f32 %v10094_v23, %v2514_v32 }
 0x242   : > { %v2116_v3 = vpop.f32.mrf.mxu2  ;;  %v2205_v28 = vpop.f32.mrf.mxu3 }
 0x243   : > { %v2739_v5 = vmax.f32 %v2579_v11, 0.0  ;;  %v2740_v62 = vmax.f32 %v2580_v58, 0.0  ;;  %v2206_v48 = vadd.f32 %v2205_v28, %v2116_v3 }
 0x245   : > { %v10104_v10 = vpack.c.bf16 %v2739_v5, %v2737_v43  ;;  %v10106_v63 = vpack.c.bf16 %v2740_v62, %v2738_v27  ;;  %v2296_v52 = vpop.f32.mrf.mxu0  ;;  %v2385_v7 = vpop.f32.mrf.mxu1  ;;  %v2460_v61 = vpack.c.bf16 %v2384_v46, %v2206_v48 }
 0x246   : > { %v2386_v37 = vadd.f32 %v2385_v7, %v2296_v52 }
 0x247   : > { %v2515_v18 = vunpack.c.l.bf16 %v2460_v61  ;;  %v2516_v55 = vunpack.c.h.bf16 %v2460_v61 }
 0x249   : > { %v2581_v6 = vadd.f32 %v10092_v12, %v2515_v18  ;;  %v2582_v40 = vadd.f32 %v10094_v23, %v2516_v55 }
 0x24a   : > { %v2118_v50 = vpop.f32.mrf.mxu2  ;;  %v2207_v51 = vpop.f32.mrf.mxu3 }
 0x24b   : > { %v2208_v59 = vadd.f32 %v2207_v51, %v2118_v50  ;;  %v2741_v25 = vmax.f32 %v2581_v6, 0.0  ;;  %v2742_v3 = vmax.f32 %v2582_v40, 0.0  ;;  %v8409_v6 = vld [vmem:[#allocation2 + $0x248] sm:$0xf0] }
 0x24d   : > { %v2461_v47 = vpack.c.bf16 %v2386_v37, %v2208_v59  ;;  %v2299_v49 = vpop.f32.mrf.mxu0  ;;  %v2388_v32 = vpop.f32.mrf.mxu1 }
 0x24e   : > { %v2389_v27 = vadd.f32 %v2388_v32, %v2299_v49  ;;  %v9191_v32 = vld [vmem:[#allocation2 + $0x244] sm:$0xf] }
 0x24f   : > { %v2517_v34 = vunpack.c.l.bf16 %v2461_v47  ;;  %v2518_v33 = vunpack.c.h.bf16 %v2461_v47  ;;  %2160 = vmatmul.bf16.gmra.mxu2 %v10025_v36  ;;  %2249 = vmatmul.bf16.gmra.mxu3 %v10027_v56  ;;  %v8412_v40 = vor.u32 %v9191_v32, %v8409_v6 }
 0x250   : > { %2338 = vmatmul.bf16.gmra.mxu0 %v10025_v36  ;;  %2427 = vmatmul.bf16.gmra.mxu1 %v10027_v56 }
 0x251   : > { %v2583_v60 = vadd.f32 %v10092_v12, %v2517_v34  ;;  %v2584_v16 = vadd.f32 %v10094_v23, %v2518_v33  ;;  %v9207_v34 = vld [vmem:[#allocation2 + $0x2c4] sm:$0xf]  ;;  %3207 = vmatpush.bf16.msrb.mxu0 %v8412_v40  ;;  %v9184_v40 = vld [vmem:[#allocation2 + $0x204] sm:$0xf0] }
 0x252   : > { %v2121_v11 = vpop.f32.mrf.mxu2  ;;  %v2210_v58 = vpop.f32.mrf.mxu3 }
 0x253   : > { %v2211_v24 = vadd.f32 %v2210_v58, %v2121_v11  ;;  %v2743_v43 = vmax.f32 %v2583_v60, 0.0  ;;  %v2744_v28 = vmax.f32 %v2584_v16, 0.0  ;;  %v8476_v60 = vor.u32 %v9207_v34, %v8473_v26 }
 0x254   : > { %v8448_v16 = vor.u32 %v9202_v0, %v8447_v44 }
 0x255   : > { %v2301_v5 = vpop.f32.mrf.mxu0  ;;  %v2390_v36 = vpop.f32.mrf.mxu1  ;;  %v10116_v62 = vpack.c.bf16 %v2743_v43, %v2741_v25  ;;  %v10118_v56 = vpack.c.bf16 %v2744_v28, %v2742_v3  ;;  %v2462_v48 = vpack.c.bf16 %v2389_v27, %v2211_v24  ;;  %3296 = vmatpush.bf16.msrb.mxu1 %v8476_v60 }
 0x256   : > { %v2391_v18 = vadd.f32 %v2390_v36, %v2301_v5  ;;  %3121 = vmatpush.bf16.msrb.mxu3 %v8448_v16 }
 0x257   : > { %v2519_v46 = vunpack.c.l.bf16 %v2462_v48  ;;  %v2520_v61 = vunpack.c.h.bf16 %v2462_v48 }
 0x259   : > { %v2585_v59 = vadd.f32 %v10092_v12, %v2519_v46  ;;  %v2586_v33 = vadd.f32 %v10094_v23, %v2520_v61 }
 0x25a   : > { %v2123_v52 = vpop.f32.mrf.mxu2  ;;  %v2212_v7 = vpop.f32.mrf.mxu3 }
 0x25b   : > { %v2213_v50 = vadd.f32 %v2212_v7, %v2123_v52  ;;  %v2745_v43 = vmax.f32 %v2585_v59, 0.0  ;;  %v2746_v28 = vmax.f32 %v2586_v33, 0.0  ;;  %v8375_v33 = vld [vmem:[#allocation2 + $0x200] sm:$0xf] }
 0x25c   : > { %v8376_v26 = vor.u32 %v9184_v40, %v8375_v33  ;;  %v8465_v33 = vld [vmem:[#allocation2 + $0x2b8] sm:$0xf0] }
 0x25d   : > { %v2463_v51 = vpack.c.bf16 %v2391_v18, %v2213_v50  ;;  %v2304_v55 = vpop.f32.mrf.mxu0  ;;  %v2393_v37 = vpop.f32.mrf.mxu1 }
 0x25e   : > { %v2394_v27 = vadd.f32 %v2393_v37, %v2304_v55  ;;  %3033 = vmatpush.bf16.msrb.mxu2 %v8376_v26  ;;  %v8439_v26 = vld [vmem:[#allocation2 + $0x280] sm:$0xf] }
 0x25f   : > { %v2521_v47 = vunpack.c.l.bf16 %v2463_v51  ;;  %v2522_v49 = vunpack.c.h.bf16 %v2463_v51  ;;  %2165 = vmatmul.bf16.gmra.mxu2 %v10037_v22  ;;  %2254 = vmatmul.bf16.gmra.mxu3 %v10039_v21 }
 0x260   : > { %2343 = vmatmul.bf16.gmra.mxu0 %v10037_v22  ;;  %2432 = vmatmul.bf16.gmra.mxu1 %v10039_v21 }
 0x261   : > { %v2587_v11 = vadd.f32 %v10092_v12, %v2521_v47  ;;  %v2588_v58 = vadd.f32 %v10094_v23, %v2522_v49 }
 0x262   : > { %v2126_v25 = vpop.f32.mrf.mxu2  ;;  %v2215_v24 = vpop.f32.mrf.mxu3 }
 0x263   : > { %v2216_v3 = vadd.f32 %v2215_v24, %v2126_v25  ;;  %v2747_v22 = vmax.f32 %v2587_v11, 0.0  ;;  %v2748_v21 = vmax.f32 %v2588_v58, 0.0 }
 0x265   : > { %v2306_v5 = vpop.f32.mrf.mxu0  ;;  %v2395_v36 = vpop.f32.mrf.mxu1  ;;  %v10128_v48 = vpack.c.bf16 %v2747_v22, %v2745_v43  ;;  %v10130_v46 = vpack.c.bf16 %v2748_v21, %v2746_v28  ;;  %v2464_v52 = vpack.c.bf16 %v2394_v27, %v2216_v3 }
 0x266   : > { %v2396_v51 = vadd.f32 %v2395_v36, %v2306_v5 }
 0x267   : > { %v2523_v7 = vunpack.c.l.bf16 %v2464_v52  ;;  %v2524_v61 = vunpack.c.h.bf16 %v2464_v52 }
 0x269   : > { %v2589_v6 = vadd.f32 %v10092_v12, %v2523_v7  ;;  %v2590_v55 = vadd.f32 %v10094_v23, %v2524_v61 }
 0x26a   : > { %v2128_v18 = vpop.f32.mrf.mxu2  ;;  %v2217_v50 = vpop.f32.mrf.mxu3 }
 0x26b   : > { %v2218_v59 = vadd.f32 %v2217_v50, %v2128_v18  ;;  %v2749_v11 = vmax.f32 %v2589_v6, 0.0  ;;  %v2750_v58 = vmax.f32 %v2590_v55, 0.0  ;;  %v9205_v6 = vld [vmem:[#allocation2 + $0x2b4] sm:$0xf] }
 0x26c   : > { %v8468_v40 = vor.u32 %v9205_v6, %v8465_v33 }
 0x26d   : > { %v2465_v47 = vpack.c.bf16 %v2396_v51, %v2218_v59  ;;  %v2309_v49 = vpop.f32.mrf.mxu0  ;;  %v2398_v32 = vpop.f32.mrf.mxu1 }
 0x26e   : > { %v2399_v25 = vadd.f32 %v2398_v32, %v2309_v49  ;;  %v9189_v49 = vld [vmem:[#allocation2 + $0x234] sm:$0xf]  ;;  %v8401_v32 = vld [vmem:[#allocation2 + $0x238] sm:$0xf0]  ;;  %3297 = vmatpush.bf16.msrb.mxu1 %v8468_v40  ;;  %v8377_v40 = vld [vmem:[#allocation2 + $0x208] sm:$0xf0] }
 0x26f   : > { %v2525_v37 = vunpack.c.l.bf16 %v2465_v47  ;;  %v2526_v34 = vunpack.c.h.bf16 %v2465_v47  ;;  %2170 = vmatmul.bf16.gmra.mxu2 %v10049_v9  ;;  %2259 = vmatmul.bf16.gmra.mxu3 %v10051_v39 }
 0x270   : > { %2348 = vmatmul.bf16.gmra.mxu0 %v10049_v9  ;;  %2437 = vmatmul.bf16.gmra.mxu1 %v10051_v39 }
 0x271   : > { %v2591_v44 = vadd.f32 %v10092_v12, %v2525_v37  ;;  %v2592_v0 = vadd.f32 %v10094_v23, %v2526_v34  ;;  %v8404_v34 = vor.u32 %v9189_v49, %v8401_v32  ;;  %v8385_v49 = vld [vmem:[#allocation2 + $0x218] sm:$0xf0]  ;;  %v9201_v32 = vld [vmem:[#allocation2 + $0x294] sm:$0xf] }
 0x272   : > { %v2131_v60 = vpop.f32.mrf.mxu2  ;;  %v2220_v16 = vpop.f32.mrf.mxu3 }
 0x273   : > { %v2221_v24 = vadd.f32 %v2220_v16, %v2131_v60  ;;  %v2751_v43 = vmax.f32 %v2591_v44, 0.0  ;;  %v2752_v3 = vmax.f32 %v2592_v0, 0.0  ;;  %v9200_v44 = vld [vmem:[#allocation2 + $0x284] sm:$0xf0]  ;;  %3208 = vmatpush.bf16.msrb.mxu0 %v8404_v34 }
 0x274   : > { %v8440_v60 = vor.u32 %v9200_v44, %v8439_v26  ;;  %v9199_v26 = vld [vmem:[#allocation2 + $0x284] sm:$0xf] }
 0x275   : > { %v2466_v22 = vpack.c.bf16 %v2399_v25, %v2221_v24  ;;  %v2311_v9 = vpop.f32.mrf.mxu0  ;;  %v2400_v28 = vpop.f32.mrf.mxu1  ;;  %v10140_v39 = vpack.c.bf16 %v2751_v43, %v2749_v11  ;;  %v10142_v21 = vpack.c.bf16 %v2752_v3, %v2750_v58  ;;  %v9187_v43 = vld [vmem:[#allocation2 + $0x224] sm:$0xf]  ;;  %v8393_v3 = vld [vmem:[#allocation2 + $0x228] sm:$0xf0] }
 0x276   : > { %v2401_v7 = vadd.f32 %v2400_v28, %v2311_v9  ;;  %3122 = vmatpush.bf16.msrb.mxu3 %v8440_v60  ;;  %v8457_v9 = vld [vmem:[#allocation2 + $0x2a8] sm:$0xf0] }
 0x277   : > { %v2527_v27 = vunpack.c.l.bf16 %v2466_v22  ;;  %v2528_v5 = vunpack.c.h.bf16 %v2466_v22  ;;  %v9203_v22 = vld [vmem:[#allocation2 + $0x2a4] sm:$0xf] }
 0x279   : > { %v2593_v18 = vadd.f32 %v10092_v12, %v2527_v27  ;;  %v2594_v47 = vadd.f32 %v10094_v23, %v2528_v5 }
 0x27a   : > { %v2133_v36 = vpop.f32.mrf.mxu2  ;;  %v2222_v52 = vpop.f32.mrf.mxu3 }
 0x27b   : > { %v2223_v61 = vadd.f32 %v2222_v52, %v2133_v36  ;;  %v2753_v0 = vmax.f32 %v2593_v18, 0.0  ;;  %v2754_v58 = vmax.f32 %v2594_v47, 0.0  ;;  %v8460_v36 = vor.u32 %v9203_v22, %v8457_v9  ;;  %v9185_v47 = vld [vmem:[#allocation2 + $0x214] sm:$0xf]  ;;  %v8560_v9 = vld [vmem:[#allocation2 + $0x370] sm:$0xf] }
 0x27c   : > { %v8388_v6 = vor.u32 %v9185_v47, %v8385_v49 }
 0x27d   : > { %v2467_v50 = vpack.c.bf16 %v2401_v7, %v2223_v61  ;;  %v2314_v51 = vpop.f32.mrf.mxu0  ;;  %v2403_v59 = vpop.f32.mrf.mxu1  ;;  %3298 = vmatpush.bf16.msrb.mxu1 %v8460_v36 }
 0x27e   : > { %v2404_v5 = vadd.f32 %v2403_v59, %v2314_v51  ;;  %v9183_v59 = vld [vmem:[#allocation2 + $0x204] sm:$0xf] }
 0x27f   : > { %v2529_v55 = vunpack.c.l.bf16 %v2467_v50  ;;  %v2530_v37 = vunpack.c.h.bf16 %v2467_v50  ;;  %2175 = vmatmul.bf16.gmra.mxu2 %v10061_v8  ;;  %2264 = vmatmul.bf16.gmra.mxu3 %v10063_v4 }
 0x280   : > { %2353 = vmatmul.bf16.gmra.mxu0 %v10061_v8  ;;  %2442 = vmatmul.bf16.gmra.mxu1 %v10063_v4  ;;  %v8396_v4 = vor.u32 %v9187_v43, %v8393_v3 }
 0x281   : > { %v2595_v16 = vadd.f32 %v10092_v12, %v2529_v55  ;;  %v2596_v11 = vadd.f32 %v10094_v23, %v2530_v37  ;;  %v8449_v55 = vld [vmem:[#allocation2 + $0x298] sm:$0xf0] }
 0x282   : > { %v2136_v25 = vpop.f32.mrf.mxu2  ;;  %v2225_v24 = vpop.f32.mrf.mxu3  ;;  %3209 = vmatpush.bf16.msrb.mxu0 %v8396_v4  ;;  %v8452_v37 = vor.u32 %v9201_v32, %v8449_v55 }
 0x283   : > { %v2226_v8 = vadd.f32 %v2225_v24, %v2136_v25  ;;  %v2755_v28 = vmax.f32 %v2595_v16, 0.0  ;;  %v2756_v27 = vmax.f32 %v2596_v11, 0.0  ;;  %v8380_v16 = vor.u32 %v9183_v59, %v8377_v40  ;;  %v8441_v11 = vld [vmem:[#allocation2 + $0x288] sm:$0xf0] }
 0x284   : > { %3299 = vmatpush.bf16.msrb.mxu1 %v8452_v37 }
 0x285   : > { %v2316_v52 = vpop.f32.mrf.mxu0  ;;  %v2405_v7 = vpop.f32.mrf.mxu1  ;;  %v10152_v61 = vpack.c.bf16 %v2755_v28, %v2753_v0  ;;  %v10154_v18 = vpack.c.bf16 %v2756_v27, %v2754_v58  ;;  %v2468_v50 = vpack.c.bf16 %v2404_v5, %v2226_v8  ;;  %v8444_v58 = vor.u32 %v9199_v26, %v8441_v11  ;;  %v9230_v28 = vld [vmem:[#allocation2 + $0x374] sm:$0xf0] }
 0x286   : > { %3210 = vmatpush.bf16.msrb.mxu0 %v8388_v6  ;;  %v2406_v0 = vadd.f32 %v2405_v7, %v2316_v52  ;;  %v8561_v27 = vor.u32 %v9230_v28, %v8560_v9 }
 0x287   : > { %v2531_v34 = vunpack.c.l.bf16 %v2468_v50  ;;  %v2532_v44 = vunpack.c.h.bf16 %v2468_v50 }
 0x288   : > { %3300 = vmatpush.bf16.msrb.mxu1 %v8444_v58  ;;  %3950 = vmatpush.bf16.msra.mxu2 %v8561_v27 }
 0x289   : > { %v2597_v3 = vadd.f32 %v10092_v12, %v2531_v34  ;;  %v2598_v4 = vadd.f32 %v10094_v23, %v2532_v44 }
 0x28a   : > { %v2138_v33 = vpop.f32.mrf.mxu2  ;;  %v2227_v51 = vpop.f32.mrf.mxu3  ;;  %3211 = vmatpush.bf16.msrb.mxu0 %v8380_v16 }
 0x28b   : > { %v2228_v60 = vadd.f32 %v2227_v51, %v2138_v33  ;;  %v2757_v50 = vmax.f32 %v2597_v3, 0.0  ;;  %v2758_v32 = vmax.f32 %v2598_v4, 0.0  ;;  %v8624_v3 = vld [vmem:[#allocation2 + $0x3f0] sm:$0xf] }
 0x28d   : > { %v2469_v25 = vpack.c.bf16 %v2406_v0, %v2228_v60  ;;  %v2319_v24 = vpop.f32.mrf.mxu0  ;;  %v2408_v43 = vpop.f32.mrf.mxu1 }
 0x28e   : > { %v2409_v55 = vadd.f32 %v2408_v43, %v2319_v24 }
 0x28f   : > { %v2533_v22 = vunpack.c.l.bf16 %v2469_v25  ;;  %v2534_v8 = vunpack.c.h.bf16 %v2469_v25  ;;  %2180 = vmatmul.bf16.gmra.mxu2 %v10076_v17  ;;  %2269 = vmatmul.bf16.gmra.mxu3 %v10078_v31 }
 0x290   : > { %2358 = vmatmul.bf16.gmra.mxu0 %v10076_v17  ;;  %2447 = vmatmul.bf16.gmra.mxu1 %v10078_v31 }
 0x291   : > { %v2599_v5 = vadd.f32 %v10092_v12, %v2533_v22  ;;  %v2600_v36 = vadd.f32 %v10094_v23, %v2534_v8  ;;  %v9246_v22 = vld [vmem:[#allocation2 + $0x3f4] sm:$0xf0] }
 0x292   : > { %v2141_v52 = vpop.f32.mrf.mxu2  ;;  %v2230_v7 = vpop.f32.mrf.mxu3  ;;  %v8625_v8 = vor.u32 %v9246_v22, %v8624_v3 }
 0x293   : > { %v2231_v47 = vadd.f32 %v2230_v7, %v2141_v52  ;;  %v2759_v49 = vmax.f32 %v2599_v5, 0.0  ;;  %v2760_v6 = vmax.f32 %v2600_v36, 0.0 }
 0x294   : > { %4039 = vmatpush.bf16.msra.mxu3 %v8625_v8 }
 0x295   : > { %v2321_v37 = vpop.f32.mrf.mxu0  ;;  %v2410_v17 = vpop.f32.mrf.mxu1  ;;  %v10164_v34 = vpack.c.bf16 %v2759_v49, %v2757_v50  ;;  %v10166_v31 = vpack.c.bf16 %v2760_v6, %v2758_v32  ;;  %v2470_v33 = vpack.c.bf16 %v2409_v55, %v2231_v47 }
 0x296   : > { %v2411_v44 = vadd.f32 %v2410_v17, %v2321_v37 }
 0x297   : > { %v2535_v51 = vunpack.c.l.bf16 %v2470_v33  ;;  %v2536_v26 = vunpack.c.h.bf16 %v2470_v33 }
 0x299   : > { %v2601_v58 = vadd.f32 %v10092_v12, %v2535_v51  ;;  %v2602_v43 = vadd.f32 %v10094_v23, %v2536_v26 }
 0x29a   : > { %v2143_v59 = vpop.f32.mrf.mxu2  ;;  %v2232_v40 = vpop.f32.mrf.mxu3 }
 0x29b   : > { %v2233_v0 = vadd.f32 %v2232_v40, %v2143_v59  ;;  %v2761_v5 = vmax.f32 %v2601_v58, 0.0  ;;  %v2762_v7 = vmax.f32 %v2602_v43, 0.0  ;;  %v8552_v58 = vld [vmem:[#allocation2 + $0x360] sm:$0xf] }
 0x29d   : > { %v2471_v60 = vpack.c.bf16 %v2411_v44, %v2233_v0  ;;  %v2324_v16 = vpop.f32.mrf.mxu0  ;;  %v2413_v11 = vpop.f32.mrf.mxu1 }
 0x29e   : > { %v2414_v47 = vadd.f32 %v2413_v11, %v2324_v16 }
 0x29f   : > { %v2537_v25 = vunpack.c.l.bf16 %v2471_v60  ;;  %v2538_v24 = vunpack.c.h.bf16 %v2471_v60  ;;  %2185 = vmatmul.bf16.gmra.mxu2 %v10088_v38  ;;  %2274 = vmatmul.bf16.gmra.mxu3 %v10090_v45 }
 0x2a0   : > { %2363 = vmatmul.bf16.gmra.mxu0 %v10088_v38  ;;  %2452 = vmatmul.bf16.gmra.mxu1 %v10090_v45 }
 0x2a1   : > { %v2603_v4 = vadd.f32 %v10092_v12, %v2537_v25  ;;  %v2604_v9 = vadd.f32 %v10094_v23, %v2538_v24  ;;  %v9228_v25 = vld [vmem:[#allocation2 + $0x364] sm:$0xf0] }
 0x2a2   : > { %v2146_v28 = vpop.f32.mrf.mxu2  ;;  %v2235_v27 = vpop.f32.mrf.mxu3  ;;  %v8553_v24 = vor.u32 %v9228_v25, %v8552_v58 }
 0x2a3   : > { %v2236_v36 = vadd.f32 %v2235_v27, %v2146_v28  ;;  %v2763_v52 = vmax.f32 %v2603_v4, 0.0  ;;  %v2764_v50 = vmax.f32 %v2604_v9, 0.0 }
 0x2a4   : > { %3951 = vmatpush.bf16.msra.mxu2 %v8553_v24 }
 0x2a5   : > { %v2326_v49 = vpop.f32.mrf.mxu0  ;;  %v2415_v38 = vpop.f32.mrf.mxu1  ;;  %v10176_v32 = vpack.c.bf16 %v2763_v52, %v2761_v5  ;;  %v10178_v45 = vpack.c.bf16 %v2764_v50, %v2762_v7  ;;  %v2472_v6 = vpack.c.bf16 %v2414_v47, %v2236_v36 }
 0x2a6   : > { %v2416_v51 = vadd.f32 %v2415_v38, %v2326_v49 }
 0x2a7   : > { %v2539_v55 = vunpack.c.l.bf16 %v2472_v6  ;;  %v2540_v33 = vunpack.c.h.bf16 %v2472_v6 }
 0x2a9   : > { %v2605_v0 = vadd.f32 %v10092_v12, %v2539_v55  ;;  %v2606_v11 = vadd.f32 %v10094_v23, %v2540_v33 }
 0x2aa   : > { %v2148_v37 = vpop.f32.mrf.mxu2  ;;  %v2237_v17 = vpop.f32.mrf.mxu3 }
 0x2ab   : > { %v2238_v59 = vadd.f32 %v2237_v17, %v2148_v37  ;;  %v2765_v4 = vmax.f32 %v2605_v0, 0.0  ;;  %v2766_v27 = vmax.f32 %v2606_v11, 0.0  ;;  %v8616_v0 = vld [vmem:[#allocation2 + $0x3e0] sm:$0xf] }
 0x2ad   : > { %v2473_v40 = vpack.c.bf16 %v2416_v51, %v2238_v59  ;;  %v2329_v26 = vpop.f32.mrf.mxu0  ;;  %v2418_v44 = vpop.f32.mrf.mxu1 }
 0x2ae   : > { %v2419_v36 = vadd.f32 %v2418_v44, %v2329_v26 }
 0x2af   : > { %v2541_v60 = vunpack.c.l.bf16 %v2473_v40  ;;  %v2542_v16 = vunpack.c.h.bf16 %v2473_v40  ;;  %3034 = vmatmul.bf16.vlgmr.msrb.gmra.mxu2 %v10104_v10  ;;  %3123 = vmatmul.bf16.vlgmr.msrb.gmra.mxu3 %v10106_v63 }
 0x2b0   : > { %3212 = vmatmul.bf16.vlgmr.msrb.gmra.mxu0 %v10104_v10  ;;  %3301 = vmatmul.bf16.vlgmr.msrb.gmra.mxu1 %v10106_v63 }
 0x2b1   : > { %v2607_v43 = vadd.f32 %v10092_v12, %v2541_v60  ;;  %v2608_v3 = vadd.f32 %v10094_v23, %v2542_v16  ;;  %v9244_v60 = vld [vmem:[#allocation2 + $0x3e4] sm:$0xf0] }
 0x2b2   : > { %v2151_v22 = vpop.f32.mrf.mxu2  ;;  %v2240_v8 = vpop.f32.mrf.mxu3  ;;  %v8617_v16 = vor.u32 %v9244_v60, %v8616_v0 }
 0x2b3   : > { %v2241_v9 = vadd.f32 %v2240_v8, %v2151_v22  ;;  %v2767_v28 = vmax.f32 %v2607_v43, 0.0  ;;  %v2768_v5 = vmax.f32 %v2608_v3, 0.0 }
 0x2b4   : > { %4040 = vmatpush.bf16.msra.mxu3 %v8617_v16 }
 0x2b5   : > { %v2331_v52 = vpop.f32.mrf.mxu0  ;;  %v2420_v10 = vpop.f32.mrf.mxu1  ;;  %v10188_v7 = vpack.c.bf16 %v2767_v28, %v2765_v4  ;;  %v10190_v63 = vpack.c.bf16 %v2768_v5, %v2766_v27  ;;  %v2474_v50 = vpack.c.bf16 %v2419_v36, %v2241_v9 }
 0x2b6   : > { %v2421_v55 = vadd.f32 %v2420_v10, %v2331_v52 }
 0x2b7   : > { %v2543_v47 = vunpack.c.l.bf16 %v2474_v50  ;;  %v2544_v6 = vunpack.c.h.bf16 %v2474_v50 }
 0x2b9   : > { %v2609_v59 = vadd.f32 %v10092_v12, %v2543_v47  ;;  %v2610_v44 = vadd.f32 %v10094_v23, %v2544_v6 }
 0x2ba   : > { %v2153_v49 = vpop.f32.mrf.mxu2  ;;  %v2242_v38 = vpop.f32.mrf.mxu3 }
 0x2bb   : > { %v2243_v37 = vadd.f32 %v2242_v38, %v2153_v49  ;;  %v2769_v43 = vmax.f32 %v2609_v59, 0.0  ;;  %v2770_v8 = vmax.f32 %v2610_v44, 0.0  ;;  %v8544_v59 = vld [vmem:[#allocation2 + $0x350] sm:$0xf] }
 0x2bd   : > { %v2475_v17 = vpack.c.bf16 %v2421_v55, %v2243_v37  ;;  %v2334_v33 = vpop.f32.mrf.mxu0  ;;  %v2423_v51 = vpop.f32.mrf.mxu1 }
 0x2be   : > { %v2424_v9 = vadd.f32 %v2423_v51, %v2334_v33 }
 0x2bf   : > { %v2545_v40 = vunpack.c.l.bf16 %v2475_v17  ;;  %v2546_v26 = vunpack.c.h.bf16 %v2475_v17  ;;  %3039 = vmatmul.bf16.gmra.mxu2 %v10116_v62  ;;  %3128 = vmatmul.bf16.gmra.mxu3 %v10118_v56 }
 0x2c0   : > { %3217 = vmatmul.bf16.gmra.mxu0 %v10116_v62  ;;  %3306 = vmatmul.bf16.gmra.mxu1 %v10118_v56 }
 0x2c1   : > { %v2611_v11 = vadd.f32 %v10092_v12, %v2545_v40  ;;  %v2612_v58 = vadd.f32 %v10094_v23, %v2546_v26  ;;  %v9226_v40 = vld [vmem:[#allocation2 + $0x354] sm:$0xf0] }
 0x2c2   : > { %v2156_v25 = vpop.f32.mrf.mxu2  ;;  %v2245_v24 = vpop.f32.mrf.mxu3  ;;  %v8545_v26 = vor.u32 %v9226_v40, %v8544_v59 }
 0x2c3   : > { %v2246_v3 = vadd.f32 %v2245_v24, %v2156_v25  ;;  %v2771_v22 = vmax.f32 %v2611_v11, 0.0  ;;  %v2772_v4 = vmax.f32 %v2612_v58, 0.0 }
 0x2c4   : > { %3952 = vmatpush.bf16.msra.mxu2 %v8545_v26 }
 0x2c5   : > { %v2336_v28 = vpop.f32.mrf.mxu0  ;;  %v2425_v62 = vpop.f32.mrf.mxu1  ;;  %v10200_v27 = vpack.c.bf16 %v2771_v22, %v2769_v43  ;;  %v10202_v56 = vpack.c.bf16 %v2772_v4, %v2770_v8  ;;  %v2476_v5 = vpack.c.bf16 %v2424_v9, %v2246_v3 }
 0x2c6   : > { %v2426_v47 = vadd.f32 %v2425_v62, %v2336_v28 }
 0x2c7   : > { %v2547_v36 = vunpack.c.l.bf16 %v2476_v5  ;;  %v2548_v50 = vunpack.c.h.bf16 %v2476_v5 }
 0x2c9   : > { %v2613_v37 = vadd.f32 %v10092_v12, %v2547_v36  ;;  %v2614_v51 = vadd.f32 %v10094_v23, %v2548_v50 }
 0x2ca   : > { %v2158_v52 = vpop.f32.mrf.mxu2  ;;  %v2247_v10 = vpop.f32.mrf.mxu3 }
 0x2cb   : > { %v2248_v49 = vadd.f32 %v2247_v10, %v2158_v52  ;;  %v2773_v11 = vmax.f32 %v2613_v37, 0.0  ;;  %v2774_v24 = vmax.f32 %v2614_v51, 0.0  ;;  %v8608_v37 = vld [vmem:[#allocation2 + $0x3d0] sm:$0xf] }
 0x2cd   : > { %v2477_v38 = vpack.c.bf16 %v2426_v47, %v2248_v49  ;;  %v2339_v6 = vpop.f32.mrf.mxu0  ;;  %v2428_v55 = vpop.f32.mrf.mxu1 }
 0x2ce   : > { %v2429_v3 = vadd.f32 %v2428_v55, %v2339_v6 }
 0x2cf   : > { %v2549_v17 = vunpack.c.l.bf16 %v2477_v38  ;;  %v2550_v33 = vunpack.c.h.bf16 %v2477_v38  ;;  %3044 = vmatmul.bf16.gmra.mxu2 %v10128_v48  ;;  %3133 = vmatmul.bf16.gmra.mxu3 %v10130_v46 }
 0x2d0   : > { %3222 = vmatmul.bf16.gmra.mxu0 %v10128_v48  ;;  %3311 = vmatmul.bf16.gmra.mxu1 %v10130_v46 }
 0x2d1   : > { %v2615_v44 = vadd.f32 %v10092_v12, %v2549_v17  ;;  %v2616_v0 = vadd.f32 %v10094_v23, %v2550_v33  ;;  %v9242_v17 = vld [vmem:[#allocation2 + $0x3d4] sm:$0xf0] }
 0x2d2   : > { %v2161_v60 = vpop.f32.mrf.mxu2  ;;  %v2250_v16 = vpop.f32.mrf.mxu3  ;;  %v8609_v33 = vor.u32 %v9242_v17, %v8608_v37 }
 0x2d3   : > { %v2251_v58 = vadd.f32 %v2250_v16, %v2161_v60  ;;  %v2775_v25 = vmax.f32 %v2615_v44, 0.0  ;;  %v2776_v43 = vmax.f32 %v2616_v0, 0.0 }
 0x2d4   : > { %4041 = vmatpush.bf16.msra.mxu3 %v8609_v33 }
 0x2d5   : > { %v2341_v22 = vpop.f32.mrf.mxu0  ;;  %v2430_v48 = vpop.f32.mrf.mxu1  ;;  %v10212_v8 = vpack.c.bf16 %v2775_v25, %v2773_v11  ;;  %v10214_v46 = vpack.c.bf16 %v2776_v43, %v2774_v24  ;;  %v2478_v4 = vpack.c.bf16 %v2429_v3, %v2251_v58 }
 0x2d6   : > { %v2431_v36 = vadd.f32 %v2430_v48, %v2341_v22 }
 0x2d7   : > { %v2551_v9 = vunpack.c.l.bf16 %v2478_v4  ;;  %v2552_v5 = vunpack.c.h.bf16 %v2478_v4 }
 0x2d9   : > { %v2617_v49 = vadd.f32 %v10092_v12, %v2551_v9  ;;  %v2618_v55 = vadd.f32 %v10094_v23, %v2552_v5 }
 0x2da   : > { %v2163_v28 = vpop.f32.mrf.mxu2  ;;  %v2252_v62 = vpop.f32.mrf.mxu3 }
 0x2db   : > { %v2253_v52 = vadd.f32 %v2252_v62, %v2163_v28  ;;  %v2777_v44 = vmax.f32 %v2617_v49, 0.0  ;;  %v2778_v16 = vmax.f32 %v2618_v55, 0.0  ;;  %v8536_v49 = vld [vmem:[#allocation2 + $0x340] sm:$0xf] }
 0x2dd   : > { %v2479_v10 = vpack.c.bf16 %v2431_v36, %v2253_v52  ;;  %v2344_v50 = vpop.f32.mrf.mxu0  ;;  %v2433_v47 = vpop.f32.mrf.mxu1 }
 0x2de   : > { %v2434_v58 = vadd.f32 %v2433_v47, %v2344_v50 }
 0x2df   : > { %v2553_v38 = vunpack.c.l.bf16 %v2479_v10  ;;  %v2554_v6 = vunpack.c.h.bf16 %v2479_v10  ;;  %3049 = vmatmul.bf16.gmra.mxu2 %v10140_v39  ;;  %3138 = vmatmul.bf16.gmra.mxu3 %v10142_v21 }
 0x2e0   : > { %3227 = vmatmul.bf16.gmra.mxu0 %v10140_v39  ;;  %3316 = vmatmul.bf16.gmra.mxu1 %v10142_v21 }
 0x2e1   : > { %v2619_v51 = vadd.f32 %v10092_v12, %v2553_v38  ;;  %v2620_v59 = vadd.f32 %v10094_v23, %v2554_v6  ;;  %v9224_v38 = vld [vmem:[#allocation2 + $0x344] sm:$0xf0] }
 0x2e2   : > { %v2166_v40 = vpop.f32.mrf.mxu2  ;;  %v2255_v26 = vpop.f32.mrf.mxu3  ;;  %v8537_v6 = vor.u32 %v9224_v38, %v8536_v49 }
 0x2e3   : > { %v2256_v0 = vadd.f32 %v2255_v26, %v2166_v40  ;;  %v2779_v60 = vmax.f32 %v2619_v51, 0.0  ;;  %v2780_v11 = vmax.f32 %v2620_v59, 0.0 }
 0x2e4   : > { %3953 = vmatpush.bf16.msra.mxu2 %v8537_v6 }
 0x2e5   : > { %v2346_v25 = vpop.f32.mrf.mxu0  ;;  %v2435_v39 = vpop.f32.mrf.mxu1  ;;  %v10224_v24 = vpack.c.bf16 %v2779_v60, %v2777_v44  ;;  %v10226_v21 = vpack.c.bf16 %v2780_v11, %v2778_v16  ;;  %v2480_v43 = vpack.c.bf16 %v2434_v58, %v2256_v0 }
 0x2e6   : > { %v2436_v9 = vadd.f32 %v2435_v39, %v2346_v25 }
 0x2e7   : > { %v2555_v3 = vunpack.c.l.bf16 %v2480_v43  ;;  %v2556_v4 = vunpack.c.h.bf16 %v2480_v43 }
 0x2e9   : > { %v2621_v52 = vadd.f32 %v10092_v12, %v2555_v3  ;;  %v2622_v47 = vadd.f32 %v10094_v23, %v2556_v4 }
 0x2ea   : > { %v2168_v22 = vpop.f32.mrf.mxu2  ;;  %v2257_v48 = vpop.f32.mrf.mxu3 }
 0x2eb   : > { %v2258_v28 = vadd.f32 %v2257_v48, %v2168_v22  ;;  %v2781_v51 = vmax.f32 %v2621_v52, 0.0  ;;  %v2782_v26 = vmax.f32 %v2622_v47, 0.0  ;;  %v8600_v52 = vld [vmem:[#allocation2 + $0x3c0] sm:$0xf] }
 0x2ed   : > { %v2481_v62 = vpack.c.bf16 %v2436_v9, %v2258_v28  ;;  %v2349_v5 = vpop.f32.mrf.mxu0  ;;  %v2438_v36 = vpop.f32.mrf.mxu1 }
 0x2ee   : > { %v2439_v0 = vadd.f32 %v2438_v36, %v2349_v5 }
 0x2ef   : > { %v2557_v10 = vunpack.c.l.bf16 %v2481_v62  ;;  %v2558_v50 = vunpack.c.h.bf16 %v2481_v62  ;;  %3054 = vmatmul.bf16.gmra.mxu2 %v10152_v61  ;;  %3143 = vmatmul.bf16.gmra.mxu3 %v10154_v18 }
 0x2f0   : > { %3232 = vmatmul.bf16.gmra.mxu0 %v10152_v61  ;;  %3321 = vmatmul.bf16.gmra.mxu1 %v10154_v18 }
 0x2f1   : > { %v2623_v55 = vadd.f32 %v10092_v12, %v2557_v10  ;;  %v2624_v37 = vadd.f32 %v10094_v23, %v2558_v50  ;;  %v9240_v10 = vld [vmem:[#allocation2 + $0x3c4] sm:$0xf0] }
 0x2f2   : > { %v2171_v17 = vpop.f32.mrf.mxu2  ;;  %v2260_v33 = vpop.f32.mrf.mxu3  ;;  %v8601_v50 = vor.u32 %v9240_v10, %v8600_v52 }
 0x2f3   : > { %v2261_v59 = vadd.f32 %v2260_v33, %v2171_v17  ;;  %v2783_v40 = vmax.f32 %v2623_v55, 0.0  ;;  %v2784_v44 = vmax.f32 %v2624_v37, 0.0 }
 0x2f4   : > { %4042 = vmatpush.bf16.msra.mxu3 %v8601_v50 }
 0x2f5   : > { %v2351_v60 = vpop.f32.mrf.mxu0  ;;  %v2440_v61 = vpop.f32.mrf.mxu1  ;;  %v10236_v16 = vpack.c.bf16 %v2783_v40, %v2781_v51  ;;  %v10238_v18 = vpack.c.bf16 %v2784_v44, %v2782_v26  ;;  %v2482_v11 = vpack.c.bf16 %v2439_v0, %v2261_v59 }
 0x2f6   : > { %v2441_v3 = vadd.f32 %v2440_v61, %v2351_v60 }
 0x2f7   : > { %v2559_v58 = vunpack.c.l.bf16 %v2482_v11  ;;  %v2560_v43 = vunpack.c.h.bf16 %v2482_v11 }
 0x2f9   : > { %v2625_v28 = vadd.f32 %v10092_v12, %v2559_v58  ;;  %v2626_v36 = vadd.f32 %v10094_v23, %v2560_v43 }
 0x2fa   : > { %v2173_v25 = vpop.f32.mrf.mxu2  ;;  %v2262_v39 = vpop.f32.mrf.mxu3 }
 0x2fb   : > { %v2263_v22 = vadd.f32 %v2262_v39, %v2173_v25  ;;  %v2785_v55 = vmax.f32 %v2625_v28, 0.0  ;;  %v2786_v33 = vmax.f32 %v2626_v36, 0.0  ;;  %v8528_v28 = vld [vmem:[#allocation2 + $0x330] sm:$0xf] }
 0x2fd   : > { %v2483_v48 = vpack.c.bf16 %v2441_v3, %v2263_v22  ;;  %v2354_v4 = vpop.f32.mrf.mxu0  ;;  %v2443_v9 = vpop.f32.mrf.mxu1 }
 0x2fe   : > { %v2444_v59 = vadd.f32 %v2443_v9, %v2354_v4 }
 0x2ff   : > { %v2561_v62 = vunpack.c.l.bf16 %v2483_v48  ;;  %v2562_v5 = vunpack.c.h.bf16 %v2483_v48  ;;  %3059 = vmatmul.bf16.gmra.mxu2 %v10164_v34  ;;  %3148 = vmatmul.bf16.gmra.mxu3 %v10166_v31 }
 0x300   : > { %3237 = vmatmul.bf16.gmra.mxu0 %v10164_v34  ;;  %3326 = vmatmul.bf16.gmra.mxu1 %v10166_v31 }
 0x301   : > { %v2627_v47 = vadd.f32 %v10092_v12, %v2561_v62  ;;  %v2628_v49 = vadd.f32 %v10094_v23, %v2562_v5  ;;  %v9222_v62 = vld [vmem:[#allocation2 + $0x334] sm:$0xf0] }
 0x302   : > { %v2176_v38 = vpop.f32.mrf.mxu2  ;;  %v2265_v6 = vpop.f32.mrf.mxu3  ;;  %v8529_v5 = vor.u32 %v9222_v62, %v8528_v28 }
 0x303   : > { %v2266_v37 = vadd.f32 %v2265_v6, %v2176_v38  ;;  %v2787_v17 = vmax.f32 %v2627_v47, 0.0  ;;  %v2788_v51 = vmax.f32 %v2628_v49, 0.0 }
 0x304   : > { %3954 = vmatpush.bf16.msra.mxu2 %v8529_v5 }
 0x305   : > { %v2356_v40 = vpop.f32.mrf.mxu0  ;;  %v2445_v34 = vpop.f32.mrf.mxu1  ;;  %v10248_v26 = vpack.c.bf16 %v2787_v17, %v2785_v55  ;;  %v10250_v31 = vpack.c.bf16 %v2788_v51, %v2786_v33  ;;  %v2484_v44 = vpack.c.bf16 %v2444_v59, %v2266_v37 }
 0x306   : > { %v2446_v58 = vadd.f32 %v2445_v34, %v2356_v40 }
 0x307   : > { %v2563_v0 = vunpack.c.l.bf16 %v2484_v44  ;;  %v2564_v11 = vunpack.c.h.bf16 %v2484_v44 }
 0x309   : > { %v2629_v22 = vadd.f32 %v10092_v12, %v2563_v0  ;;  %v2630_v9 = vadd.f32 %v10094_v23, %v2564_v11 }
 0x30a   : > { %v2178_v60 = vpop.f32.mrf.mxu2  ;;  %v2267_v61 = vpop.f32.mrf.mxu3 }
 0x30b   : > { %v2268_v25 = vadd.f32 %v2267_v61, %v2178_v60  ;;  %v2789_v47 = vmax.f32 %v2629_v22, 0.0  ;;  %v2790_v6 = vmax.f32 %v2630_v9, 0.0 }
 0x30d   : > { %v2485_v39 = vpack.c.bf16 %v2446_v58, %v2268_v25  ;;  %v2359_v43 = vpop.f32.mrf.mxu0  ;;  %v2448_v3 = vpop.f32.mrf.mxu1 }
 0x30e   : > { %v2449_v37 = vadd.f32 %v2448_v3, %v2359_v43  ;;  %v8501_v3 = vld [vmem:[%s11894_s5 + $0x4] sm:$0x3] }
 0x30f   : > { %v2565_v48 = vunpack.c.l.bf16 %v2485_v39  ;;  %v2566_v4 = vunpack.c.h.bf16 %v2485_v39  ;;  %3064 = vmatmul.bf16.gmra.mxu2 %v10176_v32  ;;  %3153 = vmatmul.bf16.gmra.mxu3 %v10178_v45  ;;  %v3417_v62 = vperm.slane %v8501_v3, 0  ;;  %v3418_v5 = vperm.slane %v8501_v3, 1 }
 0x310   : > { %3242 = vmatmul.bf16.gmra.mxu0 %v10176_v32  ;;  %3331 = vmatmul.bf16.gmra.mxu1 %v10178_v45 }
 0x311   : > { %v2631_v36 = vadd.f32 %v10092_v12, %v2565_v48  ;;  %v2632_v52 = vadd.f32 %v10094_v23, %v2566_v4 }
 0x312   : > { %v2181_v10 = vpop.f32.mrf.mxu2  ;;  %v2270_v50 = vpop.f32.mrf.mxu3 }
 0x313   : > { %v2271_v49 = vadd.f32 %v2270_v50, %v2181_v10  ;;  %v2791_v38 = vmax.f32 %v2631_v36, 0.0  ;;  %v2792_v55 = vmax.f32 %v2632_v52, 0.0 }
 0x315   : > { %v2361_v17 = vpop.f32.mrf.mxu0  ;;  %v2450_v32 = vpop.f32.mrf.mxu1  ;;  %v10260_v33 = vpack.c.bf16 %v2791_v38, %v2789_v47  ;;  %v10262_v45 = vpack.c.bf16 %v2792_v55, %v2790_v6  ;;  %v2486_v51 = vpack.c.bf16 %v2449_v37, %v2271_v49  ;;  %v8592_v55 = vld [vmem:[#allocation2 + $0x3b0] sm:$0xf] }
 0x316   : > { %v2451_v0 = vadd.f32 %v2450_v32, %v2361_v17  ;;  %v3421_v32 = vpack.c.bf16 %v3418_v5, %v3417_v62  ;;  %v9220_v62 = vld [vmem:[#allocation2 + $0x324] sm:$0xf0] }
 0x317   : > { %v2567_v59 = vunpack.c.l.bf16 %v2486_v51  ;;  %v2568_v44 = vunpack.c.h.bf16 %v2486_v51 }
 0x319   : > { %v2633_v25 = vadd.f32 %v10092_v12, %v2567_v59  ;;  %v2634_v22 = vadd.f32 %v10094_v23, %v2568_v44  ;;  %v3423_v44 = vunpack.c.l.b16 %v3421_v32 }
 0x31a   : > { %v2183_v40 = vpop.f32.mrf.mxu2  ;;  %v2272_v34 = vpop.f32.mrf.mxu3 }
 0x31b   : > { %v2273_v60 = vadd.f32 %v2272_v34, %v2183_v40  ;;  %v2793_v36 = vmax.f32 %v2633_v25, 0.0  ;;  %v2794_v50 = vmax.f32 %v2634_v22, 0.0 }
 0x31d   : > { %v2487_v61 = vpack.c.bf16 %v2451_v0, %v2273_v60  ;;  %v2364_v11 = vpop.f32.mrf.mxu0  ;;  %v2453_v58 = vpop.f32.mrf.mxu1  ;;  %v3424_v0 = vunpack.c.h.b16 %v3421_v32 }
 0x31e   : > { %v2454_v49 = vadd.f32 %v2453_v58, %v2364_v11 }
 0x31f   : > { %v2569_v39 = vunpack.c.l.bf16 %v2487_v61  ;;  %v2570_v43 = vunpack.c.h.bf16 %v2487_v61  ;;  %3069 = vmatmul.bf16.gmra.mxu2 %v10188_v7  ;;  %3158 = vmatmul.bf16.gmra.mxu3 %v10190_v63  ;;  %v3426_v3 = vpack.c.b16 %v3424_v0, %v3424_v0 }
 0x320   : > { %3247 = vmatmul.bf16.gmra.mxu0 %v10188_v7  ;;  %3336 = vmatmul.bf16.gmra.mxu1 %v10190_v63  ;;  %v9238_v7 = vld [vmem:[#allocation2 + $0x3b4] sm:$0xf0] }
 0x321   : > { %v2635_v48 = vadd.f32 %v10092_v12, %v2569_v39  ;;  %v2636_v4 = vadd.f32 %v10094_v23, %v2570_v43  ;;  %v8593_v51 = vor.u32 %v9238_v7, %v8592_v55  ;;  %v3425_v43 = vpack.c.b16 %v3423_v44, %v3423_v44 }
 0x322   : > { %v2186_v9 = vpop.f32.mrf.mxu2  ;;  %v2275_v28 = vpop.f32.mrf.mxu3 }
 0x323   : > { %v2276_v52 = vadd.f32 %v2275_v28, %v2186_v9  ;;  %v2795_v10 = vmax.f32 %v2635_v48, 0.0  ;;  %v2796_v47 = vmax.f32 %v2636_v4, 0.0  ;;  %4043 = vmatpush.bf16.msra.mxu3 %v8593_v51  ;;  %v8520_v28 = vld [vmem:[#allocation2 + $0x320] sm:$0xf] }
 0x324   : > { %v8521_v5 = vor.u32 %v9220_v62, %v8520_v28  ;;  %v9245_v28 = vld [vmem:[#allocation2 + $0x3f4] sm:$0xf]  ;;  %v8626_v62 = vld [vmem:[#allocation2 + $0x3f8] sm:$0xf0] }
 0x325   : > { %v2366_v38 = vpop.f32.mrf.mxu0  ;;  %v2455_v6 = vpop.f32.mrf.mxu1  ;;  %v10275_v37 = vpack.c.bf16 %v2795_v10, %v2793_v36  ;;  %v10277_v63 = vpack.c.bf16 %v2796_v47, %v2794_v50  ;;  %v2488_v17 = vpack.c.bf16 %v2454_v49, %v2276_v52  ;;  %v3428_v47 = vpack.i.b16 %v3425_v43, %v3425_v43 }
 0x326   : > { %v2456_v61 = vadd.f32 %v2455_v6, %v2366_v38  ;;  %v3432_v49 = vpack.i.b16 %v3426_v3, %v3426_v3  ;;  %3955 = vmatpush.bf16.msra.mxu2 %v8521_v5  ;;  %v8629_v5 = vor.u32 %v9245_v28, %v8626_v62 }
 0x327   : > { %v2571_v59 = vunpack.c.l.bf16 %v2488_v17  ;;  %v2572_v60 = vunpack.c.h.bf16 %v2488_v17 }
 0x328   : > { %4217 = vmatpush.bf16.msra.mxu1 %v8629_v5  ;;  %v8512_v5 = vld [vmem:[#allocation2 + $0x310] sm:$0xf] }
 0x329   : > { %v2637_v22 = vadd.f32 %v10092_v12, %v2571_v59  ;;  %v2638_v9 = vadd.f32 %v10094_v23, %v2572_v60 }
 0x32a   : > { %v2188_v40 = vpop.f32.mrf.mxu2  ;;  %v2277_v34 = vpop.f32.mrf.mxu3 }
 0x32b   : > { %v2278_v11 = vadd.f32 %v2277_v34, %v2188_v40  ;;  %v2797_v38 = vmax.f32 %v2637_v22, 0.0  ;;  %v2798_v7 = vmax.f32 %v2638_v9, 0.0  ;;  %v3430_v40 = vperm.slane %v3428_v47, 0 }
 0x32d   : > { %v2489_v58 = vpack.c.bf16 %v2456_v61, %v2278_v11  ;;  %v3213_v25 = vpop.f32.mrf.mxu0  ;;  %v3302_v39 = vpop.f32.mrf.mxu1  ;;  %v10291_v44 = vunpack.c.l.bf16 %v3430_v40 }
 0x32f   : > { %v2573_v48 = vunpack.c.l.bf16 %v2489_v58  ;;  %v2574_v4 = vunpack.c.h.bf16 %v2489_v58  ;;  %3074 = vmatmul.bf16.gmra.mxu2 %v10200_v27  ;;  %3163 = vmatmul.bf16.gmra.mxu3 %v10202_v56 }
 0x330   : > { %3252 = vmatmul.bf16.gmra.mxu0 %v10200_v27  ;;  %3341 = vmatmul.bf16.gmra.mxu1 %v10202_v56  ;;  %v3303_v27 = vadd.f32 %v3302_v39, %v3213_v25 }
 0x331   : > { %v2639_v36 = vadd.f32 %v10092_v12, %v2573_v48  ;;  %v2640_v52 = vadd.f32 %v10094_v23, %v2574_v4  ;;  %v3434_v23 = vperm.slane %v3432_v49, 0 }
 0x332   : > { %v3035_v10 = vpop.f32.mrf.mxu2  ;;  %v3124_v50 = vpop.f32.mrf.mxu3 }
 0x333   : > { %v3125_v6 = vadd.f32 %v3124_v50, %v3035_v10  ;;  %v2799_v55 = vmax.f32 %v2639_v36, 0.0  ;;  %v2800_v17 = vmax.f32 %v2640_v52, 0.0  ;;  %v10293_v11 = vunpack.c.l.bf16 %v3434_v23  ;;  %v8584_v36 = vld [vmem:[#allocation2 + $0x3a0] sm:$0xf]  ;;  %v9236_v52 = vld [vmem:[#allocation2 + $0x3a4] sm:$0xf0] }
 0x334   : > { %v8585_v47 = vor.u32 %v9236_v52, %v8584_v36  ;;  %v9229_v23 = vld [vmem:[#allocation2 + $0x374] sm:$0xf]  ;;  %v9218_v36 = vld [vmem:[#allocation2 + $0x314] sm:$0xf0] }
 0x335   : > { %v3215_v32 = vpop.f32.mrf.mxu0  ;;  %v3304_v56 = vpop.f32.mrf.mxu1  ;;  %v10287_v51 = vpack.c.bf16 %v2799_v55, %v2797_v38  ;;  %v10289_v59 = vpack.c.bf16 %v2800_v17, %v2798_v7  ;;  %v3382_v12 = vpack.c.bf16 %v3303_v27, %v3125_v6  ;;  %v8513_v52 = vor.u32 %v9218_v36, %v8512_v5  ;;  %v8576_v5 = vld [vmem:[#allocation2 + $0x390] sm:$0xf]  ;;  %v9234_v36 = vld [vmem:[#allocation2 + $0x394] sm:$0xf0] }
 0x336   : > { %v3305_v58 = vadd.f32 %v3304_v56, %v3215_v32  ;;  %4044 = vmatpush.bf16.msra.mxu3 %v8585_v47 }
 0x337   : > { %v3435_v34 = vunpack.c.l.bf16 %v3382_v12  ;;  %v3436_v61 = vunpack.c.h.bf16 %v3382_v12  ;;  %3956 = vmatpush.bf16.msra.mxu2 %v8513_v52  ;;  %v8577_v52 = vor.u32 %v9234_v36, %v8576_v5  ;;  %v8504_v5 = vld [vmem:[#allocation2 + $0x300] sm:$0xf]  ;;  %v9216_v36 = vld [vmem:[#allocation2 + $0x304] sm:$0xf0] }
 0x339   : > { %v3501_v22 = vadd.f32 %v10291_v44, %v3435_v34  ;;  %v3502_v48 = vadd.f32 %v10293_v11, %v3436_v61  ;;  %v8562_v34 = vld [vmem:[#allocation2 + $0x378] sm:$0xf0] }
 0x33a   : > { %v3037_v0 = vpop.f32.mrf.mxu2  ;;  %v3126_v60 = vpop.f32.mrf.mxu3  ;;  %4045 = vmatpush.bf16.msra.mxu3 %v8577_v52  ;;  %v8505_v52 = vor.u32 %v9216_v36, %v8504_v5  ;;  %v8602_v5 = vld [vmem:[#allocation2 + $0x3c8] sm:$0xf0] }
 0x33b   : > { %v3127_v43 = vadd.f32 %v3126_v60, %v3037_v0  ;;  %v3661_v49 = vmax.f32 %v3501_v22, 0.0  ;;  %v3662_v55 = vmax.f32 %v3502_v48, 0.0  ;;  %v10307_v0 = vor.u32 %v9229_v23, %v8562_v34 }
 0x33c   : > { %3957 = vmatpush.bf16.msra.mxu2 %v8505_v52 }
 0x33d   : > { %v3383_v25 = vpack.c.bf16 %v3305_v58, %v3127_v43  ;;  %v3218_v39 = vpop.f32.mrf.mxu0  ;;  %v3307_v3 = vpop.f32.mrf.mxu1  ;;  %4128 = vmatpush.bf16.msra.mxu0 %v10307_v0 }
 0x33f   : > { %v3437_v4 = vunpack.c.l.bf16 %v3383_v25  ;;  %v3438_v9 = vunpack.c.h.bf16 %v3383_v25  ;;  %3079 = vmatmul.bf16.gmra.mxu2 %v10212_v8  ;;  %3168 = vmatmul.bf16.gmra.mxu3 %v10214_v46 }
 0x340   : > { %3257 = vmatmul.bf16.gmra.mxu0 %v10212_v8  ;;  %3346 = vmatmul.bf16.gmra.mxu1 %v10214_v46  ;;  %v3308_v8 = vadd.f32 %v3307_v3, %v3218_v39 }
 0x341   : > { %v3503_v10 = vadd.f32 %v10291_v44, %v3437_v4  ;;  %v3504_v50 = vadd.f32 %v10293_v11, %v3438_v9  ;;  %9362 = vmatpush.bf16.msrb.mxu2 %v10307_v0  ;;  %v9223_v0 = vld [vmem:[#allocation2 + $0x344] sm:$0xf] }
 0x342   : > { %v3040_v38 = vpop.f32.mrf.mxu2  ;;  %v3129_v6 = vpop.f32.mrf.mxu3 }
 0x343   : > { %v3663_v7 = vmax.f32 %v3503_v10, 0.0  ;;  %v3664_v17 = vmax.f32 %v3504_v50, 0.0  ;;  %v3130_v27 = vadd.f32 %v3129_v6, %v3040_v38 }
 0x345   : > { %v10303_v32 = vpack.c.bf16 %v3663_v7, %v3661_v49  ;;  %v10305_v46 = vpack.c.bf16 %v3664_v17, %v3662_v55  ;;  %v3220_v56 = vpop.f32.mrf.mxu0  ;;  %v3309_v12 = vpop.f32.mrf.mxu1  ;;  %v3384_v40 = vpack.c.bf16 %v3308_v8, %v3130_v27 }
 0x346   : > { %v3310_v25 = vadd.f32 %v3309_v12, %v3220_v56 }
 0x347   : > { %v3439_v60 = vunpack.c.l.bf16 %v3384_v40  ;;  %v3440_v43 = vunpack.c.h.bf16 %v3384_v40 }
 0x349   : > { %v3505_v4 = vadd.f32 %v10291_v44, %v3439_v60  ;;  %v3506_v62 = vadd.f32 %v10293_v11, %v3440_v43 }
 0x34a   : > { %v3042_v61 = vpop.f32.mrf.mxu2  ;;  %v3131_v58 = vpop.f32.mrf.mxu3 }
 0x34b   : > { %v3132_v22 = vadd.f32 %v3131_v58, %v3042_v61  ;;  %v3665_v38 = vmax.f32 %v3505_v4, 0.0  ;;  %v3666_v7 = vmax.f32 %v3506_v62, 0.0 }
 0x34d   : > { %v3385_v39 = vpack.c.bf16 %v3310_v25, %v3132_v22  ;;  %v3223_v3 = vpop.f32.mrf.mxu0  ;;  %v3312_v48 = vpop.f32.mrf.mxu1 }
 0x34e   : > { %v3313_v27 = vadd.f32 %v3312_v48, %v3223_v3  ;;  %v9243_v48 = vld [vmem:[#allocation2 + $0x3e4] sm:$0xf] }
 0x34f   : > { %v3441_v9 = vunpack.c.l.bf16 %v3385_v39  ;;  %v3442_v28 = vunpack.c.h.bf16 %v3385_v39  ;;  %3084 = vmatmul.bf16.gmra.mxu2 %v10224_v24  ;;  %3173 = vmatmul.bf16.gmra.mxu3 %v10226_v21 }
 0x350   : > { %3262 = vmatmul.bf16.gmra.mxu0 %v10224_v24  ;;  %3351 = vmatmul.bf16.gmra.mxu1 %v10226_v21 }
 0x351   : > { %v3507_v10 = vadd.f32 %v10291_v44, %v3441_v9  ;;  %v3508_v50 = vadd.f32 %v10293_v11, %v3442_v28  ;;  %v8618_v9 = vld [vmem:[#allocation2 + $0x3e8] sm:$0xf0] }
 0x352   : > { %v3045_v47 = vpop.f32.mrf.mxu2  ;;  %v3134_v49 = vpop.f32.mrf.mxu3  ;;  %v8621_v62 = vor.u32 %v9243_v48, %v8618_v9 }
 0x353   : > { %v3135_v6 = vadd.f32 %v3134_v49, %v3045_v47  ;;  %v3667_v55 = vmax.f32 %v3507_v10, 0.0  ;;  %v3668_v17 = vmax.f32 %v3508_v50, 0.0 }
 0x354   : > { %4218 = vmatpush.bf16.msra.mxu1 %v8621_v62 }
 0x355   : > { %v3225_v8 = vpop.f32.mrf.mxu0  ;;  %v3314_v24 = vpop.f32.mrf.mxu1  ;;  %v10318_v56 = vpack.c.bf16 %v3667_v55, %v3665_v38  ;;  %v10320_v21 = vpack.c.bf16 %v3668_v17, %v3666_v7  ;;  %v3386_v12 = vpack.c.bf16 %v3313_v27, %v3135_v6 }
 0x356   : > { %v3315_v61 = vadd.f32 %v3314_v24, %v3225_v8 }
 0x357   : > { %v3443_v40 = vunpack.c.l.bf16 %v3386_v12  ;;  %v3444_v60 = vunpack.c.h.bf16 %v3386_v12 }
 0x359   : > { %v3509_v39 = vadd.f32 %v10291_v44, %v3443_v40  ;;  %v3510_v28 = vadd.f32 %v10293_v11, %v3444_v60  ;;  %v9227_v40 = vld [vmem:[#allocation2 + $0x364] sm:$0xf] }
 0x35a   : > { %v3047_v23 = vpop.f32.mrf.mxu2  ;;  %v3136_v34 = vpop.f32.mrf.mxu3 }
 0x35b   : > { %v3137_v58 = vadd.f32 %v3136_v34, %v3047_v23  ;;  %v3669_v38 = vmax.f32 %v3509_v39, 0.0  ;;  %v3670_v7 = vmax.f32 %v3510_v28, 0.0  ;;  %v8554_v23 = vld [vmem:[#allocation2 + $0x368] sm:$0xf0] }
 0x35c   : > { %v8557_v34 = vor.u32 %v9227_v40, %v8554_v23  ;;  %v9225_v40 = vld [vmem:[#allocation2 + $0x354] sm:$0xf]  ;;  %v8546_v23 = vld [vmem:[#allocation2 + $0x358] sm:$0xf0] }
 0x35d   : > { %v3387_v43 = vpack.c.bf16 %v3315_v61, %v3137_v58  ;;  %v3228_v25 = vpop.f32.mrf.mxu0  ;;  %v3317_v22 = vpop.f32.mrf.mxu1 }
 0x35e   : > { %4129 = vmatpush.bf16.msra.mxu0 %v8557_v34  ;;  %9363 = vmatpush.bf16.msrb.mxu2 %v8557_v34 }
 0x35f   : > { %v3445_v4 = vunpack.c.l.bf16 %v3387_v43  ;;  %v3446_v3 = vunpack.c.h.bf16 %v3387_v43  ;;  %3089 = vmatmul.bf16.gmra.mxu2 %v10236_v16  ;;  %3178 = vmatmul.bf16.gmra.mxu3 %v10238_v18 }
 0x360   : > { %3267 = vmatmul.bf16.gmra.mxu0 %v10236_v16  ;;  %3356 = vmatmul.bf16.gmra.mxu1 %v10238_v18  ;;  %v3318_v16 = vadd.f32 %v3317_v22, %v3228_v25 }
 0x361   : > { %v3511_v10 = vadd.f32 %v10291_v44, %v3445_v4  ;;  %v3512_v50 = vadd.f32 %v10293_v11, %v3446_v3 }
 0x362   : > { %v3050_v47 = vpop.f32.mrf.mxu2  ;;  %v3139_v49 = vpop.f32.mrf.mxu3 }
 0x363   : > { %v3140_v6 = vadd.f32 %v3139_v49, %v3050_v47  ;;  %v3671_v55 = vmax.f32 %v3511_v10, 0.0  ;;  %v3672_v17 = vmax.f32 %v3512_v50, 0.0 }
 0x365   : > { %v3230_v27 = vpop.f32.mrf.mxu0  ;;  %v3319_v18 = vpop.f32.mrf.mxu1  ;;  %v10330_v8 = vpack.c.bf16 %v3671_v55, %v3669_v38  ;;  %v10332_v24 = vpack.c.bf16 %v3672_v17, %v3670_v7  ;;  %v3388_v12 = vpack.c.bf16 %v3318_v16, %v3140_v6 }
 0x366   : > { %v3320_v39 = vadd.f32 %v3319_v18, %v3230_v27 }
 0x367   : > { %v3447_v60 = vunpack.c.l.bf16 %v3388_v12  ;;  %v3448_v61 = vunpack.c.h.bf16 %v3388_v12 }
 0x369   : > { %v3513_v22 = vadd.f32 %v10291_v44, %v3447_v60  ;;  %v3514_v9 = vadd.f32 %v10293_v11, %v3448_v61  ;;  %v9241_v60 = vld [vmem:[#allocation2 + $0x3d4] sm:$0xf]  ;;  %v8549_v61 = vor.u32 %v9225_v40, %v8546_v23 }
 0x36a   : > { %v3052_v58 = vpop.f32.mrf.mxu2  ;;  %v3141_v43 = vpop.f32.mrf.mxu3 }
 0x36b   : > { %v3142_v4 = vadd.f32 %v3141_v43, %v3052_v58  ;;  %v3673_v38 = vmax.f32 %v3513_v22, 0.0  ;;  %v3674_v6 = vmax.f32 %v3514_v9, 0.0  ;;  %v8610_v58 = vld [vmem:[#allocation2 + $0x3d8] sm:$0xf0]  ;;  %4130 = vmatpush.bf16.msra.mxu0 %v8549_v61  ;;  %v9239_v22 = vld [vmem:[#allocation2 + $0x3c4] sm:$0xf]  ;;  %9364 = vmatpush.bf16.msrb.mxu2 %v8549_v61 }
 0x36c   : > { %v8605_v36 = vor.u32 %v9239_v22, %v8602_v5 }
 0x36d   : > { %v3389_v3 = vpack.c.bf16 %v3320_v39, %v3142_v4  ;;  %v3233_v48 = vpop.f32.mrf.mxu0  ;;  %v3322_v25 = vpop.f32.mrf.mxu1  ;;  %v8613_v39 = vor.u32 %v9241_v60, %v8610_v58 }
 0x36e   : > { %v3323_v55 = vadd.f32 %v3322_v25, %v3233_v48  ;;  %v8538_v25 = vld [vmem:[#allocation2 + $0x348] sm:$0xf0] }
 0x36f   : > { %v3449_v28 = vunpack.c.l.bf16 %v3389_v3  ;;  %v3450_v62 = vunpack.c.h.bf16 %v3389_v3  ;;  %3094 = vmatmul.bf16.gmra.mxu2 %v10248_v26  ;;  %3183 = vmatmul.bf16.gmra.mxu3 %v10250_v31 }
 0x370   : > { %3272 = vmatmul.bf16.gmra.mxu0 %v10248_v26  ;;  %3361 = vmatmul.bf16.gmra.mxu1 %v10250_v31 }
 0x371   : > { %v3515_v10 = vadd.f32 %v10291_v44, %v3449_v28  ;;  %v3516_v50 = vadd.f32 %v10293_v11, %v3450_v62  ;;  %4219 = vmatpush.bf16.msra.mxu1 %v8613_v39  ;;  %v8541_v62 = vor.u32 %v9223_v0, %v8538_v25  ;;  %v8586_v0 = vld [vmem:[#allocation2 + $0x3a8] sm:$0xf0] }
 0x372   : > { %v3055_v47 = vpop.f32.mrf.mxu2  ;;  %v3144_v49 = vpop.f32.mrf.mxu3 }
 0x373   : > { %v3145_v7 = vadd.f32 %v3144_v49, %v3055_v47  ;;  %v3675_v17 = vmax.f32 %v3515_v10, 0.0  ;;  %v3676_v16 = vmax.f32 %v3516_v50, 0.0  ;;  %4131 = vmatpush.bf16.msra.mxu0 %v8541_v62  ;;  %v9221_v49 = vld [vmem:[#allocation2 + $0x334] sm:$0xf]  ;;  %9365 = vmatpush.bf16.msrb.mxu2 %v8541_v62 }
 0x375   : > { %v3390_v26 = vpack.c.bf16 %v3323_v55, %v3145_v7  ;;  %v3235_v31 = vpop.f32.mrf.mxu0  ;;  %v3324_v27 = vpop.f32.mrf.mxu1  ;;  %v10343_v18 = vpack.c.bf16 %v3675_v17, %v3673_v38  ;;  %v10345_v12 = vpack.c.bf16 %v3676_v16, %v3674_v6  ;;  %4220 = vmatpush.bf16.msra.mxu1 %v8605_v36  ;;  %v8530_v38 = vld [vmem:[#allocation2 + $0x338] sm:$0xf0]  ;;  %v9237_v6 = vld [vmem:[#allocation2 + $0x3b4] sm:$0xf] }
 0x376   : > { %v3325_v9 = vadd.f32 %v3324_v27, %v3235_v31  ;;  %v8533_v17 = vor.u32 %v9221_v49, %v8530_v38  ;;  %v8594_v16 = vld [vmem:[#allocation2 + $0x3b8] sm:$0xf0]  ;;  %v8568_v31 = vld [vmem:[#allocation2 + $0x380] sm:$0xf]  ;;  %v9232_v27 = vld [vmem:[#allocation2 + $0x384] sm:$0xf0] }
 0x377   : > { %v3451_v43 = vunpack.c.l.bf16 %v3390_v26  ;;  %v3452_v4 = vunpack.c.h.bf16 %v3390_v26  ;;  %v8597_v26 = vor.u32 %v9237_v6, %v8594_v16  ;;  %v8569_v23 = vor.u32 %v9232_v27, %v8568_v31  ;;  %v8514_v49 = vld [vmem:[#allocation2 + $0x318] sm:$0xf0]  ;;  %v9233_v38 = vld [vmem:[#allocation2 + $0x394] sm:$0xf]  ;;  %v8506_v31 = vld [vmem:[#allocation2 + $0x308] sm:$0xf0] }
 0x378   : > { %4132 = vmatpush.bf16.msra.mxu0 %v8533_v17  ;;  %9366 = vmatpush.bf16.msrb.mxu2 %v8533_v17  ;;  %v9231_v27 = vld [vmem:[#allocation2 + $0x384] sm:$0xf] }
 0x379   : > { %v3517_v52 = vadd.f32 %v10291_v44, %v3451_v43  ;;  %v3518_v34 = vadd.f32 %v10293_v11, %v3452_v4  ;;  %4221 = vmatpush.bf16.msra.mxu1 %v8597_v26  ;;  %v9219_v4 = vld [vmem:[#allocation2 + $0x324] sm:$0xf]  ;;  %4046 = vmatpush.bf16.msra.mxu3 %v8569_v23 }
 0x37a   : > { %v3057_v3 = vpop.f32.mrf.mxu2  ;;  %v3146_v48 = vpop.f32.mrf.mxu3  ;;  %v9215_v26 = vld [vmem:[#allocation2 + $0x304] sm:$0xf] }
 0x37b   : > { %v3147_v28 = vadd.f32 %v3146_v48, %v3057_v3  ;;  %v3677_v40 = vmax.f32 %v3517_v52, 0.0  ;;  %v3678_v58 = vmax.f32 %v3518_v34, 0.0  ;;  %v8522_v3 = vld [vmem:[#allocation2 + $0x328] sm:$0xf0]  ;;  %v9217_v34 = vld [vmem:[#allocation2 + $0x314] sm:$0xf] }
 0x37c   : > { %v8517_v6 = vor.u32 %v9217_v34, %v8514_v49 }
 0x37d   : > { %v3391_v10 = vpack.c.bf16 %v3325_v9, %v3147_v28  ;;  %v3238_v50 = vpop.f32.mrf.mxu0  ;;  %v3327_v47 = vpop.f32.mrf.mxu1 }
 0x37e   : > { %v3328_v9 = vadd.f32 %v3327_v47, %v3238_v50 }
 0x37f   : > { %v3453_v55 = vunpack.c.l.bf16 %v3391_v10  ;;  %v3454_v7 = vunpack.c.h.bf16 %v3391_v10  ;;  %3099 = vmatmul.bf16.gmra.mxu2 %v10260_v33  ;;  %3188 = vmatmul.bf16.gmra.mxu3 %v10262_v45 }
 0x380   : > { %3277 = vmatmul.bf16.gmra.mxu0 %v10260_v33  ;;  %3366 = vmatmul.bf16.gmra.mxu1 %v10262_v45  ;;  %v9235_v33 = vld [vmem:[#allocation2 + $0x3a4] sm:$0xf]  ;;  %v8525_v45 = vor.u32 %v9219_v4, %v8522_v3 }
 0x381   : > { %v3519_v60 = vadd.f32 %v10291_v44, %v3453_v55  ;;  %v3520_v61 = vadd.f32 %v10293_v11, %v3454_v7  ;;  %v8589_v28 = vor.u32 %v9235_v33, %v8586_v0  ;;  %v8578_v55 = vld [vmem:[#allocation2 + $0x398] sm:$0xf0] }
 0x382   : > { %v3060_v43 = vpop.f32.mrf.mxu2  ;;  %v3149_v39 = vpop.f32.mrf.mxu3  ;;  %4133 = vmatpush.bf16.msra.mxu0 %v8525_v45  ;;  %v8581_v7 = vor.u32 %v9233_v38, %v8578_v55  ;;  %9367 = vmatpush.bf16.msrb.mxu2 %v8525_v45 }
 0x383   : > { %v3150_v48 = vadd.f32 %v3149_v39, %v3060_v43  ;;  %v3679_v25 = vmax.f32 %v3519_v60, 0.0  ;;  %v3680_v22 = vmax.f32 %v3520_v61, 0.0  ;;  %4222 = vmatpush.bf16.msra.mxu1 %v8589_v28  ;;  %v8509_v60 = vor.u32 %v9215_v26, %v8506_v31  ;;  %v8570_v61 = vld [vmem:[#allocation2 + $0x388] sm:$0xf0] }
 0x385   : > { %v3240_v5 = vpop.f32.mrf.mxu0  ;;  %v3329_v36 = vpop.f32.mrf.mxu1  ;;  %v10355_v52 = vpack.c.bf16 %v3679_v25, %v3677_v40  ;;  %v10357_v62 = vpack.c.bf16 %v3680_v22, %v3678_v58  ;;  %v3392_v10 = vpack.c.bf16 %v3328_v9, %v3150_v48  ;;  %v8573_v58 = vor.u32 %v9231_v27, %v8570_v61 }
 0x386   : > { %4134 = vmatpush.bf16.msra.mxu0 %v8517_v6  ;;  %v3330_v23 = vadd.f32 %v3329_v36, %v3240_v5  ;;  %9368 = vmatpush.bf16.msrb.mxu2 %v8517_v6 }
 0x387   : > { %v3455_v50 = vunpack.c.l.bf16 %v3392_v10  ;;  %4223 = vmatpush.bf16.msra.mxu1 %v8581_v7  ;;  %v3456_v40 = vunpack.c.h.bf16 %v3392_v10 }
 0x389   : > { %v3521_v3 = vadd.f32 %v10291_v44, %v3455_v50  ;;  %v3522_v45 = vadd.f32 %v10293_v11, %v3456_v40 }
 0x38a   : > { %v3062_v47 = vpop.f32.mrf.mxu2  ;;  %v3151_v16 = vpop.f32.mrf.mxu3  ;;  %4135 = vmatpush.bf16.msra.mxu0 %v8509_v60  ;;  %9369 = vmatpush.bf16.msrb.mxu2 %v8509_v60 }
 0x38b   : > { %v3152_v17 = vadd.f32 %v3151_v16, %v3062_v47  ;;  %4224 = vmatpush.bf16.msra.mxu1 %v8573_v58  ;;  %v3681_v28 = vmax.f32 %v3521_v3, 0.0  ;;  %v3682_v10 = vmax.f32 %v3522_v45, 0.0 }
 0x38d   : > { %v3393_v43 = vpack.c.bf16 %v3330_v23, %v3152_v17  ;;  %v3243_v39 = vpop.f32.mrf.mxu0  ;;  %v3332_v4 = vpop.f32.mrf.mxu1 }
 0x38e   : > { %v3333_v49 = vadd.f32 %v3332_v4, %v3243_v39 }
 0x38f   : > { %v3457_v33 = vunpack.c.l.bf16 %v3393_v43  ;;  %v3458_v48 = vunpack.c.h.bf16 %v3393_v43  ;;  %3104 = vmatmul.bf16.gmra.mxu2 %v10275_v37  ;;  %3193 = vmatmul.bf16.gmra.mxu3 %v10277_v63  ;;  %v4714_v43 = vld [vmem:[%s11892_s3] sm:$0xff] }
 0x390   : > { %3282 = vmatmul.bf16.gmra.mxu0 %v10275_v37  ;;  %3371 = vmatmul.bf16.gmra.mxu1 %v10277_v63  ;;  %v4717_v39 = vunpack.c.h.b16 %v4714_v43 }
 0x391   : > { %v3523_v0 = vadd.f32 %v10291_v44, %v3457_v33  ;;  %v3524_v25 = vadd.f32 %v10293_v11, %v3458_v48 }
 0x392   : > { %v3065_v22 = vpop.f32.mrf.mxu2  ;;  %v3154_v9 = vpop.f32.mrf.mxu3 }
 0x393   : > { %v3155_v5 = vadd.f32 %v3154_v9, %v3065_v22  ;;  %v3683_v36 = vmax.f32 %v3523_v0, 0.0  ;;  %v3684_v34 = vmax.f32 %v3524_v25, 0.0  ;;  %v4719_v22 = vpack.c.b16 %v4717_v39, %v4717_v39 }
 0x395   : > { %v3245_v38 = vpop.f32.mrf.mxu0  ;;  %v3334_v6 = vpop.f32.mrf.mxu1  ;;  %v10367_v55 = vpack.c.bf16 %v3683_v36, %v3681_v28  ;;  %v10369_v37 = vpack.c.bf16 %v3684_v34, %v3682_v10  ;;  %v3394_v63 = vpack.c.bf16 %v3333_v49, %v3155_v5  ;;  %v4724_v36 = vsel %vm428_vm0, %v4719_v22, 0 }
 0x396   : > { %v3335_v26 = vadd.f32 %v3334_v6, %v3245_v38  ;;  %4822 = vmatpush.bf16.msrb.mxu3 %v4724_v36 }
 0x397   : > { %v3459_v7 = vunpack.c.l.bf16 %v3394_v63  ;;  %v3460_v50 = vunpack.c.h.bf16 %v3394_v63 }
 0x399   : > { %v3525_v17 = vadd.f32 %v10291_v44, %v3459_v7  ;;  %v3526_v60 = vadd.f32 %v10293_v11, %v3460_v50 }
 0x39a   : > { %v3067_v47 = vpop.f32.mrf.mxu2  ;;  %v3156_v16 = vpop.f32.mrf.mxu3 }
 0x39b   : > { %v3157_v31 = vadd.f32 %v3156_v16, %v3067_v47  ;;  %v3685_v45 = vmax.f32 %v3525_v17, 0.0  ;;  %v3686_v0 = vmax.f32 %v3526_v60, 0.0 }
 0x39d   : > { %v3395_v27 = vpack.c.bf16 %v3335_v26, %v3157_v31  ;;  %v3248_v40 = vpop.f32.mrf.mxu0  ;;  %v3337_v23 = vpop.f32.mrf.mxu1 }
 0x39f   : > { %v3461_v61 = vunpack.c.l.bf16 %v3395_v27  ;;  %v3462_v58 = vunpack.c.h.bf16 %v3395_v27  ;;  %3109 = vmatmul.bf16.gmra.mxu2 %v10287_v51  ;;  %3198 = vmatmul.bf16.gmra.mxu3 %v10289_v59 }
 0x3a0   : > { %3287 = vmatmul.bf16.gmra.mxu0 %v10287_v51  ;;  %3376 = vmatmul.bf16.gmra.mxu1 %v10289_v59  ;;  %v3338_v51 = vadd.f32 %v3337_v23, %v3248_v40 }
 0x3a1   : > { %v3527_v4 = vadd.f32 %v10291_v44, %v3461_v61  ;;  %v3528_v3 = vadd.f32 %v10293_v11, %v3462_v58 }
 0x3a2   : > { %v3070_v33 = vpop.f32.mrf.mxu2  ;;  %v3159_v48 = vpop.f32.mrf.mxu3 }
 0x3a3   : > { %v3160_v25 = vadd.f32 %v3159_v48, %v3070_v33  ;;  %v3687_v9 = vmax.f32 %v3527_v4, 0.0  ;;  %v3688_v28 = vmax.f32 %v3528_v3, 0.0 }
 0x3a5   : > { %v3250_v5 = vpop.f32.mrf.mxu0  ;;  %v3339_v59 = vpop.f32.mrf.mxu1  ;;  %v10383_v10 = vpack.c.bf16 %v3687_v9, %v3685_v45  ;;  %v10385_v34 = vpack.c.bf16 %v3688_v28, %v3686_v0  ;;  %v3396_v49 = vpack.c.bf16 %v3338_v51, %v3160_v25 }
 0x3a6   : > { %v3340_v50 = vadd.f32 %v3339_v59, %v3250_v5 }
 0x3a7   : > { %v3463_v38 = vunpack.c.l.bf16 %v3396_v49  ;;  %v3464_v7 = vunpack.c.h.bf16 %v3396_v49 }
 0x3a9   : > { %v3529_v27 = vadd.f32 %v10291_v44, %v3463_v38  ;;  %v3530_v17 = vadd.f32 %v10293_v11, %v3464_v7 }
 0x3aa   : > { %v3072_v6 = vpop.f32.mrf.mxu2  ;;  %v3161_v63 = vpop.f32.mrf.mxu3 }
 0x3ab   : > { %v3162_v47 = vadd.f32 %v3161_v63, %v3072_v6  ;;  %v3689_v39 = vmax.f32 %v3529_v27, 0.0  ;;  %v3690_v33 = vmax.f32 %v3530_v17, 0.0 }
 0x3ad   : > { %v3397_v16 = vpack.c.bf16 %v3340_v50, %v3162_v47  ;;  %v3253_v26 = vpop.f32.mrf.mxu0  ;;  %v3342_v31 = vpop.f32.mrf.mxu1 }
 0x3ae   : > { %v3343_v45 = vadd.f32 %v3342_v31, %v3253_v26 }
 0x3af   : > { %v3465_v40 = vunpack.c.l.bf16 %v3397_v16  ;;  %v3466_v23 = vunpack.c.h.bf16 %v3397_v16  ;;  %3958 = vmatmul.bf16.vlgmr.msra.gmra.mxu2 %v10303_v32  ;;  %4047 = vmatmul.bf16.vlgmr.msra.gmra.mxu3 %v10305_v46 }
 0x3b0   : > { %4136 = vmatmul.bf16.vlgmr.msra.gmra.mxu0 %v10303_v32  ;;  %4225 = vmatmul.bf16.vlgmr.msra.gmra.mxu1 %v10305_v46 }
 0x3b1   : > { %v3531_v60 = vadd.f32 %v10291_v44, %v3465_v40  ;;  %v3532_v61 = vadd.f32 %v10293_v11, %v3466_v23 }
 0x3b2   : > { %v3075_v58 = vpop.f32.mrf.mxu2  ;;  %v3164_v43 = vpop.f32.mrf.mxu3 }
 0x3b3   : > { %v3165_v4 = vadd.f32 %v3164_v43, %v3075_v58  ;;  %v3691_v3 = vmax.f32 %v3531_v60, 0.0  ;;  %v3692_v48 = vmax.f32 %v3532_v61, 0.0 }
 0x3b5   : > { %v3255_v0 = vpop.f32.mrf.mxu0  ;;  %v3344_v25 = vpop.f32.mrf.mxu1  ;;  %v10395_v22 = vpack.c.bf16 %v3691_v3, %v3689_v39  ;;  %v10397_v9 = vpack.c.bf16 %v3692_v48, %v3690_v33  ;;  %v3398_v32 = vpack.c.bf16 %v3343_v45, %v3165_v4 }
 0x3b6   : > { %v3345_v59 = vadd.f32 %v3344_v25, %v3255_v0 }
 0x3b7   : > { %v3467_v46 = vunpack.c.l.bf16 %v3398_v32  ;;  %v3468_v5 = vunpack.c.h.bf16 %v3398_v32 }
 0x3b9   : > { %v3533_v63 = vadd.f32 %v10291_v44, %v3467_v46  ;;  %v3534_v47 = vadd.f32 %v10293_v11, %v3468_v5 }
 0x3ba   : > { %v3077_v28 = vpop.f32.mrf.mxu2  ;;  %v3166_v51 = vpop.f32.mrf.mxu3 }
 0x3bb   : > { %v3167_v36 = vadd.f32 %v3166_v51, %v3077_v28  ;;  %v3693_v40 = vmax.f32 %v3533_v63, 0.0  ;;  %v3694_v60 = vmax.f32 %v3534_v47, 0.0 }
 0x3bd   : > { %v3399_v49 = vpack.c.bf16 %v3345_v59, %v3167_v36  ;;  %v3258_v38 = vpop.f32.mrf.mxu0  ;;  %v3347_v6 = vpop.f32.mrf.mxu1 }
 0x3be   : > { %v3348_v58 = vadd.f32 %v3347_v6, %v3258_v38 }
 0x3bf   : > { %v3469_v7 = vunpack.c.l.bf16 %v3399_v49  ;;  %v3470_v50 = vunpack.c.h.bf16 %v3399_v49  ;;  %3963 = vmatmul.bf16.gmra.mxu2 %v10318_v56  ;;  %4052 = vmatmul.bf16.gmra.mxu3 %v10320_v21 }
 0x3c0   : > { %4141 = vmatmul.bf16.gmra.mxu0 %v10318_v56  ;;  %4230 = vmatmul.bf16.gmra.mxu1 %v10320_v21 }
 0x3c1   : > { %v3535_v16 = vadd.f32 %v10291_v44, %v3469_v7  ;;  %v3536_v26 = vadd.f32 %v10293_v11, %v3470_v50 }
 0x3c2   : > { %v3080_v31 = vpop.f32.mrf.mxu2  ;;  %v3169_v27 = vpop.f32.mrf.mxu3 }
 0x3c3   : > { %v3170_v23 = vadd.f32 %v3169_v27, %v3080_v31  ;;  %v3695_v17 = vmax.f32 %v3535_v16, 0.0  ;;  %v3696_v61 = vmax.f32 %v3536_v26, 0.0 }
 0x3c5   : > { %v3260_v43 = vpop.f32.mrf.mxu0  ;;  %v3349_v39 = vpop.f32.mrf.mxu1  ;;  %v10407_v4 = vpack.c.bf16 %v3695_v17, %v3693_v40  ;;  %v10409_v3 = vpack.c.bf16 %v3696_v61, %v3694_v60  ;;  %v3400_v56 = vpack.c.bf16 %v3348_v58, %v3170_v23 }
 0x3c6   : > { %v3350_v0 = vadd.f32 %v3349_v39, %v3260_v43 }
 0x3c7   : > { %v3471_v21 = vunpack.c.l.bf16 %v3400_v56  ;;  %v3472_v45 = vunpack.c.h.bf16 %v3400_v56 }
 0x3c9   : > { %v3537_v51 = vadd.f32 %v10291_v44, %v3471_v21  ;;  %v3538_v36 = vadd.f32 %v10293_v11, %v3472_v45 }
 0x3ca   : > { %v3082_v33 = vpop.f32.mrf.mxu2  ;;  %v3171_v48 = vpop.f32.mrf.mxu3 }
 0x3cb   : > { %v3172_v25 = vadd.f32 %v3171_v48, %v3082_v33  ;;  %v3697_v7 = vmax.f32 %v3537_v51, 0.0  ;;  %v3698_v16 = vmax.f32 %v3538_v36, 0.0 }
 0x3cd   : > { %v3401_v32 = vpack.c.bf16 %v3350_v0, %v3172_v25  ;;  %v3263_v46 = vpop.f32.mrf.mxu0  ;;  %v3352_v28 = vpop.f32.mrf.mxu1 }
 0x3ce   : > { %v3353_v31 = vadd.f32 %v3352_v28, %v3263_v46 }
 0x3cf   : > { %v3473_v5 = vunpack.c.l.bf16 %v3401_v32  ;;  %v3474_v59 = vunpack.c.h.bf16 %v3401_v32  ;;  %3968 = vmatmul.bf16.gmra.mxu2 %v10330_v8  ;;  %4057 = vmatmul.bf16.gmra.mxu3 %v10332_v24 }
 0x3d0   : > { %4146 = vmatmul.bf16.gmra.mxu0 %v10330_v8  ;;  %4235 = vmatmul.bf16.gmra.mxu1 %v10332_v24 }
 0x3d1   : > { %v3539_v49 = vadd.f32 %v10291_v44, %v3473_v5  ;;  %v3540_v38 = vadd.f32 %v10293_v11, %v3474_v59 }
 0x3d2   : > { %v3085_v6 = vpop.f32.mrf.mxu2  ;;  %v3174_v63 = vpop.f32.mrf.mxu3 }
 0x3d3   : > { %v3175_v50 = vadd.f32 %v3174_v63, %v3085_v6  ;;  %v3699_v47 = vmax.f32 %v3539_v49, 0.0  ;;  %v3700_v26 = vmax.f32 %v3540_v38, 0.0 }
 0x3d5   : > { %v3265_v27 = vpop.f32.mrf.mxu0  ;;  %v3354_v40 = vpop.f32.mrf.mxu1  ;;  %v10419_v23 = vpack.c.bf16 %v3699_v47, %v3697_v7  ;;  %v10421_v17 = vpack.c.bf16 %v3700_v26, %v3698_v16  ;;  %v3402_v8 = vpack.c.bf16 %v3353_v31, %v3175_v50 }
 0x3d6   : > { %v3355_v43 = vadd.f32 %v3354_v40, %v3265_v27 }
 0x3d7   : > { %v3475_v24 = vunpack.c.l.bf16 %v3402_v8  ;;  %v3476_v58 = vunpack.c.h.bf16 %v3402_v8 }
 0x3d9   : > { %v3541_v48 = vadd.f32 %v10291_v44, %v3475_v24  ;;  %v3542_v25 = vadd.f32 %v10293_v11, %v3476_v58 }
 0x3da   : > { %v3087_v60 = vpop.f32.mrf.mxu2  ;;  %v3176_v61 = vpop.f32.mrf.mxu3 }
 0x3db   : > { %v3177_v39 = vadd.f32 %v3176_v61, %v3087_v60  ;;  %v3701_v5 = vmax.f32 %v3541_v48, 0.0  ;;  %v3702_v49 = vmax.f32 %v3542_v25, 0.0 }
 0x3dd   : > { %v3403_v56 = vpack.c.bf16 %v3355_v43, %v3177_v39  ;;  %v3268_v21 = vpop.f32.mrf.mxu0  ;;  %v3357_v33 = vpop.f32.mrf.mxu1 }
 0x3de   : > { %v3358_v6 = vadd.f32 %v3357_v33, %v3268_v21 }
 0x3df   : > { %v3477_v45 = vunpack.c.l.bf16 %v3403_v56  ;;  %v3478_v0 = vunpack.c.h.bf16 %v3403_v56  ;;  %3973 = vmatmul.bf16.gmra.mxu2 %v10343_v18  ;;  %4062 = vmatmul.bf16.gmra.mxu3 %v10345_v12 }
 0x3e0   : > { %4151 = vmatmul.bf16.gmra.mxu0 %v10343_v18  ;;  %4240 = vmatmul.bf16.gmra.mxu1 %v10345_v12 }
 0x3e1   : > { %v3543_v32 = vadd.f32 %v10291_v44, %v3477_v45  ;;  %v3544_v46 = vadd.f32 %v10293_v11, %v3478_v0 }
 0x3e2   : > { %v3090_v28 = vpop.f32.mrf.mxu2  ;;  %v3179_v51 = vpop.f32.mrf.mxu3 }
 0x3e3   : > { %v3180_v59 = vadd.f32 %v3179_v51, %v3090_v28  ;;  %v3703_v36 = vmax.f32 %v3543_v32, 0.0  ;;  %v3704_v38 = vmax.f32 %v3544_v46, 0.0 }
 0x3e5   : > { %v3270_v63 = vpop.f32.mrf.mxu0  ;;  %v3359_v7 = vpop.f32.mrf.mxu1  ;;  %v10431_v50 = vpack.c.bf16 %v3703_v36, %v3701_v5  ;;  %v10433_v47 = vpack.c.bf16 %v3704_v38, %v3702_v49  ;;  %v3404_v18 = vpack.c.bf16 %v3358_v6, %v3180_v59 }
 0x3e6   : > { %v3360_v27 = vadd.f32 %v3359_v7, %v3270_v63 }
 0x3e7   : > { %v3479_v12 = vunpack.c.l.bf16 %v3404_v18  ;;  %v3480_v31 = vunpack.c.h.bf16 %v3404_v18 }
 0x3e9   : > { %v3545_v61 = vadd.f32 %v10291_v44, %v3479_v12  ;;  %v3546_v39 = vadd.f32 %v10293_v11, %v3480_v31 }
 0x3ea   : > { %v3092_v16 = vpop.f32.mrf.mxu2  ;;  %v3181_v26 = vpop.f32.mrf.mxu3 }
 0x3eb   : > { %v3182_v40 = vadd.f32 %v3181_v26, %v3092_v16  ;;  %v3705_v45 = vmax.f32 %v3545_v61, 0.0  ;;  %v3706_v32 = vmax.f32 %v3546_v39, 0.0 }
 0x3ed   : > { %v3405_v8 = vpack.c.bf16 %v3360_v27, %v3182_v40  ;;  %v3273_v24 = vpop.f32.mrf.mxu0  ;;  %v3362_v60 = vpop.f32.mrf.mxu1 }
 0x3ee   : > { %v3363_v28 = vadd.f32 %v3362_v60, %v3273_v24 }
 0x3ef   : > { %v3481_v58 = vunpack.c.l.bf16 %v3405_v8  ;;  %v3482_v43 = vunpack.c.h.bf16 %v3405_v8  ;;  %3978 = vmatmul.bf16.gmra.mxu2 %v10355_v52  ;;  %4067 = vmatmul.bf16.gmra.mxu3 %v10357_v62 }
 0x3f0   : > { %4156 = vmatmul.bf16.gmra.mxu0 %v10355_v52  ;;  %4245 = vmatmul.bf16.gmra.mxu1 %v10357_v62 }
 0x3f1   : > { %v3547_v56 = vadd.f32 %v10291_v44, %v3481_v58  ;;  %v3548_v21 = vadd.f32 %v10293_v11, %v3482_v43 }
 0x3f2   : > { %v3095_v33 = vpop.f32.mrf.mxu2  ;;  %v3184_v48 = vpop.f32.mrf.mxu3 }
 0x3f3   : > { %v3185_v0 = vadd.f32 %v3184_v48, %v3095_v33  ;;  %v3707_v25 = vmax.f32 %v3547_v56, 0.0  ;;  %v3708_v46 = vmax.f32 %v3548_v21, 0.0 }
 0x3f5   : > { %v3275_v51 = vpop.f32.mrf.mxu0  ;;  %v3364_v5 = vpop.f32.mrf.mxu1  ;;  %v10443_v59 = vpack.c.bf16 %v3707_v25, %v3705_v45  ;;  %v10445_v36 = vpack.c.bf16 %v3708_v46, %v3706_v32  ;;  %v3406_v52 = vpack.c.bf16 %v3363_v28, %v3185_v0 }
 0x3f6   : > { %v3365_v63 = vadd.f32 %v3364_v5, %v3275_v51 }
 0x3f7   : > { %v3483_v62 = vunpack.c.l.bf16 %v3406_v52  ;;  %v3484_v6 = vunpack.c.h.bf16 %v3406_v52 }
 0x3f9   : > { %v3549_v26 = vadd.f32 %v10291_v44, %v3483_v62  ;;  %v3550_v40 = vadd.f32 %v10293_v11, %v3484_v6 }
 0x3fa   : > { %v3097_v49 = vpop.f32.mrf.mxu2  ;;  %v3186_v38 = vpop.f32.mrf.mxu3 }
 0x3fb   : > { %v3187_v7 = vadd.f32 %v3186_v38, %v3097_v49  ;;  %v3709_v58 = vmax.f32 %v3549_v26, 0.0  ;;  %v3710_v56 = vmax.f32 %v3550_v40, 0.0 }
 0x3fd   : > { %v3407_v18 = vpack.c.bf16 %v3365_v63, %v3187_v7  ;;  %v3278_v12 = vpop.f32.mrf.mxu0  ;;  %v3367_v16 = vpop.f32.mrf.mxu1 }
 0x3fe   : > { %v3368_v33 = vadd.f32 %v3367_v16, %v3278_v12 }
 0x3ff   : > { %v3485_v31 = vunpack.c.l.bf16 %v3407_v18  ;;  %v3486_v27 = vunpack.c.h.bf16 %v3407_v18  ;;  %3983 = vmatmul.bf16.gmra.mxu2 %v10367_v55  ;;  %4072 = vmatmul.bf16.gmra.mxu3 %v10369_v37 }
 0x400   : > { %4161 = vmatmul.bf16.gmra.mxu0 %v10367_v55  ;;  %4250 = vmatmul.bf16.gmra.mxu1 %v10369_v37 }
 0x401   : > { %v3551_v8 = vadd.f32 %v10291_v44, %v3485_v31  ;;  %v3552_v24 = vadd.f32 %v10293_v11, %v3486_v27 }
 0x402   : > { %v3100_v60 = vpop.f32.mrf.mxu2  ;;  %v3189_v61 = vpop.f32.mrf.mxu3 }
 0x403   : > { %v3190_v43 = vadd.f32 %v3189_v61, %v3100_v60  ;;  %v3711_v39 = vmax.f32 %v3551_v8, 0.0  ;;  %v3712_v21 = vmax.f32 %v3552_v24, 0.0 }
 0x405   : > { %v3280_v48 = vpop.f32.mrf.mxu0  ;;  %v3369_v45 = vpop.f32.mrf.mxu1  ;;  %v10455_v0 = vpack.c.bf16 %v3711_v39, %v3709_v58  ;;  %v10457_v25 = vpack.c.bf16 %v3712_v21, %v3710_v56  ;;  %v3408_v55 = vpack.c.bf16 %v3368_v33, %v3190_v43 }
 0x406   : > { %v3370_v51 = vadd.f32 %v3369_v45, %v3280_v48 }
 0x407   : > { %v3487_v37 = vunpack.c.l.bf16 %v3408_v55  ;;  %v3488_v28 = vunpack.c.h.bf16 %v3408_v55 }
 0x409   : > { %v3553_v38 = vadd.f32 %v10291_v44, %v3487_v37  ;;  %v3554_v7 = vadd.f32 %v10293_v11, %v3488_v28 }
 0x40a   : > { %v3102_v32 = vpop.f32.mrf.mxu2  ;;  %v3191_v46 = vpop.f32.mrf.mxu3 }
 0x40b   : > { %v3192_v5 = vadd.f32 %v3191_v46, %v3102_v32  ;;  %v3713_v31 = vmax.f32 %v3553_v38, 0.0  ;;  %v3714_v8 = vmax.f32 %v3554_v7, 0.0 }
 0x40d   : > { %v3409_v52 = vpack.c.bf16 %v3370_v51, %v3192_v5  ;;  %v3283_v62 = vpop.f32.mrf.mxu0  ;;  %v3372_v49 = vpop.f32.mrf.mxu1  ;;  %v8630_v5 = vld [vmem:[%s11894_s5 + $0x6] sm:$0x3] }
 0x40e   : > { %v3373_v60 = vadd.f32 %v3372_v49, %v3283_v62  ;;  %v4342_v7 = vperm.slane %v8630_v5, 1 }
 0x40f   : > { %v3489_v6 = vunpack.c.l.bf16 %v3409_v52  ;;  %v3490_v63 = vunpack.c.h.bf16 %v3409_v52  ;;  %3988 = vmatmul.bf16.gmra.mxu2 %v10383_v10  ;;  %4077 = vmatmul.bf16.gmra.mxu3 %v10385_v34 }
 0x410   : > { %4166 = vmatmul.bf16.gmra.mxu0 %v10383_v10  ;;  %4255 = vmatmul.bf16.gmra.mxu1 %v10385_v34 }
 0x411   : > { %v3555_v18 = vadd.f32 %v10291_v44, %v3489_v6  ;;  %v3556_v12 = vadd.f32 %v10293_v11, %v3490_v63  ;;  %v4341_v63 = vperm.slane %v8630_v5, 0 }
 0x412   : > { %v3105_v16 = vpop.f32.mrf.mxu2  ;;  %v3194_v26 = vpop.f32.mrf.mxu3 }
 0x413   : > { %v3195_v27 = vadd.f32 %v3194_v26, %v3105_v16  ;;  %v3715_v40 = vmax.f32 %v3555_v18, 0.0  ;;  %v3716_v24 = vmax.f32 %v3556_v12, 0.0 }
 0x415   : > { %v3285_v61 = vpop.f32.mrf.mxu0  ;;  %v3374_v58 = vpop.f32.mrf.mxu1  ;;  %v10467_v43 = vpack.c.bf16 %v3715_v40, %v3713_v31  ;;  %v10469_v39 = vpack.c.bf16 %v3716_v24, %v3714_v8  ;;  %v3410_v10 = vpack.c.bf16 %v3373_v60, %v3195_v27  ;;  %v4345_v60 = vpack.c.bf16 %v4342_v7, %v4341_v63 }
 0x416   : > { %v3375_v48 = vadd.f32 %v3374_v58, %v3285_v61 }
 0x417   : > { %v3491_v34 = vunpack.c.l.bf16 %v3410_v10  ;;  %v3492_v33 = vunpack.c.h.bf16 %v3410_v10 }
 0x419   : > { %v3557_v46 = vadd.f32 %v10291_v44, %v3491_v34  ;;  %v3558_v52 = vadd.f32 %v10293_v11, %v3492_v33  ;;  %v4347_v34 = vunpack.c.l.b16 %v4345_v60 }
 0x41a   : > { %v3107_v56 = vpop.f32.mrf.mxu2  ;;  %v3196_v21 = vpop.f32.mrf.mxu3 }
 0x41b   : > { %v3197_v45 = vadd.f32 %v3196_v21, %v3107_v56  ;;  %v3717_v18 = vmax.f32 %v3557_v46, 0.0  ;;  %v3718_v26 = vmax.f32 %v3558_v52, 0.0  ;;  %v4348_v56 = vunpack.c.h.b16 %v4345_v60 }
 0x41d   : > { %v3411_v55 = vpack.c.bf16 %v3375_v48, %v3197_v45  ;;  %v3288_v37 = vpop.f32.mrf.mxu0  ;;  %v3377_v32 = vpop.f32.mrf.mxu1 }
 0x41e   : > { %v3378_v27 = vadd.f32 %v3377_v32, %v3288_v37  ;;  %v4349_v37 = vpack.c.b16 %v4347_v34, %v4347_v34  ;;  %v4350_v32 = vpack.c.b16 %v4348_v56, %v4348_v56 }
 0x41f   : > { %v3493_v28 = vunpack.c.l.bf16 %v3411_v55  ;;  %v3494_v51 = vunpack.c.h.bf16 %v3411_v55  ;;  %3993 = vmatmul.bf16.gmra.mxu2 %v10395_v22  ;;  %4082 = vmatmul.bf16.gmra.mxu3 %v10397_v9 }
 0x420   : > { %4171 = vmatmul.bf16.gmra.mxu0 %v10395_v22  ;;  %4260 = vmatmul.bf16.gmra.mxu1 %v10397_v9  ;;  %v4352_v63 = vpack.i.b16 %v4349_v37, %v4349_v37  ;;  %v4356_v7 = vpack.i.b16 %v4350_v32, %v4350_v32 }
 0x421   : > { %v3559_v62 = vadd.f32 %v10291_v44, %v3493_v28  ;;  %v3560_v49 = vadd.f32 %v10293_v11, %v3494_v51 }
 0x422   : > { %v3110_v38 = vpop.f32.mrf.mxu2  ;;  %v3199_v6 = vpop.f32.mrf.mxu3  ;;  %v4358_v60 = vperm.slane %v4356_v7, 0 }
 0x423   : > { %v3200_v12 = vadd.f32 %v3199_v6, %v3110_v38  ;;  %v3719_v16 = vmax.f32 %v3559_v62, 0.0  ;;  %v3720_v31 = vmax.f32 %v3560_v49, 0.0 }
 0x424   : > { %v10500_v56 = vunpack.c.l.bf16 %v4358_v60 }
 0x425   : > { %v3290_v40 = vpop.f32.mrf.mxu0  ;;  %v3379_v8 = vpop.f32.mrf.mxu1  ;;  %v10482_v24 = vpack.c.bf16 %v3719_v16, %v3717_v18  ;;  %v10484_v22 = vpack.c.bf16 %v3720_v31, %v3718_v26  ;;  %v3412_v9 = vpack.c.bf16 %v3378_v27, %v3200_v12 }
 0x426   : > { %v3380_v33 = vadd.f32 %v3379_v8, %v3290_v40 }
 0x427   : > { %v3495_v61 = vunpack.c.l.bf16 %v3412_v9  ;;  %v3496_v21 = vunpack.c.h.bf16 %v3412_v9 }
 0x429   : > { %v3561_v28 = vadd.f32 %v10291_v44, %v3495_v61  ;;  %v3562_v52 = vadd.f32 %v10293_v11, %v3496_v21 }
 0x42a   : > { %v3112_v58 = vpop.f32.mrf.mxu2  ;;  %v3201_v10 = vpop.f32.mrf.mxu3 }
 0x42b   : > { %v3202_v48 = vadd.f32 %v3201_v10, %v3112_v58  ;;  %v3721_v18 = vmax.f32 %v3561_v28, 0.0  ;;  %v3722_v26 = vmax.f32 %v3562_v52, 0.0 }
 0x42d   : > { %v3413_v45 = vpack.c.bf16 %v3380_v33, %v3202_v48  ;;  %v4137_v55 = vpop.f32.mrf.mxu0  ;;  %v4226_v46 = vpop.f32.mrf.mxu1 }
 0x42e   : > { %v4227_v27 = vadd.f32 %v4226_v46, %v4137_v55 }
 0x42f   : > { %v3497_v51 = vunpack.c.l.bf16 %v3413_v45  ;;  %v3498_v5 = vunpack.c.h.bf16 %v3413_v45  ;;  %3998 = vmatmul.bf16.gmra.mxu2 %v10407_v4  ;;  %4087 = vmatmul.bf16.gmra.mxu3 %v10409_v3 }
 0x430   : > { %4176 = vmatmul.bf16.gmra.mxu0 %v10407_v4  ;;  %4265 = vmatmul.bf16.gmra.mxu1 %v10409_v3 }
 0x431   : > { %v3563_v62 = vadd.f32 %v10291_v44, %v3497_v51  ;;  %v3564_v49 = vadd.f32 %v10293_v11, %v3498_v5  ;;  %v4354_v44 = vperm.slane %v4352_v63, 0  ;;  %v8785_v51 = vld [vmem:[#allocation2 + $0x4f0] sm:$0xf]  ;;  %v9278_v5 = vld [vmem:[#allocation2 + $0x4f4] sm:$0xf0] }
 0x432   : > { %v3959_v38 = vpop.f32.mrf.mxu2  ;;  %v4048_v6 = vpop.f32.mrf.mxu3  ;;  %v8786_v52 = vor.u32 %v9278_v5, %v8785_v51 }
 0x433   : > { %v4049_v12 = vadd.f32 %v4048_v6, %v3959_v38  ;;  %v3723_v16 = vmax.f32 %v3563_v62, 0.0  ;;  %v3724_v31 = vmax.f32 %v3564_v49, 0.0  ;;  %v10498_v61 = vunpack.c.l.bf16 %v4354_v44 }
 0x434   : > { %5153 = vmatpush.bf16.msrb.mxu1 %v8786_v52 }
 0x435   : > { %v4139_v40 = vpop.f32.mrf.mxu0  ;;  %v4228_v8 = vpop.f32.mrf.mxu1  ;;  %v10494_v9 = vpack.c.bf16 %v3723_v16, %v3721_v18  ;;  %v10496_v4 = vpack.c.bf16 %v3724_v31, %v3722_v26  ;;  %v4306_v3 = vpack.c.bf16 %v4227_v27, %v4049_v12 }
 0x436   : > { %v4229_v21 = vadd.f32 %v4228_v8, %v4139_v40  ;;  %v8721_v8 = vld [vmem:[#allocation2 + $0x470] sm:$0xf] }
 0x437   : > { %v4359_v11 = vunpack.c.l.bf16 %v4306_v3  ;;  %v4360_v34 = vunpack.c.h.bf16 %v4306_v3  ;;  %v9262_v3 = vld [vmem:[#allocation2 + $0x474] sm:$0xf0] }
 0x438   : > { %v8722_v44 = vor.u32 %v9262_v3, %v8721_v8 }
 0x439   : > { %v4425_v46 = vadd.f32 %v10498_v61, %v4359_v11  ;;  %v4426_v37 = vadd.f32 %v10500_v56, %v4360_v34 }
 0x43a   : > { %v3961_v58 = vpop.f32.mrf.mxu2  ;;  %v4050_v10 = vpop.f32.mrf.mxu3  ;;  %5064 = vmatpush.bf16.msrb.mxu0 %v8722_v44 }
 0x43b   : > { %v4051_v33 = vadd.f32 %v4050_v10, %v3961_v58  ;;  %v4585_v38 = vmax.f32 %v4425_v46, 0.0  ;;  %v4586_v7 = vmax.f32 %v4426_v37, 0.0 }
 0x43d   : > { %v4307_v48 = vpack.c.bf16 %v4229_v21, %v4051_v33  ;;  %v4142_v45 = vpop.f32.mrf.mxu0  ;;  %v4231_v55 = vpop.f32.mrf.mxu1 }
 0x43e   : > { %v4232_v26 = vadd.f32 %v4231_v55, %v4142_v45 }
 0x43f   : > { %v4361_v32 = vunpack.c.l.bf16 %v4307_v48  ;;  %v4362_v28 = vunpack.c.h.bf16 %v4307_v48  ;;  %4003 = vmatmul.bf16.gmra.mxu2 %v10419_v23  ;;  %4092 = vmatmul.bf16.gmra.mxu3 %v10421_v17 }
 0x440   : > { %4181 = vmatmul.bf16.gmra.mxu0 %v10419_v23  ;;  %4270 = vmatmul.bf16.gmra.mxu1 %v10421_v17 }
 0x441   : > { %v4427_v62 = vadd.f32 %v10498_v61, %v4361_v32  ;;  %v4428_v49 = vadd.f32 %v10500_v56, %v4362_v28 }
 0x442   : > { %v3964_v6 = vpop.f32.mrf.mxu2  ;;  %v4053_v63 = vpop.f32.mrf.mxu3 }
 0x443   : > { %v4587_v18 = vmax.f32 %v4427_v62, 0.0  ;;  %v4588_v12 = vmax.f32 %v4428_v49, 0.0  ;;  %v4054_v16 = vadd.f32 %v4053_v63, %v3964_v6 }
 0x445   : > { %v10510_v31 = vpack.c.bf16 %v4587_v18, %v4585_v38  ;;  %v10512_v27 = vpack.c.bf16 %v4588_v12, %v4586_v7  ;;  %v4144_v23 = vpop.f32.mrf.mxu0  ;;  %v4233_v17 = vpop.f32.mrf.mxu1  ;;  %v4308_v40 = vpack.c.bf16 %v4232_v26, %v4054_v16 }
 0x446   : > { %v4234_v34 = vadd.f32 %v4233_v17, %v4144_v23 }
 0x447   : > { %v4363_v60 = vunpack.c.l.bf16 %v4308_v40  ;;  %v4364_v10 = vunpack.c.h.bf16 %v4308_v40 }
 0x449   : > { %v4429_v55 = vadd.f32 %v10498_v61, %v4363_v60  ;;  %v4430_v32 = vadd.f32 %v10500_v56, %v4364_v10 }
 0x44a   : > { %v3966_v11 = vpop.f32.mrf.mxu2  ;;  %v4055_v58 = vpop.f32.mrf.mxu3 }
 0x44b   : > { %v4056_v21 = vadd.f32 %v4055_v58, %v3966_v11  ;;  %v4589_v62 = vmax.f32 %v4429_v55, 0.0  ;;  %v4590_v6 = vmax.f32 %v4430_v32, 0.0 }
 0x44d   : > { %v4309_v33 = vpack.c.bf16 %v4234_v34, %v4056_v21  ;;  %v4147_v48 = vpop.f32.mrf.mxu0  ;;  %v4236_v45 = vpop.f32.mrf.mxu1 }
 0x44e   : > { %v4237_v7 = vadd.f32 %v4236_v45, %v4147_v48  ;;  %v9276_v48 = vld [vmem:[#allocation2 + $0x4e4] sm:$0xf0] }
 0x44f   : > { %v4365_v46 = vunpack.c.l.bf16 %v4309_v33  ;;  %v4366_v37 = vunpack.c.h.bf16 %v4309_v33  ;;  %4008 = vmatmul.bf16.gmra.mxu2 %v10431_v50  ;;  %4097 = vmatmul.bf16.gmra.mxu3 %v10433_v47  ;;  %v8777_v33 = vld [vmem:[#allocation2 + $0x4e0] sm:$0xf] }
 0x450   : > { %4186 = vmatmul.bf16.gmra.mxu0 %v10431_v50  ;;  %4275 = vmatmul.bf16.gmra.mxu1 %v10433_v47  ;;  %v8778_v45 = vor.u32 %v9276_v48, %v8777_v33  ;;  %v8689_v48 = vld [vmem:[#allocation2 + $0x430] sm:$0xf] }
 0x451   : > { %v4431_v28 = vadd.f32 %v10498_v61, %v4365_v46  ;;  %v4432_v51 = vadd.f32 %v10500_v56, %v4366_v37 }
 0x452   : > { %v3969_v5 = vpop.f32.mrf.mxu2  ;;  %v4058_v52 = vpop.f32.mrf.mxu3  ;;  %5154 = vmatpush.bf16.msrb.mxu1 %v8778_v45  ;;  %v9254_v45 = vld [vmem:[#allocation2 + $0x434] sm:$0xf0] }
 0x453   : > { %v4059_v49 = vadd.f32 %v4058_v52, %v3969_v5  ;;  %v4591_v38 = vmax.f32 %v4431_v28, 0.0  ;;  %v4592_v63 = vmax.f32 %v4432_v51, 0.0  ;;  %v8713_v28 = vld [vmem:[#allocation2 + $0x460] sm:$0xf]  ;;  %v9260_v51 = vld [vmem:[#allocation2 + $0x464] sm:$0xf0] }
 0x455   : > { %v4149_v18 = vpop.f32.mrf.mxu0  ;;  %v4238_v12 = vpop.f32.mrf.mxu1  ;;  %v10522_v16 = vpack.c.bf16 %v4591_v38, %v4589_v62  ;;  %v10524_v26 = vpack.c.bf16 %v4592_v63, %v4590_v6  ;;  %v4310_v50 = vpack.c.bf16 %v4237_v7, %v4059_v49  ;;  %v8714_v49 = vor.u32 %v9260_v51, %v8713_v28 }
 0x456   : > { %v4239_v8 = vadd.f32 %v4238_v12, %v4149_v18  ;;  %v8690_v28 = vor.u32 %v9254_v45, %v8689_v48 }
 0x457   : > { %v4367_v47 = vunpack.c.l.bf16 %v4310_v50  ;;  %v4368_v23 = vunpack.c.h.bf16 %v4310_v50  ;;  %5065 = vmatpush.bf16.msrb.mxu0 %v8714_v49  ;;  %v8705_v50 = vld [vmem:[#allocation2 + $0x450] sm:$0xf]  ;;  %v8681_v49 = vld [vmem:[#allocation2 + $0x420] sm:$0xf] }
 0x459   : > { %v4433_v58 = vadd.f32 %v10498_v61, %v4367_v47  ;;  %v4434_v10 = vadd.f32 %v10500_v56, %v4368_v23  ;;  %v9258_v47 = vld [vmem:[#allocation2 + $0x454] sm:$0xf0] }
 0x45a   : > { %v3971_v17 = vpop.f32.mrf.mxu2  ;;  %v4060_v40 = vpop.f32.mrf.mxu3  ;;  %v8706_v23 = vor.u32 %v9258_v47, %v8705_v50 }
 0x45b   : > { %v4061_v3 = vadd.f32 %v4060_v40, %v3971_v17  ;;  %v4593_v5 = vmax.f32 %v4433_v58, 0.0  ;;  %v4594_v52 = vmax.f32 %v4434_v10, 0.0  ;;  %v9256_v58 = vld [vmem:[#allocation2 + $0x444] sm:$0xf0] }
 0x45c   : > { %5066 = vmatpush.bf16.msrb.mxu0 %v8706_v23 }
 0x45d   : > { %v4311_v44 = vpack.c.bf16 %v4239_v8, %v4061_v3  ;;  %v4152_v60 = vpop.f32.mrf.mxu0  ;;  %v4241_v11 = vpop.f32.mrf.mxu1 }
 0x45e   : > { %v4242_v63 = vadd.f32 %v4241_v11, %v4152_v60 }
 0x45f   : > { %v4369_v34 = vunpack.c.l.bf16 %v4311_v44  ;;  %v4370_v21 = vunpack.c.h.bf16 %v4311_v44  ;;  %4013 = vmatmul.bf16.gmra.mxu2 %v10443_v59  ;;  %4102 = vmatmul.bf16.gmra.mxu3 %v10445_v36  ;;  %v8697_v44 = vld [vmem:[#allocation2 + $0x440] sm:$0xf] }
 0x460   : > { %4191 = vmatmul.bf16.gmra.mxu0 %v10443_v59  ;;  %4280 = vmatmul.bf16.gmra.mxu1 %v10445_v36  ;;  %v8698_v11 = vor.u32 %v9256_v58, %v8697_v44  ;;  %v8769_v44 = vld [vmem:[#allocation2 + $0x4d0] sm:$0xf] }
 0x461   : > { %v4435_v55 = vadd.f32 %v10498_v61, %v4369_v34  ;;  %v4436_v46 = vadd.f32 %v10500_v56, %v4370_v21 }
 0x462   : > { %v3974_v37 = vpop.f32.mrf.mxu2  ;;  %v4063_v32 = vpop.f32.mrf.mxu3  ;;  %5067 = vmatpush.bf16.msrb.mxu0 %v8698_v11 }
 0x463   : > { %v4064_v62 = vadd.f32 %v4063_v32, %v3974_v37  ;;  %v4595_v38 = vmax.f32 %v4435_v55, 0.0  ;;  %v4596_v6 = vmax.f32 %v4436_v46, 0.0 }
 0x465   : > { %v4154_v59 = vpop.f32.mrf.mxu0  ;;  %v4243_v7 = vpop.f32.mrf.mxu1  ;;  %v10534_v36 = vpack.c.bf16 %v4595_v38, %v4593_v5  ;;  %v10536_v18 = vpack.c.bf16 %v4596_v6, %v4594_v52  ;;  %v4312_v12 = vpack.c.bf16 %v4242_v63, %v4064_v62  ;;  %v9252_v38 = vld [vmem:[#allocation2 + $0x424] sm:$0xf0] }
 0x466   : > { %v4244_v10 = vadd.f32 %v4243_v7, %v4154_v59  ;;  %5068 = vmatpush.bf16.msrb.mxu0 %v8690_v28  ;;  %v8682_v7 = vor.u32 %v9252_v38, %v8681_v49  ;;  %v9272_v28 = vld [vmem:[#allocation2 + $0x4c4] sm:$0xf0]  ;;  %v8753_v49 = vld [vmem:[#allocation2 + $0x4b0] sm:$0xf]  ;;  %v9270_v38 = vld [vmem:[#allocation2 + $0x4b4] sm:$0xf0] }
 0x467   : > { %v4371_v17 = vunpack.c.l.bf16 %v4312_v12  ;;  %v4372_v40 = vunpack.c.h.bf16 %v4312_v12 }
 0x469   : > { %v4437_v55 = vadd.f32 %v10498_v61, %v4371_v17  ;;  %v4438_v46 = vadd.f32 %v10500_v56, %v4372_v40 }
 0x46a   : > { %v3976_v8 = vpop.f32.mrf.mxu2  ;;  %v4065_v3 = vpop.f32.mrf.mxu3  ;;  %5069 = vmatpush.bf16.msrb.mxu0 %v8682_v7 }
 0x46b   : > { %v4066_v60 = vadd.f32 %v4065_v3, %v3976_v8  ;;  %v4597_v6 = vmax.f32 %v4437_v55, 0.0  ;;  %v4598_v63 = vmax.f32 %v4438_v46, 0.0  ;;  %v8673_v8 = vld [vmem:[#allocation2 + $0x410] sm:$0xf]  ;;  %v9250_v3 = vld [vmem:[#allocation2 + $0x414] sm:$0xf0] }
 0x46c   : > { %v8674_v58 = vor.u32 %v9250_v3, %v8673_v8  ;;  %v8761_v55 = vld [vmem:[#allocation2 + $0x4c0] sm:$0xf]  ;;  %v9268_v8 = vld [vmem:[#allocation2 + $0x4a4] sm:$0xf0] }
 0x46d   : > { %v4313_v34 = vpack.c.bf16 %v4244_v10, %v4066_v60  ;;  %v4157_v21 = vpop.f32.mrf.mxu0  ;;  %v4246_v33 = vpop.f32.mrf.mxu1  ;;  %v9274_v10 = vld [vmem:[#allocation2 + $0x4d4] sm:$0xf0] }
 0x46e   : > { %v4247_v47 = vadd.f32 %v4246_v33, %v4157_v21  ;;  %v8770_v60 = vor.u32 %v9274_v10, %v8769_v44  ;;  %5070 = vmatpush.bf16.msrb.mxu0 %v8674_v58  ;;  %v8665_v21 = vld [vmem:[#allocation2 + $0x400] sm:$0xf]  ;;  %v9248_v33 = vld [vmem:[#allocation2 + $0x404] sm:$0xf0] }
 0x46f   : > { %v4373_v37 = vunpack.c.l.bf16 %v4313_v34  ;;  %v4374_v32 = vunpack.c.h.bf16 %v4313_v34  ;;  %4018 = vmatmul.bf16.gmra.mxu2 %v10455_v0  ;;  %4107 = vmatmul.bf16.gmra.mxu3 %v10457_v25 }
 0x470   : > { %4196 = vmatmul.bf16.gmra.mxu0 %v10455_v0  ;;  %4285 = vmatmul.bf16.gmra.mxu1 %v10457_v25 }
 0x471   : > { %v4439_v51 = vadd.f32 %v10498_v61, %v4373_v37  ;;  %v4440_v5 = vadd.f32 %v10500_v56, %v4374_v32  ;;  %5155 = vmatpush.bf16.msrb.mxu1 %v8770_v60  ;;  %v8666_v32 = vor.u32 %v9248_v33, %v8665_v21  ;;  %v8737_v33 = vld [vmem:[#allocation2 + $0x490] sm:$0xf] }
 0x472   : > { %v3979_v52 = vpop.f32.mrf.mxu2  ;;  %v4068_v62 = vpop.f32.mrf.mxu3 }
 0x473   : > { %v4069_v59 = vadd.f32 %v4068_v62, %v3979_v52  ;;  %v4599_v12 = vmax.f32 %v4439_v51, 0.0  ;;  %v4600_v50 = vmax.f32 %v4440_v5, 0.0  ;;  %v8762_v51 = vor.u32 %v9272_v28, %v8761_v55  ;;  %5071 = vmatpush.bf16.msrb.mxu0 %v8666_v32  ;;  %v9266_v55 = vld [vmem:[#allocation2 + $0x494] sm:$0xf0] }
 0x475   : > { %v4159_v23 = vpop.f32.mrf.mxu0  ;;  %v4248_v0 = vpop.f32.mrf.mxu1  ;;  %v10546_v25 = vpack.c.bf16 %v4599_v12, %v4597_v6  ;;  %v10548_v17 = vpack.c.bf16 %v4600_v50, %v4598_v63  ;;  %v4314_v40 = vpack.c.bf16 %v4247_v47, %v4069_v59  ;;  %5156 = vmatpush.bf16.msrb.mxu1 %v8762_v51  ;;  %v8754_v12 = vor.u32 %v9270_v38, %v8753_v49  ;;  %v9264_v49 = vld [vmem:[#allocation2 + $0x484] sm:$0xf0] }
 0x476   : > { %v4249_v46 = vadd.f32 %v4248_v0, %v4159_v23 }
 0x477   : > { %v4375_v11 = vunpack.c.l.bf16 %v4314_v40  ;;  %v4376_v34 = vunpack.c.h.bf16 %v4314_v40  ;;  %v8745_v40 = vld [vmem:[#allocation2 + $0x4a0] sm:$0xf] }
 0x478   : > { %v8746_v10 = vor.u32 %v9268_v8, %v8745_v40 }
 0x479   : > { %v4441_v6 = vadd.f32 %v10498_v61, %v4375_v11  ;;  %v4442_v63 = vadd.f32 %v10500_v56, %v4376_v34  ;;  %5157 = vmatpush.bf16.msrb.mxu1 %v8754_v12 }
 0x47a   : > { %v3981_v48 = vpop.f32.mrf.mxu2  ;;  %v4070_v45 = vpop.f32.mrf.mxu3 }
 0x47b   : > { %v4071_v37 = vadd.f32 %v4070_v45, %v3981_v48  ;;  %v4601_v3 = vmax.f32 %v4441_v6, 0.0  ;;  %v4602_v44 = vmax.f32 %v4442_v63, 0.0 }
 0x47d   : > { %v4315_v5 = vpack.c.bf16 %v4249_v46, %v4071_v37  ;;  %v4162_v52 = vpop.f32.mrf.mxu0  ;;  %v4251_v62 = vpop.f32.mrf.mxu1  ;;  %5158 = vmatpush.bf16.msrb.mxu1 %v8746_v10  ;;  %v8738_v46 = vor.u32 %v9266_v55, %v8737_v33 }
 0x47e   : > { %v4252_v34 = vadd.f32 %v4251_v62, %v4162_v52 }
 0x47f   : > { %v4377_v59 = vunpack.c.l.bf16 %v4315_v5  ;;  %v4378_v7 = vunpack.c.h.bf16 %v4315_v5  ;;  %4023 = vmatmul.bf16.gmra.mxu2 %v10467_v43  ;;  %4112 = vmatmul.bf16.gmra.mxu3 %v10469_v39  ;;  %v8729_v5 = vld [vmem:[#allocation2 + $0x480] sm:$0xf] }
 0x480   : > { %4201 = vmatmul.bf16.gmra.mxu0 %v10467_v43  ;;  %4290 = vmatmul.bf16.gmra.mxu1 %v10469_v39  ;;  %v8730_v62 = vor.u32 %v9264_v49, %v8729_v5 }
 0x481   : > { %v4443_v50 = vadd.f32 %v10498_v61, %v4377_v59  ;;  %v4444_v47 = vadd.f32 %v10500_v56, %v4378_v7  ;;  %5159 = vmatpush.bf16.msrb.mxu1 %v8738_v46 }
 0x482   : > { %v3984_v23 = vpop.f32.mrf.mxu2  ;;  %v4073_v0 = vpop.f32.mrf.mxu3 }
 0x483   : > { %v4074_v58 = vadd.f32 %v4073_v0, %v3984_v23  ;;  %v4603_v60 = vmax.f32 %v4443_v50, 0.0  ;;  %v4604_v11 = vmax.f32 %v4444_v47, 0.0  ;;  %v9425_v23 = vld [vmem:[%s11892_s3] sm:$0xff] }
 0x484   : > { %v4716_v0 = vunpack.c.l.b16 %v9425_v23 }
 0x485   : > { %v4164_v48 = vpop.f32.mrf.mxu0  ;;  %v4253_v43 = vpop.f32.mrf.mxu1  ;;  %v10558_v45 = vpack.c.bf16 %v4603_v60, %v4601_v3  ;;  %v10560_v39 = vpack.c.bf16 %v4604_v11, %v4602_v44  ;;  %v4316_v21 = vpack.c.bf16 %v4252_v34, %v4074_v58  ;;  %5160 = vmatpush.bf16.msrb.mxu1 %v8730_v62 }
 0x486   : > { %v4254_v38 = vadd.f32 %v4253_v43, %v4164_v48  ;;  %v4718_v40 = vpack.c.b16 %v4716_v0, %v4716_v0 }
 0x487   : > { %v4379_v37 = vunpack.c.l.bf16 %v4316_v21  ;;  %v4380_v32 = vunpack.c.h.bf16 %v4316_v21 }
 0x488   : > { %v4721_v34 = vsel %vm428_vm0, %v4718_v40, 0 }
 0x489   : > { %v4445_v7 = vadd.f32 %v10498_v61, %v4379_v37  ;;  %v4446_v12 = vadd.f32 %v10500_v56, %v4380_v32  ;;  %4733 = vmatpush.bf16.msra.mxu2 %v4721_v34 }
 0x48a   : > { %v3986_v28 = vpop.f32.mrf.mxu2  ;;  %v4075_v51 = vpop.f32.mrf.mxu3 }
 0x48b   : > { %v4076_v52 = vadd.f32 %v4075_v51, %v3986_v28  ;;  %v4605_v10 = vmax.f32 %v4445_v7, 0.0  ;;  %v4606_v60 = vmax.f32 %v4446_v12, 0.0  ;;  %v9277_v12 = vld [vmem:[#allocation2 + $0x4f4] sm:$0xf] }
 0x48d   : > { %v4317_v6 = vpack.c.bf16 %v4254_v38, %v4076_v52  ;;  %v4167_v63 = vpop.f32.mrf.mxu0  ;;  %v4256_v59 = vpop.f32.mrf.mxu1 }
 0x48e   : > { %v4257_v21 = vadd.f32 %v4256_v59, %v4167_v63 }
 0x48f   : > { %v4381_v50 = vunpack.c.l.bf16 %v4317_v6  ;;  %v4382_v47 = vunpack.c.h.bf16 %v4317_v6  ;;  %4028 = vmatmul.bf16.gmra.mxu2 %v10482_v24  ;;  %4117 = vmatmul.bf16.gmra.mxu3 %v10484_v22 }
 0x490   : > { %4206 = vmatmul.bf16.gmra.mxu0 %v10482_v24  ;;  %4295 = vmatmul.bf16.gmra.mxu1 %v10484_v22 }
 0x491   : > { %v4447_v8 = vadd.f32 %v10498_v61, %v4381_v50  ;;  %v4448_v3 = vadd.f32 %v10500_v56, %v4382_v47  ;;  %v8787_v50 = vld [vmem:[#allocation2 + $0x4f8] sm:$0xf0] }
 0x492   : > { %v3989_v44 = vpop.f32.mrf.mxu2  ;;  %v4078_v58 = vpop.f32.mrf.mxu3 }
 0x493   : > { %v4079_v11 = vadd.f32 %v4078_v58, %v3989_v44  ;;  %v4607_v48 = vmax.f32 %v4447_v8, 0.0  ;;  %v4608_v43 = vmax.f32 %v4448_v3, 0.0  ;;  %v8790_v8 = vor.u32 %v9277_v12, %v8787_v50 }
 0x495   : > { %v4169_v33 = vpop.f32.mrf.mxu0  ;;  %v4258_v24 = vpop.f32.mrf.mxu1  ;;  %v10574_v55 = vpack.c.bf16 %v4607_v48, %v4605_v10  ;;  %v10576_v22 = vpack.c.bf16 %v4608_v43, %v4606_v60  ;;  %v4318_v46 = vpack.c.bf16 %v4257_v21, %v4079_v11  ;;  %5331 = vmatpush.bf16.msra.mxu3 %v8790_v8 }
 0x496   : > { %v4259_v5 = vadd.f32 %v4258_v24, %v4169_v33 }
 0x497   : > { %v4383_v37 = vunpack.c.l.bf16 %v4318_v46  ;;  %v4384_v51 = vunpack.c.h.bf16 %v4318_v46 }
 0x499   : > { %v4449_v6 = vadd.f32 %v10498_v61, %v4383_v37  ;;  %v4450_v7 = vadd.f32 %v10500_v56, %v4384_v51  ;;  %v9261_v37 = vld [vmem:[#allocation2 + $0x474] sm:$0xf] }
 0x49a   : > { %v3991_v32 = vpop.f32.mrf.mxu2  ;;  %v4080_v28 = vpop.f32.mrf.mxu3 }
 0x49b   : > { %v4081_v49 = vadd.f32 %v4080_v28, %v3991_v32  ;;  %v4609_v3 = vmax.f32 %v4449_v6, 0.0  ;;  %v4610_v10 = vmax.f32 %v4450_v7, 0.0  ;;  %v8723_v32 = vld [vmem:[#allocation2 + $0x478] sm:$0xf0] }
 0x49d   : > { %v4319_v38 = vpack.c.bf16 %v4259_v5, %v4081_v49  ;;  %v4172_v52 = vpop.f32.mrf.mxu0  ;;  %v4261_v62 = vpop.f32.mrf.mxu1 }
 0x49e   : > { %v4262_v11 = vadd.f32 %v4261_v62, %v4172_v52  ;;  %v8726_v52 = vor.u32 %v9261_v37, %v8723_v32 }
 0x49f   : > { %v4385_v63 = vunpack.c.l.bf16 %v4319_v38  ;;  %v4386_v59 = vunpack.c.h.bf16 %v4319_v38  ;;  %4033 = vmatmul.bf16.gmra.mxu2 %v10494_v9  ;;  %4122 = vmatmul.bf16.gmra.mxu3 %v10496_v4 }
 0x4a0   : > { %4300 = vmatmul.bf16.gmra.mxu1 %v10496_v4  ;;  %5072 = vmatmul.bf16.vlgmr.msrb.gmra.mxu0 %v10510_v31 }
 0x4a1   : > { %v4451_v47 = vadd.f32 %v10498_v61, %v4385_v63  ;;  %v4452_v23 = vadd.f32 %v10500_v56, %v4386_v59 }
 0x4a2   : > { %v3994_v0 = vpop.f32.mrf.mxu2  ;;  %v4083_v40 = vpop.f32.mrf.mxu3 }
 0x4a3   : > { %v4084_v44 = vadd.f32 %v4083_v40, %v3994_v0  ;;  %v4611_v58 = vmax.f32 %v4451_v47, 0.0  ;;  %v4612_v60 = vmax.f32 %v4452_v23, 0.0 }
 0x4a5   : > { %v4174_v34 = vpop.f32.mrf.mxu0  ;;  %v4263_v4 = vpop.f32.mrf.mxu1  ;;  %v10586_v48 = vpack.c.bf16 %v4611_v58, %v4609_v3  ;;  %v10588_v43 = vpack.c.bf16 %v4612_v60, %v4610_v10  ;;  %v4320_v21 = vpack.c.bf16 %v4262_v11, %v4084_v44 }
 0x4a6   : > { %v4264_v51 = vadd.f32 %v4263_v4, %v4174_v34 }
 0x4a7   : > { %v4387_v33 = vunpack.c.l.bf16 %v4320_v21  ;;  %v4388_v28 = vunpack.c.h.bf16 %v4320_v21 }
 0x4a9   : > { %v4453_v62 = vadd.f32 %v10498_v61, %v4387_v33  ;;  %v4454_v7 = vadd.f32 %v10500_v56, %v4388_v28 }
 0x4aa   : > { %v3996_v24 = vpop.f32.mrf.mxu2  ;;  %v4085_v46 = vpop.f32.mrf.mxu3 }
 0x4ab   : > { %v4086_v5 = vadd.f32 %v4085_v46, %v3996_v24  ;;  %v4613_v0 = vmax.f32 %v4453_v62, 0.0  ;;  %v8715_v62 = vld [vmem:[#allocation2 + $0x468] sm:$0xf0] }
 0x4ad   : > { %v4321_v49 = vpack.c.bf16 %v4264_v51, %v4086_v5  ;;  %v4177_v38 = vpop.f32.mrf.mxu0  ;;  %v4266_v6 = vpop.f32.mrf.mxu1 }
 0x4ae   : > { %v4267_v44 = vadd.f32 %v4266_v6, %v4177_v38 }
 0x4af   : > { %v4389_v63 = vunpack.c.l.bf16 %v4321_v49  ;;  %v4390_v59 = vunpack.c.h.bf16 %v4321_v49  ;;  %4211 = vmatmul.bf16.vlgmr.msrb.gmra.mxu2 %v10494_v9  ;;  %8647 = vmatmul.msk.bf16.vlgmr.msrb.gmra.mxu3 %vm379_vm1, %v9649_v13  ;;  %v4614_v9 = vmax.f32 %v4454_v7, 0.0  ;;  %v8779_v7 = vld [vmem:[#allocation2 + $0x4e8] sm:$0xf0] }
 0x4b0   : > { %5077 = vmatmul.bf16.gmra.mxu0 %v10522_v16  ;;  %5161 = vmatmul.bf16.vlgmr.msrb.gmra.mxu1 %v10512_v27 }
 0x4b1   : > { %5242 = vmatpush.bf16.msrb.mxu2 %v8726_v52  ;;  %v4455_v12 = vadd.f32 %v10498_v61, %v4389_v63  ;;  %v4456_v50 = vadd.f32 %v10500_v56, %v4390_v59  ;;  %v9259_v52 = vld [vmem:[#allocation2 + $0x464] sm:$0xf] }
 0x4b2   : > { %v3999_v47 = vpop.f32.mrf.mxu2  ;;  %v4088_v23 = vpop.f32.mrf.mxu3  ;;  %v9275_v63 = vld [vmem:[#allocation2 + $0x4e4] sm:$0xf]  ;;  %v8718_v59 = vor.u32 %v9259_v52, %v8715_v62 }
 0x4b3   : > { %v4089_v40 = vadd.f32 %v4088_v23, %v3999_v47  ;;  %v4615_v8 = vmax.f32 %v4455_v12, 0.0  ;;  %v4616_v3 = vmax.f32 %v4456_v50, 0.0  ;;  %v8782_v23 = vor.u32 %v9275_v63, %v8779_v7 }
 0x4b5   : > { %v4179_v58 = vpop.f32.mrf.mxu0  ;;  %v4268_v10 = vpop.f32.mrf.mxu1  ;;  %v10599_v60 = vpack.c.bf16 %v4615_v8, %v4613_v0  ;;  %v10601_v11 = vpack.c.bf16 %v4616_v3, %v4614_v9  ;;  %v4322_v34 = vpack.c.bf16 %v4267_v44, %v4089_v40  ;;  %5243 = vmatpush.bf16.msrb.mxu2 %v8718_v59  ;;  %5332 = vmatpush.bf16.msra.mxu3 %v8782_v23 }
 0x4b6   : > { %v4269_v46 = vadd.f32 %v4268_v10, %v4179_v58 }
 0x4b7   : > { %v4391_v4 = vunpack.c.l.bf16 %v4322_v34  ;;  %v4392_v24 = vunpack.c.h.bf16 %v4322_v34 }
 0x4b9   : > { %v4457_v5 = vadd.f32 %v10498_v61, %v4391_v4  ;;  %v4458_v6 = vadd.f32 %v10500_v56, %v4392_v24 }
 0x4ba   : > { %v4001_v21 = vpop.f32.mrf.mxu2  ;;  %v4090_v33 = vpop.f32.mrf.mxu3 }
 0x4bb   : > { %v4091_v37 = vadd.f32 %v4090_v33, %v4001_v21  ;;  %v4617_v0 = vmax.f32 %v4457_v5, 0.0  ;;  %v4618_v9 = vmax.f32 %v4458_v6, 0.0 }
 0x4bd   : > { %v4323_v32 = vpack.c.bf16 %v4269_v46, %v4091_v37  ;;  %v4182_v28 = vpop.f32.mrf.mxu0  ;;  %v4271_v51 = vpop.f32.mrf.mxu1 }
 0x4be   : > { %v4272_v44 = vadd.f32 %v4271_v51, %v4182_v28 }
 0x4bf   : > { %v4393_v49 = vunpack.c.l.bf16 %v4323_v32  ;;  %v4394_v38 = vunpack.c.h.bf16 %v4323_v32  ;;  %8631 = vmatmul.msk.bf16.vlgmr.msra.gmra.mxu2 %vm379_vm1, %v9649_v13  ;;  %8648 = vmatmul.msk.bf16.gmra.mxu3 %vm379_vm1, %v9667_v29 }
 0x4c0   : > { %5082 = vmatmul.bf16.gmra.mxu0 %v10534_v36  ;;  %5166 = vmatmul.bf16.gmra.mxu1 %v10524_v26 }
 0x4c1   : > { %v4459_v12 = vadd.f32 %v10498_v61, %v4393_v49  ;;  %v4460_v50 = vadd.f32 %v10500_v56, %v4394_v38 }
 0x4c2   : > { %v4004_v47 = vpop.f32.mrf.mxu2  ;;  %v4093_v13 = vpop.f32.mrf.mxu3 }
 0x4c3   : > { %v4094_v40 = vadd.f32 %v4093_v13, %v4004_v47  ;;  %v4619_v8 = vmax.f32 %v4459_v12, 0.0  ;;  %v4620_v3 = vmax.f32 %v4460_v50, 0.0 }
 0x4c5   : > { %v4184_v58 = vpop.f32.mrf.mxu0  ;;  %v4273_v10 = vpop.f32.mrf.mxu1  ;;  %v10613_v34 = vpack.c.bf16 %v4619_v8, %v4617_v0  ;;  %v10615_v4 = vpack.c.bf16 %v4620_v3, %v4618_v9  ;;  %v4324_v21 = vpack.c.bf16 %v4272_v44, %v4094_v40 }
 0x4c6   : > { %v4274_v32 = vadd.f32 %v4273_v10, %v4184_v58 }
 0x4c7   : > { %v4395_v33 = vunpack.c.l.bf16 %v4324_v21  ;;  %v4396_v37 = vunpack.c.h.bf16 %v4324_v21 }
 0x4c9   : > { %v4461_v6 = vadd.f32 %v10498_v61, %v4395_v33  ;;  %v4462_v62 = vadd.f32 %v10500_v56, %v4396_v37 }
 0x4ca   : > { %v4006_v24 = vpop.f32.mrf.mxu2  ;;  %v4095_v46 = vpop.f32.mrf.mxu3 }
 0x4cb   : > { %v4096_v5 = vadd.f32 %v4095_v46, %v4006_v24  ;;  %v4621_v50 = vmax.f32 %v4461_v6, 0.0  ;;  %v4622_v23 = vmax.f32 %v4462_v62, 0.0  ;;  %v9273_v62 = vld [vmem:[#allocation2 + $0x4d4] sm:$0xf] }
 0x4cd   : > { %v4325_v49 = vpack.c.bf16 %v4274_v32, %v4096_v5  ;;  %v4187_v38 = vpop.f32.mrf.mxu0  ;;  %v4276_v52 = vpop.f32.mrf.mxu1 }
 0x4ce   : > { %v4277_v0 = vadd.f32 %v4276_v52, %v4187_v38 }
 0x4cf   : > { %v4397_v28 = vunpack.c.l.bf16 %v4325_v49  ;;  %v4398_v51 = vunpack.c.h.bf16 %v4325_v49  ;;  %8632 = vmatmul.msk.bf16.gmra.mxu2 %vm379_vm1, %v9667_v29  ;;  %8649 = vmatmul.msk.bf16.gmra.mxu3 %vm379_vm1, %v9683_v41 }
 0x4d0   : > { %5087 = vmatmul.bf16.gmra.mxu0 %v10546_v25  ;;  %5171 = vmatmul.bf16.gmra.mxu1 %v10536_v18 }
 0x4d1   : > { %v4463_v63 = vadd.f32 %v10498_v61, %v4397_v28  ;;  %v4464_v59 = vadd.f32 %v10500_v56, %v4398_v51  ;;  %v9257_v28 = vld [vmem:[#allocation2 + $0x454] sm:$0xf]  ;;  %v8707_v51 = vld [vmem:[#allocation2 + $0x458] sm:$0xf0] }
 0x4d2   : > { %v4009_v7 = vpop.f32.mrf.mxu2  ;;  %v4098_v12 = vpop.f32.mrf.mxu3 }
 0x4d3   : > { %v4099_v47 = vadd.f32 %v4098_v12, %v4009_v7  ;;  %v4623_v13 = vmax.f32 %v4463_v63, 0.0  ;;  %v4624_v29 = vmax.f32 %v4464_v59, 0.0  ;;  %v8710_v63 = vor.u32 %v9257_v28, %v8707_v51  ;;  %v8771_v59 = vld [vmem:[#allocation2 + $0x4d8] sm:$0xf0] }
 0x4d5   : > { %v4189_v40 = vpop.f32.mrf.mxu0  ;;  %v4278_v8 = vpop.f32.mrf.mxu1  ;;  %v10627_v9 = vpack.c.bf16 %v4623_v13, %v4621_v50  ;;  %v10629_v3 = vpack.c.bf16 %v4624_v29, %v4622_v23  ;;  %v4326_v44 = vpack.c.bf16 %v4277_v0, %v4099_v47  ;;  %v8774_v47 = vor.u32 %v9273_v62, %v8771_v59  ;;  %5244 = vmatpush.bf16.msrb.mxu2 %v8710_v63 }
 0x4d6   : > { %v4279_v24 = vadd.f32 %v4278_v8, %v4189_v40 }
 0x4d7   : > { %11911 = vst [vmem:[#allocation9_spill] sm:$0xff] %v10627_v9  ;;  %v4399_v58 = vunpack.c.l.bf16 %v4326_v44  ;;  %v4400_v33 = vunpack.c.h.bf16 %v4326_v44  ;;  %5333 = vmatpush.bf16.msra.mxu3 %v8774_v47 }
 0x4d8   : > { %11912 = vst [vmem:[#allocation10_spill] sm:$0xff] %v10629_v3 }
 0x4d9   : > { %v4465_v49 = vadd.f32 %v10498_v61, %v4399_v58  ;;  %v4466_v52 = vadd.f32 %v10500_v56, %v4400_v33 }
 0x4da   : > { %v4011_v10 = vpop.f32.mrf.mxu2  ;;  %v4100_v21 = vpop.f32.mrf.mxu3 }
 0x4db   : > { %v4101_v46 = vadd.f32 %v4100_v21, %v4011_v10  ;;  %v4625_v13 = vmax.f32 %v4465_v49, 0.0  ;;  %v4626_v0 = vmax.f32 %v4466_v52, 0.0 }
 0x4dd   : > { %v4327_v37 = vpack.c.bf16 %v4279_v24, %v4101_v46  ;;  %v4192_v32 = vpop.f32.mrf.mxu0  ;;  %v4281_v5 = vpop.f32.mrf.mxu1 }
 0x4de   : > { %v4282_v8 = vadd.f32 %v4281_v5, %v4192_v32 }
 0x4df   : > { %v4401_v6 = vunpack.c.l.bf16 %v4327_v37  ;;  %v4402_v38 = vunpack.c.h.bf16 %v4327_v37  ;;  %8633 = vmatmul.msk.bf16.gmra.mxu2 %vm379_vm1, %v9683_v41  ;;  %8650 = vmatmul.msk.bf16.gmra.mxu3 %vm379_vm1, %v9699_v53 }
 0x4e0   : > { %5092 = vmatmul.bf16.gmra.mxu0 %v10558_v45  ;;  %5176 = vmatmul.bf16.gmra.mxu1 %v10548_v17 }
 0x4e1   : > { %v4467_v7 = vadd.f32 %v10498_v61, %v4401_v6  ;;  %v4468_v12 = vadd.f32 %v10500_v56, %v4402_v38 }
 0x4e2   : > { %v4014_v50 = vpop.f32.mrf.mxu2  ;;  %v4103_v41 = vpop.f32.mrf.mxu3 }
 0x4e3   : > { %v4104_v23 = vadd.f32 %v4103_v41, %v4014_v50  ;;  %v4627_v29 = vmax.f32 %v4467_v7, 0.0  ;;  %v4628_v40 = vmax.f32 %v4468_v12, 0.0 }
 0x4e5   : > { %v4194_v44 = vpop.f32.mrf.mxu0  ;;  %v4283_v58 = vpop.f32.mrf.mxu1  ;;  %v10641_v10 = vpack.c.bf16 %v4627_v29, %v4625_v13  ;;  %v10643_v21 = vpack.c.bf16 %v4628_v40, %v4626_v0  ;;  %v4328_v33 = vpack.c.bf16 %v4282_v8, %v4104_v23 }
 0x4e6   : > { %v4284_v38 = vadd.f32 %v4283_v58, %v4194_v44 }
 0x4e7   : > { %11913 = vst [vmem:[#allocation11_spill] sm:$0xff] %v10641_v10  ;;  %v4403_v24 = vunpack.c.l.bf16 %v4328_v33  ;;  %v4404_v6 = vunpack.c.h.bf16 %v4328_v33 }
 0x4e9   : > { %v4469_v52 = vadd.f32 %v10498_v61, %v4403_v24  ;;  %v4470_v63 = vadd.f32 %v10500_v56, %v4404_v6 }
 0x4ea   : > { %v4016_v46 = vpop.f32.mrf.mxu2  ;;  %v4105_v37 = vpop.f32.mrf.mxu3 }
 0x4eb   : > { %v4106_v49 = vadd.f32 %v4105_v37, %v4016_v46  ;;  %v4629_v41 = vmax.f32 %v4469_v52, 0.0  ;;  %v4630_v23 = vmax.f32 %v4470_v63, 0.0  ;;  %v9255_v63 = vld [vmem:[#allocation2 + $0x444] sm:$0xf] }
 0x4ed   : > { %v4329_v28 = vpack.c.bf16 %v4284_v38, %v4106_v49  ;;  %v4197_v51 = vpop.f32.mrf.mxu0  ;;  %v4286_v62 = vpop.f32.mrf.mxu1 }
 0x4ee   : > { %v4287_v29 = vadd.f32 %v4286_v62, %v4197_v51 }
 0x4ef   : > { %v4405_v32 = vunpack.c.l.bf16 %v4329_v28  ;;  %v4406_v5 = vunpack.c.h.bf16 %v4329_v28  ;;  %8634 = vmatmul.msk.bf16.gmra.mxu2 %vm379_vm1, %v9699_v53  ;;  %8651 = vmatmul.msk.bf16.gmra.mxu3 %vm379_vm1, %v9715_v1 }
 0x4f0   : > { %5097 = vmatmul.bf16.gmra.mxu0 %v10574_v55  ;;  %5181 = vmatmul.bf16.gmra.mxu1 %v10560_v39 }
 0x4f1   : > { %v4471_v59 = vadd.f32 %v10498_v61, %v4405_v32  ;;  %v4472_v7 = vadd.f32 %v10500_v56, %v4406_v5 }
 0x4f2   : > { %v4019_v12 = vpop.f32.mrf.mxu2  ;;  %v4108_v50 = vpop.f32.mrf.mxu3 }
 0x4f3   : > { %v4109_v47 = vadd.f32 %v4108_v50, %v4019_v12  ;;  %v4631_v13 = vmax.f32 %v4471_v59, 0.0  ;;  %v4632_v53 = vmax.f32 %v4472_v7, 0.0  ;;  %v8699_v59 = vld [vmem:[#allocation2 + $0x448] sm:$0xf0]  ;;  %v9271_v7 = vld [vmem:[#allocation2 + $0x4c4] sm:$0xf] }
 0x4f4   : > { %v8702_v12 = vor.u32 %v9255_v63, %v8699_v59  ;;  %v8763_v50 = vld [vmem:[#allocation2 + $0x4c8] sm:$0xf0] }
 0x4f5   : > { %v4199_v0 = vpop.f32.mrf.mxu0  ;;  %v4288_v40 = vpop.f32.mrf.mxu1  ;;  %v10655_v8 = vpack.c.bf16 %v4631_v13, %v4629_v41  ;;  %v10657_v44 = vpack.c.bf16 %v4632_v53, %v4630_v23  ;;  %v4330_v58 = vpack.c.bf16 %v4287_v29, %v4109_v47  ;;  %v8766_v23 = vor.u32 %v9271_v7, %v8763_v50 }
 0x4f6   : > { %v4289_v6 = vadd.f32 %v4288_v40, %v4199_v0  ;;  %5245 = vmatpush.bf16.msrb.mxu2 %v8702_v12 }
 0x4f7   : > { %v4407_v33 = vunpack.c.l.bf16 %v4330_v58  ;;  %v4408_v37 = vunpack.c.h.bf16 %v4330_v58  ;;  %5334 = vmatpush.bf16.msra.mxu3 %v8766_v23 }
 0x4f9   : > { %v4473_v32 = vadd.f32 %v10498_v61, %v4407_v33  ;;  %v4474_v62 = vadd.f32 %v10500_v56, %v4408_v37 }
 0x4fa   : > { %v4021_v24 = vpop.f32.mrf.mxu2  ;;  %v4110_v46 = vpop.f32.mrf.mxu3 }
 0x4fb   : > { %v4111_v38 = vadd.f32 %v4110_v46, %v4021_v24  ;;  %v4633_v53 = vmax.f32 %v4473_v32, 0.0  ;;  %v4634_v40 = vmax.f32 %v4474_v62, 0.0 }
 0x4fd   : > { %v4331_v49 = vpack.c.bf16 %v4289_v6, %v4111_v38  ;;  %v4202_v28 = vpop.f32.mrf.mxu0  ;;  %v4291_v52 = vpop.f32.mrf.mxu1 }
 0x4fe   : > { %v4292_v33 = vadd.f32 %v4291_v52, %v4202_v28 }
 0x4ff   : > { %v4409_v5 = vunpack.c.l.bf16 %v4331_v49  ;;  %v4410_v51 = vunpack.c.h.bf16 %v4331_v49  ;;  %8635 = vmatmul.msk.bf16.gmra.mxu2 %vm379_vm1, %v9715_v1  ;;  %8652 = vmatmul.msk.bf16.gmra.mxu3 %vm379_vm1, %v9731_v19 }
 0x500   : > { %5102 = vmatmul.bf16.gmra.mxu0 %v10586_v48  ;;  %5186 = vmatmul.bf16.gmra.mxu1 %v10576_v22 }
 0x501   : > { %v4475_v41 = vadd.f32 %v10498_v61, %v4409_v5  ;;  %v4476_v47 = vadd.f32 %v10500_v56, %v4410_v51 }
 0x502   : > { %v4024_v13 = vpop.f32.mrf.mxu2  ;;  %v4113_v1 = vpop.f32.mrf.mxu3 }
 0x503   : > { %v4114_v29 = vadd.f32 %v4113_v1, %v4024_v13  ;;  %v4635_v0 = vmax.f32 %v4475_v41, 0.0  ;;  %v4636_v58 = vmax.f32 %v4476_v47, 0.0 }
 0x505   : > { %v4204_v24 = vpop.f32.mrf.mxu0  ;;  %v4293_v46 = vpop.f32.mrf.mxu1  ;;  %v10669_v37 = vpack.c.bf16 %v4635_v0, %v4633_v53  ;;  %v10671_v6 = vpack.c.bf16 %v4636_v58, %v4634_v40  ;;  %v4332_v38 = vpack.c.bf16 %v4292_v33, %v4114_v29 }
 0x506   : > { %v4294_v59 = vadd.f32 %v4293_v46, %v4204_v24 }
 0x507   : > { %11914 = vst [vmem:[#allocation12_spill] sm:$0xff] %v10669_v37  ;;  %v4411_v49 = vunpack.c.l.bf16 %v4332_v38  ;;  %v4412_v63 = vunpack.c.h.bf16 %v4332_v38 }
 0x509   : > { %v4477_v62 = vadd.f32 %v10498_v61, %v4411_v49  ;;  %v4478_v41 = vadd.f32 %v10500_v56, %v4412_v63 }
 0x50a   : > { %v4026_v5 = vpop.f32.mrf.mxu2  ;;  %v4115_v51 = vpop.f32.mrf.mxu3 }
 0x50b   : > { %v4116_v32 = vadd.f32 %v4115_v51, %v4026_v5  ;;  %v4637_v53 = vmax.f32 %v4477_v62, 0.0  ;;  %v4638_v40 = vmax.f32 %v4478_v41, 0.0 }
 0x50d   : > { %v4333_v7 = vpack.c.bf16 %v4294_v59, %v4116_v32  ;;  %v4207_v12 = vpop.f32.mrf.mxu0  ;;  %v4296_v50 = vpop.f32.mrf.mxu1 }
 0x50e   : > { %v4297_v58 = vadd.f32 %v4296_v50, %v4207_v12 }
 0x50f   : > { %v4413_v28 = vunpack.c.l.bf16 %v4333_v7  ;;  %v4414_v52 = vunpack.c.h.bf16 %v4333_v7  ;;  %8636 = vmatmul.msk.bf16.gmra.mxu2 %vm379_vm1, %v9731_v19  ;;  %8653 = vmatmul.msk.bf16.gmra.mxu3 %vm379_vm1, %v9747_v57 }
 0x510   : > { %5107 = vmatmul.bf16.gmra.mxu0 %v10599_v60  ;;  %5191 = vmatmul.bf16.gmra.mxu1 %v10588_v43 }
 0x511   : > { %v4479_v47 = vadd.f32 %v10498_v61, %v4413_v28  ;;  %v4480_v13 = vadd.f32 %v10500_v56, %v4414_v52 }
 0x512   : > { %v4029_v1 = vpop.f32.mrf.mxu2  ;;  %v4118_v23 = vpop.f32.mrf.mxu3 }
 0x513   : > { %v4119_v29 = vadd.f32 %v4118_v23, %v4029_v1  ;;  %v4639_v0 = vmax.f32 %v4479_v47, 0.0  ;;  %v4640_v19 = vmax.f32 %v4480_v13, 0.0  ;;  %v9253_v13 = vld [vmem:[#allocation2 + $0x434] sm:$0xf]  ;;  %v8691_v1 = vld [vmem:[#allocation2 + $0x438] sm:$0xf0] }
 0x514   : > { %v9269_v23 = vld [vmem:[#allocation2 + $0x4b4] sm:$0xf] }
 0x515   : > { %v4209_v33 = vpop.f32.mrf.mxu0  ;;  %v4298_v24 = vpop.f32.mrf.mxu1  ;;  %v10683_v46 = vpack.c.bf16 %v4639_v0, %v4637_v53  ;;  %v10685_v38 = vpack.c.bf16 %v4640_v19, %v4638_v40  ;;  %v4334_v49 = vpack.c.bf16 %v4297_v58, %v4119_v29  ;;  %v8694_v53 = vor.u32 %v9253_v13, %v8691_v1  ;;  %v8755_v29 = vld [vmem:[#allocation2 + $0x4b8] sm:$0xf0] }
 0x516   : > { %v4299_v32 = vadd.f32 %v4298_v24, %v4209_v33  ;;  %v8758_v58 = vor.u32 %v9269_v23, %v8755_v29 }
 0x517   : > { %11915 = vst [vmem:[#allocation13_spill] sm:$0xff] %v10683_v46  ;;  %v4415_v5 = vunpack.c.l.bf16 %v4334_v49  ;;  %v4416_v59 = vunpack.c.h.bf16 %v4334_v49  ;;  %5246 = vmatpush.bf16.msrb.mxu2 %v8694_v53 }
 0x518   : > { %5335 = vmatpush.bf16.msra.mxu3 %v8758_v58 }
 0x519   : > { %v4481_v41 = vadd.f32 %v10498_v61, %v4415_v5  ;;  %v4482_v47 = vadd.f32 %v10500_v56, %v4416_v59 }
 0x51a   : > { %v4031_v51 = vpop.f32.mrf.mxu2  ;;  %v4120_v63 = vpop.f32.mrf.mxu3 }
 0x51b   : > { %v4121_v7 = vadd.f32 %v4120_v63, %v4031_v51  ;;  %v4641_v33 = vmax.f32 %v4481_v41, 0.0  ;;  %v4642_v5 = vmax.f32 %v4482_v47, 0.0 }
 0x51d   : > { %v4335_v28 = vpack.c.bf16 %v4299_v32, %v4121_v7  ;;  %v4301_v62 = vpop.f32.mrf.mxu1  ;;  %v10687_v52 = vpop.f32.mrf.mxu0 }
 0x51f   : > { %v4417_v12 = vunpack.c.l.bf16 %v4335_v28  ;;  %v4418_v50 = vunpack.c.h.bf16 %v4335_v28  ;;  %8637 = vmatmul.msk.bf16.gmra.mxu2 %vm379_vm1, %v9747_v57  ;;  %8654 = vmatmul.msk.bf16.gmra.mxu3 %vm379_vm1, %v9764_v35 }
 0x520   : > { %5112 = vmatmul.bf16.gmra.mxu0 %v10613_v34  ;;  %5196 = vmatmul.bf16.gmra.mxu1 %v10601_v11 }
 0x521   : > { %v4483_v0 = vadd.f32 %v10498_v61, %v4417_v12  ;;  %v4484_v40 = vadd.f32 %v10500_v56, %v4418_v50 }
 0x522   : > { %v4034_v19 = vpop.f32.mrf.mxu2  ;;  %v4123_v57 = vpop.f32.mrf.mxu3 }
 0x523   : > { %v4124_v24 = vadd.f32 %v4123_v57, %v4034_v19  ;;  %v4643_v49 = vmax.f32 %v4483_v0, 0.0  ;;  %v4644_v51 = vmax.f32 %v4484_v40, 0.0  ;;  %v8850_v40 = vld [vmem:[#allocation2 + $0x570] sm:$0xf]  ;;  %v9294_v19 = vld [vmem:[#allocation2 + $0x574] sm:$0xf0] }
 0x524   : > { %v8851_v57 = vor.u32 %v9294_v19, %v8850_v40  ;;  %v9267_v40 = vld [vmem:[#allocation2 + $0x4a4] sm:$0xf]  ;;  %v8747_v19 = vld [vmem:[#allocation2 + $0x4a8] sm:$0xf0] }
 0x525   : > { %v4303_v63 = vpop.f32.mrf.mxu1  ;;  %v10699_v59 = vpop.f32.mrf.mxu0  ;;  %v10701_v32 = vpack.c.bf16 %v4643_v49, %v4641_v33  ;;  %v10703_v7 = vpack.c.bf16 %v4644_v51, %v4642_v5 }
 0x526   : > { %5988 = vmatpush.bf16.msra.mxu0 %v8851_v57 }
 0x527   : > { %11916 = vst [vmem:[#allocation14_spill] sm:$0xff] %v10701_v32 }
 0x52a   : > { %v4036_v28 = vpop.f32.mrf.mxu2  ;;  %v4125_v12 = vpop.f32.mrf.mxu3 }
 0x52b   : > { %v4126_v50 = vadd.f32 %v4125_v12, %v4036_v28 }
 0x52d   : > { %v10705_v13 = vpop.f32.mrf.mxu0  ;;  %v5162_v1 = vpop.f32.mrf.mxu1 }
 0x52f   : > { %8638 = vmatmul.msk.bf16.gmra.mxu2 %vm379_vm1, %v9764_v35  ;;  %8655 = vmatmul.msk.bf16.gmra.mxu3 %vm379_vm1, %v9651_v14 }
 0x530   : > { %5117 = vmatmul.bf16.gmra.mxu0 %v10627_v9  ;;  %5201 = vmatmul.bf16.gmra.mxu1 %v10615_v4  ;;  %v8914_v9 = vld [vmem:[#allocation2 + $0x5f0] sm:$0xf] }
 0x532   : > { %v4212_v41 = vpop.f32.mrf.mxu2  ;;  %v10713_v47 = vpop.f32.mrf.mxu3 }
 0x533   : > { %11917 = vst [vmem:[#allocation15_spill] sm:$0xff] %v10713_v47  ;;  %v4302_v23 = vadd.f32 %v4301_v62, %v4212_v41  ;;  %v9310_v62 = vld [vmem:[#allocation2 + $0x5f4] sm:$0xf0] }
 0x535   : > { %v4336_v53 = vpack.c.bf16 %v4302_v23, %v4124_v24  ;;  %v10715_v29 = vpop.f32.mrf.mxu0  ;;  %v5164_v0 = vpop.f32.mrf.mxu1  ;;  %v8915_v24 = vor.u32 %v9310_v62, %v8914_v9 }
 0x537   : > { %v4419_v35 = vunpack.c.l.bf16 %v4336_v53  ;;  %v4420_v49 = vunpack.c.h.bf16 %v4336_v53  ;;  %6077 = vmatpush.bf16.msra.mxu1 %v8915_v24 }
 0x539   : > { %v4485_v41 = vadd.f32 %v10498_v61, %v4419_v35  ;;  %v4486_v53 = vadd.f32 %v10500_v56, %v4420_v49 }
 0x53a   : > { %v4214_v58 = vpop.f32.mrf.mxu2  ;;  %v10717_v33 = vpop.f32.mrf.mxu3 }
 0x53b   : > { %11918 = vst [vmem:[#allocation16_spill] sm:$0xff] %v10717_v33  ;;  %v4304_v5 = vadd.f32 %v4303_v63, %v4214_v58  ;;  %v9251_v63 = vld [vmem:[#allocation2 + $0x424] sm:$0xf] }
 0x53d   : > { %v4337_v51 = vpack.c.bf16 %v4304_v5, %v4126_v50  ;;  %v10719_v28 = vpop.f32.mrf.mxu0  ;;  %v5167_v12 = vpop.f32.mrf.mxu1  ;;  %v8683_v50 = vld [vmem:[#allocation2 + $0x428] sm:$0xf0]  ;;  %v8750_v5 = vor.u32 %v9267_v40, %v8747_v19  ;;  %v9292_v19 = vld [vmem:[#allocation2 + $0x564] sm:$0xf0] }
 0x53e   : > { %v8686_v9 = vor.u32 %v9251_v63, %v8683_v50 }
 0x53f   : > { %v4421_v23 = vunpack.c.l.bf16 %v4337_v51  ;;  %v4422_v47 = vunpack.c.h.bf16 %v4337_v51  ;;  %8639 = vmatmul.msk.bf16.gmra.mxu2 %vm379_vm1, %v9651_v14  ;;  %8656 = vmatmul.msk.bf16.gmra.mxu3 %vm379_vm1, %v9653_v15  ;;  %v4645_v51 = vmax.f32 %v4485_v41, 0.0 }
 0x540   : > { %5122 = vmatmul.bf16.gmra.mxu0 %v10641_v10  ;;  %5206 = vmatmul.bf16.gmra.mxu1 %v10629_v3  ;;  %v4646_v10 = vmax.f32 %v4486_v53, 0.0 }
 0x541   : > { %v4487_v57 = vadd.f32 %v10498_v61, %v4421_v23  ;;  %v4488_v35 = vadd.f32 %v10500_v56, %v4422_v47  ;;  %5247 = vmatpush.bf16.msrb.mxu2 %v8686_v9  ;;  %5336 = vmatpush.bf16.msra.mxu3 %v8750_v5  ;;  %v8842_v9 = vld [vmem:[#allocation2 + $0x560] sm:$0xf] }
 0x542   : > { %v4735_v14 = vpop.f32.mrf.mxu2  ;;  %v10731_v58 = vpop.f32.mrf.mxu3 }
 0x543   : > { %v5074_v49 = vadd.f32 %v10687_v52, %v4735_v14  ;;  %v4647_v62 = vmax.f32 %v4487_v57, 0.0  ;;  %v4648_v33 = vmax.f32 %v4488_v35, 0.0  ;;  %v8843_v57 = vor.u32 %v9292_v19, %v8842_v9 }
 0x545   : > { %v10734_v3 = vadd.f32 %v5162_v1, %v5074_v49  ;;  %v5085_v24 = vpop.f32.mrf.mxu0  ;;  %v5169_v63 = vpop.f32.mrf.mxu1  ;;  %v10736_v50 = vpack.c.bf16 %v4647_v62, %v4645_v51  ;;  %v10738_v61 = vpack.c.bf16 %v4648_v33, %v4646_v10  ;;  %5989 = vmatpush.bf16.msra.mxu0 %v8843_v57  ;;  %v8906_v62 = vld [vmem:[#allocation2 + $0x5e0] sm:$0xf] }
 0x547   : > { %11919 = vst [vmem:[#allocation17_spill] sm:$0xff] %v10736_v50 }
 0x548   : > { %11920 = vst [vmem:[#allocation18_spill] sm:$0xff] %v10738_v61 }
 0x54a   : > { %v4737_v56 = vpop.f32.mrf.mxu2  ;;  %v10740_v47 = vpop.f32.mrf.mxu3 }
 0x54b   : > { %v5076_v41 = vadd.f32 %v10699_v59, %v4737_v56  ;;  %v9249_v56 = vld [vmem:[#allocation2 + $0x414] sm:$0xf] }
 0x54d   : > { %v10743_v23 = vadd.f32 %v5164_v0, %v5076_v41  ;;  %v5088_v52 = vpop.f32.mrf.mxu0  ;;  %v5172_v40 = vpop.f32.mrf.mxu1 }
 0x54f   : > { %8640 = vmatmul.msk.bf16.gmra.mxu2 %vm379_vm1, %v9653_v15  ;;  %8657 = vmatmul.msk.bf16.gmra.mxu3 %vm379_vm1, %v9669_v30 }
 0x550   : > { %5127 = vmatmul.bf16.gmra.mxu0 %v10655_v8  ;;  %5211 = vmatmul.bf16.gmra.mxu1 %v10643_v21 }
 0x552   : > { %v4740_v10 = vpop.f32.mrf.mxu2  ;;  %v10751_v1 = vpop.f32.mrf.mxu3 }
 0x553   : > { %v5079_v33 = vadd.f32 %v10705_v13, %v4740_v10  ;;  %v9308_v13 = vld [vmem:[#allocation2 + $0x5e4] sm:$0xf0]  ;;  %v8739_v10 = vld [vmem:[#allocation2 + $0x498] sm:$0xf0] }
 0x555   : > { %v10754_v59 = vadd.f32 %v5167_v12, %v5079_v33  ;;  %v5090_v0 = vpop.f32.mrf.mxu0  ;;  %v5174_v53 = vpop.f32.mrf.mxu1  ;;  %v8907_v12 = vor.u32 %v9308_v13, %v8906_v62 }
 0x557   : > { %6078 = vmatpush.bf16.msra.mxu1 %v8907_v12 }
 0x55a   : > { %v4742_v15 = vpop.f32.mrf.mxu2  ;;  %v10756_v35 = vpop.f32.mrf.mxu3 }
 0x55b   : > { %v5081_v14 = vadd.f32 %v10715_v29, %v4742_v15  ;;  %v8675_v29 = vld [vmem:[#allocation2 + $0x418] sm:$0xf0] }
 0x55c   : > { %v8678_v41 = vor.u32 %v9249_v56, %v8675_v29 }
 0x55d   : > { %v10759_v5 = vadd.f32 %v5169_v63, %v5081_v14  ;;  %v10761_v51 = vpop.f32.mrf.mxu0  ;;  %v5177_v49 = vpop.f32.mrf.mxu1  ;;  %v9265_v63 = vld [vmem:[#allocation2 + $0x494] sm:$0xf] }
 0x55e   : > { %v8742_v19 = vor.u32 %v9265_v63, %v8739_v10  ;;  %5248 = vmatpush.bf16.msrb.mxu2 %v8678_v41  ;;  %v9290_v10 = vld [vmem:[#allocation2 + $0x554] sm:$0xf0] }
 0x55f   : > { %8641 = vmatmul.msk.bf16.gmra.mxu2 %vm379_vm1, %v9669_v30  ;;  %8658 = vmatmul.msk.bf16.gmra.mxu3 %vm379_vm1, %v9685_v42 }
 0x560   : > { %5132 = vmatmul.bf16.gmra.mxu0 %v10669_v37  ;;  %5216 = vmatmul.bf16.gmra.mxu1 %v10657_v44 }
 0x561   : > { %5337 = vmatpush.bf16.msra.mxu3 %v8742_v19 }
 0x562   : > { %v4745_v33 = vpop.f32.mrf.mxu2  ;;  %v10769_v9 = vpop.f32.mrf.mxu3 }
 0x563   : > { %v5084_v57 = vadd.f32 %v10719_v28, %v4745_v33 }
 0x565   : > { %v10772_v30 = vadd.f32 %v5172_v40, %v5084_v57  ;;  %v10774_v15 = vpop.f32.mrf.mxu0  ;;  %v5179_v14 = vpop.f32.mrf.mxu1 }
 0x566   : > { %11921 = vst [vmem:[#allocation19_spill] sm:$0xff] %v10774_v15 }
 0x56a   : > { %v4747_v62 = vpop.f32.mrf.mxu2  ;;  %v10776_v13 = vpop.f32.mrf.mxu3 }
 0x56b   : > { %v5086_v37 = vadd.f32 %v5085_v24, %v4747_v62 }
 0x56d   : > { %v10778_v12 = vadd.f32 %v5174_v53, %v5086_v37  ;;  %v5098_v56 = vpop.f32.mrf.mxu0  ;;  %v5182_v29 = vpop.f32.mrf.mxu1  ;;  %v8834_v53 = vld [vmem:[#allocation2 + $0x550] sm:$0xf] }
 0x56f   : > { %8642 = vmatmul.msk.bf16.gmra.mxu2 %vm379_vm1, %v9685_v42  ;;  %8659 = vmatmul.msk.bf16.gmra.mxu3 %vm379_vm1, %v9701_v54  ;;  %v8835_v42 = vor.u32 %v9290_v10, %v8834_v53  ;;  %v8731_v53 = vld [vmem:[#allocation2 + $0x488] sm:$0xf0] }
 0x570   : > { %5137 = vmatmul.bf16.gmra.mxu0 %v10683_v46  ;;  %5221 = vmatmul.bf16.gmra.mxu1 %v10671_v6 }
 0x571   : > { %5990 = vmatpush.bf16.msra.mxu0 %v8835_v42 }
 0x572   : > { %v4750_v28 = vpop.f32.mrf.mxu2  ;;  %v10786_v40 = vpop.f32.mrf.mxu3 }
 0x573   : > { %11922 = vst [vmem:[#allocation20_spill] sm:$0xff] %v10786_v40  ;;  %v5089_v63 = vadd.f32 %v5088_v52, %v4750_v28  ;;  %v8898_v40 = vld [vmem:[#allocation2 + $0x5d0] sm:$0xf]  ;;  %v9306_v52 = vld [vmem:[#allocation2 + $0x5d4] sm:$0xf0] }
 0x574   : > { %v9247_v28 = vld [vmem:[#allocation2 + $0x404] sm:$0xf] }
 0x575   : > { %v10788_v41 = vadd.f32 %v5177_v49, %v5089_v63  ;;  %v10790_v37 = vpop.f32.mrf.mxu0  ;;  %v10792_v24 = vpop.f32.mrf.mxu1  ;;  %v8899_v49 = vor.u32 %v9306_v52, %v8898_v40  ;;  %v8667_v63 = vld [vmem:[#allocation2 + $0x408] sm:$0xf0] }
 0x576   : > { %11923 = vst [vmem:[#allocation21_spill] sm:$0xff] %v10790_v37 }
 0x577   : > { %6079 = vmatpush.bf16.msra.mxu1 %v8899_v49 }
 0x57a   : > { %v4752_v33 = vpop.f32.mrf.mxu2  ;;  %v10794_v19 = vpop.f32.mrf.mxu3 }
 0x57b   : > { %v5091_v57 = vadd.f32 %v5090_v0, %v4752_v33  ;;  %v9263_v0 = vld [vmem:[#allocation2 + $0x484] sm:$0xf] }
 0x57c   : > { %v8734_v40 = vor.u32 %v9263_v0, %v8731_v53  ;;  %v8826_v53 = vld [vmem:[#allocation2 + $0x540] sm:$0xf] }
 0x57d   : > { %v10796_v62 = vadd.f32 %v5179_v14, %v5091_v57  ;;  %v5103_v46 = vpop.f32.mrf.mxu0  ;;  %v5187_v15 = vpop.f32.mrf.mxu1  ;;  %v8670_v14 = vor.u32 %v9247_v28, %v8667_v63 }
 0x57e   : > { %5338 = vmatpush.bf16.msra.mxu3 %v8734_v40 }
 0x57f   : > { %8643 = vmatmul.msk.bf16.gmra.mxu2 %vm379_vm1, %v9701_v54  ;;  %8660 = vmatmul.msk.bf16.gmra.mxu3 %vm379_vm1, %v9717_v2 }
 0x580   : > { %5142 = vmatmul.bf16.gmra.mxu0 %v10701_v32  ;;  %5226 = vmatmul.bf16.gmra.mxu1 %v10685_v38 }
 0x581   : > { %5249 = vmatpush.bf16.msrb.mxu2 %v8670_v14 }
 0x582   : > { %v4755_v10 = vpop.f32.mrf.mxu2  ;;  %v10804_v42 = vpop.f32.mrf.mxu3 }
 0x583   : > { %11924 = vst [vmem:[#allocation22_spill] sm:$0xff] %v10804_v42  ;;  %v5094_v33 = vadd.f32 %v10761_v51, %v4755_v10  ;;  %v9288_v10 = vld [vmem:[#allocation2 + $0x544] sm:$0xf0] }
 0x584   : > { %v8827_v40 = vor.u32 %v9288_v10, %v8826_v53  ;;  %v8916_v10 = vld [vmem:[#allocation2 + $0x5f8] sm:$0xf0] }
 0x585   : > { %v10807_v54 = vadd.f32 %v5182_v29, %v5094_v33  ;;  %v10809_v57 = vpop.f32.mrf.mxu1  ;;  %v10811_v52 = vpop.f32.mrf.mxu0 }
 0x586   : > { %11925 = vst [vmem:[#allocation23_spill] sm:$0xff] %v10809_v57  ;;  %5991 = vmatpush.bf16.msra.mxu0 %v8827_v40  ;;  %v8890_v57 = vld [vmem:[#allocation2 + $0x5c0] sm:$0xf] }
 0x587   : > { %11926 = vst [vmem:[#allocation24_spill] sm:$0xff] %v10811_v52 }
 0x58a   : > { %v10813_v32 = vpop.f32.mrf.mxu2  ;;  %v10815_v37 = vpop.f32.mrf.mxu3 }
 0x58b   : > { %11927 = vst [vmem:[#allocation25_spill] sm:$0xff] %v10815_v37  ;;  %v9304_v37 = vld [vmem:[#allocation2 + $0x5c4] sm:$0xf0] }
 0x58c   : > { %v8891_v42 = vor.u32 %v9304_v37, %v8890_v57 }
 0x58d   : > { %v5192_v49 = vpop.f32.mrf.mxu1  ;;  %v5108_v51 = vpop.f32.mrf.mxu0 }
 0x58e   : > { %6080 = vmatpush.bf16.msra.mxu1 %v8891_v42 }
 0x58f   : > { %8644 = vmatmul.msk.bf16.gmra.mxu2 %vm379_vm1, %v9717_v2  ;;  %8661 = vmatmul.msk.bf16.gmra.mxu3 %vm379_vm1, %v9733_v20 }
 0x590   : > { %5147 = vmatmul.bf16.gmra.mxu0 %v10736_v50  ;;  %5231 = vmatmul.bf16.gmra.mxu1 %v10703_v7 }
 0x592   : > { %v4760_v29 = vpop.f32.mrf.mxu2  ;;  %v10823_v28 = vpop.f32.mrf.mxu3 }
 0x593   : > { %11928 = vst [vmem:[#allocation26_spill] sm:$0xff] %v10823_v28  ;;  %v5099_v63 = vadd.f32 %v5098_v56, %v4760_v29  ;;  %v9293_v56 = vld [vmem:[#allocation2 + $0x574] sm:$0xf]  ;;  %v8852_v29 = vld [vmem:[#allocation2 + $0x578] sm:$0xf0] }
 0x594   : > { %v8855_v53 = vor.u32 %v9293_v56, %v8852_v29 }
 0x595   : > { %v10825_v0 = vadd.f32 %v5187_v15, %v5099_v63  ;;  %v10827_v14 = vpop.f32.mrf.mxu1  ;;  %v10833_v50 = vpop.f32.mrf.mxu0  ;;  %v11933_v15 = vld [vmem:[#allocation8_spill] sm:$0xff]  ;;  %v9309_v63 = vld [vmem:[#allocation2 + $0x5f4] sm:$0xf] }
 0x596   : > { %11929 = vst [vmem:[#allocation27_spill] sm:$0xff] %v10827_v14  ;;  %v8919_v40 = vor.u32 %v9309_v63, %v8916_v10  ;;  %6166 = vmatpush.bf16.msra.mxu2 %v8855_v53  ;;  %v8818_v63 = vld [vmem:[#allocation2 + $0x530] sm:$0xf]  ;;  %v9286_v53 = vld [vmem:[#allocation2 + $0x534] sm:$0xf0] }
 0x597   : > { %11932 = vst [vmem:[#allocation30_spill] sm:$0xff] %v10833_v50  ;;  %v8819_v10 = vor.u32 %v9286_v53, %v8818_v63  ;;  %v8908_v63 = vld [vmem:[#allocation2 + $0x5e8] sm:$0xf0] }
 0x598   : > { %6255 = vmatpush.bf16.msrb.mxu3 %v8919_v40 }
 0x599   : > { %5992 = vmatpush.bf16.msra.mxu0 %v8819_v10 }
 0x59a   : > { %v10829_v2 = vpop.f32.mrf.mxu2  ;;  %v10831_v33 = vpop.f32.mrf.mxu3 }
 0x59b   : > { %11930 = vst [vmem:[#allocation28_spill] sm:$0xff] %v10829_v2 }
 0x59c   : > { %11931 = vst [vmem:[#allocation29_spill] sm:$0xff] %v10831_v33 }
 0x59d   : > { %v5197_v52 = vpop.f32.mrf.mxu1  ;;  %v5113_v57 = vpop.f32.mrf.mxu0 }
 0x59f   : > { %8645 = vmatmul.msk.bf16.gmra.mxu2 %vm379_vm1, %v9733_v20  ;;  %8662 = vmatmul.msk.bf16.gmra.mxu3 %vm379_vm1, %v11933_v15 }
 0x5a0   : > { %5236 = vmatmul.bf16.gmra.mxu1 %v10738_v61 }
 0x5a2   : > { %v4765_v50 = vpop.f32.mrf.mxu2  ;;  %v10840_v14 = vpop.f32.mrf.mxu3 }
 0x5a3   : > { %v5104_v37 = vadd.f32 %v5103_v46, %v4765_v50 }
 0x5a5   : > { %v10842_v20 = vadd.f32 %v5192_v49, %v5104_v37  ;;  %v10844_v33 = vpop.f32.mrf.mxu1  ;;  %v10850_v56 = vpop.f32.mrf.mxu0 }
 0x5a6   : > { %11934 = vst [vmem:[#allocation8_spill] sm:$0xff] %v10844_v33  ;;  %v8882_v33 = vld [vmem:[#allocation2 + $0x5b0] sm:$0xf] }
 0x5a7   : > { %11936 = vst [vmem:[#allocation32_spill] sm:$0xff] %v10850_v56 }
 0x5aa   : > { %v10846_v28 = vpop.f32.mrf.mxu2  ;;  %v10848_v2 = vpop.f32.mrf.mxu3 }
 0x5ab   : > { %11935 = vst [vmem:[#allocation31_spill] sm:$0xff] %v10848_v2 }
 0x5ad   : > { %v5202_v61 = vpop.f32.mrf.mxu1  ;;  %v5118_v40 = vpop.f32.mrf.mxu0 }
 0x5af   : > { %8646 = vmatmul.msk.bf16.gmra.mxu2 %vm379_vm1, %v11933_v15  ;;  %5339 = vmatmul.bf16.vlgmr.msra.gmra.mxu3 %v10512_v27  ;;  %v9302_v27 = vld [vmem:[#allocation2 + $0x5b4] sm:$0xf0] }
 0x5b0   : > { %v8883_v2 = vor.u32 %v9302_v27, %v8882_v33 }
 0x5b2   : > { %v4770_v42 = vpop.f32.mrf.mxu2  ;;  %v10855_v46 = vpop.f32.mrf.mxu3  ;;  %6081 = vmatpush.bf16.msra.mxu1 %v8883_v2 }
 0x5b3   : > { %11937 = vst [vmem:[#allocation33_spill] sm:$0xff] %v10855_v46  ;;  %v5109_v50 = vadd.f32 %v5108_v51, %v4770_v42  ;;  %v8844_v51 = vld [vmem:[#allocation2 + $0x568] sm:$0xf0]  ;;  %v9307_v42 = vld [vmem:[#allocation2 + $0x5e4] sm:$0xf] }
 0x5b4   : > { %v8911_v53 = vor.u32 %v9307_v42, %v8908_v63 }
 0x5b5   : > { %v10857_v49 = vadd.f32 %v5197_v52, %v5109_v50  ;;  %v10859_v29 = vpop.f32.mrf.mxu1  ;;  %v9291_v52 = vld [vmem:[#allocation2 + $0x564] sm:$0xf] }
 0x5b6   : > { %11938 = vst [vmem:[#allocation34_spill] sm:$0xff] %v10859_v29  ;;  %v8847_v50 = vor.u32 %v9291_v52, %v8844_v51  ;;  %6256 = vmatpush.bf16.msrb.mxu3 %v8911_v53 }
 0x5b8   : > { %6167 = vmatpush.bf16.msra.mxu2 %v8847_v50 }
 0x5ba   : > { %v10861_v37 = vpop.f32.mrf.mxu2  ;;  %v10863_v56 = vpop.f32.mrf.mxu3 }
 0x5bb   : > { %11939 = vst [vmem:[#allocation35_spill] sm:$0xff] %v10863_v56  ;;  %v10869_v56 = vpop.f32.mrf.mxu0 }
 0x5bc   : > { %11940 = vst [vmem:[#allocation36_spill] sm:$0xff] %v10869_v56 }
 0x5bd   : > { %v5207_v15 = vpop.f32.mrf.mxu1 }
 0x5bf   : > { %5250 = vmatmul.bf16.vlgmr.msrb.gmra.mxu2 %v10510_v31  ;;  %5344 = vmatmul.bf16.gmra.mxu3 %v10524_v26 }
 0x5c2   : > { %v4775_v10 = vpop.f32.mrf.mxu2  ;;  %v10867_v29 = vpop.f32.mrf.mxu3 }
 0x5c3   : > { %v5114_v46 = vadd.f32 %v5113_v57, %v4775_v10  ;;  %v5123_v2 = vpop.f32.mrf.mxu0 }
 0x5c5   : > { %v10871_v33 = vadd.f32 %v5202_v61, %v5114_v46  ;;  %v10873_v31 = vpop.f32.mrf.mxu1  ;;  %v8810_v61 = vld [vmem:[#allocation2 + $0x520] sm:$0xf]  ;;  %v9284_v46 = vld [vmem:[#allocation2 + $0x524] sm:$0xf0] }
 0x5c6   : > { %11941 = vst [vmem:[#allocation37_spill] sm:$0xff] %v10873_v31  ;;  %v8811_v63 = vor.u32 %v9284_v46, %v8810_v61  ;;  %v8900_v61 = vld [vmem:[#allocation2 + $0x5d8] sm:$0xf0] }
 0x5c8   : > { %5993 = vmatpush.bf16.msra.mxu0 %v8811_v63 }
 0x5ca   : > { %v10875_v26 = vpop.f32.mrf.mxu2  ;;  %v10877_v27 = vpop.f32.mrf.mxu3 }
 0x5cb   : > { %11942 = vst [vmem:[#allocation38_spill] sm:$0xff] %v10877_v27  ;;  %v10885_v53 = vpop.f32.mrf.mxu0 }
 0x5cc   : > { %11944 = vst [vmem:[#allocation40_spill] sm:$0xff] %v10885_v53 }
 0x5cd   : > { %v5212_v52 = vpop.f32.mrf.mxu1 }
 0x5cf   : > { %5255 = vmatmul.bf16.gmra.mxu2 %v10522_v16  ;;  %5349 = vmatmul.bf16.gmra.mxu3 %v10536_v18  ;;  %v8874_v16 = vld [vmem:[#allocation2 + $0x5a0] sm:$0xf]  ;;  %v9300_v18 = vld [vmem:[#allocation2 + $0x5a4] sm:$0xf0] }
 0x5d0   : > { %v8875_v56 = vor.u32 %v9300_v18, %v8874_v16 }
 0x5d2   : > { %v4780_v51 = vpop.f32.mrf.mxu2  ;;  %v10881_v42 = vpop.f32.mrf.mxu3  ;;  %6082 = vmatpush.bf16.msra.mxu1 %v8875_v56 }
 0x5d3   : > { %11943 = vst [vmem:[#allocation39_spill] sm:$0xff] %v10881_v42  ;;  %v5119_v50 = vadd.f32 %v5118_v40, %v4780_v51  ;;  %v9289_v40 = vld [vmem:[#allocation2 + $0x554] sm:$0xf]  ;;  %v5128_v46 = vpop.f32.mrf.mxu0 }
 0x5d4   : > { %v9305_v51 = vld [vmem:[#allocation2 + $0x5d4] sm:$0xf] }
 0x5d5   : > { %v10883_v57 = vadd.f32 %v5207_v15, %v5119_v50  ;;  %v10887_v10 = vpop.f32.mrf.mxu1  ;;  %v8836_v15 = vld [vmem:[#allocation2 + $0x558] sm:$0xf0]  ;;  %v8903_v63 = vor.u32 %v9305_v51, %v8900_v61 }
 0x5d6   : > { %11945 = vst [vmem:[#allocation41_spill] sm:$0xff] %v10887_v10  ;;  %v8839_v50 = vor.u32 %v9289_v40, %v8836_v15 }
 0x5d7   : > { %6257 = vmatpush.bf16.msrb.mxu3 %v8903_v63 }
 0x5d8   : > { %6168 = vmatpush.bf16.msra.mxu2 %v8839_v50 }
 0x5da   : > { %v10889_v31 = vpop.f32.mrf.mxu2  ;;  %v10891_v27 = vpop.f32.mrf.mxu3 }
 0x5db   : > { %11946 = vst [vmem:[#allocation42_spill] sm:$0xff] %v10891_v27  ;;  %v10903_v18 = vpop.f32.mrf.mxu0 }
 0x5dc   : > { %11949 = vst [vmem:[#allocation45_spill] sm:$0xff] %v10903_v18 }
 0x5dd   : > { %v5217_v27 = vpop.f32.mrf.mxu1 }
 0x5df   : > { %5260 = vmatmul.bf16.gmra.mxu2 %v10534_v36  ;;  %5354 = vmatmul.bf16.gmra.mxu3 %v10548_v17 }
 0x5e2   : > { %v4785_v10 = vpop.f32.mrf.mxu2  ;;  %v10895_v53 = vpop.f32.mrf.mxu3 }
 0x5e3   : > { %11947 = vst [vmem:[#allocation43_spill] sm:$0xff] %v10895_v53  ;;  %v5124_v42 = vadd.f32 %v5123_v2, %v4785_v10  ;;  %v5133_v2 = vpop.f32.mrf.mxu0 }
 0x5e5   : > { %v10897_v16 = vadd.f32 %v5212_v52, %v5124_v42  ;;  %v10905_v56 = vpop.f32.mrf.mxu1  ;;  %v8802_v52 = vld [vmem:[#allocation2 + $0x510] sm:$0xf]  ;;  %v9282_v42 = vld [vmem:[#allocation2 + $0x514] sm:$0xf0] }
 0x5e6   : > { %11950 = vst [vmem:[#allocation46_spill] sm:$0xff] %v10905_v56  ;;  %v8803_v50 = vor.u32 %v9282_v42, %v8802_v52  ;;  %v8866_v56 = vld [vmem:[#allocation2 + $0x590] sm:$0xf]  ;;  %v8892_v52 = vld [vmem:[#allocation2 + $0x5c8] sm:$0xf0] }
 0x5e8   : > { %5994 = vmatpush.bf16.msra.mxu0 %v8803_v50 }
 0x5ea   : > { %v10899_v36 = vpop.f32.mrf.mxu2  ;;  %v10901_v17 = vpop.f32.mrf.mxu3 }
 0x5eb   : > { %11948 = vst [vmem:[#allocation44_spill] sm:$0xff] %v10901_v17 }
 0x5ed   : > { %v5222_v61 = vpop.f32.mrf.mxu1 }
 0x5ef   : > { %5265 = vmatmul.bf16.gmra.mxu2 %v10546_v25  ;;  %5359 = vmatmul.bf16.gmra.mxu3 %v10560_v39  ;;  %v9298_v25 = vld [vmem:[#allocation2 + $0x594] sm:$0xf0]  ;;  %v10917_v39 = vpop.f32.mrf.mxu0 }
 0x5f0   : > { %v8867_v18 = vor.u32 %v9298_v25, %v8866_v56  ;;  %11955 = vst [vmem:[#allocation51_spill] sm:$0xff] %v10917_v39 }
 0x5f2   : > { %v4790_v40 = vpop.f32.mrf.mxu2  ;;  %v10909_v15 = vpop.f32.mrf.mxu3  ;;  %6083 = vmatpush.bf16.msra.mxu1 %v8867_v18 }
 0x5f3   : > { %11951 = vst [vmem:[#allocation47_spill] sm:$0xff] %v10909_v15  ;;  %v5129_v51 = vadd.f32 %v5128_v46, %v4790_v40  ;;  %v8828_v46 = vld [vmem:[#allocation2 + $0x548] sm:$0xf0]  ;;  %v9303_v40 = vld [vmem:[#allocation2 + $0x5c4] sm:$0xf] }
 0x5f4   : > { %v8895_v50 = vor.u32 %v9303_v40, %v8892_v52 }
 0x5f5   : > { %v10911_v10 = vadd.f32 %v5217_v27, %v5129_v51  ;;  %v9287_v27 = vld [vmem:[#allocation2 + $0x544] sm:$0xf]  ;;  %v10921_v42 = vpop.f32.mrf.mxu1 }
 0x5f6   : > { %v8831_v51 = vor.u32 %v9287_v27, %v8828_v46  ;;  %11956 = vst [vmem:[#allocation52_spill] sm:$0xff] %v10921_v42  ;;  %6258 = vmatpush.bf16.msrb.mxu3 %v8895_v50 }
 0x5f7   : > { %11952 = vst [vmem:[#allocation48_spill] sm:$0xff] %v10911_v10 }
 0x5f8   : > { %6169 = vmatpush.bf16.msra.mxu2 %v8831_v51  ;;  %v9280_v51 = vld [vmem:[#allocation2 + $0x504] sm:$0xf0] }
 0x5fa   : > { %v10913_v63 = vpop.f32.mrf.mxu2  ;;  %v10915_v17 = vpop.f32.mrf.mxu3 }
 0x5fb   : > { %11953 = vst [vmem:[#allocation49_spill] sm:$0xff] %v10913_v63 }
 0x5fc   : > { %11954 = vst [vmem:[#allocation50_spill] sm:$0xff] %v10915_v17 }
 0x5fd   : > { %v5227_v63 = vpop.f32.mrf.mxu1 }
 0x5ff   : > { %5270 = vmatmul.bf16.gmra.mxu2 %v10558_v45  ;;  %5364 = vmatmul.bf16.gmra.mxu3 %v10576_v22  ;;  %v5138_v45 = vpop.f32.mrf.mxu0 }
 0x602   : > { %v4795_v15 = vpop.f32.mrf.mxu2  ;;  %v10923_v17 = vpop.f32.mrf.mxu3 }
 0x603   : > { %11957 = vst [vmem:[#allocation53_spill] sm:$0xff] %v10923_v17  ;;  %v5134_v56 = vadd.f32 %v5133_v2, %v4795_v15 }
 0x605   : > { %v10925_v25 = vadd.f32 %v5222_v61, %v5134_v56  ;;  %v10937_v15 = vpop.f32.mrf.mxu1  ;;  %v8794_v61 = vld [vmem:[#allocation2 + $0x500] sm:$0xf] }
 0x606   : > { %11963 = vst [vmem:[#allocation59_spill] sm:$0xff] %v10937_v15  ;;  %v8795_v52 = vor.u32 %v9280_v51, %v8794_v61  ;;  %v8884_v61 = vld [vmem:[#allocation2 + $0x5b8] sm:$0xf0] }
 0x607   : > { %11958 = vst [vmem:[#allocation54_spill] sm:$0xff] %v10925_v25  ;;  %v10935_v46 = vpop.f32.mrf.mxu0 }
 0x608   : > { %11962 = vst [vmem:[#allocation58_spill] sm:$0xff] %v10935_v46  ;;  %5995 = vmatpush.bf16.msra.mxu0 %v8795_v52 }
 0x60a   : > { %v10927_v39 = vpop.f32.mrf.mxu2  ;;  %v10929_v22 = vpop.f32.mrf.mxu3 }
 0x60b   : > { %11959 = vst [vmem:[#allocation55_spill] sm:$0xff] %v10927_v39 }
 0x60c   : > { %11960 = vst [vmem:[#allocation56_spill] sm:$0xff] %v10929_v22  ;;  %v9296_v22 = vld [vmem:[#allocation2 + $0x584] sm:$0xf0] }
 0x60f   : > { %5275 = vmatmul.bf16.gmra.mxu2 %v10574_v55  ;;  %5369 = vmatmul.bf16.gmra.mxu3 %v10588_v43  ;;  %v5143_v55 = vpop.f32.mrf.mxu0  ;;  %v8858_v43 = vld [vmem:[#allocation2 + $0x580] sm:$0xf] }
 0x610   : > { %v8859_v17 = vor.u32 %v9296_v22, %v8858_v43 }
 0x612   : > { %v4800_v18 = vpop.f32.mrf.mxu2  ;;  %v10933_v27 = vpop.f32.mrf.mxu3  ;;  %6084 = vmatpush.bf16.msra.mxu1 %v8859_v17 }
 0x613   : > { %11961 = vst [vmem:[#allocation57_spill] sm:$0xff] %v10933_v27  ;;  %v5139_v40 = vadd.f32 %v5138_v45, %v4800_v18  ;;  %v5232_v27 = vpop.f32.mrf.mxu1  ;;  %v9285_v45 = vld [vmem:[#allocation2 + $0x534] sm:$0xf] }
 0x614   : > { %v9301_v18 = vld [vmem:[#allocation2 + $0x5b4] sm:$0xf] }
 0x615   : > { %v10939_v2 = vadd.f32 %v5227_v63, %v5139_v40  ;;  %v8820_v63 = vld [vmem:[#allocation2 + $0x538] sm:$0xf0]  ;;  %v8887_v51 = vor.u32 %v9301_v18, %v8884_v61 }
 0x616   : > { %v8823_v40 = vor.u32 %v9285_v45, %v8820_v63 }
 0x617   : > { %11964 = vst [vmem:[#allocation60_spill] sm:$0xff] %v10939_v2  ;;  %6259 = vmatpush.bf16.msrb.mxu3 %v8887_v51  ;;  %v10951_v22 = vpop.f32.mrf.mxu0  ;;  %v11976_v2 = vld [vmem:[#allocation15_spill] sm:$0xff] }
 0x618   : > { %6170 = vmatpush.bf16.msra.mxu2 %v8823_v40  ;;  %11969 = vst [vmem:[#allocation65_spill] sm:$0xff] %v10951_v22 }
 0x61a   : > { %v10941_v50 = vpop.f32.mrf.mxu2  ;;  %v10943_v56 = vpop.f32.mrf.mxu3 }
 0x61b   : > { %11965 = vst [vmem:[#allocation61_spill] sm:$0xff] %v10941_v50  ;;  %v9299_v50 = vld [vmem:[#allocation2 + $0x5a4] sm:$0xf] }
 0x61c   : > { %11966 = vst [vmem:[#allocation62_spill] sm:$0xff] %v10943_v56 }
 0x61f   : > { %5280 = vmatmul.bf16.gmra.mxu2 %v10586_v48  ;;  %5374 = vmatmul.bf16.gmra.mxu3 %v10601_v11  ;;  %v10953_v48 = vpop.f32.mrf.mxu1  ;;  %v5148_v17 = vpop.f32.mrf.mxu0 }
 0x620   : > { %11970 = vst [vmem:[#allocation66_spill] sm:$0xff] %v10953_v48 }
 0x622   : > { %v4805_v52 = vpop.f32.mrf.mxu2  ;;  %v10947_v15 = vpop.f32.mrf.mxu3 }
 0x623   : > { %11967 = vst [vmem:[#allocation63_spill] sm:$0xff] %v10947_v15  ;;  %v5144_v56 = vadd.f32 %v5143_v55, %v4805_v52  ;;  %v8791_v55 = vld [vmem:[%s11894_s5 + $0x8] sm:$0x3]  ;;  %v8979_v52 = vld [vmem:[#allocation2 + $0x670] sm:$0xf] }
 0x624   : > { %v5455_v18 = vperm.slane %v8791_v55, 0  ;;  %v5456_v40 = vperm.slane %v8791_v55, 1  ;;  %v9342_v55 = vld [vmem:[#allocation2 + $0x6f4] sm:$0xf0] }
 0x625   : > { %v10949_v46 = vadd.f32 %v5232_v27, %v5144_v56 }
 0x626   : > { %v5459_v51 = vpack.c.bf16 %v5456_v40, %v5455_v18 }
 0x627   : > { %11968 = vst [vmem:[#allocation64_spill] sm:$0xff] %v10949_v46  ;;  %v5237_v63 = vpop.f32.mrf.mxu1  ;;  %v9043_v46 = vld [vmem:[#allocation2 + $0x6f0] sm:$0xf] }
 0x628   : > { %v5461_v48 = vunpack.c.l.b16 %v5459_v51  ;;  %v5462_v22 = vunpack.c.h.b16 %v5459_v51  ;;  %v9044_v40 = vor.u32 %v9342_v55, %v9043_v46  ;;  %v11977_v46 = vld [vmem:[#allocation16_spill] sm:$0xff] }
 0x62a   : > { %v10955_v11 = vpop.f32.mrf.mxu2  ;;  %v10957_v43 = vpop.f32.mrf.mxu3  ;;  %7001 = vmatpush.bf16.msrb.mxu1 %v9044_v40 }
 0x62b   : > { %11971 = vst [vmem:[#allocation67_spill] sm:$0xff] %v10955_v11  ;;  %v11975_v11 = vld [vmem:[#allocation10_spill] sm:$0xff] }
 0x62c   : > { %11972 = vst [vmem:[#allocation68_spill] sm:$0xff] %v10957_v43  ;;  %v9326_v43 = vld [vmem:[#allocation2 + $0x674] sm:$0xf0] }
 0x62f   : > { %5285 = vmatmul.bf16.gmra.mxu2 %v10599_v60  ;;  %5379 = vmatmul.bf16.gmra.mxu3 %v10615_v4  ;;  %v8980_v4 = vor.u32 %v9326_v43, %v8979_v52 }
 0x631   : > { %6912 = vmatpush.bf16.msrb.mxu0 %v8980_v4 }
 0x632   : > { %v4810_v45 = vpop.f32.mrf.mxu2  ;;  %v5340_v27 = vpop.f32.mrf.mxu3 }
 0x633   : > { %v5149_v56 = vadd.f32 %v5148_v17, %v4810_v45  ;;  %v5463_v17 = vpack.c.b16 %v5461_v48, %v5461_v48  ;;  %v5464_v45 = vpack.c.b16 %v5462_v22, %v5462_v22 }
 0x635   : > { %v10964_v61 = vadd.f32 %v5237_v63, %v5149_v56  ;;  %v9283_v56 = vld [vmem:[#allocation2 + $0x524] sm:$0xf]  ;;  %v5466_v51 = vpack.i.b16 %v5463_v17, %v5463_v17  ;;  %v5470_v42 = vpack.i.b16 %v5464_v45, %v5464_v45 }
 0x637   : > { %11973 = vst [vmem:[#allocation69_spill] sm:$0xff] %v10964_v61  ;;  %v8812_v61 = vld [vmem:[#allocation2 + $0x528] sm:$0xf0]  ;;  %v5468_v48 = vperm.slane %v5466_v51, 0 }
 0x638   : > { %v8815_v52 = vor.u32 %v9283_v56, %v8812_v61 }
 0x639   : > { %v10973_v53 = vunpack.c.l.bf16 %v5468_v48  ;;  %v9324_v48 = vld [vmem:[#allocation2 + $0x664] sm:$0xf0] }
 0x63a   : > { %v10966_v15 = vpop.f32.mrf.mxu2  ;;  %v5342_v60 = vpop.f32.mrf.mxu3  ;;  %6171 = vmatpush.bf16.msra.mxu2 %v8815_v52 }
 0x63b   : > { %11974 = vst [vmem:[#allocation70_spill] sm:$0xff] %v10966_v15  ;;  %v8876_v15 = vld [vmem:[#allocation2 + $0x5a8] sm:$0xf0] }
 0x63c   : > { %v8879_v4 = vor.u32 %v9299_v50, %v8876_v15 }
 0x63e   : > { %6260 = vmatpush.bf16.msrb.mxu3 %v8879_v4 }
 0x63f   : > { %5290 = vmatmul.bf16.gmra.mxu2 %v10613_v34  ;;  %5384 = vmatmul.bf16.gmra.mxu3 %v11975_v11  ;;  %v5472_v11 = vperm.slane %v5470_v42, 0 }
 0x641   : > { %v10975_v61 = vunpack.c.l.bf16 %v5472_v11 }
 0x642   : > { %v5251_v63 = vpop.f32.mrf.mxu2  ;;  %v5345_v18 = vpop.f32.mrf.mxu3 }
 0x643   : > { %v5252_v43 = vadd.f32 %v5251_v63, %v11976_v2 }
 0x645   : > { %v5341_v34 = vadd.f32 %v5340_v27, %v5252_v43  ;;  %v11978_v27 = vld [vmem:[#allocation9_spill] sm:$0xff] }
 0x647   : > { %v5420_v22 = vpack.c.bf16 %v5341_v34, %v10734_v3 }
 0x649   : > { %v5473_v10 = vunpack.c.l.bf16 %v5420_v22  ;;  %v5474_v2 = vunpack.c.h.bf16 %v5420_v22  ;;  %v8971_v22 = vld [vmem:[#allocation2 + $0x660] sm:$0xf] }
 0x64a   : > { %v5253_v39 = vpop.f32.mrf.mxu2  ;;  %v5347_v25 = vpop.f32.mrf.mxu3 }
 0x64b   : > { %v5254_v55 = vadd.f32 %v5253_v39, %v11977_v46  ;;  %v5539_v3 = vadd.f32 %v10973_v53, %v5473_v10  ;;  %v5540_v42 = vadd.f32 %v10975_v61, %v5474_v2 }
 0x64d   : > { %v5343_v15 = vadd.f32 %v5342_v60, %v5254_v55  ;;  %v5699_v43 = vmax.f32 %v5539_v3, 0.0 }
 0x64f   : > { %v5421_v50 = vpack.c.bf16 %v5343_v15, %v10743_v23  ;;  %5295 = vmatmul.bf16.gmra.mxu2 %v11978_v27  ;;  %5389 = vmatmul.bf16.gmra.mxu3 %v10643_v21  ;;  %v5700_v23 = vmax.f32 %v5540_v42, 0.0  ;;  %v11979_v27 = vld [vmem:[#allocation11_spill] sm:$0xff] }
 0x651   : > { %v5475_v17 = vunpack.c.l.bf16 %v5421_v50  ;;  %v5476_v45 = vunpack.c.h.bf16 %v5421_v50 }
 0x652   : > { %v5256_v39 = vpop.f32.mrf.mxu2  ;;  %v5350_v56 = vpop.f32.mrf.mxu3 }
 0x653   : > { %v5541_v63 = vadd.f32 %v10973_v53, %v5475_v17  ;;  %v5542_v40 = vadd.f32 %v10975_v61, %v5476_v45  ;;  %v5257_v60 = vadd.f32 %v5256_v39, %v10731_v58  ;;  %v8972_v58 = vor.u32 %v9324_v48, %v8971_v22  ;;  %v9035_v45 = vld [vmem:[#allocation2 + $0x6e0] sm:$0xf]  ;;  %v9340_v39 = vld [vmem:[#allocation2 + $0x6e4] sm:$0xf0] }
 0x655   : > { %v5701_v52 = vmax.f32 %v5541_v63, 0.0  ;;  %v5702_v4 = vmax.f32 %v5542_v40, 0.0  ;;  %v5346_v51 = vadd.f32 %v5345_v18, %v5257_v60  ;;  %6913 = vmatpush.bf16.msrb.mxu0 %v8972_v58  ;;  %v9281_v63 = vld [vmem:[#allocation2 + $0x514] sm:$0xf]  ;;  %v9036_v60 = vor.u32 %v9340_v39, %v9035_v45 }
 0x657   : > { %v10985_v21 = vpack.c.bf16 %v5701_v52, %v5699_v43  ;;  %v10987_v10 = vpack.c.bf16 %v5702_v4, %v5700_v23  ;;  %v5422_v34 = vpack.c.bf16 %v5346_v51, %v10754_v59  ;;  %v8804_v43 = vld [vmem:[#allocation2 + $0x518] sm:$0xf0]  ;;  %7002 = vmatpush.bf16.msrb.mxu1 %v9036_v60 }
 0x658   : > { %v8868_v23 = vld [vmem:[#allocation2 + $0x598] sm:$0xf0]  ;;  %v8807_v4 = vor.u32 %v9281_v63, %v8804_v43 }
 0x659   : > { %5996 = vmatmul.bf16.vlgmr.msra.gmra.mxu0 %v10985_v21  ;;  %6085 = vmatmul.bf16.vlgmr.msra.gmra.mxu1 %v10987_v10  ;;  %v5477_v2 = vunpack.c.l.bf16 %v5422_v34  ;;  %v5478_v18 = vunpack.c.h.bf16 %v5422_v34 }
 0x65a   : > { %v5258_v11 = vpop.f32.mrf.mxu2  ;;  %v5352_v46 = vpop.f32.mrf.mxu3  ;;  %6172 = vmatpush.bf16.msra.mxu2 %v8807_v4 }
 0x65b   : > { %v5259_v55 = vadd.f32 %v5258_v11, %v10740_v47  ;;  %v5543_v59 = vadd.f32 %v10973_v53, %v5477_v2  ;;  %v5544_v17 = vadd.f32 %v10975_v61, %v5478_v18 }
 0x65d   : > { %v5348_v15 = vadd.f32 %v5347_v25, %v5259_v55  ;;  %v9297_v25 = vld [vmem:[#allocation2 + $0x594] sm:$0xf]  ;;  %v5703_v51 = vmax.f32 %v5543_v59, 0.0  ;;  %v5704_v11 = vmax.f32 %v5544_v17, 0.0 }
 0x65e   : > { %v8871_v34 = vor.u32 %v9297_v25, %v8868_v23 }
 0x65f   : > { %v5423_v50 = vpack.c.bf16 %v5348_v15, %v10759_v5  ;;  %5300 = vmatmul.bf16.gmra.mxu2 %v11979_v27  ;;  %5394 = vmatmul.bf16.gmra.mxu3 %v10657_v44 }
 0x660   : > { %6261 = vmatpush.bf16.msrb.mxu3 %v8871_v34 }
 0x661   : > { %v5479_v3 = vunpack.c.l.bf16 %v5423_v50  ;;  %v5480_v42 = vunpack.c.h.bf16 %v5423_v50 }
 0x662   : > { %v5261_v47 = vpop.f32.mrf.mxu2  ;;  %v5355_v40 = vpop.f32.mrf.mxu3 }
 0x663   : > { %v5262_v5 = vadd.f32 %v5261_v47, %v10751_v1  ;;  %v5545_v52 = vadd.f32 %v10973_v53, %v5479_v3  ;;  %v5546_v44 = vadd.f32 %v10975_v61, %v5480_v42 }
 0x665   : > { %v5351_v22 = vadd.f32 %v5350_v56, %v5262_v5  ;;  %v5705_v48 = vmax.f32 %v5545_v52, 0.0  ;;  %v5706_v58 = vmax.f32 %v5546_v44, 0.0  ;;  %v9322_v52 = vld [vmem:[#allocation2 + $0x654] sm:$0xf0] }
 0x667   : > { %v11001_v55 = vpack.c.bf16 %v5705_v48, %v5703_v51  ;;  %v11003_v2 = vpack.c.bf16 %v5706_v58, %v5704_v11  ;;  %v5424_v1 = vpack.c.bf16 %v5351_v22, %v10772_v30  ;;  %v11980_v58 = vld [vmem:[#allocation12_spill] sm:$0xff] }
 0x669   : > { %6001 = vmatmul.bf16.gmra.mxu0 %v11001_v55  ;;  %6090 = vmatmul.bf16.gmra.mxu1 %v11003_v2  ;;  %v5481_v56 = vunpack.c.l.bf16 %v5424_v1  ;;  %v5482_v27 = vunpack.c.h.bf16 %v5424_v1 }
 0x66a   : > { %v5263_v18 = vpop.f32.mrf.mxu2  ;;  %v5357_v15 = vpop.f32.mrf.mxu3 }
 0x66b   : > { %v5264_v50 = vadd.f32 %v5263_v18, %v10756_v35  ;;  %v5547_v42 = vadd.f32 %v10973_v53, %v5481_v56  ;;  %v5548_v45 = vadd.f32 %v10975_v61, %v5482_v27  ;;  %v9027_v56 = vld [vmem:[#allocation2 + $0x6d0] sm:$0xf]  ;;  %v9338_v27 = vld [vmem:[#allocation2 + $0x6d4] sm:$0xf0] }
 0x66d   : > { %v5353_v59 = vadd.f32 %v5352_v46, %v5264_v50  ;;  %v5707_v60 = vmax.f32 %v5547_v42, 0.0  ;;  %v9028_v42 = vor.u32 %v9338_v27, %v9027_v56  ;;  %v11984_v27 = vld [vmem:[#allocation22_spill] sm:$0xff] }
 0x66f   : > { %v5425_v3 = vpack.c.bf16 %v5353_v59, %v10778_v12  ;;  %5305 = vmatmul.bf16.gmra.mxu2 %v10655_v8  ;;  %5399 = vmatmul.bf16.gmra.mxu3 %v10671_v6  ;;  %v5708_v8 = vmax.f32 %v5548_v45, 0.0  ;;  %v9279_v59 = vld [vmem:[#allocation2 + $0x504] sm:$0xf] }
 0x670   : > { %7003 = vmatpush.bf16.msrb.mxu1 %v9028_v42 }
 0x671   : > { %v5483_v30 = vunpack.c.l.bf16 %v5425_v3  ;;  %v5484_v17 = vunpack.c.h.bf16 %v5425_v3 }
 0x672   : > { %v5266_v39 = vpop.f32.mrf.mxu2  ;;  %v5360_v63 = vpop.f32.mrf.mxu3 }
 0x673   : > { %v5267_v47 = vadd.f32 %v5266_v39, %v10769_v9  ;;  %v5549_v35 = vadd.f32 %v10973_v53, %v5483_v30  ;;  %v5550_v46 = vadd.f32 %v10975_v61, %v5484_v17  ;;  %v8963_v9 = vld [vmem:[#allocation2 + $0x650] sm:$0xf]  ;;  %v8796_v30 = vld [vmem:[#allocation2 + $0x508] sm:$0xf0] }
 0x674   : > { %v8964_v51 = vor.u32 %v9322_v52, %v8963_v9  ;;  %v8860_v17 = vld [vmem:[#allocation2 + $0x588] sm:$0xf0]  ;;  %v11982_v52 = vld [vmem:[#allocation19_spill] sm:$0xff] }
 0x675   : > { %v5356_v12 = vadd.f32 %v5355_v40, %v5267_v47  ;;  %v5709_v43 = vmax.f32 %v5549_v35, 0.0  ;;  %v5710_v25 = vmax.f32 %v5550_v46, 0.0  ;;  %v8799_v47 = vor.u32 %v9279_v59, %v8796_v30 }
 0x676   : > { %6914 = vmatpush.bf16.msrb.mxu0 %v8964_v51 }
 0x677   : > { %v11017_v6 = vpack.c.bf16 %v5709_v43, %v5707_v60  ;;  %v11019_v23 = vpack.c.bf16 %v5710_v25, %v5708_v8  ;;  %v5426_v5 = vpack.c.bf16 %v5356_v12, %v10788_v41  ;;  %6173 = vmatpush.bf16.msra.mxu2 %v8799_v47  ;;  %v8955_v47 = vld [vmem:[#allocation2 + $0x640] sm:$0xf] }
 0x679   : > { %6006 = vmatmul.bf16.gmra.mxu0 %v11017_v6  ;;  %6095 = vmatmul.bf16.gmra.mxu1 %v11019_v23  ;;  %v5485_v34 = vunpack.c.l.bf16 %v5426_v5  ;;  %v5486_v22 = vunpack.c.h.bf16 %v5426_v5 }
 0x67a   : > { %v5268_v44 = vpop.f32.mrf.mxu2  ;;  %v5362_v4 = vpop.f32.mrf.mxu3 }
 0x67b   : > { %v5269_v40 = vadd.f32 %v5268_v44, %v10776_v13  ;;  %v5551_v41 = vadd.f32 %v10973_v53, %v5485_v34  ;;  %v5552_v50 = vadd.f32 %v10975_v61, %v5486_v22  ;;  %v5096_v44 = vadd.f32 %v11982_v52, %v10813_v32 }
 0x67d   : > { %v5358_v48 = vadd.f32 %v5357_v15, %v5269_v40  ;;  %v9295_v15 = vld [vmem:[#allocation2 + $0x584] sm:$0xf]  ;;  %v5711_v35 = vmax.f32 %v5551_v41, 0.0  ;;  %v5712_v43 = vmax.f32 %v5552_v50, 0.0  ;;  %v5185_v22 = vadd.f32 %v10792_v24, %v5096_v44  ;;  %v11983_v41 = vld [vmem:[#allocation13_spill] sm:$0xff] }
 0x67e   : > { %v8863_v46 = vor.u32 %v9295_v15, %v8860_v17 }
 0x67f   : > { %v5427_v11 = vpack.c.bf16 %v5358_v48, %v10796_v62  ;;  %5310 = vmatmul.bf16.gmra.mxu2 %v11980_v58  ;;  %5404 = vmatmul.bf16.gmra.mxu3 %v10685_v38  ;;  %v11981_v62 = vld [vmem:[#allocation20_spill] sm:$0xff] }
 0x680   : > { %6262 = vmatpush.bf16.msrb.mxu3 %v8863_v46 }
 0x681   : > { %v5487_v1 = vunpack.c.l.bf16 %v5427_v11  ;;  %v5488_v18 = vunpack.c.h.bf16 %v5427_v11 }
 0x682   : > { %v5271_v13 = vpop.f32.mrf.mxu2  ;;  %v5365_v3 = vpop.f32.mrf.mxu3 }
 0x683   : > { %v5272_v45 = vadd.f32 %v5271_v13, %v11981_v62  ;;  %v5553_v39 = vadd.f32 %v10973_v53, %v5487_v1  ;;  %v5554_v38 = vadd.f32 %v10975_v61, %v5488_v18 }
 0x685   : > { %v5361_v60 = vadd.f32 %v5360_v63, %v5272_v45  ;;  %v5713_v12 = vmax.f32 %v5553_v39, 0.0  ;;  %v5714_v8 = vmax.f32 %v5554_v38, 0.0  ;;  %v11985_v45 = vld [vmem:[#allocation28_spill] sm:$0xff]  ;;  %v11986_v39 = vld [vmem:[#allocation21_spill] sm:$0xff] }
 0x686   : > { %v5101_v38 = vadd.f32 %v11986_v39, %v11985_v45 }
 0x687   : > { %v11033_v25 = vpack.c.bf16 %v5713_v12, %v5711_v35  ;;  %v11035_v5 = vpack.c.bf16 %v5714_v8, %v5712_v43  ;;  %v5428_v9 = vpack.c.bf16 %v5361_v60, %v10807_v54  ;;  %v9320_v35 = vld [vmem:[#allocation2 + $0x644] sm:$0xf0] }
 0x688   : > { %v8956_v60 = vor.u32 %v9320_v35, %v8955_v47  ;;  %v11987_v12 = vld [vmem:[#allocation25_spill] sm:$0xff] }
 0x689   : > { %6011 = vmatmul.bf16.gmra.mxu0 %v11033_v25  ;;  %6100 = vmatmul.bf16.gmra.mxu1 %v11035_v5  ;;  %v5489_v34 = vunpack.c.l.bf16 %v5428_v9  ;;  %v5490_v48 = vunpack.c.h.bf16 %v5428_v9  ;;  %v11988_v9 = vld [vmem:[#allocation23_spill] sm:$0xff] }
 0x68a   : > { %v5273_v51 = vpop.f32.mrf.mxu2  ;;  %v5367_v63 = vpop.f32.mrf.mxu3  ;;  %6915 = vmatpush.bf16.msrb.mxu0 %v8956_v60  ;;  %v5190_v52 = vadd.f32 %v11988_v9, %v5101_v38  ;;  %v11992_v60 = vld [vmem:[#allocation24_spill] sm:$0xff] }
 0x68b   : > { %v5274_v40 = vadd.f32 %v5273_v51, %v10794_v19  ;;  %v5555_v32 = vadd.f32 %v10973_v53, %v5489_v34  ;;  %v5556_v18 = vadd.f32 %v10975_v61, %v5490_v48  ;;  %v11990_v34 = vld [vmem:[#allocation18_spill] sm:$0xff] }
 0x68d   : > { %v5363_v11 = vadd.f32 %v5362_v4, %v5274_v40  ;;  %v5715_v4 = vmax.f32 %v5555_v32, 0.0  ;;  %v5716_v30 = vmax.f32 %v5556_v18, 0.0  ;;  %v11989_v40 = vld [vmem:[#allocation14_spill] sm:$0xff]  ;;  %v9336_v32 = vld [vmem:[#allocation2 + $0x6c4] sm:$0xf0] }
 0x68f   : > { %v5429_v58 = vpack.c.bf16 %v5363_v11, %v5185_v22  ;;  %5315 = vmatmul.bf16.gmra.mxu2 %v11983_v41  ;;  %5409 = vmatmul.bf16.gmra.mxu3 %v10703_v7  ;;  %v9019_v41 = vld [vmem:[#allocation2 + $0x6c0] sm:$0xf] }
 0x691   : > { %v5491_v54 = vunpack.c.l.bf16 %v5429_v58  ;;  %v5492_v1 = vunpack.c.h.bf16 %v5429_v58 }
 0x692   : > { %v5276_v50 = vpop.f32.mrf.mxu2  ;;  %v5370_v56 = vpop.f32.mrf.mxu3 }
 0x693   : > { %v5277_v19 = vadd.f32 %v5276_v50, %v11984_v27  ;;  %v5557_v59 = vadd.f32 %v10973_v53, %v5491_v54  ;;  %v5558_v24 = vadd.f32 %v10975_v61, %v5492_v1  ;;  %v9325_v54 = vld [vmem:[#allocation2 + $0x674] sm:$0xf]  ;;  %v9020_v50 = vor.u32 %v9336_v32, %v9019_v41  ;;  %v8981_v27 = vld [vmem:[#allocation2 + $0x678] sm:$0xf0] }
 0x695   : > { %v5366_v13 = vadd.f32 %v5365_v3, %v5277_v19  ;;  %v5717_v42 = vmax.f32 %v5557_v59, 0.0  ;;  %v5718_v15 = vmax.f32 %v5558_v24, 0.0  ;;  %v9341_v19 = vld [vmem:[#allocation2 + $0x6f4] sm:$0xf]  ;;  %7004 = vmatpush.bf16.msrb.mxu1 %v9020_v50 }
 0x696   : > { %v11991_v59 = vld [vmem:[#allocation26_spill] sm:$0xff] }
 0x697   : > { %v11051_v7 = vpack.c.bf16 %v5717_v42, %v5715_v4  ;;  %v11053_v17 = vpack.c.bf16 %v5718_v15, %v5716_v30  ;;  %v5430_v62 = vpack.c.bf16 %v5366_v13, %v10825_v0  ;;  %v8984_v42 = vor.u32 %v9325_v54, %v8981_v27 }
 0x699   : > { %6016 = vmatmul.bf16.gmra.mxu0 %v11051_v7  ;;  %6105 = vmatmul.bf16.gmra.mxu1 %v11053_v17  ;;  %v5493_v8 = vunpack.c.l.bf16 %v5430_v62  ;;  %v5494_v44 = vunpack.c.h.bf16 %v5430_v62 }
 0x69a   : > { %v5278_v46 = vpop.f32.mrf.mxu2  ;;  %v5372_v3 = vpop.f32.mrf.mxu3  ;;  %7090 = vmatpush.bf16.msrb.mxu2 %v8984_v42  ;;  %v9318_v42 = vld [vmem:[#allocation2 + $0x634] sm:$0xf0] }
 0x69b   : > { %v5279_v43 = vadd.f32 %v5278_v46, %v11987_v12  ;;  %v5559_v22 = vadd.f32 %v10973_v53, %v5493_v8  ;;  %v5560_v58 = vadd.f32 %v10975_v61, %v5494_v44  ;;  %v5106_v12 = vadd.f32 %v11992_v60, %v10846_v28  ;;  %v11993_v8 = vld [vmem:[#allocation29_spill] sm:$0xff]  ;;  %v11994_v44 = vld [vmem:[#allocation27_spill] sm:$0xff] }
 0x69d   : > { %v5368_v0 = vadd.f32 %v5367_v63, %v5279_v43  ;;  %v9045_v63 = vld [vmem:[#allocation2 + $0x6f8] sm:$0xf0]  ;;  %v5719_v30 = vmax.f32 %v5559_v22, 0.0  ;;  %v5720_v39 = vmax.f32 %v5560_v58, 0.0  ;;  %v11995_v22 = vld [vmem:[#allocation17_spill] sm:$0xff] }
 0x69e   : > { %v9048_v15 = vor.u32 %v9341_v19, %v9045_v63 }
 0x69f   : > { %v5431_v51 = vpack.c.bf16 %v5368_v0, %v5190_v52  ;;  %5320 = vmatmul.bf16.gmra.mxu2 %v11989_v40  ;;  %5414 = vmatmul.bf16.gmra.mxu3 %v11990_v34  ;;  %v5195_v0 = vadd.f32 %v11994_v44, %v5106_v12  ;;  %v9334_v44 = vld [vmem:[#allocation2 + $0x6b4] sm:$0xf0] }
 0x6a0   : > { %7179 = vmatpush.bf16.msra.mxu3 %v9048_v15 }
 0x6a1   : > { %v5495_v48 = vunpack.c.l.bf16 %v5431_v51  ;;  %v5496_v11 = vunpack.c.h.bf16 %v5431_v51 }
 0x6a2   : > { %v5281_v1 = vpop.f32.mrf.mxu2  ;;  %v5375_v18 = vpop.f32.mrf.mxu3 }
 0x6a3   : > { %v5282_v24 = vadd.f32 %v5281_v1, %v11991_v59  ;;  %v5561_v4 = vadd.f32 %v10973_v53, %v5495_v48  ;;  %v5562_v13 = vadd.f32 %v10975_v61, %v5496_v11 }
 0x6a5   : > { %v5371_v62 = vadd.f32 %v5370_v56, %v5282_v24  ;;  %v5721_v45 = vmax.f32 %v5561_v4, 0.0  ;;  %v5722_v38 = vmax.f32 %v5562_v13, 0.0  ;;  %v11996_v4 = vld [vmem:[#allocation30_spill] sm:$0xff] }
 0x6a6   : > { %v5111_v13 = vadd.f32 %v11996_v4, %v10861_v37 }
 0x6a7   : > { %v11069_v47 = vpack.c.bf16 %v5721_v45, %v5719_v30  ;;  %v11071_v35 = vpack.c.bf16 %v5722_v38, %v5720_v39  ;;  %v5432_v46 = vpack.c.bf16 %v5371_v62, %v10842_v20  ;;  %v11997_v62 = vld [vmem:[#allocation31_spill] sm:$0xff]  ;;  %v11998_v38 = vld [vmem:[#allocation8_spill] sm:$0xff] }
 0x6a9   : > { %6021 = vmatmul.bf16.gmra.mxu0 %v11069_v47  ;;  %6110 = vmatmul.bf16.gmra.mxu1 %v11071_v35  ;;  %v5497_v52 = vunpack.c.l.bf16 %v5432_v46  ;;  %v5498_v51 = vunpack.c.h.bf16 %v5432_v46  ;;  %v5200_v46 = vadd.f32 %v11998_v38, %v5111_v13  ;;  %v11116_v38 = vpop.f32.mrf.mxu0 }
 0x6aa   : > { %v5283_v43 = vpop.f32.mrf.mxu2  ;;  %v5377_v56 = vpop.f32.mrf.mxu3 }
 0x6ab   : > { %v5284_v9 = vadd.f32 %v5283_v43, %v11993_v8  ;;  %v5563_v28 = vadd.f32 %v10973_v53, %v5497_v52  ;;  %v5564_v11 = vadd.f32 %v10975_v61, %v5498_v51  ;;  %v9011_v52 = vld [vmem:[#allocation2 + $0x6b0] sm:$0xf] }
 0x6ad   : > { %v5373_v40 = vadd.f32 %v5372_v3, %v5284_v9  ;;  %v5723_v3 = vmax.f32 %v5563_v28, 0.0  ;;  %v5724_v19 = vmax.f32 %v5564_v11, 0.0  ;;  %v9339_v28 = vld [vmem:[#allocation2 + $0x6e4] sm:$0xf] }
 0x6af   : > { %v5433_v34 = vpack.c.bf16 %v5373_v40, %v5195_v0  ;;  %5325 = vmatmul.bf16.gmra.mxu2 %v11995_v22  ;;  %6263 = vmatmul.bf16.vlgmr.msrb.gmra.mxu3 %v10987_v10  ;;  %v9323_v0 = vld [vmem:[#allocation2 + $0x664] sm:$0xf]  ;;  %v8973_v22 = vld [vmem:[#allocation2 + $0x668] sm:$0xf0] }
 0x6b0   : > { %v8976_v11 = vor.u32 %v9323_v0, %v8973_v22 }
 0x6b1   : > { %v5499_v20 = vunpack.c.l.bf16 %v5433_v34  ;;  %v5500_v48 = vunpack.c.h.bf16 %v5433_v34  ;;  %v9012_v34 = vor.u32 %v9334_v44, %v9011_v52 }
 0x6b2   : > { %v5286_v58 = vpop.f32.mrf.mxu2  ;;  %v5380_v41 = vpop.f32.mrf.mxu3  ;;  %7091 = vmatpush.bf16.msrb.mxu2 %v8976_v11 }
 0x6b3   : > { %v5287_v32 = vadd.f32 %v5286_v58, %v10840_v14  ;;  %v5565_v54 = vadd.f32 %v10973_v53, %v5499_v20  ;;  %v5566_v1 = vadd.f32 %v10975_v61, %v5500_v48  ;;  %v8947_v14 = vld [vmem:[#allocation2 + $0x630] sm:$0xf]  ;;  %v11999_v20 = vld [vmem:[#allocation33_spill] sm:$0xff]  ;;  %7005 = vmatpush.bf16.msrb.mxu1 %v9012_v34 }
 0x6b4   : > { %v8948_v15 = vor.u32 %v9318_v42, %v8947_v14  ;;  %v12001_v14 = vld [vmem:[#allocation35_spill] sm:$0xff] }
 0x6b5   : > { %v5376_v50 = vadd.f32 %v5375_v18, %v5287_v32  ;;  %v5725_v27 = vmax.f32 %v5565_v54, 0.0  ;;  %v5726_v63 = vmax.f32 %v5566_v1, 0.0 }
 0x6b6   : > { %6916 = vmatpush.bf16.msrb.mxu0 %v8948_v15  ;;  %v12002_v15 = vld [vmem:[#allocation34_spill] sm:$0xff] }
 0x6b7   : > { %v11087_v10 = vpack.c.bf16 %v5725_v27, %v5723_v3  ;;  %v11089_v59 = vpack.c.bf16 %v5726_v63, %v5724_v19  ;;  %v5434_v24 = vpack.c.bf16 %v5376_v50, %v10857_v49 }
 0x6b9   : > { %6026 = vmatmul.bf16.gmra.mxu0 %v11087_v10  ;;  %6115 = vmatmul.bf16.gmra.mxu1 %v11089_v59  ;;  %v5501_v39 = vunpack.c.l.bf16 %v5434_v24  ;;  %v5502_v60 = vunpack.c.h.bf16 %v5434_v24  ;;  %v12000_v24 = vld [vmem:[#allocation32_spill] sm:$0xff] }
 0x6ba   : > { %v5288_v30 = vpop.f32.mrf.mxu2  ;;  %v5382_v18 = vpop.f32.mrf.mxu3  ;;  %v5116_v4 = vadd.f32 %v12000_v24, %v10875_v26 }
 0x6bb   : > { %v5289_v45 = vadd.f32 %v5288_v30, %v11997_v62  ;;  %v5567_v37 = vadd.f32 %v10973_v53, %v5501_v39  ;;  %v5568_v9 = vadd.f32 %v10975_v61, %v5502_v60 }
 0x6bc   : > { %v5205_v62 = vadd.f32 %v12002_v15, %v5116_v4 }
 0x6bd   : > { %v5378_v49 = vadd.f32 %v5377_v56, %v5289_v45  ;;  %v9037_v56 = vld [vmem:[#allocation2 + $0x6e8] sm:$0xf0]  ;;  %v5727_v58 = vmax.f32 %v5567_v37, 0.0  ;;  %v5728_v3 = vmax.f32 %v5568_v9, 0.0 }
 0x6be   : > { %v9040_v32 = vor.u32 %v9339_v28, %v9037_v56 }
 0x6bf   : > { %v5435_v12 = vpack.c.bf16 %v5378_v49, %v5200_v46  ;;  %6174 = vmatmul.bf16.vlgmr.msra.gmra.mxu2 %v10985_v21  ;;  %6268 = vmatmul.bf16.gmra.mxu3 %v11003_v2  ;;  %v11118_v46 = vpop.f32.mrf.mxu1 }
 0x6c0   : > { %7180 = vmatpush.bf16.msra.mxu3 %v9040_v32  ;;  %v12004_v32 = vld [vmem:[#allocation38_spill] sm:$0xff] }
 0x6c1   : > { %v5503_v43 = vunpack.c.l.bf16 %v5435_v12  ;;  %v5504_v8 = vunpack.c.h.bf16 %v5435_v12 }
 0x6c2   : > { %v5291_v51 = vpop.f32.mrf.mxu2  ;;  %v5385_v40 = vpop.f32.mrf.mxu3 }
 0x6c3   : > { %v5292_v48 = vadd.f32 %v5291_v51, %v11999_v20  ;;  %v5569_v21 = vadd.f32 %v10973_v53, %v5503_v43  ;;  %v5570_v2 = vadd.f32 %v10975_v61, %v5504_v8 }
 0x6c5   : > { %v5381_v54 = vadd.f32 %v5380_v41, %v5292_v48  ;;  %v5729_v1 = vmax.f32 %v5569_v21, 0.0  ;;  %v5730_v50 = vmax.f32 %v5570_v2, 0.0  ;;  %v9316_v21 = vld [vmem:[#allocation2 + $0x624] sm:$0xf0] }
 0x6c7   : > { %v11105_v27 = vpack.c.bf16 %v5729_v1, %v5727_v58  ;;  %v11107_v19 = vpack.c.bf16 %v5730_v50, %v5728_v3  ;;  %v5436_v63 = vpack.c.bf16 %v5381_v54, %v10871_v33  ;;  %v12005_v3 = vld [vmem:[#allocation37_spill] sm:$0xff] }
 0x6c9   : > { %6031 = vmatmul.bf16.gmra.mxu0 %v11105_v27  ;;  %6120 = vmatmul.bf16.gmra.mxu1 %v11107_v19  ;;  %v5505_v30 = vunpack.c.l.bf16 %v5436_v63  ;;  %v5506_v45 = vunpack.c.h.bf16 %v5436_v63 }
 0x6ca   : > { %v5293_v13 = vpop.f32.mrf.mxu2  ;;  %v5387_v41 = vpop.f32.mrf.mxu3 }
 0x6cb   : > { %v5294_v42 = vadd.f32 %v5293_v13, %v12001_v14  ;;  %v5571_v26 = vadd.f32 %v10973_v53, %v5505_v30  ;;  %v5572_v12 = vadd.f32 %v10975_v61, %v5506_v45  ;;  %v9332_v45 = vld [vmem:[#allocation2 + $0x6a4] sm:$0xf0] }
 0x6cd   : > { %v5383_v39 = vadd.f32 %v5382_v18, %v5294_v42  ;;  %v5731_v52 = vmax.f32 %v5571_v26, 0.0 }
 0x6cf   : > { %v5437_v33 = vpack.c.bf16 %v5383_v39, %v5205_v62  ;;  %6179 = vmatmul.bf16.gmra.mxu2 %v11001_v55  ;;  %6273 = vmatmul.bf16.gmra.mxu3 %v11019_v23  ;;  %v5732_v55 = vmax.f32 %v5572_v12, 0.0  ;;  %v9003_v62 = vld [vmem:[#allocation2 + $0x6a0] sm:$0xf]  ;;  %v9321_v39 = vld [vmem:[#allocation2 + $0x654] sm:$0xf] }
 0x6d0   : > { %v9004_v26 = vor.u32 %v9332_v45, %v9003_v62  ;;  %v9029_v12 = vld [vmem:[#allocation2 + $0x6d8] sm:$0xf0] }
 0x6d1   : > { %v5507_v60 = vunpack.c.l.bf16 %v5437_v33  ;;  %v5508_v49 = vunpack.c.h.bf16 %v5437_v33  ;;  %v12010_v45 = vld [vmem:[#allocation43_spill] sm:$0xff] }
 0x6d2   : > { %v5296_v37 = vpop.f32.mrf.mxu2  ;;  %v5390_v43 = vpop.f32.mrf.mxu3  ;;  %7006 = vmatpush.bf16.msrb.mxu1 %v9004_v26 }
 0x6d3   : > { %v5297_v8 = vadd.f32 %v5296_v37, %v10867_v29  ;;  %v5573_v18 = vadd.f32 %v10973_v53, %v5507_v60  ;;  %v5574_v9 = vadd.f32 %v10975_v61, %v5508_v49  ;;  %v12003_v29 = vld [vmem:[#allocation36_spill] sm:$0xff]  ;;  %v8965_v60 = vld [vmem:[#allocation2 + $0x658] sm:$0xf0]  ;;  %v9337_v49 = vld [vmem:[#allocation2 + $0x6d4] sm:$0xf] }
 0x6d4   : > { %v5121_v48 = vadd.f32 %v12003_v29, %v10889_v31  ;;  %v12006_v37 = vld [vmem:[#allocation39_spill] sm:$0xff] }
 0x6d5   : > { %v5386_v44 = vadd.f32 %v5385_v40, %v5297_v8  ;;  %v5733_v0 = vmax.f32 %v5573_v18, 0.0  ;;  %v5734_v51 = vmax.f32 %v5574_v9, 0.0  ;;  %v8939_v40 = vld [vmem:[#allocation2 + $0x620] sm:$0xf]  ;;  %v8968_v18 = vor.u32 %v9321_v39, %v8965_v60 }
 0x6d6   : > { %v5997_v23 = vpop.f32.mrf.mxu0  ;;  %v6086_v34 = vpop.f32.mrf.mxu1  ;;  %v8940_v58 = vor.u32 %v9316_v21, %v8939_v40  ;;  %v5210_v50 = vadd.f32 %v12005_v3, %v5121_v48  ;;  %v12007_v21 = vld [vmem:[#allocation40_spill] sm:$0xff]  ;;  %v12009_v3 = vld [vmem:[#allocation41_spill] sm:$0xff] }
 0x6d7   : > { %v11127_v22 = vadd.f32 %v6086_v34, %v5997_v23  ;;  %v11129_v28 = vpack.c.bf16 %v5733_v0, %v5731_v52  ;;  %v11131_v56 = vpack.c.bf16 %v5734_v51, %v5732_v55  ;;  %v5438_v20 = vpack.c.bf16 %v5386_v44, %v10883_v57  ;;  %7092 = vmatpush.bf16.msrb.mxu2 %v8968_v18  ;;  %v12011_v18 = vld [vmem:[#allocation48_spill] sm:$0xff] }
 0x6d8   : > { %6917 = vmatpush.bf16.msrb.mxu0 %v8940_v58  ;;  %v9032_v52 = vor.u32 %v9337_v49, %v9029_v12 }
 0x6d9   : > { %6036 = vmatmul.bf16.gmra.mxu0 %v11129_v28  ;;  %6125 = vmatmul.bf16.gmra.mxu1 %v11131_v56  ;;  %v5509_v1 = vunpack.c.l.bf16 %v5438_v20  ;;  %v5510_v63 = vunpack.c.h.bf16 %v5438_v20 }
 0x6da   : > { %v5298_v2 = vpop.f32.mrf.mxu2  ;;  %v5392_v11 = vpop.f32.mrf.mxu3  ;;  %7181 = vmatpush.bf16.msra.mxu3 %v9032_v52  ;;  %v12012_v52 = vld [vmem:[#allocation49_spill] sm:$0xff] }
 0x6db   : > { %v5299_v54 = vadd.f32 %v5298_v2, %v12004_v32  ;;  %v5575_v14 = vadd.f32 %v10973_v53, %v5509_v1  ;;  %v5576_v15 = vadd.f32 %v10975_v61, %v5510_v63  ;;  %v5126_v2 = vadd.f32 %v12007_v21, %v10899_v36  ;;  %v12008_v32 = vld [vmem:[#allocation42_spill] sm:$0xff] }
 0x6dd   : > { %v5388_v57 = vadd.f32 %v5387_v41, %v5299_v54  ;;  %v5735_v9 = vmax.f32 %v5575_v14, 0.0  ;;  %v5736_v55 = vmax.f32 %v5576_v15, 0.0 }
 0x6de   : > { %v5999_v24 = vpop.f32.mrf.mxu0  ;;  %v6088_v4 = vpop.f32.mrf.mxu1 }
 0x6df   : > { %v5439_v31 = vpack.c.bf16 %v5388_v57, %v5210_v50  ;;  %v11140_v13 = vadd.f32 %v6088_v4, %v5999_v24  ;;  %6184 = vmatmul.bf16.gmra.mxu2 %v11017_v6  ;;  %6278 = vmatmul.bf16.gmra.mxu3 %v11035_v5  ;;  %v5215_v50 = vadd.f32 %v12009_v3, %v5126_v2 }
 0x6e1   : > { %v5511_v42 = vunpack.c.l.bf16 %v5439_v31  ;;  %v5512_v30 = vunpack.c.h.bf16 %v5439_v31 }
 0x6e2   : > { %v5301_v33 = vpop.f32.mrf.mxu2  ;;  %v5395_v41 = vpop.f32.mrf.mxu3 }
 0x6e3   : > { %v5302_v8 = vadd.f32 %v5301_v33, %v12006_v37  ;;  %v5577_v6 = vadd.f32 %v10973_v53, %v5511_v42  ;;  %v5578_v5 = vadd.f32 %v10975_v61, %v5512_v30 }
 0x6e5   : > { %v5391_v44 = vadd.f32 %v5390_v43, %v5302_v8  ;;  %v5737_v0 = vmax.f32 %v5577_v6, 0.0  ;;  %v5738_v51 = vmax.f32 %v5578_v5, 0.0 }
 0x6e6   : > { %v6002_v23 = vpop.f32.mrf.mxu0  ;;  %v6091_v34 = vpop.f32.mrf.mxu1 }
 0x6e7   : > { %v11149_v20 = vadd.f32 %v6091_v34, %v6002_v23  ;;  %v11151_v29 = vpack.c.bf16 %v5737_v0, %v5735_v9  ;;  %v11153_v48 = vpack.c.bf16 %v5738_v51, %v5736_v55  ;;  %v5440_v40 = vpack.c.bf16 %v5391_v44, %v10897_v16  ;;  %v12013_v44 = vld [vmem:[#allocation45_spill] sm:$0xff]  ;;  %v9314_v55 = vld [vmem:[#allocation2 + $0x614] sm:$0xf0] }
 0x6e8   : > { %v5131_v0 = vadd.f32 %v12013_v44, %v12012_v52 }
 0x6e9   : > { %6041 = vmatmul.bf16.gmra.mxu0 %v11151_v29  ;;  %6130 = vmatmul.bf16.gmra.mxu1 %v11153_v48  ;;  %v5513_v1 = vunpack.c.l.bf16 %v5440_v40  ;;  %v5514_v63 = vunpack.c.h.bf16 %v5440_v40  ;;  %v12014_v40 = vld [vmem:[#allocation44_spill] sm:$0xff] }
 0x6ea   : > { %v5303_v43 = vpop.f32.mrf.mxu2  ;;  %v5397_v58 = vpop.f32.mrf.mxu3 }
 0x6eb   : > { %v5304_v54 = vadd.f32 %v5303_v43, %v12008_v32  ;;  %v5579_v36 = vadd.f32 %v10973_v53, %v5513_v1  ;;  %v5580_v30 = vadd.f32 %v10975_v61, %v5514_v63  ;;  %v12015_v43 = vld [vmem:[#allocation46_spill] sm:$0xff] }
 0x6ec   : > { %v5220_v32 = vadd.f32 %v12015_v43, %v5131_v0 }
 0x6ed   : > { %v5393_v57 = vadd.f32 %v5392_v11, %v5304_v54  ;;  %v5739_v26 = vmax.f32 %v5579_v36, 0.0 }
 0x6ee   : > { %v6004_v24 = vpop.f32.mrf.mxu0  ;;  %v6093_v4 = vpop.f32.mrf.mxu1 }
 0x6ef   : > { %v5441_v31 = vpack.c.bf16 %v5393_v57, %v5215_v50  ;;  %v11162_v16 = vadd.f32 %v6093_v4, %v6004_v24  ;;  %6189 = vmatmul.bf16.gmra.mxu2 %v11033_v25  ;;  %6283 = vmatmul.bf16.gmra.mxu3 %v11053_v17  ;;  %v5740_v25 = vmax.f32 %v5580_v30, 0.0  ;;  %v9319_v30 = vld [vmem:[#allocation2 + $0x644] sm:$0xf] }
 0x6f1   : > { %v5515_v14 = vunpack.c.l.bf16 %v5441_v31  ;;  %v5516_v42 = vunpack.c.h.bf16 %v5441_v31 }
 0x6f2   : > { %v5306_v15 = vpop.f32.mrf.mxu2  ;;  %v5400_v62 = vpop.f32.mrf.mxu3 }
 0x6f3   : > { %v5307_v39 = vadd.f32 %v5306_v15, %v12010_v45  ;;  %v5581_v11 = vadd.f32 %v10973_v53, %v5515_v14  ;;  %v5582_v33 = vadd.f32 %v10975_v61, %v5516_v42  ;;  %v8995_v14 = vld [vmem:[#allocation2 + $0x690] sm:$0xf]  ;;  %v9330_v42 = vld [vmem:[#allocation2 + $0x694] sm:$0xf0] }
 0x6f4   : > { %v8996_v45 = vor.u32 %v9330_v42, %v8995_v14 }
 0x6f5   : > { %v5396_v60 = vadd.f32 %v5395_v41, %v5307_v39  ;;  %v5741_v49 = vmax.f32 %v5581_v11, 0.0  ;;  %v5742_v12 = vmax.f32 %v5582_v33, 0.0  ;;  %v8931_v41 = vld [vmem:[#allocation2 + $0x610] sm:$0xf]  ;;  %v8957_v39 = vld [vmem:[#allocation2 + $0x648] sm:$0xf0] }
 0x6f6   : > { %v6007_v17 = vpop.f32.mrf.mxu0  ;;  %v6096_v37 = vpop.f32.mrf.mxu1  ;;  %v8932_v34 = vor.u32 %v9314_v55, %v8931_v41  ;;  %v9335_v11 = vld [vmem:[#allocation2 + $0x6c4] sm:$0xf]  ;;  %v9021_v33 = vld [vmem:[#allocation2 + $0x6c8] sm:$0xf0]  ;;  %7007 = vmatpush.bf16.msrb.mxu1 %v8996_v45 }
 0x6f7   : > { %v11171_v8 = vadd.f32 %v6096_v37, %v6007_v17  ;;  %v11173_v6 = vpack.c.bf16 %v5741_v49, %v5739_v26  ;;  %v11175_v5 = vpack.c.bf16 %v5742_v12, %v5740_v25  ;;  %v5442_v9 = vpack.c.bf16 %v5396_v60, %v12011_v18  ;;  %v12016_v26 = vld [vmem:[#allocation47_spill] sm:$0xff] }
 0x6f8   : > { %6918 = vmatpush.bf16.msrb.mxu0 %v8932_v34  ;;  %v8960_v49 = vor.u32 %v9319_v30, %v8957_v39  ;;  %v9024_v12 = vor.u32 %v9335_v11, %v9021_v33  ;;  %v12022_v33 = vld [vmem:[#allocation53_spill] sm:$0xff] }
 0x6f9   : > { %6046 = vmatmul.bf16.gmra.mxu0 %v11173_v6  ;;  %6135 = vmatmul.bf16.gmra.mxu1 %v11175_v5  ;;  %v5517_v2 = vunpack.c.l.bf16 %v5442_v9  ;;  %v5518_v54 = vunpack.c.h.bf16 %v5442_v9 }
 0x6fa   : > { %v5308_v51 = vpop.f32.mrf.mxu2  ;;  %v5402_v23 = vpop.f32.mrf.mxu3  ;;  %7093 = vmatpush.bf16.msrb.mxu2 %v8960_v49  ;;  %7182 = vmatpush.bf16.msra.mxu3 %v9024_v12 }
 0x6fb   : > { %v5309_v21 = vadd.f32 %v5308_v51, %v12014_v40  ;;  %v5583_v24 = vadd.f32 %v10973_v53, %v5517_v2  ;;  %v5584_v36 = vadd.f32 %v10975_v61, %v5518_v54  ;;  %v12017_v51 = vld [vmem:[#allocation54_spill] sm:$0xff]  ;;  %v12018_v40 = vld [vmem:[#allocation55_spill] sm:$0xff] }
 0x6fd   : > { %v5398_v1 = vadd.f32 %v5397_v58, %v5309_v21  ;;  %v5743_v25 = vmax.f32 %v5583_v24, 0.0  ;;  %v5744_v18 = vmax.f32 %v5584_v36, 0.0  ;;  %v12019_v21 = vld [vmem:[#allocation51_spill] sm:$0xff] }
 0x6fe   : > { %v6009_v3 = vpop.f32.mrf.mxu0  ;;  %v6098_v50 = vpop.f32.mrf.mxu1  ;;  %v5136_v2 = vadd.f32 %v12019_v21, %v12018_v40  ;;  %v9312_v40 = vld [vmem:[#allocation2 + $0x604] sm:$0xf0] }
 0x6ff   : > { %v5443_v63 = vpack.c.bf16 %v5398_v1, %v5220_v32  ;;  %v11184_v57 = vadd.f32 %v6098_v50, %v6009_v3  ;;  %6194 = vmatmul.bf16.gmra.mxu2 %v11051_v7  ;;  %6288 = vmatmul.bf16.gmra.mxu3 %v11071_v35  ;;  %v12020_v32 = vld [vmem:[#allocation50_spill] sm:$0xff]  ;;  %v12021_v3 = vld [vmem:[#allocation52_spill] sm:$0xff] }
 0x700   : > { %v5225_v50 = vadd.f32 %v12021_v3, %v5136_v2  ;;  %v12027_v3 = vld [vmem:[#allocation59_spill] sm:$0xff] }
 0x701   : > { %v5519_v4 = vunpack.c.l.bf16 %v5443_v63  ;;  %v5520_v31 = vunpack.c.h.bf16 %v5443_v63 }
 0x702   : > { %v5311_v15 = vpop.f32.mrf.mxu2  ;;  %v5405_v58 = vpop.f32.mrf.mxu3 }
 0x703   : > { %v5312_v60 = vadd.f32 %v5311_v15, %v12016_v26  ;;  %v5585_v7 = vadd.f32 %v10973_v53, %v5519_v4  ;;  %v5586_v35 = vadd.f32 %v10975_v61, %v5520_v31 }
 0x705   : > { %v5401_v17 = vadd.f32 %v5400_v62, %v5312_v60  ;;  %v5745_v37 = vmax.f32 %v5585_v7, 0.0  ;;  %v5746_v9 = vmax.f32 %v5586_v35, 0.0 }
 0x706   : > { %v6012_v52 = vpop.f32.mrf.mxu0  ;;  %v6101_v44 = vpop.f32.mrf.mxu1 }
 0x707   : > { %v11193_v0 = vadd.f32 %v6101_v44, %v6012_v52  ;;  %v11195_v41 = vpack.c.bf16 %v5745_v37, %v5743_v25  ;;  %v11197_v55 = vpack.c.bf16 %v5746_v9, %v5744_v18  ;;  %v5444_v34 = vpack.c.bf16 %v5401_v17, %v12017_v51  ;;  %v12023_v9 = vld [vmem:[#allocation60_spill] sm:$0xff]  ;;  %v12024_v44 = vld [vmem:[#allocation61_spill] sm:$0xff]  ;;  %v12025_v51 = vld [vmem:[#allocation58_spill] sm:$0xff] }
 0x709   : > { %6051 = vmatmul.bf16.gmra.mxu0 %v11195_v41  ;;  %6140 = vmatmul.bf16.gmra.mxu1 %v11197_v55  ;;  %v5521_v1 = vunpack.c.l.bf16 %v5444_v34  ;;  %v5522_v63 = vunpack.c.h.bf16 %v5444_v34  ;;  %v5141_v34 = vadd.f32 %v12025_v51, %v12024_v44 }
 0x70a   : > { %v5313_v62 = vpop.f32.mrf.mxu2  ;;  %v5407_v43 = vpop.f32.mrf.mxu3 }
 0x70b   : > { %v5314_v54 = vadd.f32 %v5313_v62, %v12020_v32  ;;  %v5587_v42 = vadd.f32 %v10973_v53, %v5521_v1  ;;  %v5588_v45 = vadd.f32 %v10975_v61, %v5522_v63  ;;  %v12026_v32 = vld [vmem:[#allocation56_spill] sm:$0xff] }
 0x70d   : > { %v5403_v24 = vadd.f32 %v5402_v23, %v5314_v54  ;;  %v5747_v7 = vmax.f32 %v5587_v42, 0.0 }
 0x70e   : > { %v6014_v4 = vpop.f32.mrf.mxu0  ;;  %v6103_v31 = vpop.f32.mrf.mxu1 }
 0x70f   : > { %v5445_v36 = vpack.c.bf16 %v5403_v24, %v5225_v50  ;;  %v11206_v14 = vadd.f32 %v6103_v31, %v6014_v4  ;;  %6199 = vmatmul.bf16.gmra.mxu2 %v11069_v47  ;;  %6293 = vmatmul.bf16.gmra.mxu3 %v11089_v59  ;;  %v5748_v47 = vmax.f32 %v5588_v45, 0.0  ;;  %v5230_v50 = vadd.f32 %v12027_v3, %v5141_v34 }
 0x711   : > { %v5523_v30 = vunpack.c.l.bf16 %v5445_v36  ;;  %v5524_v15 = vunpack.c.h.bf16 %v5445_v36 }
 0x712   : > { %v5316_v39 = vpop.f32.mrf.mxu2  ;;  %v5410_v11 = vpop.f32.mrf.mxu3 }
 0x713   : > { %v5317_v26 = vadd.f32 %v5316_v39, %v12022_v33  ;;  %v5589_v23 = vadd.f32 %v10973_v53, %v5523_v30  ;;  %v5590_v60 = vadd.f32 %v10975_v61, %v5524_v15  ;;  %v8987_v33 = vld [vmem:[#allocation2 + $0x680] sm:$0xf] }
 0x715   : > { %v5406_v35 = vadd.f32 %v5405_v58, %v5317_v26  ;;  %v5749_v49 = vmax.f32 %v5589_v23, 0.0  ;;  %v5750_v25 = vmax.f32 %v5590_v60, 0.0  ;;  %v8923_v58 = vld [vmem:[#allocation2 + $0x600] sm:$0xf]  ;;  %v9328_v26 = vld [vmem:[#allocation2 + $0x684] sm:$0xf0] }
 0x716   : > { %v6017_v59 = vpop.f32.mrf.mxu0  ;;  %v6106_v12 = vpop.f32.mrf.mxu1  ;;  %v8924_v62 = vor.u32 %v9312_v40, %v8923_v58  ;;  %v9317_v23 = vld [vmem:[#allocation2 + $0x634] sm:$0xf] }
 0x717   : > { %v11215_v17 = vadd.f32 %v6106_v12, %v6017_v59  ;;  %v11217_v37 = vpack.c.bf16 %v5749_v49, %v5747_v7  ;;  %v11219_v18 = vpack.c.bf16 %v5750_v25, %v5748_v47  ;;  %v5446_v52 = vpack.c.bf16 %v5406_v35, %v12023_v9  ;;  %v8949_v35 = vld [vmem:[#allocation2 + $0x638] sm:$0xf0]  ;;  %v9333_v49 = vld [vmem:[#allocation2 + $0x6b4] sm:$0xf]  ;;  %v12028_v25 = vld [vmem:[#allocation57_spill] sm:$0xff] }
 0x718   : > { %6919 = vmatpush.bf16.msrb.mxu0 %v8924_v62  ;;  %v8988_v7 = vor.u32 %v9328_v26, %v8987_v33  ;;  %v9013_v47 = vld [vmem:[#allocation2 + $0x6b8] sm:$0xf0]  ;;  %v8952_v12 = vor.u32 %v9317_v23, %v8949_v35  ;;  %v8920_v35 = vld [vmem:[%s11894_s5 + $0xa] sm:$0x3] }
 0x719   : > { %6056 = vmatmul.bf16.gmra.mxu0 %v11217_v37  ;;  %6145 = vmatmul.bf16.gmra.mxu1 %v11219_v18  ;;  %v5525_v1 = vunpack.c.l.bf16 %v5446_v52  ;;  %v5526_v63 = vunpack.c.h.bf16 %v5446_v52  ;;  %v9016_v52 = vor.u32 %v9333_v49, %v9013_v47 }
 0x71a   : > { %v5318_v21 = vpop.f32.mrf.mxu2  ;;  %v5412_v2 = vpop.f32.mrf.mxu3  ;;  %7008 = vmatpush.bf16.msrb.mxu1 %v8988_v7  ;;  %7094 = vmatpush.bf16.msrb.mxu2 %v8952_v12  ;;  %v6380_v12 = vperm.slane %v8920_v35, 1 }
 0x71b   : > { %v5319_v54 = vadd.f32 %v5318_v21, %v12026_v32  ;;  %v5591_v30 = vadd.f32 %v10973_v53, %v5525_v1  ;;  %v5592_v39 = vadd.f32 %v10975_v61, %v5526_v63  ;;  %7183 = vmatpush.bf16.msra.mxu3 %v9016_v52  ;;  %v12029_v1 = vld [vmem:[#allocation64_spill] sm:$0xff]  ;;  %v12031_v63 = vld [vmem:[#allocation65_spill] sm:$0xff] }
 0x71d   : > { %v5408_v24 = vadd.f32 %v5407_v43, %v5319_v54  ;;  %v5751_v9 = vmax.f32 %v5591_v30, 0.0  ;;  %v5752_v34 = vmax.f32 %v5592_v39, 0.0 }
 0x71e   : > { %v6019_v4 = vpop.f32.mrf.mxu0  ;;  %v6108_v31 = vpop.f32.mrf.mxu1 }
 0x71f   : > { %v5447_v36 = vpack.c.bf16 %v5408_v24, %v5230_v50  ;;  %v11228_v42 = vadd.f32 %v6108_v31, %v6019_v4  ;;  %6204 = vmatmul.bf16.gmra.mxu2 %v11087_v10  ;;  %6298 = vmatmul.bf16.gmra.mxu3 %v11107_v19  ;;  %v12030_v50 = vld [vmem:[#allocation67_spill] sm:$0xff]  ;;  %v12032_v31 = vld [vmem:[#allocation62_spill] sm:$0xff] }
 0x720   : > { %v5146_v24 = vadd.f32 %v12031_v63, %v12030_v50 }
 0x721   : > { %v5527_v15 = vunpack.c.l.bf16 %v5447_v36  ;;  %v5528_v45 = vunpack.c.h.bf16 %v5447_v36 }
 0x722   : > { %v5321_v60 = vpop.f32.mrf.mxu2  ;;  %v5415_v43 = vpop.f32.mrf.mxu3 }
 0x723   : > { %v5322_v59 = vadd.f32 %v5321_v60, %v12028_v25  ;;  %v5593_v10 = vadd.f32 %v10973_v53, %v5527_v15  ;;  %v5594_v19 = vadd.f32 %v10975_v61, %v5528_v45  ;;  %v12033_v15 = vld [vmem:[#allocation66_spill] sm:$0xff] }
 0x724   : > { %v5235_v45 = vadd.f32 %v12033_v15, %v5146_v24 }
 0x725   : > { %v5411_v44 = vadd.f32 %v5410_v11, %v5322_v59  ;;  %v5753_v51 = vmax.f32 %v5593_v10, 0.0  ;;  %v5754_v58 = vmax.f32 %v5594_v19, 0.0  ;;  %v6379_v19 = vperm.slane %v8920_v35, 0 }
 0x726   : > { %v6022_v40 = vpop.f32.mrf.mxu0  ;;  %v6111_v21 = vpop.f32.mrf.mxu1 }
 0x727   : > { %v11237_v62 = vadd.f32 %v6111_v21, %v6022_v40  ;;  %v11239_v32 = vpack.c.bf16 %v5753_v51, %v5751_v9  ;;  %v11241_v54 = vpack.c.bf16 %v5754_v58, %v5752_v34  ;;  %v5448_v3 = vpack.c.bf16 %v5411_v44, %v12029_v1  ;;  %v12034_v9 = vld [vmem:[#allocation63_spill] sm:$0xff] }
 0x729   : > { %6061 = vmatmul.bf16.gmra.mxu0 %v11239_v32  ;;  %6150 = vmatmul.bf16.gmra.mxu1 %v11241_v54  ;;  %v5529_v30 = vunpack.c.l.bf16 %v5448_v3  ;;  %v5530_v39 = vunpack.c.h.bf16 %v5448_v3  ;;  %v6383_v3 = vpack.c.bf16 %v6380_v12, %v6379_v19 }
 0x72a   : > { %v5323_v11 = vpop.f32.mrf.mxu2  ;;  %v5417_v4 = vpop.f32.mrf.mxu3 }
 0x72b   : > { %v5324_v36 = vadd.f32 %v5323_v11, %v12032_v31  ;;  %v5595_v49 = vadd.f32 %v10973_v53, %v5529_v30  ;;  %v5596_v59 = vadd.f32 %v10975_v61, %v5530_v39  ;;  %v12035_v11 = vld [vmem:[#allocation70_spill] sm:$0xff]  ;;  %v9350_v39 = vld [vmem:[%s11895_s6 + $0x38] sm:$0xff] }
 0x72c   : > { %v5151_v31 = vadd.f32 %v11116_v38, %v12035_v11  ;;  %7775 = vmatpush.bf16.msra.mxu0 %v9350_v39 }
 0x72d   : > { %v5413_v33 = vadd.f32 %v5412_v2, %v5324_v36  ;;  %v5755_v44 = vmax.f32 %v5595_v49, 0.0  ;;  %v5756_v58 = vmax.f32 %v5596_v59, 0.0  ;;  %v12036_v36 = vld [vmem:[#allocation69_spill] sm:$0xff] }
 0x72e   : > { %v6024_v26 = vpop.f32.mrf.mxu0  ;;  %v6113_v23 = vpop.f32.mrf.mxu1 }
 0x72f   : > { %v5449_v60 = vpack.c.bf16 %v5413_v33, %v5235_v45  ;;  %v11250_v7 = vadd.f32 %v6113_v23, %v6024_v26  ;;  %6209 = vmatmul.bf16.gmra.mxu2 %v11105_v27  ;;  %6303 = vmatmul.bf16.gmra.mxu3 %v11131_v56  ;;  %v6385_v45 = vunpack.c.l.b16 %v6383_v3  ;;  %v12037_v33 = vld [vmem:[#allocation68_spill] sm:$0xff]  ;;  %v6386_v23 = vunpack.c.h.b16 %v6383_v3 }
 0x731   : > { %v5531_v47 = vunpack.c.l.bf16 %v5449_v60  ;;  %v5532_v25 = vunpack.c.h.bf16 %v5449_v60  ;;  %v5240_v60 = vadd.f32 %v11118_v46, %v5151_v31  ;;  %v6387_v59 = vpack.c.b16 %v6385_v45, %v6385_v45  ;;  %v8941_v46 = vld [vmem:[#allocation2 + $0x628] sm:$0xf0] }
 0x732   : > { %v5326_v2 = vpop.f32.mrf.mxu2  ;;  %v6264_v10 = vpop.f32.mrf.mxu3  ;;  %v6388_v12 = vpack.c.b16 %v6386_v23, %v6386_v23 }
 0x733   : > { %v5327_v52 = vadd.f32 %v5326_v2, %v12034_v9  ;;  %v5597_v27 = vadd.f32 %v10973_v53, %v5531_v47  ;;  %v5598_v56 = vadd.f32 %v10975_v61, %v5532_v25  ;;  %v9358_v9 = vld [vmem:[%s11895_s6 + $0x78] sm:$0xff] }
 0x734   : > { %7864 = vmatpush.bf16.msra.mxu1 %v9358_v9  ;;  %v6394_v3 = vpack.i.b16 %v6388_v12, %v6388_v12 }
 0x735   : > { %v5416_v51 = vadd.f32 %v5415_v43, %v5327_v52  ;;  %v5757_v34 = vmax.f32 %v5597_v27, 0.0  ;;  %v5758_v40 = vmax.f32 %v5598_v56, 0.0  ;;  %v9315_v52 = vld [vmem:[#allocation2 + $0x624] sm:$0xf]  ;;  %v9005_v56 = vld [vmem:[#allocation2 + $0x6a8] sm:$0xf0] }
 0x736   : > { %v6027_v21 = vpop.f32.mrf.mxu0  ;;  %v6116_v1 = vpop.f32.mrf.mxu1  ;;  %v8944_v27 = vor.u32 %v9315_v52, %v8941_v46 }
 0x737   : > { %v11262_v50 = vadd.f32 %v6116_v1, %v6027_v21  ;;  %v11264_v63 = vpack.c.bf16 %v5757_v34, %v5755_v44  ;;  %v11266_v24 = vpack.c.bf16 %v5758_v40, %v5756_v58  ;;  %v5450_v30 = vpack.c.bf16 %v5416_v51, %v12036_v36 }
 0x738   : > { %7095 = vmatpush.bf16.msrb.mxu2 %v8944_v27 }
 0x739   : > { %6066 = vmatmul.bf16.gmra.mxu0 %v11264_v63  ;;  %6155 = vmatmul.bf16.gmra.mxu1 %v11266_v24  ;;  %v5533_v38 = vunpack.c.l.bf16 %v5450_v30  ;;  %v5534_v49 = vunpack.c.h.bf16 %v5450_v30 }
 0x73a   : > { %v5328_v43 = vpop.f32.mrf.mxu2  ;;  %v6266_v15 = vpop.f32.mrf.mxu3 }
 0x73b   : > { %v5329_v26 = vadd.f32 %v5328_v43, %v12037_v33  ;;  %v5599_v34 = vadd.f32 %v10973_v53, %v5533_v38 }
 0x73d   : > { %v5418_v35 = vadd.f32 %v5417_v4, %v5329_v26  ;;  %v9331_v4 = vld [vmem:[#allocation2 + $0x6a4] sm:$0xf]  ;;  %v5759_v36 = vmax.f32 %v5599_v34, 0.0 }
 0x73e   : > { %v6029_v47 = vpop.f32.mrf.mxu0  ;;  %v6118_v25 = vpop.f32.mrf.mxu1  ;;  %v9008_v58 = vor.u32 %v9331_v4, %v9005_v56 }
 0x73f   : > { %v5451_v2 = vpack.c.bf16 %v5418_v35, %v5240_v60  ;;  %v11278_v19 = vadd.f32 %v6118_v25, %v6029_v47  ;;  %6214 = vmatmul.bf16.gmra.mxu2 %v11129_v28  ;;  %6308 = vmatmul.bf16.gmra.mxu3 %v11153_v48  ;;  %v6390_v28 = vpack.i.b16 %v6387_v59, %v6387_v59  ;;  %v6396_v60 = vperm.slane %v6394_v3, 0 }
 0x740   : > { %v5600_v48 = vadd.f32 %v10975_v61, %v5534_v49  ;;  %7184 = vmatpush.bf16.msra.mxu3 %v9008_v58 }
 0x741   : > { %v5535_v44 = vunpack.c.l.bf16 %v5451_v2  ;;  %v5536_v51 = vunpack.c.h.bf16 %v5451_v2  ;;  %v6392_v39 = vperm.slane %v6390_v28, 0  ;;  %v11300_v25 = vunpack.c.l.bf16 %v6396_v60 }
 0x742   : > { %v6175_v40 = vpop.f32.mrf.mxu2  ;;  %v6269_v21 = vpop.f32.mrf.mxu3  ;;  %v5760_v23 = vmax.f32 %v5600_v48, 0.0 }
 0x743   : > { %v6265_v1 = vadd.f32 %v6264_v10, %v6175_v40  ;;  %v5601_v11 = vadd.f32 %v10973_v53, %v5535_v44  ;;  %v5602_v31 = vadd.f32 %v10975_v61, %v5536_v51  ;;  %v11297_v61 = vunpack.c.l.bf16 %v6392_v39 }
 0x745   : > { %v5761_v30 = vmax.f32 %v5601_v11, 0.0  ;;  %v5762_v43 = vmax.f32 %v5602_v31, 0.0  ;;  %v6344_v45 = vpack.c.bf16 %v6265_v1, %v11127_v22 }
 0x746   : > { %v6032_v33 = vpop.f32.mrf.mxu0  ;;  %v6121_v26 = vpop.f32.mrf.mxu1 }
 0x747   : > { %v11290_v38 = vadd.f32 %v6121_v26, %v6032_v33  ;;  %v11292_v35 = vpack.c.bf16 %v5761_v30, %v5759_v36  ;;  %v11294_v10 = vpack.c.bf16 %v5762_v43, %v5760_v23  ;;  %v6397_v53 = vunpack.c.l.bf16 %v6344_v45 }
 0x748   : > { %v6398_v47 = vunpack.c.h.bf16 %v6344_v45 }
 0x749   : > { %6071 = vmatmul.bf16.gmra.mxu0 %v11292_v35  ;;  %6160 = vmatmul.bf16.gmra.mxu1 %v11294_v10  ;;  %v6463_v12 = vadd.f32 %v11297_v61, %v6397_v53 }
 0x74a   : > { %v6177_v49 = vpop.f32.mrf.mxu2  ;;  %v6271_v22 = vpop.f32.mrf.mxu3  ;;  %v6464_v46 = vadd.f32 %v11300_v25, %v6398_v47 }
 0x74b   : > { %v6267_v59 = vadd.f32 %v6266_v15, %v6177_v49  ;;  %v6623_v51 = vmax.f32 %v6463_v12, 0.0  ;;  %v9329_v12 = vld [vmem:[#allocation2 + $0x694] sm:$0xf] }
 0x74c   : > { %v6624_v58 = vmax.f32 %v6464_v46, 0.0 }
 0x74d   : > { %v6345_v2 = vpack.c.bf16 %v6267_v59, %v11140_v13  ;;  %v9313_v59 = vld [vmem:[#allocation2 + $0x614] sm:$0xf] }
 0x74e   : > { %v6034_v9 = vpop.f32.mrf.mxu0  ;;  %v6123_v52 = vpop.f32.mrf.mxu1 }
 0x74f   : > { %v6399_v27 = vunpack.c.l.bf16 %v6345_v2  ;;  %v6400_v4 = vunpack.c.h.bf16 %v6345_v2  ;;  %v11305_v56 = vadd.f32 %v6123_v52, %v6034_v9  ;;  %6219 = vmatmul.bf16.gmra.mxu2 %v11151_v29  ;;  %6313 = vmatmul.bf16.gmra.mxu3 %v11175_v5  ;;  %v8997_v9 = vld [vmem:[#allocation2 + $0x698] sm:$0xf0] }
 0x751   : > { %v6465_v44 = vadd.f32 %v11297_v61, %v6399_v27  ;;  %v6466_v15 = vadd.f32 %v11300_v25, %v6400_v4  ;;  %v9000_v27 = vor.u32 %v9329_v12, %v8997_v9 }
 0x752   : > { %v6180_v13 = vpop.f32.mrf.mxu2  ;;  %v6274_v34 = vpop.f32.mrf.mxu3 }
 0x753   : > { %v6625_v40 = vmax.f32 %v6465_v44, 0.0  ;;  %v6626_v28 = vmax.f32 %v6466_v15, 0.0  ;;  %v6270_v48 = vadd.f32 %v6269_v21, %v6180_v13  ;;  %v9349_v21 = vld [vmem:[%s11895_s6 + $0x30] sm:$0xff]  ;;  %7185 = vmatpush.bf16.msra.mxu3 %v9000_v27 }
 0x754   : > { %7776 = vmatpush.bf16.msra.mxu0 %v9349_v21 }
 0x755   : > { %v11311_v1 = vpack.c.bf16 %v6625_v40, %v6623_v51  ;;  %v11313_v3 = vpack.c.bf16 %v6626_v28, %v6624_v58  ;;  %v6346_v11 = vpack.c.bf16 %v6270_v48, %v11149_v20 }
 0x756   : > { %v6037_v29 = vpop.f32.mrf.mxu0  ;;  %v6126_v31 = vpop.f32.mrf.mxu1 }
 0x757   : > { %v11316_v5 = vadd.f32 %v6126_v31, %v6037_v29  ;;  %v6401_v36 = vunpack.c.l.bf16 %v6346_v11  ;;  %v6402_v45 = vunpack.c.h.bf16 %v6346_v11 }
 0x759   : > { %6920 = vmatmul.bf16.vlgmr.msrb.gmra.mxu0 %v11311_v1  ;;  %7009 = vmatmul.bf16.vlgmr.msrb.gmra.mxu1 %v11313_v3  ;;  %v6467_v23 = vadd.f32 %v11297_v61, %v6401_v36  ;;  %v6468_v47 = vadd.f32 %v11300_v25, %v6402_v45 }
 0x75a   : > { %v6182_v30 = vpop.f32.mrf.mxu2  ;;  %v6276_v43 = vpop.f32.mrf.mxu3 }
 0x75b   : > { %v6272_v39 = vadd.f32 %v6271_v22, %v6182_v30  ;;  %v9357_v22 = vld [vmem:[%s11895_s6 + $0x70] sm:$0xff]  ;;  %v6628_v51 = vmax.f32 %v6468_v47, 0.0 }
 0x75c   : > { %7865 = vmatpush.bf16.msra.mxu1 %v9357_v22 }
 0x75d   : > { %v6347_v20 = vpack.c.bf16 %v6272_v39, %v11162_v16  ;;  %v8933_v16 = vld [vmem:[#allocation2 + $0x618] sm:$0xf0] }
 0x75e   : > { %v6039_v33 = vpop.f32.mrf.mxu0  ;;  %v6128_v26 = vpop.f32.mrf.mxu1  ;;  %v8936_v2 = vor.u32 %v9313_v59, %v8933_v16 }
 0x75f   : > { %v6403_v60 = vunpack.c.l.bf16 %v6347_v20  ;;  %v6404_v53 = vunpack.c.h.bf16 %v6347_v20  ;;  %v11325_v49 = vadd.f32 %v6128_v26, %v6039_v33  ;;  %6224 = vmatmul.bf16.gmra.mxu2 %v11173_v6  ;;  %6318 = vmatmul.bf16.gmra.mxu3 %v11197_v55  ;;  %v6627_v55 = vmax.f32 %v6467_v23, 0.0 }
 0x760   : > { %7096 = vmatpush.bf16.msrb.mxu2 %v8936_v2 }
 0x761   : > { %v6469_v52 = vadd.f32 %v11297_v61, %v6403_v60  ;;  %v6470_v46 = vadd.f32 %v11300_v25, %v6404_v53 }
 0x762   : > { %v6185_v6 = vpop.f32.mrf.mxu2  ;;  %v6279_v4 = vpop.f32.mrf.mxu3 }
 0x763   : > { %v6275_v44 = vadd.f32 %v6274_v34, %v6185_v6  ;;  %v6629_v15 = vmax.f32 %v6469_v52, 0.0  ;;  %v6630_v13 = vmax.f32 %v6470_v46, 0.0 }
 0x765   : > { %v11335_v58 = vpack.c.bf16 %v6629_v15, %v6627_v55  ;;  %v11337_v40 = vpack.c.bf16 %v6630_v13, %v6628_v51  ;;  %v6348_v28 = vpack.c.bf16 %v6275_v44, %v11171_v8  ;;  %v9348_v44 = vld [vmem:[%s11895_s6 + $0x28] sm:$0xff] }
 0x766   : > { %v6042_v48 = vpop.f32.mrf.mxu0  ;;  %v6131_v11 = vpop.f32.mrf.mxu1  ;;  %7777 = vmatpush.bf16.msra.mxu0 %v9348_v44 }
 0x767   : > { %v11340_v29 = vadd.f32 %v6131_v11, %v6042_v48  ;;  %v6405_v31 = vunpack.c.l.bf16 %v6348_v28  ;;  %v6406_v30 = vunpack.c.h.bf16 %v6348_v28 }
 0x769   : > { %6925 = vmatmul.bf16.gmra.mxu0 %v11335_v58  ;;  %7014 = vmatmul.bf16.gmra.mxu1 %v11337_v40  ;;  %v6471_v33 = vadd.f32 %v11297_v61, %v6405_v31  ;;  %v6472_v60 = vadd.f32 %v11300_v25, %v6406_v30 }
 0x76a   : > { %v6187_v34 = vpop.f32.mrf.mxu2  ;;  %v6281_v36 = vpop.f32.mrf.mxu3 }
 0x76b   : > { %v6277_v21 = vadd.f32 %v6276_v43, %v6187_v34  ;;  %v6631_v22 = vmax.f32 %v6471_v33, 0.0  ;;  %v6632_v2 = vmax.f32 %v6472_v60, 0.0 }
 0x76d   : > { %v6349_v45 = vpack.c.bf16 %v6277_v21, %v11184_v57  ;;  %v9311_v21 = vld [vmem:[#allocation2 + $0x604] sm:$0xf] }
 0x76e   : > { %v6044_v39 = vpop.f32.mrf.mxu0  ;;  %v6133_v20 = vpop.f32.mrf.mxu1 }
 0x76f   : > { %v6407_v8 = vunpack.c.l.bf16 %v6349_v45  ;;  %v6408_v26 = vunpack.c.h.bf16 %v6349_v45  ;;  %v11346_v23 = vadd.f32 %v6133_v20, %v6044_v39  ;;  %6229 = vmatmul.bf16.gmra.mxu2 %v11195_v41  ;;  %6323 = vmatmul.bf16.gmra.mxu3 %v11219_v18  ;;  %v9327_v39 = vld [vmem:[#allocation2 + $0x684] sm:$0xf]  ;;  %v8989_v20 = vld [vmem:[#allocation2 + $0x688] sm:$0xf0] }
 0x771   : > { %v6473_v53 = vadd.f32 %v11297_v61, %v6407_v8  ;;  %v6474_v43 = vadd.f32 %v11300_v25, %v6408_v26  ;;  %v8992_v26 = vor.u32 %v9327_v39, %v8989_v20 }
 0x772   : > { %v6190_v47 = vpop.f32.mrf.mxu2  ;;  %v6284_v57 = vpop.f32.mrf.mxu3 }
 0x773   : > { %v6280_v59 = vadd.f32 %v6279_v4, %v6190_v47  ;;  %v6633_v16 = vmax.f32 %v6473_v53, 0.0  ;;  %v6634_v12 = vmax.f32 %v6474_v43, 0.0  ;;  %7186 = vmatpush.bf16.msra.mxu3 %v8992_v26 }
 0x775   : > { %v11353_v9 = vpack.c.bf16 %v6633_v16, %v6631_v22  ;;  %v11355_v52 = vpack.c.bf16 %v6634_v12, %v6632_v2  ;;  %v6350_v41 = vpack.c.bf16 %v6280_v59, %v11193_v0 }
 0x776   : > { %v6047_v18 = vpop.f32.mrf.mxu0  ;;  %v6136_v46 = vpop.f32.mrf.mxu1 }
 0x777   : > { %v11358_v27 = vadd.f32 %v6136_v46, %v6047_v18  ;;  %v6409_v6 = vunpack.c.l.bf16 %v6350_v41  ;;  %v6410_v15 = vunpack.c.h.bf16 %v6350_v41 }
 0x779   : > { %6930 = vmatmul.bf16.gmra.mxu0 %v11353_v9  ;;  %7019 = vmatmul.bf16.gmra.mxu1 %v11355_v52  ;;  %v6475_v48 = vadd.f32 %v11297_v61, %v6409_v6  ;;  %v6476_v30 = vadd.f32 %v11300_v25, %v6410_v15 }
 0x77a   : > { %v6192_v55 = vpop.f32.mrf.mxu2  ;;  %v6286_v4 = vpop.f32.mrf.mxu3 }
 0x77b   : > { %v6282_v51 = vadd.f32 %v6281_v36, %v6192_v55  ;;  %v9356_v36 = vld [vmem:[%s11895_s6 + $0x68] sm:$0xff]  ;;  %v6636_v47 = vmax.f32 %v6476_v30, 0.0 }
 0x77c   : > { %7866 = vmatpush.bf16.msra.mxu1 %v9356_v36 }
 0x77d   : > { %v6351_v0 = vpack.c.bf16 %v6282_v51, %v11206_v14  ;;  %v8925_v14 = vld [vmem:[#allocation2 + $0x608] sm:$0xf0] }
 0x77e   : > { %v6049_v13 = vpop.f32.mrf.mxu0  ;;  %v6138_v28 = vpop.f32.mrf.mxu1  ;;  %v8928_v45 = vor.u32 %v9311_v21, %v8925_v14 }
 0x77f   : > { %v6411_v11 = vunpack.c.l.bf16 %v6351_v0  ;;  %v6412_v31 = vunpack.c.h.bf16 %v6351_v0  ;;  %v11367_v34 = vadd.f32 %v6138_v28, %v6049_v13  ;;  %6234 = vmatmul.bf16.gmra.mxu2 %v11217_v37  ;;  %6328 = vmatmul.bf16.gmra.mxu3 %v11241_v54  ;;  %v6635_v54 = vmax.f32 %v6475_v48, 0.0 }
 0x780   : > { %7097 = vmatpush.bf16.msrb.mxu2 %v8928_v45 }
 0x781   : > { %v6477_v33 = vadd.f32 %v11297_v61, %v6411_v11  ;;  %v6478_v8 = vadd.f32 %v11300_v25, %v6412_v31 }
 0x782   : > { %v6195_v37 = vpop.f32.mrf.mxu2  ;;  %v6289_v60 = vpop.f32.mrf.mxu3 }
 0x783   : > { %v6285_v53 = vadd.f32 %v6284_v57, %v6195_v37  ;;  %v6637_v43 = vmax.f32 %v6477_v33, 0.0  ;;  %v6638_v22 = vmax.f32 %v6478_v8, 0.0 }
 0x785   : > { %v11377_v59 = vpack.c.bf16 %v6637_v43, %v6635_v54  ;;  %v11379_v16 = vpack.c.bf16 %v6638_v22, %v6636_v47  ;;  %v6352_v2 = vpack.c.bf16 %v6285_v53, %v11215_v17  ;;  %v9347_v53 = vld [vmem:[%s11895_s6 + $0x20] sm:$0xff] }
 0x786   : > { %v6052_v12 = vpop.f32.mrf.mxu0  ;;  %v6141_v41 = vpop.f32.mrf.mxu1  ;;  %7778 = vmatpush.bf16.msra.mxu0 %v9347_v53 }
 0x787   : > { %v11382_v18 = vadd.f32 %v6141_v41, %v6052_v12  ;;  %v6413_v46 = vunpack.c.l.bf16 %v6352_v2  ;;  %v6414_v55 = vunpack.c.h.bf16 %v6352_v2 }
 0x789   : > { %6935 = vmatmul.bf16.gmra.mxu0 %v11377_v59  ;;  %7024 = vmatmul.bf16.gmra.mxu1 %v11379_v16  ;;  %v6479_v13 = vadd.f32 %v11297_v61, %v6413_v46  ;;  %v6480_v11 = vadd.f32 %v11300_v25, %v6414_v55 }
 0x78a   : > { %v6197_v57 = vpop.f32.mrf.mxu2  ;;  %v6291_v6 = vpop.f32.mrf.mxu3 }
 0x78b   : > { %v6287_v44 = vadd.f32 %v6286_v4, %v6197_v57  ;;  %v6639_v36 = vmax.f32 %v6479_v13, 0.0  ;;  %v6640_v45 = vmax.f32 %v6480_v11, 0.0 }
 0x78d   : > { %v6353_v15 = vpack.c.bf16 %v6287_v44, %v11228_v42 }
 0x78e   : > { %v6054_v51 = vpop.f32.mrf.mxu0  ;;  %v6143_v0 = vpop.f32.mrf.mxu1 }
 0x78f   : > { %v6415_v17 = vunpack.c.l.bf16 %v6353_v15  ;;  %v6416_v28 = vunpack.c.h.bf16 %v6353_v15  ;;  %v11388_v48 = vadd.f32 %v6143_v0, %v6054_v51  ;;  %6239 = vmatmul.bf16.gmra.mxu2 %v11239_v32  ;;  %6333 = vmatmul.bf16.gmra.mxu3 %v11266_v24 }
 0x791   : > { %v6481_v31 = vadd.f32 %v11297_v61, %v6415_v17  ;;  %v6482_v4 = vadd.f32 %v11300_v25, %v6416_v28 }
 0x792   : > { %v6200_v30 = vpop.f32.mrf.mxu2  ;;  %v6294_v42 = vpop.f32.mrf.mxu3 }
 0x793   : > { %v6290_v21 = vadd.f32 %v6289_v60, %v6200_v30  ;;  %v6641_v14 = vmax.f32 %v6481_v31, 0.0  ;;  %v6642_v39 = vmax.f32 %v6482_v4, 0.0 }
 0x795   : > { %v11395_v20 = vpack.c.bf16 %v6641_v14, %v6639_v36  ;;  %v11397_v33 = vpack.c.bf16 %v6642_v39, %v6640_v45  ;;  %v6354_v32 = vpack.c.bf16 %v6290_v21, %v11237_v62 }
 0x796   : > { %v6057_v24 = vpop.f32.mrf.mxu0  ;;  %v6146_v8 = vpop.f32.mrf.mxu1 }
 0x797   : > { %v11400_v26 = vadd.f32 %v6146_v8, %v6057_v24  ;;  %v6417_v37 = vunpack.c.l.bf16 %v6354_v32  ;;  %v6418_v43 = vunpack.c.h.bf16 %v6354_v32 }
 0x799   : > { %6940 = vmatmul.bf16.gmra.mxu0 %v11395_v20  ;;  %7029 = vmatmul.bf16.gmra.mxu1 %v11397_v33  ;;  %v6483_v12 = vadd.f32 %v11297_v61, %v6417_v37  ;;  %v6484_v55 = vadd.f32 %v11300_v25, %v6418_v43 }
 0x79a   : > { %v6202_v54 = vpop.f32.mrf.mxu2  ;;  %v6296_v60 = vpop.f32.mrf.mxu3 }
 0x79b   : > { %v6292_v47 = vadd.f32 %v6291_v6, %v6202_v54  ;;  %v9355_v6 = vld [vmem:[%s11895_s6 + $0x60] sm:$0xff]  ;;  %v6643_v0 = vmax.f32 %v6483_v12, 0.0  ;;  %v6644_v28 = vmax.f32 %v6484_v55, 0.0 }
 0x79c   : > { %7867 = vmatpush.bf16.msra.mxu1 %v9355_v6 }
 0x79d   : > { %v6355_v62 = vpack.c.bf16 %v6292_v47, %v11250_v7 }
 0x79e   : > { %v6059_v22 = vpop.f32.mrf.mxu0  ;;  %v6148_v2 = vpop.f32.mrf.mxu1 }
 0x79f   : > { %v6419_v41 = vunpack.c.l.bf16 %v6355_v62  ;;  %v6420_v46 = vunpack.c.h.bf16 %v6355_v62  ;;  %v11409_v57 = vadd.f32 %v6148_v2, %v6059_v22  ;;  %6244 = vmatmul.bf16.gmra.mxu2 %v11264_v63  ;;  %6338 = vmatmul.bf16.gmra.mxu3 %v11294_v10 }
 0x7a1   : > { %v6485_v7 = vadd.f32 %v11297_v61, %v6419_v41  ;;  %v6486_v44 = vadd.f32 %v11300_v25, %v6420_v46 }
 0x7a2   : > { %v6205_v15 = vpop.f32.mrf.mxu2  ;;  %v6299_v51 = vpop.f32.mrf.mxu3 }
 0x7a3   : > { %v6295_v13 = vadd.f32 %v6294_v42, %v6205_v15  ;;  %v6645_v17 = vmax.f32 %v6485_v7, 0.0  ;;  %v6646_v63 = vmax.f32 %v6486_v44, 0.0 }
 0x7a5   : > { %v11419_v11 = vpack.c.bf16 %v6645_v17, %v6643_v0  ;;  %v11421_v10 = vpack.c.bf16 %v6646_v63, %v6644_v28  ;;  %v6356_v31 = vpack.c.bf16 %v6295_v13, %v11262_v50  ;;  %v9346_v13 = vld [vmem:[%s11895_s6 + $0x18] sm:$0xff] }
 0x7a6   : > { %v6062_v4 = vpop.f32.mrf.mxu0  ;;  %v6151_v30 = vpop.f32.mrf.mxu1  ;;  %7779 = vmatpush.bf16.msra.mxu0 %v9346_v13 }
 0x7a7   : > { %v11424_v36 = vadd.f32 %v6151_v30, %v6062_v4  ;;  %v6421_v21 = vunpack.c.l.bf16 %v6356_v31  ;;  %v6422_v45 = vunpack.c.h.bf16 %v6356_v31 }
 0x7a9   : > { %6945 = vmatmul.bf16.gmra.mxu0 %v11419_v11  ;;  %7034 = vmatmul.bf16.gmra.mxu1 %v11421_v10  ;;  %v6487_v37 = vadd.f32 %v11297_v61, %v6421_v21  ;;  %v6488_v43 = vadd.f32 %v11300_v25, %v6422_v45 }
 0x7aa   : > { %v6207_v14 = vpop.f32.mrf.mxu2  ;;  %v6301_v42 = vpop.f32.mrf.mxu3 }
 0x7ab   : > { %v6297_v39 = vadd.f32 %v6296_v60, %v6207_v14  ;;  %v6647_v22 = vmax.f32 %v6487_v37, 0.0  ;;  %v6648_v41 = vmax.f32 %v6488_v43, 0.0 }
 0x7ad   : > { %v6357_v32 = vpack.c.bf16 %v6297_v39, %v11278_v19 }
 0x7ae   : > { %v6064_v24 = vpop.f32.mrf.mxu0  ;;  %v6153_v8 = vpop.f32.mrf.mxu1 }
 0x7af   : > { %v6423_v50 = vunpack.c.l.bf16 %v6357_v32  ;;  %v6424_v54 = vunpack.c.h.bf16 %v6357_v32  ;;  %v11430_v53 = vadd.f32 %v6153_v8, %v6064_v24  ;;  %6249 = vmatmul.bf16.gmra.mxu2 %v11292_v35  ;;  %7187 = vmatmul.bf16.vlgmr.msra.gmra.mxu3 %v11313_v3 }
 0x7b1   : > { %v6489_v47 = vadd.f32 %v11297_v61, %v6423_v50  ;;  %v6490_v60 = vadd.f32 %v11300_v25, %v6424_v54 }
 0x7b2   : > { %v6210_v62 = vpop.f32.mrf.mxu2  ;;  %v6304_v19 = vpop.f32.mrf.mxu3 }
 0x7b3   : > { %v6300_v2 = vadd.f32 %v6299_v51, %v6210_v62  ;;  %v6649_v12 = vmax.f32 %v6489_v47, 0.0  ;;  %v6650_v46 = vmax.f32 %v6490_v60, 0.0 }
 0x7b5   : > { %v11437_v55 = vpack.c.bf16 %v6649_v12, %v6647_v22  ;;  %v11439_v6 = vpack.c.bf16 %v6650_v46, %v6648_v41  ;;  %v6358_v35 = vpack.c.bf16 %v6300_v2, %v11290_v38 }
 0x7b6   : > { %v6067_v3 = vpop.f32.mrf.mxu0  ;;  %v6156_v7 = vpop.f32.mrf.mxu1 }
 0x7b7   : > { %v11442_v44 = vadd.f32 %v6156_v7, %v6067_v3  ;;  %v6425_v15 = vunpack.c.l.bf16 %v6358_v35  ;;  %v6426_v17 = vunpack.c.h.bf16 %v6358_v35 }
 0x7b9   : > { %6950 = vmatmul.bf16.gmra.mxu0 %v11437_v55  ;;  %7039 = vmatmul.bf16.gmra.mxu1 %v11439_v6  ;;  %v6491_v4 = vadd.f32 %v11297_v61, %v6425_v15  ;;  %v6492_v45 = vadd.f32 %v11300_v25, %v6426_v17 }
 0x7ba   : > { %v6212_v0 = vpop.f32.mrf.mxu2  ;;  %v6306_v51 = vpop.f32.mrf.mxu3 }
 0x7bb   : > { %v6302_v28 = vadd.f32 %v6301_v42, %v6212_v0  ;;  %v9354_v42 = vld [vmem:[%s11895_s6 + $0x58] sm:$0xff]  ;;  %v6651_v8 = vmax.f32 %v6491_v4, 0.0  ;;  %v6652_v54 = vmax.f32 %v6492_v45, 0.0 }
 0x7bc   : > { %7868 = vmatpush.bf16.msra.mxu1 %v9354_v42 }
 0x7bd   : > { %v6359_v38 = vpack.c.bf16 %v6302_v28, %v11305_v56 }
 0x7be   : > { %v6069_v63 = vpop.f32.mrf.mxu0  ;;  %v6158_v31 = vpop.f32.mrf.mxu1 }
 0x7bf   : > { %v6427_v30 = vunpack.c.l.bf16 %v6359_v38  ;;  %v6428_v21 = vunpack.c.h.bf16 %v6359_v38  ;;  %v11451_v14 = vadd.f32 %v6158_v31, %v6069_v63  ;;  %7098 = vmatmul.bf16.vlgmr.msrb.gmra.mxu2 %v11311_v1  ;;  %7192 = vmatmul.bf16.gmra.mxu3 %v11337_v40 }
 0x7c1   : > { %v6493_v56 = vadd.f32 %v11297_v61, %v6427_v30  ;;  %v6494_v39 = vadd.f32 %v11300_v25, %v6428_v21 }
 0x7c2   : > { %v6215_v32 = vpop.f32.mrf.mxu2  ;;  %v6309_v24 = vpop.f32.mrf.mxu3 }
 0x7c3   : > { %v6305_v37 = vadd.f32 %v6304_v19, %v6215_v32  ;;  %v6653_v50 = vmax.f32 %v6493_v56, 0.0  ;;  %v6654_v1 = vmax.f32 %v6494_v39, 0.0 }
 0x7c5   : > { %v11461_v43 = vpack.c.bf16 %v6653_v50, %v6651_v8  ;;  %v11463_v40 = vpack.c.bf16 %v6654_v1, %v6652_v54  ;;  %v6360_v47 = vpack.c.bf16 %v6305_v37, %v11316_v5  ;;  %v9345_v37 = vld [vmem:[%s11895_s6 + $0x10] sm:$0xff] }
 0x7c6   : > { %v6072_v60 = vpop.f32.mrf.mxu0  ;;  %v6161_v62 = vpop.f32.mrf.mxu1  ;;  %7780 = vmatpush.bf16.msra.mxu0 %v9345_v37 }
 0x7c7   : > { %v11466_v22 = vadd.f32 %v6161_v62, %v6072_v60  ;;  %v6429_v2 = vunpack.c.l.bf16 %v6360_v47  ;;  %v6430_v41 = vunpack.c.h.bf16 %v6360_v47 }
 0x7c9   : > { %6955 = vmatmul.bf16.gmra.mxu0 %v11461_v43  ;;  %7044 = vmatmul.bf16.gmra.mxu1 %v11463_v40  ;;  %v6495_v7 = vadd.f32 %v11297_v61, %v6429_v2  ;;  %v6496_v13 = vadd.f32 %v11300_v25, %v6430_v41  ;;  %v9353_v41 = vld [vmem:[%s11895_s6 + $0x50] sm:$0xff] }
 0x7ca   : > { %v6217_v12 = vpop.f32.mrf.mxu2  ;;  %v6311_v19 = vpop.f32.mrf.mxu3  ;;  %7869 = vmatpush.bf16.msra.mxu1 %v9353_v41 }
 0x7cb   : > { %v6307_v46 = vadd.f32 %v6306_v51, %v6217_v12  ;;  %v6655_v63 = vmax.f32 %v6495_v7, 0.0  ;;  %v6656_v30 = vmax.f32 %v6496_v13, 0.0 }
 0x7cd   : > { %v6361_v35 = vpack.c.bf16 %v6307_v46, %v11325_v49 }
 0x7ce   : > { %v6074_v3 = vpop.f32.mrf.mxu0  ;;  %v6163_v0 = vpop.f32.mrf.mxu1 }
 0x7cf   : > { %v6431_v15 = vunpack.c.l.bf16 %v6361_v35  ;;  %v6432_v5 = vunpack.c.h.bf16 %v6361_v35  ;;  %7103 = vmatmul.bf16.gmra.mxu2 %v11335_v58  ;;  %7197 = vmatmul.bf16.gmra.mxu3 %v11355_v52  ;;  %v11475_v17 = vadd.f32 %v6163_v0, %v6074_v3 }
 0x7d1   : > { %v6497_v28 = vadd.f32 %v11297_v61, %v6431_v15  ;;  %v6498_v51 = vadd.f32 %v11300_v25, %v6432_v5 }
 0x7d2   : > { %v6220_v38 = vpop.f32.mrf.mxu2  ;;  %v6314_v49 = vpop.f32.mrf.mxu3 }
 0x7d3   : > { %v6310_v31 = vadd.f32 %v6309_v24, %v6220_v38  ;;  %v6657_v4 = vmax.f32 %v6497_v28, 0.0  ;;  %v6658_v21 = vmax.f32 %v6498_v51, 0.0 }
 0x7d5   : > { %v11479_v45 = vpack.c.bf16 %v6657_v4, %v6655_v63  ;;  %v11481_v58 = vpack.c.bf16 %v6658_v21, %v6656_v30  ;;  %v6362_v52 = vpack.c.bf16 %v6310_v31, %v11340_v29 }
 0x7d6   : > { %v6921_v42 = vpop.f32.mrf.mxu0  ;;  %v7010_v56 = vpop.f32.mrf.mxu1 }
 0x7d7   : > { %v11484_v39 = vadd.f32 %v7010_v56, %v6921_v42  ;;  %v6433_v32 = vunpack.c.l.bf16 %v6362_v52  ;;  %v6434_v50 = vunpack.c.h.bf16 %v6362_v52 }
 0x7d9   : > { %6960 = vmatmul.bf16.gmra.mxu0 %v11479_v45  ;;  %7049 = vmatmul.bf16.gmra.mxu1 %v11481_v58  ;;  %v6499_v47 = vadd.f32 %v11297_v61, %v6433_v32  ;;  %v6500_v12 = vadd.f32 %v11300_v25, %v6434_v50 }
 0x7da   : > { %v6222_v8 = vpop.f32.mrf.mxu2  ;;  %v6316_v24 = vpop.f32.mrf.mxu3 }
 0x7db   : > { %v6312_v54 = vadd.f32 %v6311_v19, %v6222_v8  ;;  %v6659_v7 = vmax.f32 %v6499_v47, 0.0  ;;  %v6660_v5 = vmax.f32 %v6500_v12, 0.0 }
 0x7dd   : > { %v6363_v29 = vpack.c.bf16 %v6312_v54, %v11346_v23 }
 0x7de   : > { %v6923_v1 = vpop.f32.mrf.mxu0  ;;  %v7012_v2 = vpop.f32.mrf.mxu1 }
 0x7df   : > { %v6435_v60 = vunpack.c.l.bf16 %v6363_v29  ;;  %v6436_v62 = vunpack.c.h.bf16 %v6363_v29  ;;  %7108 = vmatmul.bf16.gmra.mxu2 %v11353_v9  ;;  %7202 = vmatmul.bf16.gmra.mxu3 %v11379_v16  ;;  %v11499_v19 = vadd.f32 %v7012_v2, %v6923_v1 }
 0x7e1   : > { %v6501_v23 = vadd.f32 %v11297_v61, %v6435_v60  ;;  %v6502_v46 = vadd.f32 %v11300_v25, %v6436_v62 }
 0x7e2   : > { %v6225_v35 = vpop.f32.mrf.mxu2  ;;  %v6319_v3 = vpop.f32.mrf.mxu3 }
 0x7e3   : > { %v6315_v15 = vadd.f32 %v6314_v49, %v6225_v35  ;;  %v6661_v9 = vmax.f32 %v6501_v23, 0.0  ;;  %v6662_v16 = vmax.f32 %v6502_v46, 0.0 }
 0x7e5   : > { %v11503_v0 = vpack.c.bf16 %v6661_v9, %v6659_v7  ;;  %v11505_v13 = vpack.c.bf16 %v6662_v16, %v6660_v5  ;;  %v6364_v28 = vpack.c.bf16 %v6315_v15, %v11358_v27  ;;  %v9344_v15 = vld [vmem:[%s11895_s6 + $0x8] sm:$0xff] }
 0x7e6   : > { %v6926_v51 = vpop.f32.mrf.mxu0  ;;  %v7015_v38 = vpop.f32.mrf.mxu1  ;;  %7781 = vmatpush.bf16.msra.mxu0 %v9344_v15 }
 0x7e7   : > { %v11508_v63 = vadd.f32 %v7015_v38, %v6926_v51  ;;  %v6437_v31 = vunpack.c.l.bf16 %v6364_v28  ;;  %v6438_v30 = vunpack.c.h.bf16 %v6364_v28 }
 0x7e9   : > { %6965 = vmatmul.bf16.gmra.mxu0 %v11503_v0  ;;  %7054 = vmatmul.bf16.gmra.mxu1 %v11505_v13  ;;  %v6503_v56 = vadd.f32 %v11297_v61, %v6437_v31  ;;  %v6504_v37 = vadd.f32 %v11300_v25, %v6438_v30  ;;  %v9352_v30 = vld [vmem:[%s11895_s6 + $0x48] sm:$0xff] }
 0x7ea   : > { %v6227_v4 = vpop.f32.mrf.mxu2  ;;  %v6321_v49 = vpop.f32.mrf.mxu3  ;;  %7870 = vmatpush.bf16.msra.mxu1 %v9352_v30 }
 0x7eb   : > { %v6317_v21 = vadd.f32 %v6316_v24, %v6227_v4  ;;  %v6663_v1 = vmax.f32 %v6503_v56, 0.0  ;;  %v6664_v62 = vmax.f32 %v6504_v37, 0.0 }
 0x7ed   : > { %v6365_v52 = vpack.c.bf16 %v6317_v21, %v11367_v34 }
 0x7ee   : > { %v6928_v42 = vpop.f32.mrf.mxu0  ;;  %v7017_v8 = vpop.f32.mrf.mxu1 }
 0x7ef   : > { %v6439_v32 = vunpack.c.l.bf16 %v6365_v52  ;;  %v6440_v27 = vunpack.c.h.bf16 %v6365_v52  ;;  %7113 = vmatmul.bf16.gmra.mxu2 %v11377_v59  ;;  %7207 = vmatmul.bf16.gmra.mxu3 %v11397_v33  ;;  %v11517_v50 = vadd.f32 %v7017_v8, %v6928_v42 }
 0x7f1   : > { %v6505_v54 = vadd.f32 %v11297_v61, %v6439_v32  ;;  %v6506_v24 = vadd.f32 %v11300_v25, %v6440_v27 }
 0x7f2   : > { %v6230_v29 = vpop.f32.mrf.mxu2  ;;  %v6324_v34 = vpop.f32.mrf.mxu3 }
 0x7f3   : > { %v6320_v47 = vadd.f32 %v6319_v3, %v6230_v29  ;;  %v6665_v60 = vmax.f32 %v6505_v54, 0.0  ;;  %v6666_v2 = vmax.f32 %v6506_v24, 0.0 }
 0x7f5   : > { %v11521_v12 = vpack.c.bf16 %v6665_v60, %v6663_v1  ;;  %v11523_v59 = vpack.c.bf16 %v6666_v2, %v6664_v62  ;;  %v6366_v33 = vpack.c.bf16 %v6320_v47, %v11382_v18 }
 0x7f6   : > { %v6931_v41 = vpop.f32.mrf.mxu0  ;;  %v7020_v23 = vpop.f32.mrf.mxu1 }
 0x7f7   : > { %v11526_v46 = vadd.f32 %v7020_v23, %v6931_v41  ;;  %v6441_v35 = vunpack.c.l.bf16 %v6366_v33  ;;  %v6442_v9 = vunpack.c.h.bf16 %v6366_v33 }
 0x7f9   : > { %6970 = vmatmul.bf16.gmra.mxu0 %v11521_v12  ;;  %7059 = vmatmul.bf16.gmra.mxu1 %v11523_v59  ;;  %v6507_v28 = vadd.f32 %v11297_v61, %v6441_v35  ;;  %v6508_v4 = vadd.f32 %v11300_v25, %v6442_v9 }
 0x7fa   : > { %v6232_v7 = vpop.f32.mrf.mxu2  ;;  %v6326_v3 = vpop.f32.mrf.mxu3 }
 0x7fb   : > { %v6322_v5 = vadd.f32 %v6321_v49, %v6232_v7  ;;  %v6667_v56 = vmax.f32 %v6507_v28, 0.0  ;;  %v6668_v27 = vmax.f32 %v6508_v4, 0.0 }
 0x7fd   : > { %v6367_v18 = vpack.c.bf16 %v6322_v5, %v11388_v48 }
 0x7fe   : > { %v6933_v16 = vpop.f32.mrf.mxu0  ;;  %v7022_v31 = vpop.f32.mrf.mxu1 }
 0x7ff   : > { %v6443_v51 = vunpack.c.l.bf16 %v6367_v18  ;;  %v6444_v38 = vunpack.c.h.bf16 %v6367_v18  ;;  %7118 = vmatmul.bf16.gmra.mxu2 %v11395_v20  ;;  %7212 = vmatmul.bf16.gmra.mxu3 %v11421_v10  ;;  %v11541_v49 = vadd.f32 %v7022_v31, %v6933_v16 }
 0x801   : > { %v6509_v48 = vadd.f32 %v11297_v61, %v6443_v51  ;;  %v6510_v21 = vadd.f32 %v11300_v25, %v6444_v38 }
 0x802   : > { %v6235_v52 = vpop.f32.mrf.mxu2  ;;  %v6329_v42 = vpop.f32.mrf.mxu3 }
 0x803   : > { %v6325_v32 = vadd.f32 %v6324_v34, %v6235_v52  ;;  %v6669_v20 = vmax.f32 %v6509_v48, 0.0  ;;  %v6670_v10 = vmax.f32 %v6510_v21, 0.0 }
 0x805   : > { %v11545_v8 = vpack.c.bf16 %v6669_v20, %v6667_v56  ;;  %v11547_v37 = vpack.c.bf16 %v6670_v10, %v6668_v27  ;;  %v6368_v54 = vpack.c.bf16 %v6325_v32, %v11400_v26  ;;  %v9343_v32 = vld [vmem:[%s11895_s6] sm:$0xff] }
 0x806   : > { %v6936_v24 = vpop.f32.mrf.mxu0  ;;  %v7025_v29 = vpop.f32.mrf.mxu1  ;;  %7782 = vmatpush.bf16.msra.mxu0 %v9343_v32 }
 0x807   : > { %v11550_v1 = vadd.f32 %v7025_v29, %v6936_v24  ;;  %v6445_v47 = vunpack.c.l.bf16 %v6368_v54  ;;  %v6446_v62 = vunpack.c.h.bf16 %v6368_v54 }
 0x809   : > { %6975 = vmatmul.bf16.gmra.mxu0 %v11545_v8  ;;  %7064 = vmatmul.bf16.gmra.mxu1 %v11547_v37  ;;  %v6511_v23 = vadd.f32 %v11297_v61, %v6445_v47  ;;  %v6512_v15 = vadd.f32 %v11300_v25, %v6446_v62  ;;  %v9351_v62 = vld [vmem:[%s11895_s6 + $0x40] sm:$0xff] }
 0x80a   : > { %v6237_v60 = vpop.f32.mrf.mxu2  ;;  %v6331_v34 = vpop.f32.mrf.mxu3  ;;  %7871 = vmatpush.bf16.msra.mxu1 %v9351_v62 }
 0x80b   : > { %v6327_v2 = vadd.f32 %v6326_v3, %v6237_v60  ;;  %v6671_v16 = vmax.f32 %v6511_v23, 0.0  ;;  %v6672_v38 = vmax.f32 %v6512_v15, 0.0 }
 0x80d   : > { %v6369_v33 = vpack.c.bf16 %v6327_v2, %v11409_v57 }
 0x80e   : > { %v6938_v41 = vpop.f32.mrf.mxu0  ;;  %v7027_v7 = vpop.f32.mrf.mxu1 }
 0x80f   : > { %v6447_v35 = vunpack.c.l.bf16 %v6369_v33  ;;  %v6448_v26 = vunpack.c.h.bf16 %v6369_v33  ;;  %7123 = vmatmul.bf16.gmra.mxu2 %v11419_v11  ;;  %7217 = vmatmul.bf16.gmra.mxu3 %v11439_v6  ;;  %v11559_v9 = vadd.f32 %v7027_v7, %v6938_v41 }
 0x811   : > { %v6513_v5 = vadd.f32 %v11297_v61, %v6447_v35  ;;  %v6514_v3 = vadd.f32 %v11300_v25, %v6448_v26 }
 0x812   : > { %v6240_v18 = vpop.f32.mrf.mxu2  ;;  %v6334_v57 = vpop.f32.mrf.mxu3 }
 0x813   : > { %v6330_v28 = vadd.f32 %v6329_v42, %v6240_v18  ;;  %v6673_v51 = vmax.f32 %v6513_v5, 0.0  ;;  %v6674_v31 = vmax.f32 %v6514_v3, 0.0 }
 0x815   : > { %v11563_v4 = vpack.c.bf16 %v6673_v51, %v6671_v16  ;;  %v11565_v11 = vpack.c.bf16 %v6674_v31, %v6672_v38  ;;  %v6370_v6 = vpack.c.bf16 %v6330_v28, %v11424_v36 }
 0x816   : > { %v6941_v30 = vpop.f32.mrf.mxu0  ;;  %v7030_v48 = vpop.f32.mrf.mxu1 }
 0x817   : > { %v11568_v21 = vadd.f32 %v7030_v48, %v6941_v30  ;;  %v6449_v52 = vunpack.c.l.bf16 %v6370_v6  ;;  %v6450_v20 = vunpack.c.h.bf16 %v6370_v6 }
 0x819   : > { %6980 = vmatmul.bf16.gmra.mxu0 %v11563_v4  ;;  %7069 = vmatmul.bf16.gmra.mxu1 %v11565_v11  ;;  %v6515_v54 = vadd.f32 %v11297_v61, %v6449_v52  ;;  %v6516_v60 = vadd.f32 %v11300_v25, %v6450_v20  ;;  %v9049_v20 = vld [vmem:[%s11894_s5 + $0xc] sm:$0x3] }
 0x81a   : > { %v6242_v56 = vpop.f32.mrf.mxu2  ;;  %v6336_v42 = vpop.f32.mrf.mxu3 }
 0x81b   : > { %v6332_v27 = vadd.f32 %v6331_v34, %v6242_v56  ;;  %v6675_v23 = vmax.f32 %v6515_v54, 0.0  ;;  %v6676_v26 = vmax.f32 %v6516_v60, 0.0 }
 0x81d   : > { %v6371_v36 = vpack.c.bf16 %v6332_v27, %v11430_v53 }
 0x81e   : > { %v6943_v10 = vpop.f32.mrf.mxu0  ;;  %v7032_v47 = vpop.f32.mrf.mxu1 }
 0x81f   : > { %v6451_v24 = vunpack.c.l.bf16 %v6371_v36  ;;  %v6452_v29 = vunpack.c.h.bf16 %v6371_v36  ;;  %7128 = vmatmul.bf16.gmra.mxu2 %v11437_v55  ;;  %7222 = vmatmul.bf16.gmra.mxu3 %v11463_v40  ;;  %v11583_v34 = vadd.f32 %v7032_v47, %v6943_v10 }
 0x821   : > { %v6517_v53 = vadd.f32 %v11297_v61, %v6451_v24  ;;  %v6518_v2 = vadd.f32 %v11300_v25, %v6452_v29  ;;  %v7303_v24 = vperm.slane %v9049_v20, 0  ;;  %v7304_v29 = vperm.slane %v9049_v20, 1 }
 0x822   : > { %v6245_v33 = vpop.f32.mrf.mxu2  ;;  %v6339_v41 = vpop.f32.mrf.mxu3 }
 0x823   : > { %v6335_v35 = vadd.f32 %v6334_v57, %v6245_v33  ;;  %v6677_v55 = vmax.f32 %v6517_v53, 0.0  ;;  %v6678_v40 = vmax.f32 %v6518_v2, 0.0 }
 0x825   : > { %v11587_v7 = vpack.c.bf16 %v6677_v55, %v6675_v23  ;;  %v11589_v15 = vpack.c.bf16 %v6678_v40, %v6676_v26  ;;  %v6372_v5 = vpack.c.bf16 %v6335_v35, %v11442_v44  ;;  %v7307_v23 = vpack.c.bf16 %v7304_v29, %v7303_v24 }
 0x826   : > { %v6946_v3 = vpop.f32.mrf.mxu0  ;;  %v7035_v18 = vpop.f32.mrf.mxu1 }
 0x827   : > { %v11592_v16 = vadd.f32 %v7035_v18, %v6946_v3  ;;  %v6453_v28 = vunpack.c.l.bf16 %v6372_v5  ;;  %v6454_v38 = vunpack.c.h.bf16 %v6372_v5  ;;  %v7309_v5 = vunpack.c.l.b16 %v7307_v23 }
 0x828   : > { %v7310_v3 = vunpack.c.h.b16 %v7307_v23 }
 0x829   : > { %6985 = vmatmul.bf16.gmra.mxu0 %v11587_v7  ;;  %7074 = vmatmul.bf16.gmra.mxu1 %v11589_v15  ;;  %v6519_v48 = vadd.f32 %v11297_v61, %v6453_v28  ;;  %v6520_v32 = vadd.f32 %v11300_v25, %v6454_v38 }
 0x82a   : > { %v6247_v51 = vpop.f32.mrf.mxu2  ;;  %v6341_v57 = vpop.f32.mrf.mxu3 }
 0x82b   : > { %v6337_v31 = vadd.f32 %v6336_v42, %v6247_v51  ;;  %v6679_v54 = vmax.f32 %v6519_v48, 0.0 }
 0x82d   : > { %v6373_v6 = vpack.c.bf16 %v6337_v31, %v11451_v14  ;;  %v7312_v31 = vpack.c.b16 %v7310_v3, %v7310_v3 }
 0x82e   : > { %v6948_v30 = vpop.f32.mrf.mxu0  ;;  %v7037_v56 = vpop.f32.mrf.mxu1 }
 0x82f   : > { %v6455_v52 = vunpack.c.l.bf16 %v6373_v6  ;;  %v6456_v44 = vunpack.c.h.bf16 %v6373_v6  ;;  %7133 = vmatmul.bf16.gmra.mxu2 %v11461_v43  ;;  %7227 = vmatmul.bf16.gmra.mxu3 %v11481_v58  ;;  %v11604_v27 = vadd.f32 %v7037_v56, %v6948_v30  ;;  %v6680_v58 = vmax.f32 %v6520_v32, 0.0 }
 0x831   : > { %v6521_v14 = vadd.f32 %v11297_v61, %v6455_v52  ;;  %v6522_v42 = vadd.f32 %v11300_v25, %v6456_v44 }
 0x832   : > { %v6250_v36 = vpop.f32.mrf.mxu2  ;;  %v7188_v10 = vpop.f32.mrf.mxu3 }
 0x833   : > { %v6340_v43 = vadd.f32 %v6339_v41, %v6250_v36  ;;  %v6681_v47 = vmax.f32 %v6521_v14, 0.0  ;;  %v6682_v60 = vmax.f32 %v6522_v42, 0.0  ;;  %v7318_v14 = vpack.i.b16 %v7312_v31, %v7312_v31 }
 0x835   : > { %v11608_v62 = vpack.c.bf16 %v6681_v47, %v6679_v54  ;;  %v11610_v53 = vpack.c.bf16 %v6682_v60, %v6680_v58  ;;  %v6374_v2 = vpack.c.bf16 %v6340_v43, %v11466_v22  ;;  %v7311_v22 = vpack.c.b16 %v7309_v5, %v7309_v5 }
 0x836   : > { %v6951_v33 = vpop.f32.mrf.mxu0  ;;  %v7040_v35 = vpop.f32.mrf.mxu1 }
 0x837   : > { %v11613_v55 = vadd.f32 %v7040_v35, %v6951_v33  ;;  %v6457_v26 = vunpack.c.l.bf16 %v6374_v2  ;;  %v6458_v18 = vunpack.c.h.bf16 %v6374_v2  ;;  %v7314_v20 = vpack.i.b16 %v7311_v22, %v7311_v22 }
 0x839   : > { %6990 = vmatmul.bf16.gmra.mxu0 %v11608_v62  ;;  %7079 = vmatmul.bf16.gmra.mxu1 %v11610_v53  ;;  %v6523_v6 = vadd.f32 %v11297_v61, %v6457_v26  ;;  %v6524_v44 = vadd.f32 %v11300_v25, %v6458_v18  ;;  %v7316_v58 = vperm.slane %v7314_v20, 0 }
 0x83a   : > { %v6252_v41 = vpop.f32.mrf.mxu2  ;;  %v7190_v40 = vpop.f32.mrf.mxu3 }
 0x83b   : > { %v6342_v28 = vadd.f32 %v6341_v57, %v6252_v41  ;;  %v6683_v36 = vmax.f32 %v6523_v6, 0.0  ;;  %v6684_v29 = vmax.f32 %v6524_v44, 0.0  ;;  %v11634_v23 = vunpack.c.l.bf16 %v7316_v58 }
 0x83d   : > { %v6375_v51 = vpack.c.bf16 %v6342_v28, %v11475_v17 }
 0x83e   : > { %v6953_v38 = vpop.f32.mrf.mxu0  ;;  %v7042_v52 = vpop.f32.mrf.mxu1 }
 0x83f   : > { %v6459_v30 = vunpack.c.l.bf16 %v6375_v51  ;;  %v6460_v48 = vunpack.c.h.bf16 %v6375_v51  ;;  %7138 = vmatmul.bf16.gmra.mxu2 %v11479_v45  ;;  %7232 = vmatmul.bf16.gmra.mxu3 %v11505_v13  ;;  %v11622_v56 = vadd.f32 %v7042_v52, %v6953_v38 }
 0x841   : > { %v6525_v57 = vadd.f32 %v11297_v61, %v6459_v30  ;;  %v6526_v17 = vadd.f32 %v11300_v25, %v6460_v48  ;;  %v7320_v61 = vperm.slane %v7318_v14, 0 }
 0x842   : > { %v7099_v32 = vpop.f32.mrf.mxu2  ;;  %v7193_v42 = vpop.f32.mrf.mxu3 }
 0x843   : > { %v7189_v54 = vadd.f32 %v7188_v10, %v7099_v32  ;;  %v6685_v24 = vmax.f32 %v6525_v57, 0.0  ;;  %v6686_v43 = vmax.f32 %v6526_v17, 0.0  ;;  %v11637_v41 = vunpack.c.l.bf16 %v7320_v61 }
 0x845   : > { %v11626_v45 = vpack.c.bf16 %v6685_v24, %v6683_v36  ;;  %v11628_v13 = vpack.c.bf16 %v6686_v43, %v6684_v29  ;;  %v7268_v47 = vpack.c.bf16 %v7189_v54, %v11484_v39 }
 0x846   : > { %v6956_v60 = vpop.f32.mrf.mxu0  ;;  %v7045_v2 = vpop.f32.mrf.mxu1 }
 0x847   : > { %v11631_v25 = vadd.f32 %v7045_v2, %v6956_v60  ;;  %v7321_v33 = vunpack.c.l.bf16 %v7268_v47  ;;  %v7322_v26 = vunpack.c.h.bf16 %v7268_v47 }
 0x849   : > { %6995 = vmatmul.bf16.gmra.mxu0 %v11626_v45  ;;  %7084 = vmatmul.bf16.gmra.mxu1 %v11628_v13  ;;  %v7387_v3 = vadd.f32 %v11634_v23, %v7321_v33  ;;  %v7388_v28 = vadd.f32 %v11637_v41, %v7322_v26 }
 0x84a   : > { %v7101_v10 = vpop.f32.mrf.mxu2  ;;  %v7195_v35 = vpop.f32.mrf.mxu3 }
 0x84b   : > { %v7191_v5 = vadd.f32 %v7190_v40, %v7101_v10  ;;  %v7547_v30 = vmax.f32 %v7387_v3, 0.0  ;;  %v7548_v52 = vmax.f32 %v7388_v28, 0.0 }
 0x84d   : > { %v7269_v39 = vpack.c.bf16 %v7191_v5, %v11499_v19 }
 0x84e   : > { %v6958_v18 = vpop.f32.mrf.mxu0  ;;  %v7047_v22 = vpop.f32.mrf.mxu1 }
 0x84f   : > { %v7323_v51 = vunpack.c.l.bf16 %v7269_v39  ;;  %v7324_v38 = vunpack.c.h.bf16 %v7269_v39  ;;  %7143 = vmatmul.bf16.gmra.mxu2 %v11503_v0  ;;  %7237 = vmatmul.bf16.gmra.mxu3 %v11523_v59  ;;  %v11644_v31 = vadd.f32 %v7047_v22, %v6958_v18 }
 0x851   : > { %v7389_v6 = vadd.f32 %v11634_v23, %v7323_v51  ;;  %v7390_v40 = vadd.f32 %v11637_v41, %v7324_v38 }
 0x852   : > { %v7104_v19 = vpop.f32.mrf.mxu2  ;;  %v7198_v48 = vpop.f32.mrf.mxu3 }
 0x853   : > { %v7549_v44 = vmax.f32 %v7389_v6, 0.0  ;;  %v7550_v57 = vmax.f32 %v7390_v40, 0.0  ;;  %v7194_v17 = vadd.f32 %v7193_v42, %v7104_v19 }
 0x855   : > { %v7611_v32 = vpack.c.bf16 %v7549_v44, %v7547_v30  ;;  %v7612_v20 = vpack.c.bf16 %v7550_v57, %v7548_v52  ;;  %v7270_v14 = vpack.c.bf16 %v7194_v17, %v11508_v63 }
 0x856   : > { %v6961_v0 = vpop.f32.mrf.mxu0  ;;  %v7050_v36 = vpop.f32.mrf.mxu1 }
 0x857   : > { %v11649_v59 = vadd.f32 %v7050_v36, %v6961_v0  ;;  %v7325_v54 = vunpack.c.l.bf16 %v7270_v14  ;;  %v7326_v43 = vunpack.c.h.bf16 %v7270_v14 }
 0x859   : > { %7783 = vmatmul.bf16.vlgmr.msra.gmra.mxu0 %v7611_v32  ;;  %7872 = vmatmul.bf16.vlgmr.msra.gmra.mxu1 %v7612_v20  ;;  %v7391_v42 = vadd.f32 %v11634_v23, %v7325_v54  ;;  %v7392_v63 = vadd.f32 %v11637_v41, %v7326_v43 }
 0x85a   : > { %v7106_v24 = vpop.f32.mrf.mxu2  ;;  %v7200_v29 = vpop.f32.mrf.mxu3 }
 0x85b   : > { %v7196_v47 = vadd.f32 %v7195_v35, %v7106_v24  ;;  %v7551_v39 = vmax.f32 %v7391_v42, 0.0  ;;  %v7552_v28 = vmax.f32 %v7392_v63, 0.0 }
 0x85d   : > { %v7271_v58 = vpack.c.bf16 %v7196_v47, %v11517_v50 }
 0x85e   : > { %v6963_v60 = vpop.f32.mrf.mxu0  ;;  %v7052_v33 = vpop.f32.mrf.mxu1 }
 0x85f   : > { %v7327_v61 = vunpack.c.l.bf16 %v7271_v58  ;;  %v7328_v2 = vunpack.c.h.bf16 %v7271_v58  ;;  %7148 = vmatmul.bf16.gmra.mxu2 %v11521_v12  ;;  %7242 = vmatmul.bf16.gmra.mxu3 %v11547_v37  ;;  %v11656_v10 = vadd.f32 %v7052_v33, %v6963_v60 }
 0x861   : > { %v7393_v26 = vadd.f32 %v11634_v23, %v7327_v61  ;;  %v7394_v35 = vadd.f32 %v11637_v41, %v7328_v2 }
 0x862   : > { %v7109_v5 = vpop.f32.mrf.mxu2  ;;  %v7203_v50 = vpop.f32.mrf.mxu3 }
 0x863   : > { %v7199_v3 = vadd.f32 %v7198_v48, %v7109_v5  ;;  %v7553_v18 = vmax.f32 %v7393_v26, 0.0  ;;  %v7554_v51 = vmax.f32 %v7394_v35, 0.0 }
 0x865   : > { %v7613_v38 = vpack.c.bf16 %v7553_v18, %v7551_v39  ;;  %v7614_v22 = vpack.c.bf16 %v7554_v51, %v7552_v28  ;;  %v7272_v12 = vpack.c.bf16 %v7199_v3, %v11526_v46 }
 0x866   : > { %v6966_v37 = vpop.f32.mrf.mxu0  ;;  %v7055_v6 = vpop.f32.mrf.mxu1 }
 0x867   : > { %v11661_v40 = vadd.f32 %v7055_v6, %v6966_v37  ;;  %v7329_v30 = vunpack.c.l.bf16 %v7272_v12  ;;  %v7330_v44 = vunpack.c.h.bf16 %v7272_v12 }
 0x869   : > { %7788 = vmatmul.bf16.gmra.mxu0 %v7613_v38  ;;  %7877 = vmatmul.bf16.gmra.mxu1 %v7614_v22  ;;  %v7395_v32 = vadd.f32 %v11634_v23, %v7329_v30  ;;  %v7396_v46 = vadd.f32 %v11637_v41, %v7330_v44 }
 0x86a   : > { %v7111_v19 = vpop.f32.mrf.mxu2  ;;  %v7205_v52 = vpop.f32.mrf.mxu3 }
 0x86b   : > { %v7201_v57 = vadd.f32 %v7200_v29, %v7111_v19  ;;  %v7555_v43 = vmax.f32 %v7395_v32, 0.0  ;;  %v7556_v60 = vmax.f32 %v7396_v46, 0.0 }
 0x86d   : > { %v7273_v48 = vpack.c.bf16 %v7201_v57, %v11541_v49 }
 0x86e   : > { %v6968_v17 = vpop.f32.mrf.mxu0  ;;  %v7057_v0 = vpop.f32.mrf.mxu1 }
 0x86f   : > { %v7331_v20 = vunpack.c.l.bf16 %v7273_v48  ;;  %v7332_v14 = vunpack.c.h.bf16 %v7273_v48  ;;  %7153 = vmatmul.bf16.gmra.mxu2 %v11545_v8  ;;  %7247 = vmatmul.bf16.gmra.mxu3 %v11565_v11  ;;  %v11668_v36 = vadd.f32 %v7057_v0, %v6968_v17 }
 0x871   : > { %v7397_v54 = vadd.f32 %v11634_v23, %v7331_v20  ;;  %v7398_v24 = vadd.f32 %v11637_v41, %v7332_v14 }
 0x872   : > { %v7114_v29 = vpop.f32.mrf.mxu2  ;;  %v7208_v49 = vpop.f32.mrf.mxu3 }
 0x873   : > { %v7204_v47 = vadd.f32 %v7203_v50, %v7114_v29  ;;  %v7557_v58 = vmax.f32 %v7397_v54, 0.0  ;;  %v7558_v42 = vmax.f32 %v7398_v24, 0.0 }
 0x875   : > { %v7615_v61 = vpack.c.bf16 %v7557_v58, %v7555_v43  ;;  %v7616_v2 = vpack.c.bf16 %v7558_v42, %v7556_v60  ;;  %v7274_v8 = vpack.c.bf16 %v7204_v47, %v11550_v1 }
 0x876   : > { %v6971_v11 = vpop.f32.mrf.mxu0  ;;  %v7060_v33 = vpop.f32.mrf.mxu1 }
 0x877   : > { %v11673_v63 = vadd.f32 %v7060_v33, %v6971_v11  ;;  %v7333_v26 = vunpack.c.l.bf16 %v7274_v8  ;;  %v7334_v39 = vunpack.c.h.bf16 %v7274_v8 }
 0x879   : > { %7793 = vmatmul.bf16.gmra.mxu0 %v7615_v61  ;;  %7882 = vmatmul.bf16.gmra.mxu1 %v7616_v2  ;;  %v7399_v28 = vadd.f32 %v11634_v23, %v7333_v26  ;;  %v7400_v1 = vadd.f32 %v11637_v41, %v7334_v39 }
 0x87a   : > { %v7116_v35 = vpop.f32.mrf.mxu2  ;;  %v7210_v5 = vpop.f32.mrf.mxu3 }
 0x87b   : > { %v7206_v3 = vadd.f32 %v7205_v52, %v7116_v35  ;;  %v7559_v19 = vmax.f32 %v7399_v28, 0.0  ;;  %v7560_v57 = vmax.f32 %v7400_v1, 0.0 }
 0x87d   : > { %v7275_v50 = vpack.c.bf16 %v7206_v3, %v11559_v9 }
 0x87e   : > { %v6973_v18 = vpop.f32.mrf.mxu0  ;;  %v7062_v22 = vpop.f32.mrf.mxu1 }
 0x87f   : > { %v7335_v51 = vunpack.c.l.bf16 %v7275_v50  ;;  %v7336_v38 = vunpack.c.h.bf16 %v7275_v50  ;;  %7158 = vmatmul.bf16.gmra.mxu2 %v11563_v4  ;;  %7252 = vmatmul.bf16.gmra.mxu3 %v11589_v15  ;;  %v11680_v12 = vadd.f32 %v7062_v22, %v6973_v18 }
 0x881   : > { %v7401_v37 = vadd.f32 %v11634_v23, %v7335_v51  ;;  %v7402_v6 = vadd.f32 %v11637_v41, %v7336_v38 }
 0x882   : > { %v7119_v30 = vpop.f32.mrf.mxu2  ;;  %v7213_v9 = vpop.f32.mrf.mxu3 }
 0x883   : > { %v7209_v52 = vadd.f32 %v7208_v49, %v7119_v30  ;;  %v7561_v44 = vmax.f32 %v7401_v37, 0.0  ;;  %v7562_v48 = vmax.f32 %v7402_v6, 0.0 }
 0x885   : > { %v7617_v17 = vpack.c.bf16 %v7561_v44, %v7559_v19  ;;  %v7618_v32 = vpack.c.bf16 %v7562_v48, %v7560_v57  ;;  %v7276_v4 = vpack.c.bf16 %v7209_v52, %v11568_v21 }
 0x886   : > { %v6976_v15 = vpop.f32.mrf.mxu0  ;;  %v7065_v20 = vpop.f32.mrf.mxu1 }
 0x887   : > { %v11685_v14 = vadd.f32 %v7065_v20, %v6976_v15  ;;  %v7337_v0 = vunpack.c.l.bf16 %v7276_v4  ;;  %v7338_v24 = vunpack.c.h.bf16 %v7276_v4 }
 0x889   : > { %7798 = vmatmul.bf16.gmra.mxu0 %v7617_v17  ;;  %7887 = vmatmul.bf16.gmra.mxu1 %v7618_v32  ;;  %v7403_v47 = vadd.f32 %v11634_v23, %v7337_v0  ;;  %v7404_v21 = vadd.f32 %v11637_v41, %v7338_v24 }
 0x88a   : > { %v7121_v46 = vpop.f32.mrf.mxu2  ;;  %v7215_v54 = vpop.f32.mrf.mxu3 }
 0x88b   : > { %v7211_v29 = vadd.f32 %v7210_v5, %v7121_v46  ;;  %v7563_v33 = vmax.f32 %v7403_v47, 0.0  ;;  %v7564_v5 = vmax.f32 %v7404_v21, 0.0 }
 0x88d   : > { %v7277_v49 = vpack.c.bf16 %v7211_v29, %v11583_v34 }
 0x88e   : > { %v6978_v43 = vpop.f32.mrf.mxu0  ;;  %v7067_v42 = vpop.f32.mrf.mxu1 }
 0x88f   : > { %v7339_v58 = vunpack.c.l.bf16 %v7277_v49  ;;  %v7340_v60 = vunpack.c.h.bf16 %v7277_v49  ;;  %7163 = vmatmul.bf16.gmra.mxu2 %v11587_v7  ;;  %7257 = vmatmul.bf16.gmra.mxu3 %v11610_v53  ;;  %v11692_v61 = vadd.f32 %v7067_v42, %v6978_v43 }
 0x891   : > { %v7405_v2 = vadd.f32 %v11634_v23, %v7339_v58  ;;  %v7406_v8 = vadd.f32 %v11637_v41, %v7340_v60 }
 0x892   : > { %v7124_v11 = vpop.f32.mrf.mxu2  ;;  %v7218_v34 = vpop.f32.mrf.mxu3 }
 0x893   : > { %v7214_v26 = vadd.f32 %v7213_v9, %v7124_v11  ;;  %v7565_v35 = vmax.f32 %v7405_v2, 0.0  ;;  %v7566_v39 = vmax.f32 %v7406_v8, 0.0 }
 0x895   : > { %v7619_v3 = vpack.c.bf16 %v7565_v35, %v7563_v33  ;;  %v7620_v50 = vpack.c.bf16 %v7566_v39, %v7564_v5  ;;  %v7278_v7 = vpack.c.bf16 %v7214_v26, %v11592_v16 }
 0x896   : > { %v6981_v53 = vpop.f32.mrf.mxu0  ;;  %v7070_v18 = vpop.f32.mrf.mxu1 }
 0x897   : > { %v11697_v28 = vadd.f32 %v7070_v18, %v6981_v53  ;;  %v7341_v51 = vunpack.c.l.bf16 %v7278_v7  ;;  %v7342_v1 = vunpack.c.h.bf16 %v7278_v7 }
 0x899   : > { %7803 = vmatmul.bf16.gmra.mxu0 %v7619_v3  ;;  %7892 = vmatmul.bf16.gmra.mxu1 %v7620_v50  ;;  %v7407_v9 = vadd.f32 %v11634_v23, %v7341_v51  ;;  %v7408_v16 = vadd.f32 %v11637_v41, %v7342_v1 }
 0x89a   : > { %v7126_v38 = vpop.f32.mrf.mxu2  ;;  %v7220_v22 = vpop.f32.mrf.mxu3 }
 0x89b   : > { %v7216_v37 = vadd.f32 %v7215_v54, %v7126_v38  ;;  %v7567_v4 = vmax.f32 %v7407_v9, 0.0  ;;  %v7568_v0 = vmax.f32 %v7408_v16, 0.0 }
 0x89d   : > { %v7279_v6 = vpack.c.bf16 %v7216_v37, %v11604_v27 }
 0x89e   : > { %v6983_v30 = vpop.f32.mrf.mxu0  ;;  %v7072_v44 = vpop.f32.mrf.mxu1 }
 0x89f   : > { %v7343_v19 = vunpack.c.l.bf16 %v7279_v6  ;;  %v7344_v52 = vunpack.c.h.bf16 %v7279_v6  ;;  %7168 = vmatmul.bf16.gmra.mxu2 %v11608_v62  ;;  %7262 = vmatmul.bf16.gmra.mxu3 %v11628_v13  ;;  %v11704_v57 = vadd.f32 %v7072_v44, %v6983_v30 }
 0x8a1   : > { %v7409_v48 = vadd.f32 %v11634_v23, %v7343_v19  ;;  %v7410_v17 = vadd.f32 %v11637_v41, %v7344_v52 }
 0x8a2   : > { %v7129_v32 = vpop.f32.mrf.mxu2  ;;  %v7223_v27 = vpop.f32.mrf.mxu3 }
 0x8a3   : > { %v7219_v15 = vadd.f32 %v7218_v34, %v7129_v32  ;;  %v7569_v20 = vmax.f32 %v7409_v48, 0.0  ;;  %v7570_v46 = vmax.f32 %v7410_v17, 0.0 }
 0x8a5   : > { %v7621_v54 = vpack.c.bf16 %v7569_v20, %v7567_v4  ;;  %v7622_v24 = vpack.c.bf16 %v7570_v46, %v7568_v0  ;;  %v7280_v62 = vpack.c.bf16 %v7219_v15, %v11613_v55 }
 0x8a6   : > { %v6986_v13 = vpop.f32.mrf.mxu0  ;;  %v7075_v29 = vpop.f32.mrf.mxu1 }
 0x8a7   : > { %v11709_v49 = vadd.f32 %v7075_v29, %v6986_v13  ;;  %v7345_v43 = vunpack.c.l.bf16 %v7280_v62  ;;  %v7346_v60 = vunpack.c.h.bf16 %v7280_v62 }
 0x8a9   : > { %7808 = vmatmul.bf16.gmra.mxu0 %v7621_v54  ;;  %7897 = vmatmul.bf16.gmra.mxu1 %v7622_v24  ;;  %v7411_v8 = vadd.f32 %v11634_v23, %v7345_v43  ;;  %v7412_v55 = vadd.f32 %v11637_v41, %v7346_v60 }
 0x8aa   : > { %v7131_v47 = vpop.f32.mrf.mxu2  ;;  %v7225_v58 = vpop.f32.mrf.mxu3 }
 0x8ab   : > { %v7221_v42 = vadd.f32 %v7220_v22, %v7131_v47  ;;  %v7571_v50 = vmax.f32 %v7411_v8, 0.0  ;;  %v7572_v53 = vmax.f32 %v7412_v55, 0.0 }
 0x8ad   : > { %v7281_v21 = vpack.c.bf16 %v7221_v42, %v11622_v56 }
 0x8ae   : > { %v6988_v2 = vpop.f32.mrf.mxu0  ;;  %v7077_v33 = vpop.f32.mrf.mxu1 }
 0x8af   : > { %v7347_v11 = vunpack.c.l.bf16 %v7281_v21  ;;  %v7348_v34 = vunpack.c.h.bf16 %v7281_v21  ;;  %7173 = vmatmul.bf16.gmra.mxu2 %v11626_v45  ;;  %v11715_v26 = vadd.f32 %v7077_v33, %v6988_v2 }
 0x8b1   : > { %v7413_v35 = vadd.f32 %v11634_v23, %v7347_v11  ;;  %v7414_v5 = vadd.f32 %v11637_v41, %v7348_v34 }
 0x8b2   : > { %v7134_v39 = vpop.f32.mrf.mxu2  ;;  %v7228_v3 = vpop.f32.mrf.mxu3 }
 0x8b3   : > { %v7224_v56 = vadd.f32 %v7223_v27, %v7134_v39  ;;  %v7573_v7 = vmax.f32 %v7413_v35, 0.0  ;;  %v7574_v18 = vmax.f32 %v7414_v5, 0.0 }
 0x8b5   : > { %v7623_v51 = vpack.c.bf16 %v7573_v7, %v7571_v50  ;;  %v7624_v38 = vpack.c.bf16 %v7574_v18, %v7572_v53  ;;  %v7282_v22 = vpack.c.bf16 %v7224_v56, %v11631_v25 }
 0x8b6   : > { %v6991_v45 = vpop.f32.mrf.mxu0  ;;  %v7080_v1 = vpop.f32.mrf.mxu1 }
 0x8b7   : > { %v11720_v37 = vadd.f32 %v7080_v1, %v6991_v45  ;;  %v7349_v6 = vunpack.c.l.bf16 %v7282_v22  ;;  %v7350_v19 = vunpack.c.h.bf16 %v7282_v22 }
 0x8b9   : > { %7813 = vmatmul.bf16.gmra.mxu0 %v7623_v51  ;;  %7902 = vmatmul.bf16.gmra.mxu1 %v7624_v38  ;;  %v7415_v48 = vadd.f32 %v11634_v23, %v7349_v6  ;;  %v7416_v25 = vadd.f32 %v11637_v41, %v7350_v19  ;;  %v11743_v38 = vld [vmem:[%s11896_s7] ss:$0 sm:$0xff] }
 0x8ba   : > { %v7136_v30 = vpop.f32.mrf.mxu2  ;;  %v7230_v9 = vpop.f32.mrf.mxu3 }
 0x8bb   : > { %v7226_v52 = vadd.f32 %v7225_v58, %v7136_v30  ;;  %v7575_v54 = vmax.f32 %v7415_v48, 0.0 }
 0x8bd   : > { %v7283_v44 = vpack.c.bf16 %v7226_v52, %v11644_v31  ;;  %v7576_v31 = vmax.f32 %v7416_v25, 0.0 }
 0x8be   : > { %v6993_v16 = vpop.f32.mrf.mxu0  ;;  %v7082_v27 = vpop.f32.mrf.mxu1 }
 0x8bf   : > { %v7351_v17 = vunpack.c.l.bf16 %v7283_v44  ;;  %v7352_v32 = vunpack.c.h.bf16 %v7283_v44  ;;  %v11725_v4 = vadd.f32 %v7082_v27, %v6993_v16 }
 0x8c1   : > { %v7417_v15 = vadd.f32 %v11634_v23, %v7351_v17  ;;  %v7418_v20 = vadd.f32 %v11637_v41, %v7352_v32 }
 0x8c2   : > { %v7139_v0 = vpop.f32.mrf.mxu2  ;;  %v7233_v46 = vpop.f32.mrf.mxu3 }
 0x8c3   : > { %v7229_v24 = vadd.f32 %v7228_v3, %v7139_v0  ;;  %v7577_v62 = vmax.f32 %v7417_v15, 0.0  ;;  %v7578_v13 = vmax.f32 %v7418_v20, 0.0 }
 0x8c5   : > { %v7625_v29 = vpack.c.bf16 %v7577_v62, %v7575_v54  ;;  %v7626_v43 = vpack.c.bf16 %v7578_v13, %v7576_v31  ;;  %v7284_v47 = vpack.c.bf16 %v7229_v24, %v11649_v59 }
 0x8c6   : > { %v6996_v58 = vpop.f32.mrf.mxu0  ;;  %v7085_v60 = vpop.f32.mrf.mxu1 }
 0x8c7   : > { %v11730_v42 = vadd.f32 %v7085_v60, %v6996_v58  ;;  %v7353_v21 = vunpack.c.l.bf16 %v7284_v47  ;;  %v7354_v11 = vunpack.c.h.bf16 %v7284_v47 }
 0x8c9   : > { %7818 = vmatmul.bf16.gmra.mxu0 %v7625_v29  ;;  %7907 = vmatmul.bf16.gmra.mxu1 %v7626_v43  ;;  %v7419_v35 = vadd.f32 %v11634_v23, %v7353_v21  ;;  %v7420_v3 = vadd.f32 %v11637_v41, %v7354_v11 }
 0x8ca   : > { %v7141_v2 = vpop.f32.mrf.mxu2  ;;  %v7235_v8 = vpop.f32.mrf.mxu3 }
 0x8cb   : > { %v7231_v34 = vadd.f32 %v7230_v9, %v7141_v2  ;;  %v7579_v51 = vmax.f32 %v7419_v35, 0.0  ;;  %v7580_v45 = vmax.f32 %v7420_v3, 0.0 }
 0x8cd   : > { %v7285_v33 = vpack.c.bf16 %v7231_v34, %v11656_v10 }
 0x8ce   : > { %v6998_v55 = vpop.f32.mrf.mxu0  ;;  %v7087_v39 = vpop.f32.mrf.mxu1 }
 0x8cf   : > { %v7355_v5 = vunpack.c.l.bf16 %v7285_v33  ;;  %v7356_v59 = vunpack.c.h.bf16 %v7285_v33  ;;  %v11735_v50 = vadd.f32 %v7087_v39, %v6998_v55 }
 0x8d1   : > { %v7421_v56 = vadd.f32 %v11634_v23, %v7355_v5  ;;  %v7422_v7 = vadd.f32 %v11637_v41, %v7356_v59 }
 0x8d2   : > { %v7144_v53 = vpop.f32.mrf.mxu2  ;;  %v7238_v18 = vpop.f32.mrf.mxu3 }
 0x8d3   : > { %v7234_v10 = vadd.f32 %v7233_v46, %v7144_v53  ;;  %v7581_v22 = vmax.f32 %v7421_v56, 0.0  ;;  %v7582_v1 = vmax.f32 %v7422_v7, 0.0 }
 0x8d5   : > { %v7627_v6 = vpack.c.bf16 %v7581_v22, %v7579_v51  ;;  %v7628_v30 = vpack.c.bf16 %v7582_v1, %v7580_v45  ;;  %v7286_v9 = vpack.c.bf16 %v7234_v10, %v11661_v40 }
 0x8d6   : > { %v7784_v19 = vpop.f32.mrf.mxu0  ;;  %v7873_v44 = vpop.f32.mrf.mxu1 }
 0x8d7   : > { %v7785_v52 = vadd.f32 %v11743_v38, %v7784_v19  ;;  %v7357_v48 = vunpack.c.l.bf16 %v7286_v9  ;;  %v7358_v27 = vunpack.c.h.bf16 %v7286_v9 }
 0x8d9   : > { %v7874_v16 = vadd.f32 %v7873_v44, %v7785_v52  ;;  %7823 = vmatmul.bf16.gmra.mxu0 %v7627_v6  ;;  %7912 = vmatmul.bf16.gmra.mxu1 %v7628_v30  ;;  %v7423_v20 = vadd.f32 %v11634_v23, %v7357_v48  ;;  %v7424_v62 = vadd.f32 %v11637_v41, %v7358_v27 }
 0x8da   : > { %v7146_v17 = vpop.f32.mrf.mxu2  ;;  %v7240_v32 = vpop.f32.mrf.mxu3 }
 0x8db   : > { %7953 = vst [vmem:[%s11749_s22] sm:$0xff] %v7874_v16  ;;  %v7236_v25 = vadd.f32 %v7235_v8, %v7146_v17  ;;  %v7583_v58 = vmax.f32 %v7423_v20, 0.0  ;;  %v7584_v21 = vmax.f32 %v7424_v62, 0.0 }
 0x8dd   : > { %v7287_v15 = vpack.c.bf16 %v7236_v25, %v11668_v36 }
 0x8de   : > { %v7786_v40 = vpop.f32.mrf.mxu0  ;;  %v7875_v24 = vpop.f32.mrf.mxu1 }
 0x8df   : > { %v7359_v0 = vunpack.c.l.bf16 %v7287_v15  ;;  %v7360_v46 = vunpack.c.h.bf16 %v7287_v15  ;;  %v7787_v54 = vadd.f32 %v11743_v38, %v7786_v40 }
 0x8e1   : > { %v7876_v31 = vadd.f32 %v7875_v24, %v7787_v54  ;;  %v7425_v13 = vadd.f32 %v11634_v23, %v7359_v0  ;;  %v7426_v29 = vadd.f32 %v11637_v41, %v7360_v46 }
 0x8e2   : > { %v7149_v43 = vpop.f32.mrf.mxu2  ;;  %v7243_v47 = vpop.f32.mrf.mxu3 }
 0x8e3   : > { %7954 = vst [vmem:[%s11749_s22 + $0x8] sm:$0xff] %v7876_v31  ;;  %v7239_v36 = vadd.f32 %v7238_v18, %v7149_v43  ;;  %v7585_v60 = vmax.f32 %v7425_v13, 0.0  ;;  %v7586_v2 = vmax.f32 %v7426_v29, 0.0 }
 0x8e5   : > { %v7629_v8 = vpack.c.bf16 %v7585_v60, %v7583_v58  ;;  %v7630_v11 = vpack.c.bf16 %v7586_v2, %v7584_v21  ;;  %v7288_v34 = vpack.c.bf16 %v7239_v36, %v11673_v63 }
 0x8e6   : > { %v7789_v33 = vpop.f32.mrf.mxu0  ;;  %v7878_v35 = vpop.f32.mrf.mxu1 }
 0x8e7   : > { %v7790_v55 = vadd.f32 %v11743_v38, %v7789_v33  ;;  %v7361_v59 = vunpack.c.l.bf16 %v7288_v34  ;;  %v7362_v56 = vunpack.c.h.bf16 %v7288_v34 }
 0x8e9   : > { %v7879_v5 = vadd.f32 %v7878_v35, %v7790_v55  ;;  %7828 = vmatmul.bf16.gmra.mxu0 %v7629_v8  ;;  %7917 = vmatmul.bf16.gmra.mxu1 %v7630_v11  ;;  %v7427_v51 = vadd.f32 %v11634_v23, %v7361_v59  ;;  %v7428_v1 = vadd.f32 %v11637_v41, %v7362_v56 }
 0x8ea   : > { %v7151_v39 = vpop.f32.mrf.mxu2  ;;  %v7245_v3 = vpop.f32.mrf.mxu3 }
 0x8eb   : > { %7955 = vst [vmem:[%s11749_s22 + $0x10] sm:$0xff] %v7879_v5  ;;  %v7241_v7 = vadd.f32 %v7240_v32, %v7151_v39  ;;  %v7587_v52 = vmax.f32 %v7427_v51, 0.0  ;;  %v7588_v16 = vmax.f32 %v7428_v1, 0.0 }
 0x8ed   : > { %v7289_v53 = vpack.c.bf16 %v7241_v7, %v11680_v12 }
 0x8ee   : > { %v7791_v18 = vpop.f32.mrf.mxu0  ;;  %v7880_v45 = vpop.f32.mrf.mxu1 }
 0x8ef   : > { %v7363_v63 = vunpack.c.l.bf16 %v7289_v53  ;;  %v7364_v10 = vunpack.c.h.bf16 %v7289_v53  ;;  %v7792_v22 = vadd.f32 %v11743_v38, %v7791_v18 }
 0x8f1   : > { %v7881_v6 = vadd.f32 %v7880_v45, %v7792_v22  ;;  %v7429_v30 = vadd.f32 %v11634_v23, %v7363_v63  ;;  %v7430_v9 = vadd.f32 %v11637_v41, %v7364_v10 }
 0x8f2   : > { %v7154_v19 = vpop.f32.mrf.mxu2  ;;  %v7248_v17 = vpop.f32.mrf.mxu3 }
 0x8f3   : > { %7956 = vst [vmem:[%s11749_s22 + $0x18] sm:$0xff] %v7881_v6  ;;  %v7244_v44 = vadd.f32 %v7243_v47, %v7154_v19  ;;  %v7589_v12 = vmax.f32 %v7429_v30, 0.0  ;;  %v7590_v48 = vmax.f32 %v7430_v9, 0.0 }
 0x8f5   : > { %v7631_v32 = vpack.c.bf16 %v7589_v12, %v7587_v52  ;;  %v7632_v27 = vpack.c.bf16 %v7590_v48, %v7588_v16  ;;  %v7290_v25 = vpack.c.bf16 %v7244_v44, %v11685_v14 }
 0x8f6   : > { %v7794_v15 = vpop.f32.mrf.mxu0  ;;  %v7883_v20 = vpop.f32.mrf.mxu1 }
 0x8f7   : > { %v7795_v40 = vadd.f32 %v11743_v38, %v7794_v15  ;;  %v7365_v46 = vunpack.c.l.bf16 %v7290_v25  ;;  %v7366_v24 = vunpack.c.h.bf16 %v7290_v25 }
 0x8f9   : > { %v7884_v0 = vadd.f32 %v7883_v20, %v7795_v40  ;;  %7833 = vmatmul.bf16.gmra.mxu0 %v7631_v32  ;;  %7922 = vmatmul.bf16.gmra.mxu1 %v7632_v27  ;;  %v7431_v43 = vadd.f32 %v11634_v23, %v7365_v46  ;;  %v7432_v60 = vadd.f32 %v11637_v41, %v7366_v24 }
 0x8fa   : > { %v7156_v54 = vpop.f32.mrf.mxu2  ;;  %v7250_v13 = vpop.f32.mrf.mxu3 }
 0x8fb   : > { %7957 = vst [vmem:[%s11749_s22 + $0x20] sm:$0xff] %v7884_v0  ;;  %v7246_v62 = vadd.f32 %v7245_v3, %v7156_v54  ;;  %v7591_v34 = vmax.f32 %v7431_v43, 0.0  ;;  %v7592_v55 = vmax.f32 %v7432_v60, 0.0 }
 0x8fd   : > { %v7291_v31 = vpack.c.bf16 %v7246_v62, %v11692_v61 }
 0x8fe   : > { %v7796_v29 = vpop.f32.mrf.mxu0  ;;  %v7885_v36 = vpop.f32.mrf.mxu1 }
 0x8ff   : > { %v7367_v14 = vunpack.c.l.bf16 %v7291_v31  ;;  %v7368_v47 = vunpack.c.h.bf16 %v7291_v31  ;;  %v7797_v58 = vadd.f32 %v11743_v38, %v7796_v29 }
 0x901   : > { %v7886_v21 = vadd.f32 %v7885_v36, %v7797_v58  ;;  %v7433_v2 = vadd.f32 %v11634_v23, %v7367_v14  ;;  %v7434_v8 = vadd.f32 %v11637_v41, %v7368_v47 }
 0x902   : > { %v7159_v11 = vpop.f32.mrf.mxu2  ;;  %v7253_v53 = vpop.f32.mrf.mxu3 }
 0x903   : > { %7958 = vst [vmem:[%s11749_s22 + $0x28] sm:$0xff] %v7886_v21  ;;  %v7249_v61 = vadd.f32 %v7248_v17, %v7159_v11  ;;  %v7593_v33 = vmax.f32 %v7433_v2, 0.0  ;;  %v7594_v35 = vmax.f32 %v7434_v8, 0.0 }
 0x905   : > { %v7633_v5 = vpack.c.bf16 %v7593_v33, %v7591_v34  ;;  %v7634_v59 = vpack.c.bf16 %v7594_v35, %v7592_v55  ;;  %v7292_v39 = vpack.c.bf16 %v7249_v61, %v11697_v28 }
 0x906   : > { %v7799_v3 = vpop.f32.mrf.mxu0  ;;  %v7888_v7 = vpop.f32.mrf.mxu1 }
 0x907   : > { %v7800_v56 = vadd.f32 %v11743_v38, %v7799_v3  ;;  %v7369_v51 = vunpack.c.l.bf16 %v7292_v39  ;;  %v7370_v10 = vunpack.c.h.bf16 %v7292_v39 }
 0x909   : > { %v7889_v18 = vadd.f32 %v7888_v7, %v7800_v56  ;;  %7838 = vmatmul.bf16.gmra.mxu0 %v7633_v5  ;;  %7927 = vmatmul.bf16.gmra.mxu1 %v7634_v59  ;;  %v7435_v6 = vadd.f32 %v11634_v23, %v7369_v51  ;;  %v7436_v52 = vadd.f32 %v11637_v41, %v7370_v10 }
 0x90a   : > { %v7161_v63 = vpop.f32.mrf.mxu2  ;;  %v7255_v48 = vpop.f32.mrf.mxu3 }
 0x90b   : > { %7959 = vst [vmem:[%s11749_s22 + $0x30] sm:$0xff] %v7889_v18  ;;  %v7251_v22 = vadd.f32 %v7250_v13, %v7161_v63  ;;  %v7595_v32 = vmax.f32 %v7435_v6, 0.0  ;;  %v7596_v25 = vmax.f32 %v7436_v52, 0.0 }
 0x90d   : > { %v7293_v45 = vpack.c.bf16 %v7251_v22, %v11704_v57 }
 0x90e   : > { %v7801_v1 = vpop.f32.mrf.mxu0  ;;  %v7890_v19 = vpop.f32.mrf.mxu1 }
 0x90f   : > { %v7371_v28 = vunpack.c.l.bf16 %v7293_v45  ;;  %v7372_v30 = vunpack.c.h.bf16 %v7293_v45  ;;  %v7802_v9 = vadd.f32 %v11743_v38, %v7801_v1 }
 0x911   : > { %v7891_v44 = vadd.f32 %v7890_v19, %v7802_v9  ;;  %v7437_v12 = vadd.f32 %v11634_v23, %v7371_v28  ;;  %v7438_v16 = vadd.f32 %v11637_v41, %v7372_v30 }
 0x912   : > { %v7164_v17 = vpop.f32.mrf.mxu2  ;;  %v7258_v14 = vpop.f32.mrf.mxu3 }
 0x913   : > { %7960 = vst [vmem:[%s11749_s22 + $0x38] sm:$0xff] %v7891_v44  ;;  %v7254_v57 = vadd.f32 %v7253_v53, %v7164_v17  ;;  %v7597_v27 = vmax.f32 %v7437_v12, 0.0  ;;  %v7598_v15 = vmax.f32 %v7438_v16, 0.0 }
 0x915   : > { %v7635_v40 = vpack.c.bf16 %v7597_v27, %v7595_v32  ;;  %v7636_v20 = vpack.c.bf16 %v7598_v15, %v7596_v25  ;;  %v7294_v0 = vpack.c.bf16 %v7254_v57, %v11709_v49 }
 0x916   : > { %v7804_v46 = vpop.f32.mrf.mxu0  ;;  %v7893_v24 = vpop.f32.mrf.mxu1 }
 0x917   : > { %v7805_v54 = vadd.f32 %v11743_v38, %v7804_v46  ;;  %v7373_v31 = vunpack.c.l.bf16 %v7294_v0  ;;  %v7374_v29 = vunpack.c.h.bf16 %v7294_v0 }
 0x919   : > { %v7894_v62 = vadd.f32 %v7893_v24, %v7805_v54  ;;  %7843 = vmatmul.bf16.gmra.mxu0 %v7635_v40  ;;  %7932 = vmatmul.bf16.gmra.mxu1 %v7636_v20  ;;  %v7439_v36 = vadd.f32 %v11634_v23, %v7373_v31  ;;  %v7440_v8 = vadd.f32 %v11637_v41, %v7374_v29 }
 0x91a   : > { %v7166_v13 = vpop.f32.mrf.mxu2  ;;  %v7260_v56 = vpop.f32.mrf.mxu3 }
 0x91b   : > { %7961 = vst [vmem:[%s11749_s22 + $0x40] sm:$0xff] %v7894_v62  ;;  %v7256_v43 = vadd.f32 %v7255_v48, %v7166_v13  ;;  %v7599_v55 = vmax.f32 %v7439_v36, 0.0  ;;  %v7600_v5 = vmax.f32 %v7440_v8, 0.0 }
 0x91d   : > { %v7295_v47 = vpack.c.bf16 %v7256_v43, %v11715_v26 }
 0x91e   : > { %v7806_v58 = vpop.f32.mrf.mxu0  ;;  %v7895_v2 = vpop.f32.mrf.mxu1 }
 0x91f   : > { %v7375_v49 = vunpack.c.l.bf16 %v7295_v47  ;;  %v7376_v60 = vunpack.c.h.bf16 %v7295_v47  ;;  %v7807_v21 = vadd.f32 %v11743_v38, %v7806_v58 }
 0x921   : > { %v7896_v11 = vadd.f32 %v7895_v2, %v7807_v21  ;;  %v7441_v34 = vadd.f32 %v11634_v23, %v7375_v49  ;;  %v7442_v61 = vadd.f32 %v11637_v41, %v7376_v60 }
 0x922   : > { %v7169_v33 = vpop.f32.mrf.mxu2  ;;  %v7263_v12 = vpop.f32.mrf.mxu3 }
 0x923   : > { %7962 = vst [vmem:[%s11749_s22 + $0x48] sm:$0xff] %v7896_v11  ;;  %v7259_v35 = vadd.f32 %v7258_v14, %v7169_v33  ;;  %v7601_v26 = vmax.f32 %v7441_v34, 0.0  ;;  %v7602_v59 = vmax.f32 %v7442_v61, 0.0 }
 0x925   : > { %v7637_v39 = vpack.c.bf16 %v7601_v26, %v7599_v55  ;;  %v7638_v3 = vpack.c.bf16 %v7602_v59, %v7600_v5  ;;  %v7296_v7 = vpack.c.bf16 %v7259_v35, %v11720_v37 }
 0x926   : > { %v7809_v53 = vpop.f32.mrf.mxu0  ;;  %v7898_v51 = vpop.f32.mrf.mxu1 }
 0x927   : > { %v7810_v18 = vadd.f32 %v11743_v38, %v7809_v53  ;;  %v7377_v10 = vunpack.c.l.bf16 %v7296_v7  ;;  %v7378_v45 = vunpack.c.h.bf16 %v7296_v7 }
 0x929   : > { %v7899_v63 = vadd.f32 %v7898_v51, %v7810_v18  ;;  %7848 = vmatmul.bf16.gmra.mxu0 %v7637_v39  ;;  %7937 = vmatmul.bf16.gmra.mxu1 %v7638_v3  ;;  %v7443_v30 = vadd.f32 %v11634_v23, %v7377_v10  ;;  %v7444_v44 = vadd.f32 %v11637_v41, %v7378_v45 }
 0x92a   : > { %v7171_v22 = vpop.f32.mrf.mxu2  ;;  %v7265_v31 = vpop.f32.mrf.mxu3 }
 0x92b   : > { %7963 = vst [vmem:[%s11749_s22 + $0x50] sm:$0xff] %v7899_v63  ;;  %v7261_v1 = vadd.f32 %v7260_v56, %v7171_v22  ;;  %v7603_v57 = vmax.f32 %v7443_v30, 0.0  ;;  %v7604_v25 = vmax.f32 %v7444_v44, 0.0 }
 0x92d   : > { %v7297_v6 = vpack.c.bf16 %v7261_v1, %v11725_v4 }
 0x92e   : > { %v7811_v28 = vpop.f32.mrf.mxu0  ;;  %v7900_v52 = vpop.f32.mrf.mxu1 }
 0x92f   : > { %v7379_v9 = vunpack.c.l.bf16 %v7297_v6  ;;  %v7380_v37 = vunpack.c.h.bf16 %v7297_v6  ;;  %v7812_v19 = vadd.f32 %v11743_v38, %v7811_v28 }
 0x931   : > { %v7901_v16 = vadd.f32 %v7900_v52, %v7812_v19  ;;  %v7445_v48 = vadd.f32 %v11634_v23, %v7379_v9  ;;  %v7446_v17 = vadd.f32 %v11637_v41, %v7380_v37 }
 0x932   : > { %v7174_v32 = vpop.f32.mrf.mxu2 }
 0x933   : > { %7964 = vst [vmem:[%s11749_s22 + $0x58] sm:$0xff] %v7901_v16  ;;  %v7264_v4 = vadd.f32 %v7263_v12, %v7174_v32  ;;  %v7605_v27 = vmax.f32 %v7445_v48, 0.0  ;;  %v7606_v15 = vmax.f32 %v7446_v17, 0.0 }
 0x935   : > { %v7639_v40 = vpack.c.bf16 %v7605_v27, %v7603_v57  ;;  %v7640_v20 = vpack.c.bf16 %v7606_v15, %v7604_v25  ;;  %v7298_v0 = vpack.c.bf16 %v7264_v4, %v11730_v42 }
 0x936   : > { %v7814_v46 = vpop.f32.mrf.mxu0  ;;  %v7903_v24 = vpop.f32.mrf.mxu1 }
 0x937   : > { %v7815_v54 = vadd.f32 %v11743_v38, %v7814_v46  ;;  %v7381_v13 = vunpack.c.l.bf16 %v7298_v0  ;;  %v7382_v43 = vunpack.c.h.bf16 %v7298_v0 }
 0x939   : > { %v7904_v62 = vadd.f32 %v7903_v24, %v7815_v54  ;;  %7853 = vmatmul.bf16.gmra.mxu0 %v7639_v40  ;;  %7942 = vmatmul.bf16.gmra.mxu1 %v7640_v20  ;;  %v7447_v36 = vadd.f32 %v11634_v23, %v7381_v13  ;;  %v7448_v2 = vadd.f32 %v11637_v41, %v7382_v43 }
 0x93a   : > { %v7176_v29 = vpop.f32.mrf.mxu2 }
 0x93b   : > { %7965 = vst [vmem:[%s11749_s22 + $0x60] sm:$0xff] %v7904_v62  ;;  %v7266_v14 = vadd.f32 %v7265_v31, %v7176_v29  ;;  %v7607_v61 = vmax.f32 %v7447_v36, 0.0 }
 0x93d   : > { %v7299_v47 = vpack.c.bf16 %v7266_v14, %v11735_v50  ;;  %v7608_v50 = vmax.f32 %v7448_v2, 0.0 }
 0x93e   : > { %v7816_v58 = vpop.f32.mrf.mxu0  ;;  %v7905_v21 = vpop.f32.mrf.mxu1 }
 0x93f   : > { %v7383_v42 = vunpack.c.l.bf16 %v7299_v47  ;;  %v7384_v49 = vunpack.c.h.bf16 %v7299_v47  ;;  %v7817_v60 = vadd.f32 %v11743_v38, %v7816_v58 }
 0x941   : > { %v7906_v8 = vadd.f32 %v7905_v21, %v7817_v60  ;;  %v7449_v11 = vadd.f32 %v11634_v23, %v7383_v42  ;;  %v7450_v34 = vadd.f32 %v11637_v41, %v7384_v49 }
 0x943   : > { %7966 = vst [vmem:[%s11749_s22 + $0x68] sm:$0xff] %v7906_v8  ;;  %v7609_v33 = vmax.f32 %v7449_v11, 0.0  ;;  %v7610_v55 = vmax.f32 %v7450_v34, 0.0 }
 0x945   : > { %v7641_v35 = vpack.c.bf16 %v7609_v33, %v7607_v61  ;;  %v7642_v26 = vpack.c.bf16 %v7610_v55, %v7608_v50 }
 0x946   : > { %v7819_v5 = vpop.f32.mrf.mxu0  ;;  %v7908_v39 = vpop.f32.mrf.mxu1 }
 0x947   : > { %v7820_v59 = vadd.f32 %v11743_v38, %v7819_v5 }
 0x949   : > { %v7909_v3 = vadd.f32 %v7908_v39, %v7820_v59  ;;  %7858 = vmatmul.bf16.gmra.mxu0 %v7641_v35  ;;  %7947 = vmatmul.bf16.gmra.mxu1 %v7642_v26 }
 0x94b   : > { %7967 = vst [vmem:[%s11749_s22 + $0x70] sm:$0xff] %v7909_v3 }
 0x94e   : > { %v7821_v23 = vpop.f32.mrf.mxu0  ;;  %v7910_v56 = vpop.f32.mrf.mxu1 }
 0x94f   : > { %v7822_v41 = vadd.f32 %v11743_v38, %v7821_v23 }
 0x951   : > { %v7911_v7 = vadd.f32 %v7910_v56, %v7822_v41 }
 0x953   : > { %7968 = vst [vmem:[%s11749_s22 + $0x78] sm:$0xff] %v7911_v7 }
 0x956   : > { %v7824_v53 = vpop.f32.mrf.mxu0  ;;  %v7913_v51 = vpop.f32.mrf.mxu1 }
 0x957   : > { %v7825_v18 = vadd.f32 %v11743_v38, %v7824_v53 }
 0x959   : > { %v7914_v63 = vadd.f32 %v7913_v51, %v7825_v18 }
 0x95b   : > { %7969 = vst [vmem:[%s11749_s22 + $0x80] sm:$0xff] %v7914_v63 }
 0x95e   : > { %v7826_v10 = vpop.f32.mrf.mxu0  ;;  %v7915_v45 = vpop.f32.mrf.mxu1 }
 0x95f   : > { %v7827_v22 = vadd.f32 %v11743_v38, %v7826_v10 }
 0x961   : > { %v7916_v1 = vadd.f32 %v7915_v45, %v7827_v22 }
 0x963   : > { %7970 = vst [vmem:[%s11749_s22 + $0x88] sm:$0xff] %v7916_v1 }
 0x966   : > { %v7829_v6 = vpop.f32.mrf.mxu0  ;;  %v7918_v30 = vpop.f32.mrf.mxu1 }
 0x967   : > { %v7830_v28 = vadd.f32 %v11743_v38, %v7829_v6 }
 0x969   : > { %v7919_v9 = vadd.f32 %v7918_v30, %v7830_v28 }
 0x96b   : > { %7971 = vst [vmem:[%s11749_s22 + $0x90] sm:$0xff] %v7919_v9 }
 0x96e   : > { %v7831_v37 = vpop.f32.mrf.mxu0  ;;  %v7920_v52 = vpop.f32.mrf.mxu1 }
 0x96f   : > { %v7832_v19 = vadd.f32 %v11743_v38, %v7831_v37 }
 0x971   : > { %v7921_v44 = vadd.f32 %v7920_v52, %v7832_v19 }
 0x973   : > { %7972 = vst [vmem:[%s11749_s22 + $0x98] sm:$0xff] %v7921_v44 }
 0x976   : > { %v7834_v12 = vpop.f32.mrf.mxu0  ;;  %v7923_v48 = vpop.f32.mrf.mxu1 }
 0x977   : > { %v7835_v16 = vadd.f32 %v11743_v38, %v7834_v12 }
 0x979   : > { %v7924_v17 = vadd.f32 %v7923_v48, %v7835_v16 }
 0x97b   : > { %7973 = vst [vmem:[%s11749_s22 + $0xa0] sm:$0xff] %v7924_v17 }
 0x97e   : > { %v7836_v32 = vpop.f32.mrf.mxu0  ;;  %v7925_v4 = vpop.f32.mrf.mxu1 }
 0x97f   : > { %v7837_v57 = vadd.f32 %v11743_v38, %v7836_v32 }
 0x981   : > { %v7926_v27 = vadd.f32 %v7925_v4, %v7837_v57 }
 0x983   : > { %7974 = vst [vmem:[%s11749_s22 + $0xa8] sm:$0xff] %v7926_v27 }
 0x986   : > { %v7839_v25 = vpop.f32.mrf.mxu0  ;;  %v7928_v40 = vpop.f32.mrf.mxu1 }
 0x987   : > { %v7840_v15 = vadd.f32 %v11743_v38, %v7839_v25 }
 0x989   : > { %v7929_v20 = vadd.f32 %v7928_v40, %v7840_v15 }
 0x98b   : > { %7975 = vst [vmem:[%s11749_s22 + $0xb0] sm:$0xff] %v7929_v20 }
 0x98e   : > { %v7841_v0 = vpop.f32.mrf.mxu0  ;;  %v7930_v54 = vpop.f32.mrf.mxu1 }
 0x98f   : > { %v7842_v46 = vadd.f32 %v11743_v38, %v7841_v0 }
 0x991   : > { %v7931_v24 = vadd.f32 %v7930_v54, %v7842_v46 }
 0x993   : > { %7976 = vst [vmem:[%s11749_s22 + $0xb8] sm:$0xff] %v7931_v24 }
 0x996   : > { %v7844_v62 = vpop.f32.mrf.mxu0  ;;  %v7933_v13 = vpop.f32.mrf.mxu1 }
 0x997   : > { %v7845_v31 = vadd.f32 %v11743_v38, %v7844_v62 }
 0x999   : > { %v7934_v29 = vadd.f32 %v7933_v13, %v7845_v31 }
 0x99b   : > { %7977 = vst [vmem:[%s11749_s22 + $0xc0] sm:$0xff] %v7934_v29 }
 0x99e   : > { %v7846_v43 = vpop.f32.mrf.mxu0  ;;  %v7935_v47 = vpop.f32.mrf.mxu1 }
 0x99f   : > { %v7847_v14 = vadd.f32 %v11743_v38, %v7846_v43 }
 0x9a1   : > { %v7936_v58 = vadd.f32 %v7935_v47, %v7847_v14 }
 0x9a3   : > { %7978 = vst [vmem:[%s11749_s22 + $0xc8] sm:$0xff] %v7936_v58 }
 0x9a6   : > { %v7849_v36 = vpop.f32.mrf.mxu0  ;;  %v7938_v49 = vpop.f32.mrf.mxu1 }
 0x9a7   : > { %v7850_v42 = vadd.f32 %v11743_v38, %v7849_v36 }
 0x9a9   : > { %v7939_v60 = vadd.f32 %v7938_v49, %v7850_v42 }
 0x9ab   : > { %7979 = vst [vmem:[%s11749_s22 + $0xd0] sm:$0xff] %v7939_v60 }
 0x9ae   : > { %v7851_v21 = vpop.f32.mrf.mxu0  ;;  %v7940_v8 = vpop.f32.mrf.mxu1 }
 0x9af   : > { %v7852_v2 = vadd.f32 %v11743_v38, %v7851_v21 }
 0x9b1   : > { %v7941_v11 = vadd.f32 %v7940_v8, %v7852_v2 }
 0x9b3   : > { %7980 = vst [vmem:[%s11749_s22 + $0xd8] sm:$0xff] %v7941_v11 }
 0x9b6   : > { %v7854_v34 = vpop.f32.mrf.mxu0  ;;  %v7943_v33 = vpop.f32.mrf.mxu1 }
 0x9b7   : > { %v7855_v61 = vadd.f32 %v11743_v38, %v7854_v34 }
 0x9b9   : > { %v7944_v50 = vadd.f32 %v7943_v33, %v7855_v61 }
 0x9bb   : > { %7981 = vst [vmem:[%s11749_s22 + $0xe0] sm:$0xff] %v7944_v50 }
 0x9be   : > { %v7856_v55 = vpop.f32.mrf.mxu0  ;;  %v7945_v26 = vpop.f32.mrf.mxu1 }
 0x9bf   : > { %v7857_v35 = vadd.f32 %v11743_v38, %v7856_v55 }
 0x9c1   : > { %v7946_v5 = vadd.f32 %v7945_v26, %v7857_v35 }
 0x9c3   : > { %7982 = vst [vmem:[%s11749_s22 + $0xe8] sm:$0xff] %v7946_v5 }
 0x9c6   : > { %v7859_v59 = vpop.f32.mrf.mxu0  ;;  %v7948_v3 = vpop.f32.mrf.mxu1 }
 0x9c7   : > { %v7860_v39 = vadd.f32 %v11743_v38, %v7859_v59 }
 0x9c9   : > { %v7949_v23 = vadd.f32 %v7948_v3, %v7860_v39 }
 0x9cb   : > { %7983 = vst [vmem:[%s11749_s22 + $0xf0] sm:$0xff] %v7949_v23 }
 0x9ce   : > { %v7861_v41 = vpop.f32.mrf.mxu0  ;;  %v7950_v7 = vpop.f32.mrf.mxu1 }
 0x9cf   : > { %v7862_v56 = vadd.f32 %v11743_v38, %v7861_v41 }
 0x9d1   : > { %v7951_v53 = vadd.f32 %v7950_v7, %v7862_v56 }
 0x9d3   : > { %7984 = vst [vmem:[%s11749_s22 + $0xf8] sm:$0xff] %v7951_v53 }
 0x9d4   : > { %9483 = shalt.err (!%p9480_p8)
}
 0x9d5   : > { %s9527_s18 = smov 128   ;;  %s9528_s22 = smov 8  }
 0x9d6   : > { %9374 = dma.vmem_to_hbm [thread:$0]  (%p9612_p5), %s7999_s10, 4096, %s8001_s12, %s7986_s13, %s9527_s18, %s9527_s18, %s9528_s22  }
 0x9d7 PF: > { %p9386_p9 = scmp.ge.s32.totalorder %s9522_s30, 2  ;;  %s8015_s25 = sand.u32 1, %s9510_s27  }
 0x9d8   : > { %s8016_s26 = scalar_lea.sflag [#allocation4], %s8015_s25 }
 0x9d9   : > { %p9381_p10 = pnand %p9386_p9, %p9616_p6 }
 0x9db   : > { %p9382_p11 = pneg %p9381_p10 }
 0x9dd   : > { %9505 = dma.done.wait (%p9382_p11), %s8016_s26, 4096  }
 0x9de   : > { %9507 = vsyncadd (%p9382_p11), %s8016_s26, 4294963200  ;;  %p19_p12 = scmp.ge.s32.totalorder %s9599_s11, 4   ;;  %s12038_s27 = smov %s9514_s28 }
 0x9df   : > { %s12039_s28 = smov %s9518_s29  ;;  %s12040_s29 = smov %s9610_s14 }
 0x9e0   : > { %s12041_s30 = smov %s9599_s11  ;;  %21 = sbr.rel (!%p19_p12) target bundleno = 4 (0x4), region = 104 }
 0x9e5   :  { %8022 = vsyncpa [#allocation3], 1 }
 0x9e6   :  { %8024 = vsyncpa [#allocation3 + $0x1], 1 }
 0x9e7   :  { %8025 = vsyncpa [#allocation4], 1 }
 0x9e8   :  { %8027 = vsyncpa [#allocation4 + $0x1], 1 }

</bundles_post_ra>
